<compile_context>
chip_gen: v5e
topology: v5e:2x2
jax: 0.10.0
libtpu: 0.0.40
codegen_flags: <defaults>
</compile_context>

<pallas_src>
import functools

import jax
import jax.numpy as jnp
from jax import lax
from jax.experimental import pallas as pl
from jax.experimental.pallas import tpu as pltpu


def _round_up(x, m):
    return (x + m - 1) // m * m


# --------------------------------------------------------------------------- #
# Per-generation tuning + pltpu.roll capability/direction probe.              #
# --------------------------------------------------------------------------- #

@functools.lru_cache(maxsize=None)
def _device_kind():
    try:
        return jax.devices()[0].device_kind.lower()
    except Exception:
        return ""


def _tuning(cout):
    kind = _device_kind()
    # 2-TC parts (v7x, v4, v5p): one cout tile per core via the "parallel" axis.
    # Single-TC v5e/v6e: one full-width tile so x is DMA'd / pooled once per image.
    two_cores = ("v7" in kind) or ("v4" in kind) or ("v5p" in kind)
    if two_cores and cout % 256 == 0 and cout >= 512:
        tc = cout // 2
    else:
        tc = cout
    if "v7" in kind:
        vmem = 44 * 1024 * 1024          # 64 MiB physical VMEM per core on v7x
    elif ("v5" in kind) or ("v6" in kind) or ("v4" in kind):
        vmem = 96 * 1024 * 1024          # 128 MiB physical on v4/v5e/v5p/v6e
    else:
        vmem = 48 * 1024 * 1024
    return tc, vmem


@functools.lru_cache(maxsize=None)
def _roll_mode():
    """Probe pltpu.roll along the sublane axis on this backend.

    Returns "jnp" if pltpu.roll(x, +1) moves data toward higher indices (same
    convention as jnp.roll), "flipped" if the opposite, or None if sublane roll
    does not lower here (the kernel then falls back to shifted stores).
    """
    try:
        def k(x_ref, o_ref):
            o_ref[...] = pltpu.roll(x_ref[...], 1, axis=0)

        x = jnp.tile(jnp.arange(8, dtype=jnp.float32)[:, None], (1, 128))
        y = jax.device_get(
            pl.pallas_call(k, out_shape=jax.ShapeDtypeStruct((8, 128),
                                                             jnp.float32))(x))
        if float(y[1, 0]) == 0.0 and float(y[0, 0]) == 7.0:
            return "jnp"
        if float(y[0, 0]) == 1.0 and float(y[7, 0]) == 0.0:
            return "flipped"
        return None
    except Exception:
        return None


# --------------------------------------------------------------------------- #
# Fused kernel: maxpool 2x2 + 3x3 conv (pad 1) + BN partial statistics.       #
# --------------------------------------------------------------------------- #

def _fused_pool_conv_kernel(x_ref, w_ref, out_ref, stats_ref, b3_ref, *,
                            cin, ho, wo, wop, roll_mode):
    """One image (inner 'arbitrary' batch axis) x one cout tile.

    x_ref    : (ho, 2, wo, 2*cin)   f32   reshaped NHWC rows of one image
    w_ref    : (3, 3*cin, tc)       bf16  kh-major, (kw, ci)-folded conv weights
    out_ref  : (1, ho, wo, tc)      bf16  conv output tile (pre-BN)
    stats_ref: (16, tc)             f32   rows 0:8 = sum partials, 8:16 = sum-sq
    b3_ref   : (ho+2, wop, 3*cin)   bf16  scratch: padded, kw-folded patch matrix
    """
    n = pl.program_id(1)
    tc = w_ref.shape[-1]
    bf16 = jnp.bfloat16

    # -- 0. One-time init per batch sweep (scratch persists across grid steps).
    #    Pad rows (r = 0, ho+1) and junk columns (w in [wo, wop)) are never
    #    written afterwards and the interior is fully overwritten every step,
    #    so the zeros persist -> no per-step memset on the store slot.
    @pl.when(n == 0)
    def _():
        b3_ref[...] = jnp.zeros_like(b3_ref)
        stats_ref[...] = jnp.zeros_like(stats_ref)

    # -- 1. MaxPool 2x2 / stride 2 (VPU, f32; all slices lane/plane aligned).
    top = x_ref[:, 0, :, :]                                   # rows 2h
    bot = x_ref[:, 1, :, :]                                   # rows 2h+1
    m = jnp.maximum(top, bot)                                 # (ho, wo, 2*cin)
    pooled = jnp.maximum(m[:, :, :cin], m[:, :, cin:])        # (ho, wo, cin) f32

    # -- 2. kw-folded, zero-padded patch matrix (bf16 to feed the MXU):
    #    b3[r, w, kw*cin + ci] == padded_pool[r, w + kw, ci]
    b3_ref[1:ho + 1, 0:wo, cin:2 * cin] = pooled.astype(bf16)            # kw = 1
    if roll_mode is not None:
        # w-shifts on the XLU (pltpu.roll) + a VPU select for the pad column,
        # so all three patch stores are sublane-offset-0 (unmasked vst).
        s_hi = 1 if roll_mode == "jnp" else wo - 1    # out[w] = in[w-1]
        s_lo = wo - 1 if roll_mode == "jnp" else 1    # out[w] = in[w+1]
        col = lax.broadcasted_iota(jnp.int32, (ho, wo, cin), 1)
        right = jnp.where(col >= 1, pltpu.roll(pooled, s_hi, axis=1), 0.0)
        left = jnp.where(col <= wo - 2, pltpu.roll(pooled, s_lo, axis=1), 0.0)
        b3_ref[1:ho + 1, 0:wo, 0:cin] = right.astype(bf16)               # kw = 0
        b3_ref[1:ho + 1, 0:wo, 2 * cin:3 * cin] = left.astype(bf16)      # kw = 2
    else:
        # Fallback (roll unsupported here): sublane-misaligned shifted stores.
        b3_ref[1:ho + 1, 1:wo, 0:cin] = pooled[:, 0:wo - 1, :].astype(bf16)
        b3_ref[1:ho + 1, 0:wo - 1, 2 * cin:3 * cin] = pooled[:, 1:wo, :].astype(bf16)

    # -- 3. conv as 3 bf16 MXU matmuls with K = 3*cin (kw folded into K).
    #    wop % 16 == 0 keeps the bf16 leading-dim merge / row slices aligned.
    # TODO(synk): for small ho*wo, fold a batch sub-block into M to better feed
    # the 256-row MXU (conditional; VGG-sized spatial is already fine).
    acc = None
    for kh in range(3):
        lhs = b3_ref[kh:kh + ho, :, :].reshape(ho * wop, 3 * cin)
        d = jnp.dot(lhs, w_ref[kh], preferred_element_type=jnp.float32)
        acc = d if acc is None else acc + d                   # (ho*wop, tc) f32

    out_ref[0, :, :, :] = acc.reshape(ho, wop, tc)[:, :wo, :].astype(out_ref.dtype)

    # -- 4. BN batch-statistic partials.  Rows with w >= wo are exactly zero
    #    (zero patch columns, no bias), so the flat sums over all ho*wop rows
    #    equal the exact per-channel sums over (h, w).  Accumulated as 8-row
    #    f32 partials -> full-vreg RMW on the resident stats block.
    stats_ref[0:8, :] += jnp.sum(acc.reshape(-1, 8, tc), axis=0)
    stats_ref[8:16, :] += jnp.sum((acc * acc).reshape(-1, 8, tc), axis=0)


# --------------------------------------------------------------------------- #
# Wrapper                                                                     #
# --------------------------------------------------------------------------- #

@functools.partial(jax.jit, static_argnames=("tc", "vmem_limit", "roll_mode"))
def _forward_impl(x_nchw, conv_w, gamma, beta, *, tc, vmem_limit, roll_mode):
    n, cin, h, w = x_nchw.shape
    cout = conv_w.shape[0]
    ho, wo = h // 2, w // 2
    wop = _round_up(wo, 16)                 # bf16 sublane-tile aligned
    ct = cout // tc

    # NCHW -> NHWC (one XLA relayout), then a metadata-only reshape exposing the
    # 2x2 pooling window as a (row-pair, lane-pair).
    # TODO(synk): fold this boundary relayout into the kernel's index map.
    x_nhwc = jnp.transpose(x_nchw, (0, 2, 3, 1))
    xr = x_nhwc.reshape(n * ho, 2, wo, 2 * cin)

    # OIHW -> (kh, kw*cin + ci, co), pre-cast to bf16 for the MXU.
    w3 = jnp.transpose(conv_w, (2, 3, 1, 0)).reshape(3, 3 * cin, cout)
    w3 = w3.astype(jnp.bfloat16)

    flops = 2 * n * ho * wo * 9 * cin * cout
    bytes_accessed = (4 * xr.size * ct + 2 * w3.size
                      + 2 * n * ho * wo * cout + 4 * 16 * cout)

    conv_out, stats = pl.pallas_call(
        functools.partial(_fused_pool_conv_kernel, cin=cin, ho=ho, wo=wo,
                          wop=wop, roll_mode=roll_mode),
        grid=(ct, n),
        in_specs=[
            pl.BlockSpec((ho, 2, wo, 2 * cin), lambda c, i: (i, 0, 0, 0)),
            pl.BlockSpec((3, 3 * cin, tc), lambda c, i: (0, 0, c)),
        ],
        out_specs=[
            pl.BlockSpec((1, ho, wo, tc), lambda c, i: (i, 0, 0, c)),
            pl.BlockSpec((16, tc), lambda c, i: (0, c)),
        ],
        out_shape=[
            jax.ShapeDtypeStruct((n, ho, wo, cout), jnp.bfloat16),
            jax.ShapeDtypeStruct((16, cout), jnp.float32),
        ],
        scratch_shapes=[pltpu.VMEM((ho + 2, wop, 3 * cin), jnp.bfloat16)],
        compiler_params=pltpu.CompilerParams(
            dimension_semantics=("parallel", "arbitrary"),
            vmem_limit_bytes=vmem_limit),
        cost_estimate=pl.CostEstimate(flops=flops, transcendentals=0,
                                      bytes_accessed=bytes_accessed),
    )(xr, w3)
    # TODO(synk): for v7x at large spatial sizes, add an ho (row-strip) grid
    # axis to shrink the per-step input block within the 64 MiB VMEM budget.

    # Fold BN batch stats + affine into a per-channel scale/shift; XLA fuses it
    # with the NHWC -> NCHW relayout as a single elementwise epilogue.
    count = n * ho * wo
    mean = jnp.sum(stats[0:8], axis=0) / count
    var = jnp.sum(stats[8:16], axis=0) / count - mean * mean   # biased (training)
    scale = gamma * lax.rsqrt(var + 1e-5)
    shift = beta - mean * scale
    y = conv_out.astype(jnp.float32) * scale + shift
    # TODO(synk): BatchNorm running_mean/running_var momentum buffer updates are
    # not modeled; they do not affect the returned tensor.
    return jnp.transpose(y, (0, 3, 1, 2))                      # NHWC -> NCHW


def forward(x_nchw, conv_w, conv_b, gamma, beta):
    """MaxPool2d(2,2) -> Conv2d(256,512,3x3,pad 1) -> BatchNorm2d (training).

    conv_b is dropped: training-mode BN subtracts the batch mean, so a
    per-channel bias cancels exactly in the returned tensor.
    """
    del conv_b
    tc, vmem_limit = _tuning(conv_w.shape[0])
    return _forward_impl(x_nchw, conv_w, gamma, beta,
                         tc=tc, vmem_limit=vmem_limit, roll_mode=_roll_mode())


# --------------------------------------------------------------------------- #
# Reference & test                                                            #
# --------------------------------------------------------------------------- #

def _reference(x, conv_w, conv_b, gamma, beta):
    xp = lax.reduce_window(x, -jnp.inf, lax.max,
                           (1, 1, 2, 2), (1, 1, 2, 2), "VALID")
    y = lax.conv_general_dilated(xp, conv_w, (1, 1), ((1, 1), (1, 1)),
                                 dimension_numbers=("NCHW", "OIHW", "NCHW"))
    y = y + conv_b[None, :, None, None]
    mean = jnp.mean(y, axis=(0, 2, 3), keepdims=True)
    var = jnp.mean((y - mean) ** 2, axis=(0, 2, 3), keepdims=True)
    return ((y - mean) * lax.rsqrt(var + 1e-5) * gamma[None, :, None, None]
            + beta[None, :, None, None])


if __name__ == "__main__":
    key = jax.random.PRNGKey(0)
    k1, k2, k3 = jax.random.split(key, 3)

    # Channel counts fixed by the module (256 -> 512); spatial/batch kept small.
    N, CIN, H, W = 2, 256, 16, 16
    COUT = 512

    x = jax.random.normal(k1, (N, CIN, H, W), jnp.float32)
    conv_w = 0.05 * jax.random.normal(k2, (COUT, CIN, 3, 3), jnp.float32)
    conv_b = 0.05 * jax.random.normal(k3, (COUT,), jnp.float32)
    gamma = jnp.ones((COUT,), jnp.float32)   # PyTorch BatchNorm2d affine default
    beta = jnp.zeros((COUT,), jnp.float32)

    out = jax.block_until_ready(forward(x, conv_w, conv_b, gamma, beta))
    ref = _reference(x, conv_w, conv_b, gamma, beta)

    assert out.shape == (N, COUT, H // 2, W // 2), out.shape
    err = float(jnp.max(jnp.abs(out - ref)))
    # bf16 MXU inputs + bf16 conv_out intermediate vs. an f32 reference.
    assert err < 5e-2, f"max abs err {err}"
    print("KERNEL_OK")
</pallas_src>

<mosaic_0001>
module attributes {stable_mosaic.version = 11 : i64} {
  func.func @k(%arg0: memref<8x128xf32, #tpu.memory_space<vmem>>, %arg1: memref<8x128xf32, #tpu.memory_space<vmem>>) attributes {dimension_semantics = [], scalar_prefetch = 0 : i64, scratch_operands = 0 : i64, tpu.core_type = #tpu.core_type<tc>} {
    %c0 = arith.constant 0 : index
    %c0_0 = arith.constant 0 : index
    %0 = vector.load %arg0[%c0, %c0_0] : memref<8x128xf32, #tpu.memory_space<vmem>>, vector<8x128xf32>
    %c1_i32 = arith.constant 1 : i32
    %1 = tpu.dynamic_rotate %0 by %c1_i32 dim 0 : vector<8x128xf32>, i32 -> vector<8x128xf32>
    %c0_1 = arith.constant 0 : index
    %c0_2 = arith.constant 0 : index
    %2 = vector.load %arg1[%c0_1, %c0_2] : memref<8x128xf32, #tpu.memory_space<vmem>>, vector<8x128xf32>
    tpu.vector_store %arg1[%c0_1, %c0_2], %1 {strides = array<i32>} : memref<8x128xf32, #tpu.memory_space<vmem>>, vector<8x128xf32>,
    return
  }
}

module attributes {stable_mosaic.version = 11 : i64} {
  func.func @_fused_pool_conv_kernel(%arg0: i32, %arg1: i32, %arg2: memref<8x2x8x512xf32, #tpu.memory_space<vmem>>, %arg3: memref<3x768x512xbf16, #tpu.memory_space<vmem>>, %arg4: memref<1x8x8x512xbf16, #tpu.memory_space<vmem>>, %arg5: memref<16x512xf32, #tpu.memory_space<vmem>>, %arg6: memref<10x16x768xbf16, #tpu.memory_space<vmem>>) attributes {dimension_semantics = [#tpu.dimension_semantics<parallel>, #tpu.dimension_semantics<arbitrary>], iteration_bounds = array<i64: 1, 2>, scalar_prefetch = 0 : i64, scratch_operands = 1 : i64, tpu.core_type = #tpu.core_type<tc>, window_params = [{transform_indices = @transform_0, window_bounds = array<i64: 8, 2, 8, 512>}, {transform_indices = @transform_1, window_bounds = array<i64: 3, 768, 512>}, {transform_indices = @transform_2, window_bounds = array<i64: 1, 8, 8, 512>}, {transform_indices = @transform_3, window_bounds = array<i64: 16, 512>}]} {
    %c0_i32 = arith.constant 0 : i32
    %0 = arith.cmpi eq, %arg1, %c0_i32 : i32
    %1 = arith.extui %0 : i1 to i32
    %c0_i32_0 = arith.constant 0 : i32
    %2 = arith.cmpi ne, %1, %c0_i32_0 : i32
    scf.if %2 {
      %cst_46 = arith.constant 0.000000e+00 : bf16
      %53 = vector.broadcast %cst_46 : bf16 to vector<10x16x768xbf16>
      %c0_47 = arith.constant 0 : index
      %c0_48 = arith.constant 0 : index
      %c0_49 = arith.constant 0 : index
      %54 = vector.load %arg6[%c0_47, %c0_48, %c0_49] : memref<10x16x768xbf16, #tpu.memory_space<vmem>>, vector<10x16x768xbf16>
      tpu.vector_store %arg6[%c0_47, %c0_48, %c0_49], %53 {strides = array<i32>} : memref<10x16x768xbf16, #tpu.memory_space<vmem>>, vector<10x16x768xbf16>,
      %cst_50 = arith.constant 0.000000e+00 : f32
      %55 = vector.broadcast %cst_50 : f32 to vector<16x512xf32>
      %c0_51 = arith.constant 0 : index
      %c0_52 = arith.constant 0 : index
      %56 = vector.load %arg5[%c0_51, %c0_52] : memref<16x512xf32, #tpu.memory_space<vmem>>, vector<16x512xf32>
      tpu.vector_store %arg5[%c0_51, %c0_52], %55 {strides = array<i32>} : memref<16x512xf32, #tpu.memory_space<vmem>>, vector<16x512xf32>,
    } else {
    }
    %c0 = arith.constant 0 : index
    %c0_1 = arith.constant 0 : index
    %c0_2 = arith.constant 0 : index
    %c0_3 = arith.constant 0 : index
    %3 = vector.load %arg2[%c0, %c0_1, %c0_2, %c0_3] : memref<8x2x8x512xf32, #tpu.memory_space<vmem>>, vector<8x1x8x512xf32>
    %4 = vector.shape_cast %3 : vector<8x1x8x512xf32> to vector<8x8x512xf32>
    %c0_4 = arith.constant 0 : index
    %c1 = arith.constant 1 : index
    %c0_5 = arith.constant 0 : index
    %c0_6 = arith.constant 0 : index
    %5 = vector.load %arg2[%c0_4, %c1, %c0_5, %c0_6] : memref<8x2x8x512xf32, #tpu.memory_space<vmem>>, vector<8x1x8x512xf32>
    %6 = vector.shape_cast %5 : vector<8x1x8x512xf32> to vector<8x8x512xf32>
    %7 = arith.maximumf %4, %6 : vector<8x8x512xf32>
    %8 = vector.extract_strided_slice %7 {offsets = [0, 0, 0], sizes = [8, 8, 256], strides = [1, 1, 1]} : vector<8x8x512xf32> to vector<8x8x256xf32>
    %9 = vector.extract_strided_slice %7 {offsets = [0, 0, 256], sizes = [8, 8, 256], strides = [1, 1, 1]} : vector<8x8x512xf32> to vector<8x8x256xf32>
    %10 = arith.maximumf %8, %9 : vector<8x8x256xf32>
    %11 = arith.truncf %10 : vector<8x8x256xf32> to vector<8x8x256xbf16>
    %c1_7 = arith.constant 1 : index
    %c0_8 = arith.constant 0 : index
    %c256 = arith.constant 256 : index
    %12 = vector.load %arg6[%c1_7, %c0_8, %c256] : memref<10x16x768xbf16, #tpu.memory_space<vmem>>, vector<8x8x256xbf16>
    tpu.vector_store %arg6[%c1_7, %c0_8, %c256], %11 {strides = array<i32>} : memref<10x16x768xbf16, #tpu.memory_space<vmem>>, vector<8x8x256xbf16>,
    %13 = vector.extract_strided_slice %10 {offsets = [0, 0, 0], sizes = [8, 7, 256], strides = [1, 1, 1]} : vector<8x8x256xf32> to vector<8x7x256xf32>
    %14 = arith.truncf %13 : vector<8x7x256xf32> to vector<8x7x256xbf16>
    %c1_9 = arith.constant 1 : index
    %c1_10 = arith.constant 1 : index
    %c0_11 = arith.constant 0 : index
    %15 = vector.load %arg6[%c1_9, %c1_10, %c0_11] : memref<10x16x768xbf16, #tpu.memory_space<vmem>>, vector<8x7x256xbf16>
    tpu.vector_store %arg6[%c1_9, %c1_10, %c0_11], %14 {strides = array<i32>} : memref<10x16x768xbf16, #tpu.memory_space<vmem>>, vector<8x7x256xbf16>,
    %16 = vector.extract_strided_slice %10 {offsets = [0, 1, 0], sizes = [8, 7, 256], strides = [1, 1, 1]} : vector<8x8x256xf32> to vector<8x7x256xf32>
    %17 = arith.truncf %16 : vector<8x7x256xf32> to vector<8x7x256xbf16>
    %c1_12 = arith.constant 1 : index
    %c0_13 = arith.constant 0 : index
    %c512 = arith.constant 512 : index
    %18 = vector.load %arg6[%c1_12, %c0_13, %c512] : memref<10x16x768xbf16, #tpu.memory_space<vmem>>, vector<8x7x256xbf16>
    tpu.vector_store %arg6[%c1_12, %c0_13, %c512], %17 {strides = array<i32>} : memref<10x16x768xbf16, #tpu.memory_space<vmem>>, vector<8x7x256xbf16>,
    %c0_14 = arith.constant 0 : index
    %c0_15 = arith.constant 0 : index
    %c0_16 = arith.constant 0 : index
    %19 = vector.load %arg6[%c0_14, %c0_15, %c0_16] : memref<10x16x768xbf16, #tpu.memory_space<vmem>>, vector<8x16x768xbf16>
    %20 = vector.shape_cast %19 : vector<8x16x768xbf16> to vector<128x768xbf16>
    %c0_17 = arith.constant 0 : index
    %c0_18 = arith.constant 0 : index
    %c0_19 = arith.constant 0 : index
    %21 = vector.load %arg3[%c0_17, %c0_18, %c0_19] : memref<3x768x512xbf16, #tpu.memory_space<vmem>>, vector<1x768x512xbf16>
    %22 = vector.shape_cast %21 : vector<1x768x512xbf16> to vector<768x512xbf16>
    %cst = arith.constant dense<0.000000e+00> : vector<128x512xf32>
    %23 = tpu.matmul %20, %22, %cst {dimension_numbers = #tpu.dot_dimension_numbers<[1], [0], [0], [1], [0, 0, 1, 1], [], []>} : vector<128x768xbf16>, vector<768x512xbf16>, vector<128x512xf32> -> vector<128x512xf32>
    %c1_20 = arith.constant 1 : index
    %c0_21 = arith.constant 0 : index
    %c0_22 = arith.constant 0 : index
    %24 = vector.load %arg6[%c1_20, %c0_21, %c0_22] : memref<10x16x768xbf16, #tpu.memory_space<vmem>>, vector<8x16x768xbf16>
    %25 = vector.shape_cast %24 : vector<8x16x768xbf16> to vector<128x768xbf16>
    %c1_23 = arith.constant 1 : index
    %c0_24 = arith.constant 0 : index
    %c0_25 = arith.constant 0 : index
    %26 = vector.load %arg3[%c1_23, %c0_24, %c0_25] : memref<3x768x512xbf16, #tpu.memory_space<vmem>>, vector<1x768x512xbf16>
    %27 = vector.shape_cast %26 : vector<1x768x512xbf16> to vector<768x512xbf16>
    %cst_26 = arith.constant dense<0.000000e+00> : vector<128x512xf32>
    %28 = tpu.matmul %25, %27, %cst_26 {dimension_numbers = #tpu.dot_dimension_numbers<[1], [0], [0], [1], [0, 0, 1, 1], [], []>} : vector<128x768xbf16>, vector<768x512xbf16>, vector<128x512xf32> -> vector<128x512xf32>
    %29 = arith.addf %23, %28 : vector<128x512xf32>
    %c2 = arith.constant 2 : index
    %c0_27 = arith.constant 0 : index
    %c0_28 = arith.constant 0 : index
    %30 = vector.load %arg6[%c2, %c0_27, %c0_28] : memref<10x16x768xbf16, #tpu.memory_space<vmem>>, vector<8x16x768xbf16>
    %31 = vector.shape_cast %30 : vector<8x16x768xbf16> to vector<128x768xbf16>
    %c2_29 = arith.constant 2 : index
    %c0_30 = arith.constant 0 : index
    %c0_31 = arith.constant 0 : index
    %32 = vector.load %arg3[%c2_29, %c0_30, %c0_31] : memref<3x768x512xbf16, #tpu.memory_space<vmem>>, vector<1x768x512xbf16>
    %33 = vector.shape_cast %32 : vector<1x768x512xbf16> to vector<768x512xbf16>
    %cst_32 = arith.constant dense<0.000000e+00> : vector<128x512xf32>
    %34 = tpu.matmul %31, %33, %cst_32 {dimension_numbers = #tpu.dot_dimension_numbers<[1], [0], [0], [1], [0, 0, 1, 1], [], []>} : vector<128x768xbf16>, vector<768x512xbf16>, vector<128x512xf32> -> vector<128x512xf32>
    %35 = arith.addf %29, %34 : vector<128x512xf32>
    %36 = vector.shape_cast %35 : vector<128x512xf32> to vector<8x16x512xf32>
    %37 = vector.extract_strided_slice %36 {offsets = [0, 0, 0], sizes = [8, 8, 512], strides = [1, 1, 1]} : vector<8x16x512xf32> to vector<8x8x512xf32>
    %38 = arith.truncf %37 : vector<8x8x512xf32> to vector<8x8x512xbf16>
    %c0_33 = arith.constant 0 : index
    %c0_34 = arith.constant 0 : index
    %c0_35 = arith.constant 0 : index
    %c0_36 = arith.constant 0 : index
    %39 = vector.load %arg4[%c0_33, %c0_34, %c0_35, %c0_36] : memref<1x8x8x512xbf16, #tpu.memory_space<vmem>>, vector<1x8x8x512xbf16>
    %40 = vector.shape_cast %39 : vector<1x8x8x512xbf16> to vector<8x8x512xbf16>
    %41 = vector.shape_cast %38 : vector<8x8x512xbf16> to vector<1x8x8x512xbf16>
    tpu.vector_store %arg4[%c0_33, %c0_34, %c0_35, %c0_36], %41 {strides = array<i32>} : memref<1x8x8x512xbf16, #tpu.memory_space<vmem>>, vector<1x8x8x512xbf16>,
    %c0_37 = arith.constant 0 : index
    %c0_38 = arith.constant 0 : index
    %42 = vector.load %arg5[%c0_37, %c0_38] : memref<16x512xf32, #tpu.memory_space<vmem>>, vector<8x512xf32>
    %43 = vector.shape_cast %35 : vector<128x512xf32> to vector<16x8x512xf32>
    %cst_39 = arith.constant dense<0.000000e+00> : vector<8x512xf32>
    %44 = vector.multi_reduction <add>, %43, %cst_39 [0] : vector<16x8x512xf32> to vector<8x512xf32>
    %45 = arith.addf %42, %44 : vector<8x512xf32>
    %c0_40 = arith.constant 0 : index
    %c0_41 = arith.constant 0 : index
    %46 = vector.load %arg5[%c0_40, %c0_41] : memref<16x512xf32, #tpu.memory_space<vmem>>, vector<8x512xf32>
    tpu.vector_store %arg5[%c0_40, %c0_41], %45 {strides = array<i32>} : memref<16x512xf32, #tpu.memory_space<vmem>>, vector<8x512xf32>,
    %c8 = arith.constant 8 : index
    %c0_42 = arith.constant 0 : index
    %47 = vector.load %arg5[%c8, %c0_42] : memref<16x512xf32, #tpu.memory_space<vmem>>, vector<8x512xf32>
    %48 = arith.mulf %35, %35 : vector<128x512xf32>
    %49 = vector.shape_cast %48 : vector<128x512xf32> to vector<16x8x512xf32>
    %cst_43 = arith.constant dense<0.000000e+00> : vector<8x512xf32>
    %50 = vector.multi_reduction <add>, %49, %cst_43 [0] : vector<16x8x512xf32> to vector<8x512xf32>
    %51 = arith.addf %47, %50 : vector<8x512xf32>
    %c8_44 = arith.constant 8 : index
    %c0_45 = arith.constant 0 : index
    %52 = vector.load %arg5[%c8_44, %c0_45] : memref<16x512xf32, #tpu.memory_space<vmem>>, vector<8x512xf32>
    tpu.vector_store %arg5[%c8_44, %c0_45], %51 {strides = array<i32>} : memref<16x512xf32, #tpu.memory_space<vmem>>, vector<8x512xf32>,
    return
  }
  func.func @transform_0(%arg0: i32, %arg1: i32) -> (i32, i32, i32, i32) {
    %c0_i32 = arith.constant 0 : i32
    %c0_i32_0 = arith.constant 0 : i32
    %c0_i32_1 = arith.constant 0 : i32
    %c0_i32_2 = arith.constant 0 : i32
    return %arg1, %c0_i32, %c0_i32_0, %c0_i32_1 : i32, i32, i32, i32
  }
  func.func @transform_1(%arg0: i32, %arg1: i32) -> (i32, i32, i32) {
    %c0_i32 = arith.constant 0 : i32
    %c0_i32_0 = arith.constant 0 : i32
    %c0_i32_1 = arith.constant 0 : i32
    return %c0_i32, %c0_i32_0, %arg0 : i32, i32, i32
  }
  func.func @transform_2(%arg0: i32, %arg1: i32) -> (i32, i32, i32, i32) {
    %c0_i32 = arith.constant 0 : i32
    %c0_i32_0 = arith.constant 0 : i32
    %c0_i32_1 = arith.constant 0 : i32
    return %arg1, %c0_i32, %c0_i32_0, %arg0 : i32, i32, i32, i32
  }
  func.func @transform_3(%arg0: i32, %arg1: i32) -> (i32, i32) {
    %c0_i32 = arith.constant 0 : i32
    %c0_i32_0 = arith.constant 0 : i32
    return %c0_i32, %arg0 : i32, i32
  }
}

</mosaic_0001>

<bundles_post_ra>
// kernel: tpu_custom_call.1
= control target key start
LH: loop header
LB: loop body
LE: loop exit
PB: predicated region body
PF: predicated region fallthrough
CT: control target
= control target key end

     0   :  { %6 = vsyncpa [#allocation3], 0  ;;  %s115_s0 = inlined_call_operand.hbm [shape: f32[8,128], index: 0, kind: input, shape index: {}]   ;;  %s116_s1 = inlined_call_operand.hbm [shape: f32[8,128], index: 1, kind: output, shape index: {}]  }
   0x1   :  { %7 = vsyncpa [#allocation4], 0  ;;  %s13_s8 = sshll.u32 %s115_s0, 4  ;;  %s97_s9 = smov [#allocation2]   ;;  %s14_s8 = int_to_ptr.hbm [resolvable:$true] %s13_s8 }
   0x2   :  { %s15_s10 = sshll.u32 %s97_s9, 4  ;;  %s16_s10 = int_to_ptr.vmem [resolvable:$true] %s15_s10 }
   0x3   :  { %18 = dma.hbm_to_vmem [thread:$0]  %s14_s8, 128, %s16_s10, [#allocation3]  }
   0x4   :  { %93 = dma.done.wait [#allocation3], 128  }
   0x5   :  { %94 = vsyncadd [#allocation3], 4294967168  ;;  %s98_s11 = smov [#allocation5]   ;;  %s33_s15 = sshll.u32 %s116_s1, 4  ;;  %v23_v0 = vld [vmem:[#allocation2] sm:$0xff]  ;;  %s34_s15 = int_to_ptr.hbm [resolvable:$true] %s33_s15 }
   0x6   :  { %s31_s12 = sshll.u32 %s98_s11, 4  ;;  %v24_v1 = vrot.slane %v23_v0, 7  ;;  %s32_s12 = int_to_ptr.vmem [resolvable:$true] %s31_s12 }
   0x8   :  { %25 = vst [vmem:[#allocation5] sm:$0xff] %v24_v1 }
   0x9   :  { %36 = dma.vmem_to_hbm [thread:$0]  %s32_s12, 128, %s34_s15, [#allocation4]  }
   0xa   :  { %95 = dma.done.wait [#allocation4], 128  }
   0xb   :  { %96 = vsyncadd [#allocation4], 4294967168 }
   0xc   :  { %41 = vsyncpa [#allocation3], 1 }
   0xd   :  { %42 = vsyncpa [#allocation4], 1 }

// kernel: _forward_impl.1
= control target key start
LH: loop header
LB: loop body
LE: loop exit
PB: predicated region body
PF: predicated region fallthrough
CT: control target
= control target key end

     0   :  { %s12990_s12 = smov 0   ;;  %s12992_s13 = smov 0   ;;  %s18717_s0 = inlined_call_operand.vmem [shape: f32[16,2,8,512], index: 0, kind: input, shape index: {}]   ;;  %s18718_s1 = inlined_call_operand.vmem [shape: bf16[3,768,512], index: 1, kind: input, shape index: {}]   ;;  %s18719_s2 = inlined_call_operand.vmem [shape: bf16[2,8,8,512], index: 2, kind: output, shape index: {0}]   ;;  %s18720_s3 = inlined_call_operand.vmem [shape: f32[16,512], index: 3, kind: output, shape index: {1}]  }
   0x1   :  { %s12994_s14 = smov 0  }
   0x2 LB: > { %s23_s15 = sadd.s32 1, %s12962_s13  ;;  %p8889_p0 = scmp.ge.s32.totalorder %s12966_s14, 1  ;;  %s12966_s14 = sphi %s12994_s14, %s14_s14   ;;  %s12962_s13 = sphi %s12992_s13, %s19272_s13   ;;  %s12958_s12 = sphi %s12990_s12, %s19271_s12  }
   0x3   : > { %p24_p1 = scmp.ge.s32.totalorder %s23_s15, 2  ;;  %p167_p2 = scmp.lt.s32.totalorder %s12966_s14, 3 }
   0x5   : > { %s19274_s15 = smov (%p24_p1, %s23_s15), 0  ;;  %p168_p3 = pnand %p8889_p0, %p167_p2 }
   0x7   : > { %171 = sbr.rel (%p168_p3) target bundleno = 2582 (0xa16), region = 28 }
   0xc   : > { %s8890_s16 = sshll.u32 %s12958_s12, 3  ;;  %p220_p4 = scmp.lt.s32.totalorder %s12958_s12, 1 }
   0xd   : > { %p207_p5 = scmp.lt.s32.totalorder %s8890_s16, 15  ;;  %p8895_p6 = scmp.ne.s32.totalorder %s12958_s12, 0 }
   0xe   : > { %s221_s17 = scalar_select %p220_p4, %s12958_s12, 1 }
   0xf   : > { %s19276_s16 = smov (!%p207_p5, %s8890_s16), 15  ;;  %239 = sbr.rel (%p8895_p6) target bundleno = 89 (0x59), region = 32 }
  0x10   : > { %s12197_s18 = sshll.u32 %s221_s17, 7  ;;  %s12196_s19 = sshll.u32 %s19276_s16, 6 }
  0x11   : > { %s13011_s22 = scalar_lea.vmem %s18719_s2, %s12197_s18  ;;  %s13016_s25 = scalar_lea.vmem %s18717_s0, %s12196_s19 }
  0x14   : > { %v12968_v0 = vmov 0   ;;  %v12969_v1 = vmov 0.0  }
  0x15   : > { %240 = vst [vmem:[#allocation2] sm:$0xff] %v12968_v0 }
  0x16   : > { %241 = vst [vmem:[#allocation2 + $0x8] sm:$0xff] %v12968_v0 }
  0x17   : > { %242 = vst [vmem:[#allocation2 + $0x10] sm:$0xff] %v12968_v0 }
  0x18   : > { %243 = vst [vmem:[#allocation2 + $0x18] sm:$0xff] %v12968_v0 }
  0x19   : > { %244 = vst [vmem:[#allocation2 + $0x20] sm:$0xff] %v12968_v0 }
  0x1a   : > { %245 = vst [vmem:[#allocation2 + $0x28] sm:$0xff] %v12968_v0 }
  0x1b   : > { %246 = vst [vmem:[#allocation2 + $0x30] sm:$0xff] %v12968_v0 }
  0x1c   : > { %247 = vst [vmem:[#allocation2 + $0x38] sm:$0xff] %v12968_v0 }
  0x1d   : > { %248 = vst [vmem:[#allocation2 + $0x40] sm:$0xff] %v12968_v0 }
  0x1e   : > { %249 = vst [vmem:[#allocation2 + $0x48] sm:$0xff] %v12968_v0 }
  0x1f   : > { %250 = vst [vmem:[#allocation2 + $0x50] sm:$0xff] %v12968_v0 }
  0x20   : > { %251 = vst [vmem:[#allocation2 + $0x58] sm:$0xff] %v12968_v0 }
  0x21   : > { %252 = vst [vmem:[#allocation2 + $0x60] sm:$0xff] %v12968_v0 }
  0x22   : > { %253 = vst [vmem:[#allocation2 + $0x68] sm:$0xff] %v12968_v0 }
  0x23   : > { %254 = vst [vmem:[#allocation2 + $0x70] sm:$0xff] %v12968_v0 }
  0x24   : > { %255 = vst [vmem:[#allocation2 + $0x78] sm:$0xff] %v12968_v0 }
  0x25   : > { %256 = vst [vmem:[#allocation2 + $0x80] sm:$0xff] %v12968_v0 }
  0x26   : > { %257 = vst [vmem:[#allocation2 + $0x88] sm:$0xff] %v12968_v0 }
  0x27   : > { %258 = vst [vmem:[#allocation2 + $0x90] sm:$0xff] %v12968_v0 }
  0x28   : > { %259 = vst [vmem:[#allocation2 + $0x98] sm:$0xff] %v12968_v0 }
  0x29   : > { %260 = vst [vmem:[#allocation2 + $0xa0] sm:$0xff] %v12968_v0 }
  0x2a   : > { %261 = vst [vmem:[#allocation2 + $0xa8] sm:$0xff] %v12968_v0 }
  0x2b   : > { %262 = vst [vmem:[#allocation2 + $0xb0] sm:$0xff] %v12968_v0 }
  0x2c   : > { %263 = vst [vmem:[#allocation2 + $0xb8] sm:$0xff] %v12968_v0 }
  0x2d   : > { %264 = vst [vmem:[#allocation2 + $0xc0] sm:$0xff] %v12968_v0 }
  0x2e   : > { %265 = vst [vmem:[#allocation2 + $0xc8] sm:$0xff] %v12968_v0 }
  0x2f   : > { %266 = vst [vmem:[#allocation2 + $0xd0] sm:$0xff] %v12968_v0 }
  0x30   : > { %267 = vst [vmem:[#allocation2 + $0xd8] sm:$0xff] %v12968_v0 }
  0x31   : > { %268 = vst [vmem:[#allocation2 + $0xe0] sm:$0xff] %v12968_v0 }
  0x32   : > { %269 = vst [vmem:[#allocation2 + $0xe8] sm:$0xff] %v12968_v0 }
  0x33   : > { %270 = vst [vmem:[#allocation2 + $0xf0] sm:$0xff] %v12968_v0 }
  0x34   : > { %271 = vst [vmem:[#allocation2 + $0xf8] sm:$0xff] %v12968_v0 }
  0x35   : > { %272 = vst [vmem:[#allocation2 + $0x100] sm:$0xff] %v12968_v0 }
  0x36   : > { %273 = vst [vmem:[#allocation2 + $0x108] sm:$0xff] %v12968_v0 }
  0x37   : > { %274 = vst [vmem:[#allocation2 + $0x110] sm:$0xff] %v12968_v0 }
  0x38   : > { %275 = vst [vmem:[#allocation2 + $0x118] sm:$0xff] %v12968_v0 }
  0x39   : > { %276 = vst [vmem:[#allocation2 + $0x120] sm:$0xff] %v12968_v0 }
  0x3a   : > { %277 = vst [vmem:[#allocation2 + $0x128] sm:$0xff] %v12968_v0 }
  0x3b   : > { %278 = vst [vmem:[#allocation2 + $0x130] sm:$0xff] %v12968_v0 }
  0x3c   : > { %279 = vst [vmem:[#allocation2 + $0x138] sm:$0xff] %v12968_v0 }
  0x3d   : > { %280 = vst [vmem:[#allocation2 + $0x140] sm:$0xff] %v12968_v0 }
  0x3e   : > { %281 = vst [vmem:[#allocation2 + $0x148] sm:$0xff] %v12968_v0 }
  0x3f   : > { %282 = vst [vmem:[#allocation2 + $0x150] sm:$0xff] %v12968_v0 }
  0x40   : > { %283 = vst [vmem:[#allocation2 + $0x158] sm:$0xff] %v12968_v0 }
  0x41   : > { %284 = vst [vmem:[#allocation2 + $0x160] sm:$0xff] %v12968_v0 }
  0x42   : > { %285 = vst [vmem:[#allocation2 + $0x168] sm:$0xff] %v12968_v0 }
  0x43   : > { %286 = vst [vmem:[#allocation2 + $0x170] sm:$0xff] %v12968_v0 }
  0x44   : > { %287 = vst [vmem:[#allocation2 + $0x178] sm:$0xff] %v12968_v0 }
  0x45   : > { %288 = vst [vmem:[#allocation2 + $0x180] sm:$0xff] %v12968_v0 }
  0x46   : > { %289 = vst [vmem:[#allocation2 + $0x188] sm:$0xff] %v12968_v0 }
  0x47   : > { %290 = vst [vmem:[#allocation2 + $0x190] sm:$0xff] %v12968_v0 }
  0x48   : > { %291 = vst [vmem:[#allocation2 + $0x198] sm:$0xff] %v12968_v0 }
  0x49   : > { %292 = vst [vmem:[#allocation2 + $0x1a0] sm:$0xff] %v12968_v0 }
  0x4a   : > { %293 = vst [vmem:[#allocation2 + $0x1a8] sm:$0xff] %v12968_v0 }
  0x4b   : > { %294 = vst [vmem:[#allocation2 + $0x1b0] sm:$0xff] %v12968_v0 }
  0x4c   : > { %295 = vst [vmem:[#allocation2 + $0x1b8] sm:$0xff] %v12968_v0 }
  0x4d   : > { %296 = vst [vmem:[#allocation2 + $0x1c0] sm:$0xff] %v12968_v0 }
  0x4e   : > { %297 = vst [vmem:[#allocation2 + $0x1c8] sm:$0xff] %v12968_v0 }
  0x4f   : > { %298 = vst [vmem:[#allocation2 + $0x1d0] sm:$0xff] %v12968_v0 }
  0x50   : > { %299 = vst [vmem:[#allocation2 + $0x1d8] sm:$0xff] %v12968_v0 }
  0x51   : > { %300 = vst [vmem:[%s18720_s3] sm:$0xff] %v12969_v1 }
  0x52   : > { %301 = vst [vmem:[%s18720_s3 + $0x8] sm:$0xff] %v12969_v1 }
  0x53   : > { %302 = vst [vmem:[%s18720_s3 + $0x10] sm:$0xff] %v12969_v1 }
  0x54   : > { %303 = vst [vmem:[%s18720_s3 + $0x18] sm:$0xff] %v12969_v1 }
  0x55   : > { %304 = vst [vmem:[%s18720_s3 + $0x20] sm:$0xff] %v12969_v1 }
  0x56   : > { %305 = vst [vmem:[%s18720_s3 + $0x28] sm:$0xff] %v12969_v1 }
  0x57   : > { %306 = vst [vmem:[%s18720_s3 + $0x30] sm:$0xff] %v12969_v1 }
  0x58   : > { %307 = vst [vmem:[%s18720_s3 + $0x38] sm:$0xff] %v12969_v1 }
  0x59 PF: > { %v9426_v2 = vld [vmem:[%s18718_s1 + $0x6e0] sm:$0xf]  ;;  %v12516_v3 = vld [vmem:[%s18718_s1 + $0x6ec] sm:$0xf0]  ;;  %vm502_vm0 = vcmask 1043456   ;;  %vm505_vm2 = vcmask 1047556  }
  0x5a   : > { %v9554_v4 = vld [vmem:[%s18718_s1 + $0x7e0] sm:$0xf]  ;;  %v9427_v5 = vor.u32 %v12516_v3, %v9426_v2  ;;  %v12548_v6 = vld [vmem:[%s18718_s1 + $0x7ec] sm:$0xf0]  ;;  %vm503_vm1 = vsmask.f32 7938 }
  0x5b   : > { %v9682_v7 = vld [vmem:[%s18718_s1 + $0x8e0] sm:$0xf]  ;;  %v12580_v8 = vld [vmem:[%s18718_s1 + $0x8ec] sm:$0xf0]  ;;  %v9555_v9 = vor.u32 %v12548_v6, %v9554_v4  ;;  %vm506_vm3 = vsmask.f32 7954  ;;  %vm13241_vm4 = vmand %vm502_vm0, %vm503_vm1 }
  0x5c   : > { %v9683_v10 = vor.u32 %v12580_v8, %v9682_v7  ;;  %v9810_v11 = vld [vmem:[%s18718_s1 + $0x9e0] sm:$0xf]  ;;  %v12612_v12 = vld [vmem:[%s18718_s1 + $0x9ec] sm:$0xf0]  ;;  %2283 = vmatpush.bf16.msra.mxu0 %v9427_v5  ;;  %vm13250_vm5 = vmand %vm505_vm2, %vm506_vm3  ;;  %vm573_vm7 = vsmask.f32 3328 }
  0x5d   : > { %v9410_v13 = vld [vmem:[%s18718_s1 + $0x6c0] sm:$0xf]  ;;  %v9811_v14 = vor.u32 %v12612_v12, %v9810_v11  ;;  %v12512_v15 = vld [vmem:[%s18718_s1 + $0x6cc] sm:$0xf0]  ;;  %2332 = vmatpush.bf16.msra.mxu1 %v9555_v9  ;;  %vm13297_vm6 = vmor %vm13250_vm5, %vm13241_vm4  ;;  %vm575_vm9 = vsmask.f32 7424 }
  0x5e   : > { %v9538_v16 = vld [vmem:[%s18718_s1 + $0x7c0] sm:$0xf]  ;;  %v12544_v17 = vld [vmem:[%s18718_s1 + $0x7cc] sm:$0xf0]  ;;  %2381 = vmatpush.bf16.msra.mxu2 %v9683_v10  ;;  %v9411_v18 = vor.u32 %v12512_v15, %v9410_v13  ;;  %vm574_vm8 = vmand %vm502_vm0, %vm573_vm7 }
  0x5f   : > { %v9539_v19 = vor.u32 %v12544_v17, %v9538_v16  ;;  %v9666_v20 = vld [vmem:[%s18718_s1 + $0x8c0] sm:$0xf]  ;;  %v12576_v21 = vld [vmem:[%s18718_s1 + $0x8cc] sm:$0xf0]  ;;  %2430 = vmatpush.bf16.msra.mxu3 %v9811_v14  ;;  %vm576_vm10 = vmand %vm505_vm2, %vm575_vm9 }
  0x60   : > { %v9794_v22 = vld [vmem:[%s18718_s1 + $0x9c0] sm:$0xf]  ;;  %v9667_v23 = vor.u32 %v12576_v21, %v9666_v20  ;;  %v12608_v24 = vld [vmem:[%s18718_s1 + $0x9cc] sm:$0xf0]  ;;  %2284 = vmatpush.bf16.msra.mxu0 %v9411_v18  ;;  %vm13680_vm11 = vmor %vm576_vm10, %vm574_vm8 }
  0x61   : > { %v9394_v25 = vld [vmem:[%s18718_s1 + $0x6a0] sm:$0xf]  ;;  %v12508_v26 = vld [vmem:[%s18718_s1 + $0x6ac] sm:$0xf0]  ;;  %v9795_v27 = vor.u32 %v12608_v24, %v9794_v22  ;;  %2333 = vmatpush.bf16.msra.mxu1 %v9539_v19  ;;  %v309_v19 = vld [vmem:[%s13016_s25 + $0x8] sm:$0xff] }
  0x62   : > { %v9522_v28 = vld [vmem:[%s18718_s1 + $0x7a0] sm:$0xf]  ;;  %v12540_v29 = vld [vmem:[%s18718_s1 + $0x7ac] sm:$0xf0]  ;;  %v9395_v31 = vor.u32 %v12508_v26, %v9394_v25  ;;  %2382 = vmatpush.bf16.msra.mxu2 %v9667_v23  ;;  %v311_v25 = vld [vmem:[%s13016_s25 + $0x18] sm:$0xff] }
  0x63   : > { %v9650_v30 = vld [vmem:[%s18718_s1 + $0x8a0] sm:$0xf]  ;;  %v12572_v32 = vld [vmem:[%s18718_s1 + $0x8ac] sm:$0xf0]  ;;  %v9523_v35 = vor.u32 %v12540_v29, %v9522_v28  ;;  %2431 = vmatpush.bf16.msra.mxu3 %v9795_v27  ;;  %v8897_v28 = vld [vmem:[%s13016_s25 + $0x28] sm:$0xff] }
  0x64   : > { %v9778_v33 = vld [vmem:[%s18718_s1 + $0x9a0] sm:$0xf]  ;;  %v12604_v34 = vld [vmem:[%s18718_s1 + $0x9ac] sm:$0xf0]  ;;  %v9651_v36 = vor.u32 %v12572_v32, %v9650_v30  ;;  %2285 = vmatpush.bf16.msra.mxu0 %v9395_v31  ;;  %v8899_v30 = vld [vmem:[%s13016_s25 + $0x38] sm:$0xff] }
  0x65   : > { %v9378_v37 = vld [vmem:[%s18718_s1 + $0x680] sm:$0xf]  ;;  %v12504_v38 = vld [vmem:[%s18718_s1 + $0x68c] sm:$0xf0]  ;;  %v9779_v40 = vor.u32 %v12604_v34, %v9778_v33  ;;  %2334 = vmatpush.bf16.msra.mxu1 %v9523_v35  ;;  %v374_v35 = vmax.f32 %v309_v19, %v8897_v28  ;;  %v9540_v28 = vld [vmem:[%s18718_s1 + $0x7d0] sm:$0xf0] }
  0x66   : > { %v9506_v39 = vld [vmem:[%s18718_s1 + $0x780] sm:$0xf]  ;;  %v12536_v41 = vld [vmem:[%s18718_s1 + $0x78c] sm:$0xf0]  ;;  %v9379_v46 = vor.u32 %v12504_v38, %v9378_v37  ;;  %2383 = vmatpush.bf16.msra.mxu2 %v9651_v36  ;;  %v376_v37 = vmax.f32 %v311_v25, %v8899_v30 }
  0x67   : > { %v9634_v42 = vld [vmem:[%s18718_s1 + $0x880] sm:$0xf]  ;;  %v12568_v43 = vld [vmem:[%s18718_s1 + $0x88c] sm:$0xf0]  ;;  %v9507_v47 = vor.u32 %v12536_v41, %v9506_v39  ;;  %2432 = vmatpush.bf16.msra.mxu3 %v9779_v40 }
  0x68   : > { %v9762_v44 = vld [vmem:[%s18718_s1 + $0x980] sm:$0xf]  ;;  %v12600_v45 = vld [vmem:[%s18718_s1 + $0x98c] sm:$0xf0]  ;;  %v9635_v48 = vor.u32 %v12568_v43, %v9634_v42  ;;  %2286 = vmatpush.bf16.msra.mxu0 %v9379_v46  ;;  %v12514_v46 = vld [vmem:[%s18718_s1 + $0x6e4] sm:$0xf] }
  0x69   : > { %v9362_v49 = vld [vmem:[%s18718_s1 + $0x660] sm:$0xf]  ;;  %v12500_v50 = vld [vmem:[%s18718_s1 + $0x66c] sm:$0xf0]  ;;  %v9763_v52 = vor.u32 %v12600_v45, %v9762_v44  ;;  %2335 = vmatpush.bf16.msra.mxu1 %v9507_v47  ;;  %v406_v44 = vmax.f32 %v374_v35, %v376_v37  ;;  %v317_v35 = vld [vmem:[%s13016_s25 + $0x88] sm:$0xff] }
  0x6a   : > { %v9490_v51 = vld [vmem:[%s18718_s1 + $0x760] sm:$0xf]  ;;  %v12532_v53 = vld [vmem:[%s18718_s1 + $0x76c] sm:$0xf0]  ;;  %v9363_v58 = vor.u32 %v12500_v50, %v9362_v49  ;;  %2384 = vmatpush.bf16.msra.mxu2 %v9635_v48  ;;  %v9428_v48 = vld [vmem:[%s18718_s1 + $0x6f0] sm:$0xf0] }
  0x6b   : > { %v9618_v54 = vld [vmem:[%s18718_s1 + $0x860] sm:$0xf]  ;;  %v12564_v55 = vld [vmem:[%s18718_s1 + $0x86c] sm:$0xf0]  ;;  %v9491_v59 = vor.u32 %v12532_v53, %v9490_v51  ;;  %2433 = vmatpush.bf16.msra.mxu3 %v9763_v52 }
  0x6c   : > { %v9746_v56 = vld [vmem:[%s18718_s1 + $0x960] sm:$0xf]  ;;  %v12596_v57 = vld [vmem:[%s18718_s1 + $0x96c] sm:$0xf0]  ;;  %v9619_v60 = vor.u32 %v12564_v55, %v9618_v54  ;;  %2287 = vmatpush.bf16.msra.mxu0 %v9363_v58  ;;  %v12546_v54 = vld [vmem:[%s18718_s1 + $0x7e4] sm:$0xf]  ;;  %v9431_v58 = vor.u32 %v12514_v46, %v9428_v48 }
  0x6d   : > { %v9346_v61 = vld [vmem:[%s18718_s1 + $0x640] sm:$0xf]  ;;  %v12496_v62 = vld [vmem:[%s18718_s1 + $0x64c] sm:$0xf0]  ;;  %v9747_v0 = vor.u32 %v12596_v57, %v9746_v56  ;;  %2336 = vmatpush.bf16.msra.mxu1 %v9491_v59  ;;  %v9556_v55 = vld [vmem:[%s18718_s1 + $0x7f0] sm:$0xf0] }
  0x6e   : > { %v9474_v63 = vld [vmem:[%s18718_s1 + $0x740] sm:$0xf]  ;;  %v12528_v1 = vld [vmem:[%s18718_s1 + $0x74c] sm:$0xf0]  ;;  %v9347_v7 = vor.u32 %v12496_v62, %v9346_v61  ;;  %2385 = vmatpush.bf16.msra.mxu2 %v9619_v60  ;;  %v313_v61 = vld [vmem:[%s13016_s25 + $0x48] sm:$0xff] }
  0x6f   : > { %v9602_v2 = vld [vmem:[%s18718_s1 + $0x840] sm:$0xf]  ;;  %v12560_v3 = vld [vmem:[%s18718_s1 + $0x84c] sm:$0xf0]  ;;  %v9475_v11 = vor.u32 %v12528_v1, %v9474_v63  ;;  %2434 = vmatpush.bf16.msra.mxu3 %v9747_v0  ;;  %v9559_v1 = vor.u32 %v12546_v54, %v9556_v55  ;;  %v8905_v46 = vld [vmem:[%s13016_s25 + $0xa8] sm:$0xff] }
  0x70   : > { %v9730_v4 = vld [vmem:[%s18718_s1 + $0x940] sm:$0xf]  ;;  %v12592_v5 = vld [vmem:[%s18718_s1 + $0x94c] sm:$0xf0]  ;;  %v9603_v12 = vor.u32 %v12560_v3, %v9602_v2  ;;  %2288 = vmatpush.bf16.msra.mxu0 %v9347_v7  ;;  %v315_v3 = vld [vmem:[%s13016_s25 + $0x58] sm:$0xff] }
  0x71   : > { %v9330_v6 = vld [vmem:[%s18718_s1 + $0x620] sm:$0xf]  ;;  %v12492_v8 = vld [vmem:[%s18718_s1 + $0x62c] sm:$0xf0]  ;;  %v9731_v16 = vor.u32 %v12592_v5, %v9730_v4  ;;  %2337 = vmatpush.bf16.msra.mxu1 %v9475_v11  ;;  %v8907_v48 = vld [vmem:[%s13016_s25 + $0xb8] sm:$0xff] }
  0x72   : > { %v9458_v9 = vld [vmem:[%s18718_s1 + $0x720] sm:$0xf]  ;;  %v12524_v10 = vld [vmem:[%s18718_s1 + $0x72c] sm:$0xf0]  ;;  %v9331_v20 = vor.u32 %v12492_v8, %v9330_v6  ;;  %2386 = vmatpush.bf16.msra.mxu2 %v9603_v12  ;;  %v8901_v6 = vld [vmem:[%s13016_s25 + $0x68] sm:$0xff] }
  0x73   : > { %v9586_v13 = vld [vmem:[%s18718_s1 + $0x820] sm:$0xf]  ;;  %v12556_v14 = vld [vmem:[%s18718_s1 + $0x82c] sm:$0xf0]  ;;  %v9459_v21 = vor.u32 %v12524_v10, %v9458_v9  ;;  %2435 = vmatpush.bf16.msra.mxu3 %v9731_v16  ;;  %v8903_v8 = vld [vmem:[%s13016_s25 + $0x78] sm:$0xff]  ;;  %v378_v12 = vmax.f32 %v313_v61, %v8901_v6 }
  0x74   : > { %v9714_v15 = vld [vmem:[%s18718_s1 + $0x920] sm:$0xf]  ;;  %v12588_v17 = vld [vmem:[%s18718_s1 + $0x92c] sm:$0xf0]  ;;  %v9587_v27 = vor.u32 %v12556_v14, %v9586_v13  ;;  %2289 = vmatpush.bf16.msra.mxu0 %v9331_v20  ;;  %v380_v14 = vmax.f32 %v315_v3, %v8903_v8  ;;  %v323_v61 = vld [vmem:[%s13016_s25 + $0xd8] sm:$0xff] }
  0x75   : > { %v308_v18 = vld [vmem:[%s13016_s25] sm:$0xff]  ;;  %v12488_v23 = vld [vmem:[%s18718_s1 + $0x60c] sm:$0xf0]  ;;  %v9715_v38 = vor.u32 %v12588_v17, %v9714_v15  ;;  %2338 = vmatpush.bf16.msra.mxu1 %v9459_v21  ;;  %v9132_v17 = vld [vmem:[#allocation2 + $0x50] sm:$0xf0] }
  0x76   : > { %v9314_v22 = vld [vmem:[%s18718_s1 + $0x600] sm:$0xf]  ;;  %v310_v24 = vld [vmem:[%s13016_s25 + $0x10] sm:$0xff]  ;;  %2387 = vmatpush.bf16.msra.mxu2 %v9587_v27  ;;  %v408_v21 = vmax.f32 %v378_v12, %v380_v14  ;;  %v12542_v27 = vld [vmem:[%s18718_s1 + $0x7c4] sm:$0xf] }
  0x77   : > { %v8896_v26 = vld [vmem:[%s13016_s25 + $0x20] sm:$0xff]  ;;  %v8898_v29 = vld [vmem:[%s13016_s25 + $0x30] sm:$0xff]  ;;  %v9315_v47 = vor.u32 %v12488_v23, %v9314_v22  ;;  %2436 = vmatpush.bf16.msra.mxu3 %v9715_v38  ;;  %v8911_v6 = vld [vmem:[%s13016_s25 + $0xf8] sm:$0xff] }
  0x78   : > { %v373_v31 = vmax.f32 %v308_v18, %v8896_v26  ;;  %v9442_v32 = vld [vmem:[%s18718_s1 + $0x700] sm:$0xf]  ;;  %v12520_v33 = vld [vmem:[%s18718_s1 + $0x70c] sm:$0xf0]  ;;  %v375_v36 = vmax.f32 %v310_v24, %v8898_v29  ;;  %v12510_v18 = vld [vmem:[%s18718_s1 + $0x6c4] sm:$0xf] }
  0x79   : > { %v9570_v34 = vld [vmem:[%s18718_s1 + $0x800] sm:$0xf]  ;;  %v12552_v39 = vld [vmem:[%s18718_s1 + $0x80c] sm:$0xf0]  ;;  %v9443_v51 = vor.u32 %v12520_v33, %v9442_v32  ;;  %2290 = vmatpush.bf16.msra.mxu0 %v9315_v47  ;;  %v9412_v22 = vld [vmem:[%s18718_s1 + $0x6d0] sm:$0xf0]  ;;  %v9543_v32 = vor.u32 %v12542_v27, %v9540_v28 }
  0x7a   : > { %v9698_v40 = vld [vmem:[%s18718_s1 + $0x900] sm:$0xf]  ;;  %v12584_v42 = vld [vmem:[%s18718_s1 + $0x90c] sm:$0xf0]  ;;  %v405_v43 = vmax.f32 %v373_v31, %v375_v36  ;;  %v9571_v52 = vor.u32 %v12552_v39, %v9570_v34  ;;  %v9415_v25 = vor.u32 %v12510_v18, %v9412_v22  ;;  %v9396_v27 = vld [vmem:[%s18718_s1 + $0x6b0] sm:$0xf0] }
  0x7b   : > { %v9938_v49 = vld [vmem:[%s18718_s1 + $0xae0] sm:$0xf]  ;;  %v12644_v50 = vld [vmem:[%s18718_s1 + $0xaec] sm:$0xf0]  ;;  %v9699_v57 = vor.u32 %v12584_v42, %v9698_v40  ;;  %2339 = vmatpush.bf16.msra.mxu1 %v9443_v51  ;;  %v12441_v51 = vld [vmem:[#allocation2 + $0x44] sm:$0xf0] }
  0x7c   : > { %v13266_v53 = vpack.c.bf16 %v406_v44, %v405_v43  ;;  %v10066_v56 = vld [vmem:[%s18718_s1 + $0xbe0] sm:$0xf]  ;;  %v12676_v59 = vld [vmem:[%s18718_s1 + $0xbec] sm:$0xf0]  ;;  %v9939_v0 = vor.u32 %v12644_v50, %v9938_v49  ;;  %2388 = vmatpush.bf16.msra.mxu2 %v9571_v52  ;;  %v319_v44 = vld [vmem:[%s13016_s25 + $0x98] sm:$0xff]  ;;  %v382_v50 = vmax.f32 %v317_v35, %v8905_v46 }
  0x7d   : > { %v312_v60 = vld [vmem:[%s13016_s25 + $0x40] sm:$0xff]  ;;  %v314_v2 = vld [vmem:[%s13016_s25 + $0x50] sm:$0xff]  ;;  %v10067_v5 = vor.u32 %v12676_v59, %v10066_v56  ;;  %2437 = vmatpush.bf16.msra.mxu3 %v9699_v57  ;;  %v9124_v52 = vld [vmem:[#allocation2 + $0x48] sm:$0xf0]  ;;  %v384_v57 = vmax.f32 %v319_v44, %v8907_v48 }
  0x7e   : > { %v439_v62 = vshrl.u32 %v13266_v53, 16  ;;  %v442_v63 = vshll.u32 %v13266_v53, 16  ;;  %430 = vst [vmem:[#allocation2 + $0x38] sm:$0xff] %v13266_v53  ;;  %v8900_v4 = vld [vmem:[%s13016_s25 + $0x60] sm:$0xff]  ;;  %v8902_v7 = vld [vmem:[%s13016_s25 + $0x70] sm:$0xff]  ;;  %2479 = vmatpush.bf16.msrb.mxu0 %v9939_v0  ;;  %v321_v59 = vld [vmem:[%s13016_s25 + $0xc8] sm:$0xff] }
  0x7f   : > { %v377_v9 = vmax.f32 %v312_v60, %v8900_v4  ;;  %v509_v11 = vld [vmem:[#allocation2 + $0x30] sm:$0xff]  ;;  %v379_v13 = vmax.f32 %v314_v2, %v8902_v7  ;;  %v9922_v23 = vld [vmem:[%s18718_s1 + $0xac0] sm:$0xf]  ;;  %2528 = vmatpush.bf16.msrb.mxu1 %v10067_v5  ;;  %v410_v3 = vmax.f32 %v382_v50, %v384_v57  ;;  %v8909_v4 = vld [vmem:[%s13016_s25 + $0xe8] sm:$0xff] }
  0x80   : > { %v441_v10 = vrot.slane %v439_v62, 7  ;;  %v12442_v16 = vld [vmem:[#allocation2 + $0x4c] sm:$0xf0]  ;;  %2577 = vmatpush.bf16.msrb.mxu2 %v9431_v58  ;;  %v10050_v29 = vld [vmem:[%s18718_s1 + $0xbc0] sm:$0xf]  ;;  %v386_v8 = vmax.f32 %v321_v59, %v8909_v4  ;;  %v8913_v4 = vld [vmem:[%s13016_s25 + $0x128] sm:$0xff] }
  0x81   : > { %2626 = vmatpush.bf16.msrb.mxu3 %v9559_v1  ;;  %v407_v20 = vmax.f32 %v377_v9, %v379_v13  ;;  %v12640_v24 = vld [vmem:[%s18718_s1 + $0xacc] sm:$0xf0]  ;;  %v316_v34 = vld [vmem:[%s13016_s25 + $0x80] sm:$0xff] }
  0x82   : > { %v444_v19 = vor.u32 %v442_v63, %v441_v10  ;;  %v9923_v26 = vor.u32 %v12640_v24, %v9922_v23  ;;  %v12672_v33 = vld [vmem:[%s18718_s1 + $0xbcc] sm:$0xf0]  ;;  %v8904_v45 = vld [vmem:[%s13016_s25 + $0xa0] sm:$0xff]  ;;  %v388_v10 = vmax.f32 %v323_v61, %v8911_v6  ;;  %v325_v61 = vld [vmem:[%s13016_s25 + $0x108] sm:$0xff] }
  0x83   : > { %v13326_v31 = vpack.c.bf16 %v408_v21, %v407_v20  ;;  %v10051_v38 = vor.u32 %v12672_v33, %v10050_v29  ;;  %v318_v39 = vld [vmem:[%s13016_s25 + $0x90] sm:$0xff]  ;;  %v381_v49 = vmax.f32 %v316_v34, %v8904_v45  ;;  %v512_v55 = vld [vmem:[#allocation2 + $0x60] sm:$0xff]  ;;  %v8915_v6 = vld [vmem:[%s13016_s25 + $0x138] sm:$0xff] }
  0x84   : > { %v510_v30 = vsel %vm13297_vm6, %v444_v19, %v509_v11  ;;  %2578 = vmatpush.bf16.msrb.mxu2 %v9415_v25  ;;  %2480 = vmatpush.bf16.msrb.mxu0 %v9923_v26  ;;  %v8906_v47 = vld [vmem:[%s13016_s25 + $0xb0] sm:$0xff]  ;;  %v320_v58 = vld [vmem:[%s13016_s25 + $0xc0] sm:$0xff]  ;;  %v412_v19 = vmax.f32 %v386_v8, %v388_v10  ;;  %v390_v8 = vmax.f32 %v325_v61, %v8913_v4  ;;  %v329_v61 = vld [vmem:[%s13016_s25 + $0x148] sm:$0xff] }
  0x85   : > { %511 = vst [vmem:[#allocation2 + $0x30] sm:$0xff] %v510_v30  ;;  %v9130_v36 = vld [vmem:[#allocation2 + $0x38] sm:$0xf]  ;;  %v12439_v37 = vld [vmem:[#allocation2 + $0x3c] sm:$0xf]  ;;  %v446_v42 = vshrl.u32 %v13326_v31, 16  ;;  %2627 = vmatpush.bf16.msrb.mxu3 %v9543_v32  ;;  %2529 = vmatpush.bf16.msrb.mxu1 %v10051_v38  ;;  %v383_v56 = vmax.f32 %v318_v39, %v8906_v47 }
  0x86   : > { %v13334_v40 = vor.u32 %v12442_v16, %v9130_v36  ;;  %v13336_v41 = vor.u32 %v12439_v37, %v9132_v17  ;;  %v449_v43 = vshll.u32 %v13326_v31, 16  ;;  %431 = vst [vmem:[#allocation2 + $0x68] sm:$0xff] %v13326_v31  ;;  %v322_v60 = vld [vmem:[%s13016_s25 + $0xd0] sm:$0xff]  ;;  %v8908_v0 = vld [vmem:[%s13016_s25 + $0xe0] sm:$0xff]  ;;  %v8917_v4 = vld [vmem:[%s13016_s25 + $0x168] sm:$0xff] }
  0x87   : > { %v448_v54 = vrot.slane %v446_v42, 7  ;;  %v409_v2 = vmax.f32 %v381_v49, %v383_v56  ;;  %v8910_v5 = vld [vmem:[%s13016_s25 + $0xf0] sm:$0xff]  ;;  %v385_v7 = vmax.f32 %v320_v58, %v8908_v0  ;;  %v12448_v23 = vld [vmem:[#allocation2 + $0x7c] sm:$0xf0]  ;;  %v9156_v25 = vld [vmem:[#allocation2 + $0x80] sm:$0xf0] }
  0x88   : > { %18867 = vst [vmem:[#allocation3_spill] sm:$0xff] %v13334_v40  ;;  %2389 = vmatmul.bf16.vlgmr.msra.gmra.mxu2 %v13334_v40  ;;  %2438 = vmatmul.bf16.vlgmr.msra.gmra.mxu3 %v13336_v41  ;;  %v387_v9 = vmax.f32 %v322_v60, %v8910_v5  ;;  %v12506_v26 = vld [vmem:[%s18718_s1 + $0x6a4] sm:$0xf]  ;;  %v515_v30 = vld [vmem:[#allocation2 + $0x90] sm:$0xff]  ;;  %v9906_v33 = vld [vmem:[%s18718_s1 + $0xaa0] sm:$0xf] }
  0x89   : > { %18868 = vst [vmem:[#allocation4_spill] sm:$0xff] %v13336_v41  ;;  %v451_v1 = vor.u32 %v449_v43, %v448_v54  ;;  %v13362_v14 = vpack.c.bf16 %v410_v3, %v409_v2  ;;  %v9399_v32 = vor.u32 %v12506_v26, %v9396_v27  ;;  %v12636_v34 = vld [vmem:[%s18718_s1 + $0xaac] sm:$0xf0]  ;;  %v12538_v36 = vld [vmem:[%s18718_s1 + $0x7a4] sm:$0xf]  ;;  %v327_v2 = vld [vmem:[%s13016_s25 + $0x118] sm:$0xff] }
  0x8a   : > { %v411_v18 = vmax.f32 %v385_v7, %v387_v9  ;;  %v9907_v35 = vor.u32 %v12636_v34, %v9906_v33  ;;  %v9524_v37 = vld [vmem:[%s18718_s1 + $0x7b0] sm:$0xf0]  ;;  %v10034_v38 = vld [vmem:[%s18718_s1 + $0xba0] sm:$0xf]  ;;  %v12668_v45 = vld [vmem:[%s18718_s1 + $0xbac] sm:$0xf0]  ;;  %v392_v10 = vmax.f32 %v327_v2, %v8915_v6 }
  0x8b   : > { %v513_v13 = vsel %vm13297_vm6, %v451_v1, %v512_v55  ;;  %v453_v20 = vshrl.u32 %v13362_v14, 16  ;;  %v456_v21 = vshll.u32 %v13362_v14, 16  ;;  %432 = vst [vmem:[#allocation2 + $0x98] sm:$0xff] %v13362_v14  ;;  %2579 = vmatpush.bf16.msrb.mxu2 %v9399_v32  ;;  %v9527_v44 = vor.u32 %v12538_v36, %v9524_v37  ;;  %v518_v54 = vld [vmem:[#allocation2 + $0xc0] sm:$0xff]  ;;  %v12447_v56 = vld [vmem:[#allocation2 + $0x74] sm:$0xf0] }
  0x8c   : > { %v9122_v11 = vld [vmem:[#allocation2 + $0x30] sm:$0xf]  ;;  %v12438_v12 = vld [vmem:[#allocation2 + $0x34] sm:$0xf]  ;;  %514 = vst [vmem:[#allocation2 + $0x60] sm:$0xff] %v513_v13  ;;  %v13379_v28 = vpack.c.bf16 %v412_v19, %v411_v18  ;;  %2481 = vmatpush.bf16.msrb.mxu0 %v9907_v35  ;;  %v10035_v48 = vor.u32 %v12668_v45, %v10034_v38  ;;  %v324_v60 = vld [vmem:[%s13016_s25 + $0x100] sm:$0xff]  ;;  %v414_v18 = vmax.f32 %v390_v8, %v392_v10 }
  0x8d   : > { %v13364_v16 = vor.u32 %v12441_v51, %v9122_v11  ;;  %v13366_v17 = vor.u32 %v12438_v12, %v9124_v52  ;;  %v9154_v22 = vld [vmem:[#allocation2 + $0x68] sm:$0xf]  ;;  %v12445_v24 = vld [vmem:[#allocation2 + $0x6c] sm:$0xf]  ;;  %v455_v29 = vrot.slane %v453_v20, 7  ;;  %2628 = vmatpush.bf16.msrb.mxu3 %v9527_v44  ;;  %v326_v0 = vld [vmem:[%s13016_s25 + $0x110] sm:$0xff]  ;;  %v394_v8 = vmax.f32 %v329_v61, %v8917_v4 }
  0x8e   : > { %v460_v46 = vshrl.u32 %v13379_v28, 16  ;;  %v463_v47 = vshll.u32 %v13379_v28, 16  ;;  %433 = vst [vmem:[#allocation2 + $0xc8] sm:$0xff] %v13379_v28  ;;  %v13406_v49 = vor.u32 %v12448_v23, %v9154_v22  ;;  %v13408_v50 = vor.u32 %v12445_v24, %v9156_v25  ;;  %2530 = vmatpush.bf16.msrb.mxu1 %v10035_v48  ;;  %v9148_v58 = vld [vmem:[#allocation2 + $0x78] sm:$0xf0]  ;;  %v8912_v3 = vld [vmem:[%s13016_s25 + $0x120] sm:$0xff] }
  0x8f   : > { %18869 = vst [vmem:[#allocation5_spill] sm:$0xff] %v13366_v17  ;;  %2291 = vmatmul.bf16.vlgmr.msra.gmra.mxu0 %v13364_v16  ;;  %2340 = vmatmul.bf16.vlgmr.msra.gmra.mxu1 %v13366_v17  ;;  %v458_v39 = vor.u32 %v456_v21, %v455_v29  ;;  %v8914_v5 = vld [vmem:[%s13016_s25 + $0x130] sm:$0xff]  ;;  %v389_v7 = vmax.f32 %v324_v60, %v8912_v3  ;;  %v12502_v24 = vld [vmem:[%s18718_s1 + $0x684] sm:$0xf]  ;;  %v9890_v26 = vld [vmem:[%s18718_s1 + $0xa80] sm:$0xf] }
  0x90   : > { %v462_v52 = vrot.slane %v460_v46, 7  ;;  %v391_v9 = vmax.f32 %v326_v0, %v8914_v5  ;;  %v12454_v22 = vld [vmem:[#allocation2 + $0xac] sm:$0xf0]  ;;  %v9180_v23 = vld [vmem:[#allocation2 + $0xb0] sm:$0xf0]  ;;  %v328_v60 = vld [vmem:[%s13016_s25 + $0x140] sm:$0xff] }
  0x91   : > { %v516_v51 = vsel %vm13297_vm6, %v458_v39, %v515_v30  ;;  %v9380_v25 = vld [vmem:[%s18718_s1 + $0x690] sm:$0xf0]  ;;  %v12632_v32 = vld [vmem:[%s18718_s1 + $0xa8c] sm:$0xf0]  ;;  %v12534_v34 = vld [vmem:[%s18718_s1 + $0x784] sm:$0xf] }
  0x92   : > { %517 = vst [vmem:[#allocation2 + $0x90] sm:$0xff] %v516_v51  ;;  %v465_v59 = vor.u32 %v463_v47, %v462_v52  ;;  %v413_v13 = vmax.f32 %v389_v7, %v391_v9  ;;  %v9178_v27 = vld [vmem:[#allocation2 + $0x98] sm:$0xf]  ;;  %v12451_v29 = vld [vmem:[#allocation2 + $0x9c] sm:$0xf]  ;;  %v9383_v30 = vor.u32 %v12502_v24, %v9380_v25  ;;  %v9891_v33 = vor.u32 %v12632_v32, %v9890_v26  ;;  %v330_v0 = vld [vmem:[%s13016_s25 + $0x150] sm:$0xff] }
  0x93   : > { %v9146_v55 = vld [vmem:[#allocation2 + $0x60] sm:$0xf]  ;;  %v12444_v57 = vld [vmem:[#allocation2 + $0x64] sm:$0xf]  ;;  %v9508_v35 = vld [vmem:[%s18718_s1 + $0x790] sm:$0xf0]  ;;  %v13463_v48 = vor.u32 %v12454_v22, %v9178_v27  ;;  %v13465_v51 = vor.u32 %v12451_v29, %v9180_v23 }
  0x94   : > { %v519_v1 = vsel %vm13297_vm6, %v465_v59, %v518_v54  ;;  %v13428_v11 = vor.u32 %v12447_v56, %v9146_v55  ;;  %v13430_v12 = vor.u32 %v12444_v57, %v9148_v58  ;;  %v13432_v19 = vpack.c.bf16 %v414_v18, %v413_v13  ;;  %v10018_v36 = vld [vmem:[%s18718_s1 + $0xb80] sm:$0xf]  ;;  %2580 = vmatpush.bf16.msrb.mxu2 %v9383_v30  ;;  %v12664_v38 = vld [vmem:[%s18718_s1 + $0xb8c] sm:$0xf0]  ;;  %v12453_v56 = vld [vmem:[#allocation2 + $0xa4] sm:$0xf0] }
  0x95   : > { %520 = vst [vmem:[#allocation2 + $0xc0] sm:$0xff] %v519_v1  ;;  %v9511_v37 = vor.u32 %v12534_v34, %v9508_v35  ;;  %2482 = vmatpush.bf16.msrb.mxu0 %v9891_v33  ;;  %v10019_v45 = vor.u32 %v12664_v38, %v10018_v36  ;;  %v521_v54 = vld [vmem:[#allocation2 + $0xf0] sm:$0xff]  ;;  %v9172_v58 = vld [vmem:[#allocation2 + $0xa8] sm:$0xf0]  ;;  %v331_v2 = vld [vmem:[%s13016_s25 + $0x158] sm:$0xff] }
  0x96   : > { %18870 = vst [vmem:[#allocation6_spill] sm:$0xff] %v13428_v11  ;;  %v467_v39 = vshrl.u32 %v13432_v19, 16  ;;  %v470_v44 = vshll.u32 %v13432_v19, 16  ;;  %v8916_v3 = vld [vmem:[%s13016_s25 + $0x160] sm:$0xff]  ;;  %v8918_v5 = vld [vmem:[%s13016_s25 + $0x170] sm:$0xff]  ;;  %v8919_v6 = vld [vmem:[%s13016_s25 + $0x178] sm:$0xff] }
  0x97   : > { %18871 = vst [vmem:[#allocation7_spill] sm:$0xff] %v13430_v12  ;;  %2629 = vmatpush.bf16.msrb.mxu3 %v9511_v37  ;;  %2531 = vmatpush.bf16.msrb.mxu1 %v10019_v45  ;;  %v393_v7 = vmax.f32 %v328_v60, %v8916_v3  ;;  %v395_v9 = vmax.f32 %v330_v0, %v8918_v5  ;;  %v9202_v25 = vld [vmem:[#allocation2 + $0xc8] sm:$0xf]  ;;  %v12460_v26 = vld [vmem:[#allocation2 + $0xdc] sm:$0xf0] }
  0x98   : > { %2394 = vmatmul.bf16.gmra.mxu2 %v13406_v49  ;;  %2443 = vmatmul.bf16.gmra.mxu3 %v13408_v50  ;;  %434 = vst [vmem:[#allocation2 + $0xf8] sm:$0xff] %v13432_v19  ;;  %v469_v52 = vrot.slane %v467_v39, 7  ;;  %v396_v10 = vmax.f32 %v331_v2, %v8919_v6  ;;  %v12498_v27 = vld [vmem:[%s18718_s1 + $0x664] sm:$0xf]  ;;  %v9364_v29 = vld [vmem:[%s18718_s1 + $0x670] sm:$0xf0] }
  0x99   : > { %v9170_v55 = vld [vmem:[#allocation2 + $0x90] sm:$0xf]  ;;  %v12450_v57 = vld [vmem:[#allocation2 + $0x94] sm:$0xf]  ;;  %v415_v22 = vmax.f32 %v393_v7, %v395_v9  ;;  %v9874_v30 = vld [vmem:[%s18718_s1 + $0xa60] sm:$0xf]  ;;  %v9367_v34 = vor.u32 %v12498_v27, %v9364_v29 }
  0x9a   : > { %v472_v59 = vor.u32 %v470_v44, %v469_v52  ;;  %v13483_v13 = vor.u32 %v12453_v56, %v9170_v55  ;;  %v13485_v18 = vor.u32 %v12450_v57, %v9172_v58  ;;  %v416_v23 = vmax.f32 %v394_v8, %v396_v10  ;;  %v12457_v32 = vld [vmem:[#allocation2 + $0xcc] sm:$0xf]  ;;  %v9204_v33 = vld [vmem:[#allocation2 + $0xe0] sm:$0xf0]  ;;  %v12628_v35 = vld [vmem:[%s18718_s1 + $0xa6c] sm:$0xf0] }
  0x9b   : > { %v9875_v36 = vor.u32 %v12628_v35, %v9874_v30  ;;  %v12530_v37 = vld [vmem:[%s18718_s1 + $0x764] sm:$0xf]  ;;  %v9492_v38 = vld [vmem:[%s18718_s1 + $0x770] sm:$0xf0]  ;;  %v10002_v45 = vld [vmem:[%s18718_s1 + $0xb60] sm:$0xf]  ;;  %2581 = vmatpush.bf16.msrb.mxu2 %v9367_v34  ;;  %v13518_v58 = vor.u32 %v12460_v26, %v9202_v25 }
  0x9c   : > { %v522_v1 = vsel %vm13297_vm6, %v472_v59, %v521_v54  ;;  %18872 = vst [vmem:[#allocation8_spill] sm:$0xff] %v13483_v13  ;;  %v13487_v24 = vpack.c.bf16 %v416_v23, %v415_v22  ;;  %v9495_v52 = vor.u32 %v12530_v37, %v9492_v38  ;;  %v12660_v54 = vld [vmem:[%s18718_s1 + $0xb6c] sm:$0xf0]  ;;  %v13520_v59 = vor.u32 %v12457_v32, %v9204_v33  ;;  %v524_v61 = vld [vmem:[#allocation2 + $0x120] sm:$0xff]  ;;  %v9196_v3 = vld [vmem:[#allocation2 + $0xd8] sm:$0xf0] }
  0x9d   : > { %523 = vst [vmem:[#allocation2 + $0xf0] sm:$0xff] %v522_v1  ;;  %2483 = vmatpush.bf16.msrb.mxu0 %v9875_v36  ;;  %v10003_v57 = vor.u32 %v12660_v54, %v10002_v45  ;;  %v9194_v0 = vld [vmem:[#allocation2 + $0xc0] sm:$0xf]  ;;  %v12459_v1 = vld [vmem:[#allocation2 + $0xd4] sm:$0xf0]  ;;  %v333_v6 = vld [vmem:[%s13016_s25 + $0x188] sm:$0xff] }
  0x9e   : > { %18873 = vst [vmem:[#allocation9_spill] sm:$0xff] %v13485_v18  ;;  %v474_v55 = vshrl.u32 %v13487_v24, 16  ;;  %v477_v56 = vshll.u32 %v13487_v24, 16  ;;  %2630 = vmatpush.bf16.msrb.mxu3 %v9495_v52  ;;  %v12456_v2 = vld [vmem:[#allocation2 + $0xc4] sm:$0xf]  ;;  %v334_v7 = vld [vmem:[%s13016_s25 + $0x190] sm:$0xff]  ;;  %v13538_v32 = vor.u32 %v12459_v1, %v9194_v0 }
  0x9f   : > { %2296 = vmatmul.bf16.gmra.mxu0 %v13428_v11  ;;  %2345 = vmatmul.bf16.gmra.mxu1 %v13430_v12  ;;  %435 = vst [vmem:[#allocation2 + $0x128] sm:$0xff] %v13487_v24  ;;  %v332_v5 = vld [vmem:[%s13016_s25 + $0x180] sm:$0xff]  ;;  %v335_v9 = vld [vmem:[%s13016_s25 + $0x198] sm:$0xff]  ;;  %v8921_v22 = vld [vmem:[%s13016_s25 + $0x1a8] sm:$0xff]  ;;  %v13540_v33 = vor.u32 %v12456_v2, %v9196_v3 }
  0xa0   : > { %v476_v60 = vrot.slane %v474_v55, 7  ;;  %2532 = vmatpush.bf16.msrb.mxu1 %v10003_v57  ;;  %v8920_v10 = vld [vmem:[%s13016_s25 + $0x1a0] sm:$0xff]  ;;  %v8922_v23 = vld [vmem:[%s13016_s25 + $0x1b0] sm:$0xff]  ;;  %v8923_v25 = vld [vmem:[%s13016_s25 + $0x1b8] sm:$0xff]  ;;  %v398_v27 = vmax.f32 %v333_v6, %v8921_v22  ;;  %18874 = vst [vmem:[#allocation10_spill] sm:$0xff] %v13538_v32 }
  0xa1   : > { %v397_v26 = vmax.f32 %v332_v5, %v8920_v10  ;;  %v399_v29 = vmax.f32 %v334_v7, %v8922_v23  ;;  %v400_v30 = vmax.f32 %v335_v9, %v8923_v25  ;;  %18875 = vst [vmem:[#allocation11_spill] sm:$0xff] %v13540_v33  ;;  %v9226_v37 = vld [vmem:[#allocation2 + $0xf8] sm:$0xf]  ;;  %v12466_v38 = vld [vmem:[#allocation2 + $0x10c] sm:$0xf0] }
  0xa2   : > { %v479_v4 = vor.u32 %v477_v56, %v476_v60  ;;  %v12494_v45 = vld [vmem:[%s18718_s1 + $0x644] sm:$0xf]  ;;  %v9348_v52 = vld [vmem:[%s18718_s1 + $0x650] sm:$0xf0]  ;;  %v9858_v54 = vld [vmem:[%s18718_s1 + $0xa40] sm:$0xf]  ;;  %v13573_v10 = vor.u32 %v12466_v38, %v9226_v37 }
  0xa3   : > { %v417_v34 = vmax.f32 %v397_v26, %v399_v29  ;;  %v418_v35 = vmax.f32 %v398_v27, %v400_v30  ;;  %v12463_v57 = vld [vmem:[#allocation2 + $0xfc] sm:$0xf]  ;;  %v9228_v60 = vld [vmem:[#allocation2 + $0x110] sm:$0xf0]  ;;  %v12624_v0 = vld [vmem:[%s18718_s1 + $0xa4c] sm:$0xf0] }
  0xa4   : > { %v525_v8 = vsel %vm13297_vm6, %v479_v4, %v524_v61  ;;  %v9351_v61 = vor.u32 %v12494_v45, %v9348_v52  ;;  %v9859_v1 = vor.u32 %v12624_v0, %v9858_v54  ;;  %v12526_v2 = vld [vmem:[%s18718_s1 + $0x744] sm:$0xf]  ;;  %v9476_v3 = vld [vmem:[%s18718_s1 + $0x750] sm:$0xf0]  ;;  %v9986_v4 = vld [vmem:[%s18718_s1 + $0xb40] sm:$0xf]  ;;  %v13575_v22 = vor.u32 %v12463_v57, %v9228_v60 }
  0xa5   : > { %526 = vst [vmem:[#allocation2 + $0x120] sm:$0xff] %v525_v8  ;;  %v13542_v36 = vpack.c.bf16 %v418_v35, %v417_v34  ;;  %v9479_v5 = vor.u32 %v12526_v2, %v9476_v3  ;;  %v12656_v6 = vld [vmem:[%s18718_s1 + $0xb4c] sm:$0xf0]  ;;  %v12465_v27 = vld [vmem:[#allocation2 + $0x104] sm:$0xf0]  ;;  %v336_v35 = vld [vmem:[%s13016_s25 + $0x1c0] sm:$0xff] }
  0xa6   : > { %2582 = vmatpush.bf16.msrb.mxu2 %v9351_v61  ;;  %2484 = vmatpush.bf16.msrb.mxu0 %v9859_v1  ;;  %v9987_v9 = vor.u32 %v12656_v6, %v9986_v4  ;;  %v527_v25 = vld [vmem:[#allocation2 + $0x150] sm:$0xff]  ;;  %v9220_v30 = vld [vmem:[#allocation2 + $0x108] sm:$0xf0]  ;;  %v339_v52 = vld [vmem:[%s13016_s25 + $0x1d8] sm:$0xff] }
  0xa7   : > { %v18724_v7 = vshrl.u32 %v13542_v36, 16  ;;  %v18723_v8 = vshll.u32 %v13542_v36, 16  ;;  %436 = vst [vmem:[#allocation2 + $0x158] sm:$0xff] %v13542_v36  ;;  %2631 = vmatpush.bf16.msrb.mxu3 %v9479_v5  ;;  %v9218_v26 = vld [vmem:[#allocation2 + $0xf0] sm:$0xf]  ;;  %v337_v37 = vld [vmem:[%s13016_s25 + $0x1c8] sm:$0xff] }
  0xa8   : > { %2399 = vmatmul.bf16.gmra.mxu2 %v13463_v48  ;;  %2448 = vmatmul.bf16.gmra.mxu3 %v13465_v51  ;;  %v12462_v29 = vld [vmem:[#allocation2 + $0xf4] sm:$0xf]  ;;  %v8924_v54 = vld [vmem:[%s13016_s25 + $0x1e0] sm:$0xff]  ;;  %v8925_v57 = vld [vmem:[%s13016_s25 + $0x1e8] sm:$0xff]  ;;  %v13593_v4 = vor.u32 %v12465_v27, %v9218_v26 }
  0xa9   : > { %v483_v23 = vrot.slane %v18724_v7, 7  ;;  %2533 = vmatpush.bf16.msrb.mxu1 %v9987_v9  ;;  %v338_v38 = vld [vmem:[%s13016_s25 + $0x1d0] sm:$0xff]  ;;  %v8927_v61 = vld [vmem:[%s13016_s25 + $0x1f8] sm:$0xff]  ;;  %v401_v0 = vmax.f32 %v336_v35, %v8924_v54  ;;  %v402_v1 = vmax.f32 %v337_v37, %v8925_v57  ;;  %v13595_v5 = vor.u32 %v12462_v29, %v9220_v30  ;;  %v12490_v35 = vld [vmem:[%s18718_s1 + $0x624] sm:$0xf] }
  0xaa   : > { %v8926_v60 = vld [vmem:[%s13016_s25 + $0x1f0] sm:$0xff]  ;;  %v404_v3 = vmax.f32 %v339_v52, %v8927_v61  ;;  %18876 = vst [vmem:[#allocation12_spill] sm:$0xff] %v13593_v4  ;;  %v9842_v27 = vld [vmem:[%s18718_s1 + $0xa20] sm:$0xf]  ;;  %v12469_v29 = vld [vmem:[#allocation2 + $0x12c] sm:$0xf] }
  0xab   : > { %v486_v34 = vor.u32 %v18723_v8, %v483_v23  ;;  %v403_v2 = vmax.f32 %v338_v38, %v8926_v60  ;;  %18877 = vst [vmem:[#allocation13_spill] sm:$0xff] %v13595_v5  ;;  %v9332_v26 = vld [vmem:[%s18718_s1 + $0x630] sm:$0xf0]  ;;  %v9252_v30 = vld [vmem:[#allocation2 + $0x140] sm:$0xf0] }
  0xac   : > { %v420_v9 = vmax.f32 %v402_v1, %v404_v3  ;;  %v9335_v37 = vor.u32 %v12490_v35, %v9332_v26  ;;  %v12620_v38 = vld [vmem:[%s18718_s1 + $0xa2c] sm:$0xf0]  ;;  %v12522_v52 = vld [vmem:[%s18718_s1 + $0x724] sm:$0xf]  ;;  %v9460_v54 = vld [vmem:[%s18718_s1 + $0x730] sm:$0xf0] }
  0xad   : > { %v528_v45 = vsel %vm13297_vm6, %v486_v34, %v527_v25  ;;  %v419_v6 = vmax.f32 %v401_v0, %v403_v2  ;;  %v9250_v25 = vld [vmem:[#allocation2 + $0x128] sm:$0xf]  ;;  %v12472_v34 = vld [vmem:[#allocation2 + $0x13c] sm:$0xf0]  ;;  %v9463_v60 = vor.u32 %v12522_v52, %v9460_v54  ;;  %v12652_v61 = vld [vmem:[%s18718_s1 + $0xb2c] sm:$0xf0] }
  0xae   : > { %529 = vst [vmem:[#allocation2 + $0x150] sm:$0xff] %v528_v45  ;;  %v9843_v45 = vor.u32 %v12620_v38, %v9842_v27  ;;  %v9970_v57 = vld [vmem:[%s18718_s1 + $0xb20] sm:$0xf]  ;;  %2583 = vmatpush.bf16.msrb.mxu2 %v9335_v37  ;;  %v13628_v3 = vor.u32 %v12472_v34, %v9250_v25  ;;  %v12471_v27 = vld [vmem:[#allocation2 + $0x134] sm:$0xf0] }
  0xaf   : > { %2301 = vmatmul.bf16.gmra.mxu0 %v13483_v13  ;;  %2350 = vmatmul.bf16.gmra.mxu1 %v13485_v18  ;;  %v13597_v23 = vpack.c.bf16 %v420_v9, %v419_v6  ;;  %v9971_v2 = vor.u32 %v12652_v61, %v9970_v57  ;;  %v13630_v6 = vor.u32 %v12469_v29, %v9252_v30  ;;  %v530_v35 = vld [vmem:[#allocation2 + $0x180] sm:$0xff]  ;;  %v9244_v52 = vld [vmem:[#allocation2 + $0x138] sm:$0xf0]  ;;  %v533_v30 = vrot.slane %v439_v62, 4  ;;  %v9274_v54 = vld [vmem:[#allocation2 + $0x158] sm:$0xf] }
  0xb0   : > { %2485 = vmatpush.bf16.msrb.mxu0 %v9843_v45  ;;  %2632 = vmatpush.bf16.msrb.mxu3 %v9463_v60  ;;  %v9242_v37 = vld [vmem:[#allocation2 + $0x120] sm:$0xf]  ;;  %v12468_v38 = vld [vmem:[#allocation2 + $0x124] sm:$0xf]  ;;  %v534_v45 = vrot.slane %v442_v63, 5 }
  0xb1   : > { %v18722_v0 = vshrl.u32 %v13597_v23, 16  ;;  %v18721_v1 = vshll.u32 %v13597_v23, 16  ;;  %437 = vst [vmem:[#allocation2 + $0x188] sm:$0xff] %v13597_v23  ;;  %2534 = vmatpush.bf16.msrb.mxu1 %v9971_v2  ;;  %v13640_v34 = vor.u32 %v12471_v27, %v9242_v37  ;;  %v13642_v29 = vor.u32 %v12468_v38, %v9244_v52  ;;  %v12478_v57 = vld [vmem:[#allocation2 + $0x16c] sm:$0xf0] }
  0xb2   : > { %v12486_v15 = vld [vmem:[%s18718_s1 + $0x604] sm:$0xf]  ;;  %v9316_v60 = vld [vmem:[%s18718_s1 + $0x610] sm:$0xf0]  ;;  %v9826_v62 = vld [vmem:[%s18718_s1 + $0xa00] sm:$0xf] }
  0xb3   : > { %v490_v9 = vrot.slane %v18722_v0, 7  ;;  %18878 = vst [vmem:[#allocation14_spill] sm:$0xff] %v13640_v34  ;;  %v12475_v53 = vld [vmem:[#allocation2 + $0x15c] sm:$0xf]  ;;  %v9276_v63 = vld [vmem:[#allocation2 + $0x170] sm:$0xf0]  ;;  %v9319_v61 = vor.u32 %v12486_v15, %v9316_v60  ;;  %v13675_v15 = vor.u32 %v12478_v57, %v9274_v54 }
  0xb4   : > { %18879 = vst [vmem:[#allocation15_spill] sm:$0xff] %v13642_v29  ;;  %v12616_v2 = vld [vmem:[%s18718_s1 + $0xa0c] sm:$0xf0]  ;;  %v9444_v27 = vld [vmem:[%s18718_s1 + $0x710] sm:$0xf0]  ;;  %v13677_v60 = vor.u32 %v12475_v53, %v9276_v63  ;;  %v537_v53 = vrot.slane %v446_v42, 4 }
  0xb5   : > { %v493_v26 = vor.u32 %v18721_v1, %v490_v9  ;;  %v535_v9 = vor.u32 %v534_v45, %v533_v30  ;;  %v9954_v37 = vld [vmem:[%s18718_s1 + $0xb00] sm:$0xf]  ;;  %2584 = vmatpush.bf16.msrb.mxu2 %v9319_v61  ;;  %v12648_v52 = vld [vmem:[%s18718_s1 + $0xb0c] sm:$0xf0]  ;;  %v538_v63 = vrot.slane %v449_v43, 5 }
  0xb6   : > { %v9955_v30 = vor.u32 %v12648_v52, %v9954_v37  ;;  %v578_v45 = vld [vmem:[#allocation2 + $0x40] sm:$0xff]  ;;  %v9684_v43 = vld [vmem:[%s18718_s1 + $0x8f0] sm:$0xf0] }
  0xb7   : > { %v531_v25 = vsel %vm13297_vm6, %v493_v26, %v530_v35  ;;  %v9827_v35 = vor.u32 %v12616_v2, %v9826_v62  ;;  %v12518_v26 = vld [vmem:[%s18718_s1 + $0x704] sm:$0xf]  ;;  %v12477_v2 = vld [vmem:[#allocation2 + $0x164] sm:$0xf0]  ;;  %v12484_v37 = vld [vmem:[#allocation2 + $0x19c] sm:$0xf0] }
  0xb8   : > { %2404 = vmatmul.bf16.gmra.mxu2 %v13518_v58  ;;  %2453 = vmatmul.bf16.gmra.mxu3 %v13520_v59  ;;  %532 = vst [vmem:[#allocation2 + $0x180] sm:$0xff] %v531_v25  ;;  %v9447_v38 = vor.u32 %v12518_v26, %v9444_v27  ;;  %v536_v25 = vrot.slane %v535_v9, 4  ;;  %v9266_v9 = vld [vmem:[#allocation2 + $0x150] sm:$0xf]  ;;  %v9268_v26 = vld [vmem:[#allocation2 + $0x168] sm:$0xf0] }
  0xb9   : > { %2486 = vmatpush.bf16.msrb.mxu0 %v9827_v35  ;;  %2535 = vmatpush.bf16.msrb.mxu1 %v9955_v30  ;;  %v12474_v35 = vld [vmem:[#allocation2 + $0x154] sm:$0xf]  ;;  %v13688_v54 = vor.u32 %v12477_v2, %v9266_v9  ;;  %v9298_v27 = vld [vmem:[#allocation2 + $0x188] sm:$0xf]  ;;  %v12642_v52 = vld [vmem:[%s18718_s1 + $0xae4] sm:$0xf] }
  0xba   : > { %2633 = vmatpush.bf16.msrb.mxu3 %v9447_v38  ;;  %v579_v61 = vsel %vm13680_vm11, %v536_v25, %v578_v45  ;;  %v13690_v57 = vor.u32 %v12474_v35, %v9268_v26  ;;  %v12481_v38 = vld [vmem:[#allocation2 + $0x18c] sm:$0xf]  ;;  %v9940_v25 = vld [vmem:[%s18718_s1 + $0xaf0] sm:$0xf0]  ;;  %v12578_v31 = vld [vmem:[%s18718_s1 + $0x8e4] sm:$0xf]  ;;  %v13722_v8 = vor.u32 %v12484_v37, %v9298_v27 }
  0xbb   : > { %580 = vst [vmem:[#allocation2 + $0x40] sm:$0xff] %v579_v61  ;;  %v9943_v42 = vor.u32 %v12642_v52, %v9940_v25  ;;  %v12674_v30 = vld [vmem:[%s18718_s1 + $0xbe4] sm:$0xf]  ;;  %v10068_v45 = vld [vmem:[%s18718_s1 + $0xbf0] sm:$0xf0]  ;;  %v539_v61 = vor.u32 %v538_v63, %v537_v53  ;;  %v9687_v9 = vor.u32 %v12578_v31, %v9684_v43  ;;  %v541_v27 = vrot.slane %v453_v20, 4 }
  0xbc   : > { %18882 = vst [vmem:[#allocation16_spill] sm:$0xff] %v13688_v54  ;;  %v9300_v2 = vld [vmem:[#allocation2 + $0x1a0] sm:$0xf0]  ;;  %v10071_v35 = vor.u32 %v12674_v30, %v10068_v45  ;;  %v9812_v52 = vld [vmem:[%s18718_s1 + $0x9f0] sm:$0xf0]  ;;  %v542_v37 = vrot.slane %v456_v21, 5 }
  0xbd   : > { %18883 = vst [vmem:[#allocation17_spill] sm:$0xff] %v13690_v57  ;;  %v12610_v26 = vld [vmem:[%s18718_s1 + $0x9e4] sm:$0xf]  ;;  %2773 = vmatpush.bf16.msra.mxu2 %v9943_v42  ;;  %v540_v1 = vrot.slane %v539_v61, 4  ;;  %2675 = vmatpush.bf16.msra.mxu0 %v9687_v9  ;;  %v581_v0 = vld [vmem:[#allocation2 + $0x70] sm:$0xff]  ;;  %v13724_v53 = vor.u32 %v12481_v38, %v9300_v2 }
  0xbe   : > { %v9815_v25 = vor.u32 %v12610_v26, %v9812_v52  ;;  %2822 = vmatpush.bf16.msra.mxu3 %v10071_v35  ;;  %v12483_v31 = vld [vmem:[#allocation2 + $0x194] sm:$0xf0]  ;;  %v9292_v45 = vld [vmem:[#allocation2 + $0x198] sm:$0xf0]  ;;  %v12574_v38 = vld [vmem:[%s18718_s1 + $0x8c4] sm:$0xf]  ;;  %v543_v9 = vor.u32 %v542_v37, %v541_v27 }
  0xbf   : > { %2306 = vmatmul.bf16.gmra.mxu0 %v13538_v32  ;;  %2355 = vmatmul.bf16.gmra.mxu1 %v13540_v33  ;;  %v582_v63 = vsel %vm13680_vm11, %v540_v1, %v581_v0  ;;  %v9290_v43 = vld [vmem:[#allocation2 + $0x180] sm:$0xf]  ;;  %v12480_v30 = vld [vmem:[#allocation2 + $0x184] sm:$0xf]  ;;  %v9924_v1 = vld [vmem:[%s18718_s1 + $0xad0] sm:$0xf0] }
  0xc0   : > { %2724 = vmatpush.bf16.msra.mxu1 %v9815_v25  ;;  %583 = vst [vmem:[#allocation2 + $0x70] sm:$0xff] %v582_v63  ;;  %v13730_v42 = vor.u32 %v12483_v31, %v9290_v43  ;;  %v13732_v61 = vor.u32 %v12480_v30, %v9292_v45  ;;  %v12638_v0 = vld [vmem:[%s18718_s1 + $0xac4] sm:$0xf]  ;;  %v9668_v14 = vld [vmem:[%s18718_s1 + $0x8d0] sm:$0xf0]  ;;  %v544_v31 = vrot.slane %v543_v9, 4 }
  0xc1   : > { %v9927_v20 = vor.u32 %v12638_v0, %v9924_v1  ;;  %v12670_v21 = vld [vmem:[%s18718_s1 + $0xbc4] sm:$0xf]  ;;  %v10052_v2 = vld [vmem:[%s18718_s1 + $0xbd0] sm:$0xf0]  ;;  %v9671_v35 = vor.u32 %v12574_v38, %v9668_v14  ;;  %v12443_v45 = vld [vmem:[#allocation2 + $0x54] sm:$0xf0] }
  0xc2   : > { %18884 = vst [vmem:[#allocation18_spill] sm:$0xff] %v13730_v42  ;;  %v10055_v26 = vor.u32 %v12670_v21, %v10052_v2  ;;  %v12606_v52 = vld [vmem:[%s18718_s1 + $0x9c4] sm:$0xf]  ;;  %v9796_v25 = vld [vmem:[%s18718_s1 + $0x9d0] sm:$0xf0] }
  0xc3   : > { %18885 = vst [vmem:[#allocation19_spill] sm:$0xff] %v13732_v61  ;;  %2774 = vmatpush.bf16.msra.mxu2 %v9927_v20  ;;  %v9799_v63 = vor.u32 %v12606_v52, %v9796_v25  ;;  %2676 = vmatpush.bf16.msra.mxu0 %v9671_v35  ;;  %v584_v43 = vld [vmem:[#allocation2 + $0xa0] sm:$0xff]  ;;  %v9140_v0 = vld [vmem:[#allocation2 + $0x58] sm:$0xf0]  ;;  %v545_v35 = vrot.slane %v460_v46, 4 }
  0xc4   : > { %2823 = vmatpush.bf16.msra.mxu3 %v10055_v26  ;;  %v585_v30 = vsel %vm13680_vm11, %v544_v31, %v584_v43  ;;  %v9138_v27 = vld [vmem:[#allocation2 + $0x40] sm:$0xf]  ;;  %v12440_v37 = vld [vmem:[#allocation2 + $0x44] sm:$0xf]  ;;  %v546_v26 = vrot.slane %v463_v47, 5 }
  0xc5   : > { %2725 = vmatpush.bf16.msra.mxu1 %v9799_v63  ;;  %586 = vst [vmem:[#allocation2 + $0xa0] sm:$0xff] %v585_v30  ;;  %v13768_v1 = vor.u32 %v12443_v45, %v9138_v27  ;;  %v13770_v38 = vor.u32 %v12440_v37, %v9140_v0  ;;  %v12634_v25 = vld [vmem:[%s18718_s1 + $0xaa4] sm:$0xf]  ;;  %v9908_v63 = vld [vmem:[%s18718_s1 + $0xab0] sm:$0xf0] }
  0xc6   : > { %v12570_v46 = vld [vmem:[%s18718_s1 + $0x8a4] sm:$0xf]  ;;  %v9911_v31 = vor.u32 %v12634_v25, %v9908_v63  ;;  %v9652_v28 = vld [vmem:[%s18718_s1 + $0x8b0] sm:$0xf0]  ;;  %v547_v30 = vor.u32 %v546_v26, %v545_v35 }
  0xc7   : > { %v12666_v47 = vld [vmem:[%s18718_s1 + $0xba4] sm:$0xf]  ;;  %v10036_v43 = vld [vmem:[%s18718_s1 + $0xbb0] sm:$0xf0]  ;;  %v9655_v27 = vor.u32 %v12570_v46, %v9652_v28  ;;  %v9162_v28 = vld [vmem:[#allocation2 + $0x70] sm:$0xf] }
  0xc8   : > { %2409 = vmatmul.bf16.gmra.mxu2 %v13573_v10  ;;  %2458 = vmatmul.bf16.gmra.mxu3 %v13575_v22  ;;  %v10039_v37 = vor.u32 %v12666_v47, %v10036_v43  ;;  %v12602_v0 = vld [vmem:[%s18718_s1 + $0x9a4] sm:$0xf]  ;;  %v587_v35 = vld [vmem:[#allocation2 + $0xd0] sm:$0xff]  ;;  %v12449_v47 = vld [vmem:[#allocation2 + $0x84] sm:$0xf0] }
  0xc9   : > { %2775 = vmatpush.bf16.msra.mxu2 %v9911_v31  ;;  %2677 = vmatpush.bf16.msra.mxu0 %v9655_v27  ;;  %v12446_v43 = vld [vmem:[#allocation2 + $0x74] sm:$0xf]  ;;  %v9164_v31 = vld [vmem:[#allocation2 + $0x88] sm:$0xf0]  ;;  %v13810_v27 = vor.u32 %v12449_v47, %v9162_v28 }
  0xca   : > { %2824 = vmatpush.bf16.msra.mxu3 %v10039_v37  ;;  %v13812_v37 = vor.u32 %v12446_v43, %v9164_v31  ;;  %v9636_v19 = vld [vmem:[%s18718_s1 + $0x890] sm:$0xf0] }
  0xcb   : > { %v9620_v24 = vld [vmem:[%s18718_s1 + $0x870] sm:$0xf0] }
  0xcc   : > { %v12452_v7 = vld [vmem:[#allocation2 + $0xa4] sm:$0xf] }
  0xcf   : > { %2311 = vmatmul.bf16.gmra.mxu0 %v13593_v4  ;;  %2360 = vmatmul.bf16.gmra.mxu1 %v13595_v5 }
  0xd8   : > { %2414 = vmatmul.bf16.gmra.mxu2 %v13628_v3  ;;  %2463 = vmatmul.bf16.gmra.mxu3 %v13630_v6 }
  0xdf   : > { %2316 = vmatmul.bf16.gmra.mxu0 %v13640_v34  ;;  %2365 = vmatmul.bf16.gmra.mxu1 %v13642_v29 }
  0xe8   : > { %2419 = vmatmul.bf16.gmra.mxu2 %v13675_v15  ;;  %2468 = vmatmul.bf16.gmra.mxu3 %v13677_v60 }
  0xef   : > { %2321 = vmatmul.bf16.gmra.mxu0 %v13688_v54  ;;  %2370 = vmatmul.bf16.gmra.mxu1 %v13690_v57 }
  0xf8   : > { %2424 = vmatmul.bf16.gmra.mxu2 %v13722_v8  ;;  %2473 = vmatmul.bf16.gmra.mxu3 %v13724_v53 }
  0xff   : > { %2326 = vmatmul.bf16.gmra.mxu0 %v13730_v42  ;;  %2375 = vmatmul.bf16.gmra.mxu1 %v13732_v61 }
 0x108   : > { %2585 = vmatmul.bf16.vlgmr.msrb.gmra.mxu2 %v13364_v16  ;;  %2634 = vmatmul.bf16.vlgmr.msrb.gmra.mxu3 %v13366_v17 }
 0x10b   : > { %v2390_v20 = vpop.f32.mrf.mxu2  ;;  %v2439_v14 = vpop.f32.mrf.mxu3 }
 0x10c   : > { %v2292_v21 = vpop.f32.mrf.mxu0  ;;  %v2341_v2 = vpop.f32.mrf.mxu1 }
 0x10d   : > { %v2342_v9 = vadd.f32 %v2341_v2, %v2292_v21  ;;  %v548_v2 = vrot.slane %v547_v30, 4 }
 0x10f   : > { %2487 = vmatmul.bf16.vlgmr.msrb.gmra.mxu0 %v13768_v1  ;;  %2536 = vmatmul.bf16.vlgmr.msrb.gmra.mxu1 %v13770_v38  ;;  %v2391_v52 = vadd.f32 %v2390_v20, %v2342_v9  ;;  %v9780_v20 = vld [vmem:[%s18718_s1 + $0x9b0] sm:$0xf0] }
 0x110   : > { %v9783_v21 = vor.u32 %v12602_v0, %v9780_v20 }
 0x111   : > { %v13796_v45 = vadd.f32 %v2439_v14, %v2391_v52  ;;  %v588_v52 = vsel %vm13680_vm11, %v548_v2, %v587_v35 }
 0x112   : > { %2726 = vmatpush.bf16.msra.mxu1 %v9783_v21  ;;  %589 = vst [vmem:[#allocation2 + $0xd0] sm:$0xff] %v588_v52  ;;  %v9892_v52 = vld [vmem:[%s18718_s1 + $0xa90] sm:$0xf0] }
 0x113   : > { %v2392_v9 = vpop.f32.mrf.mxu2  ;;  %v2441_v25 = vpop.f32.mrf.mxu3 }
 0x114   : > { %v2294_v14 = vpop.f32.mrf.mxu0  ;;  %v2343_v26 = vpop.f32.mrf.mxu1 }
 0x115   : > { %v2344_v63 = vadd.f32 %v2343_v26, %v2294_v14  ;;  %v550_v14 = vrot.slane %v470_v44, 5  ;;  %v12630_v26 = vld [vmem:[%s18718_s1 + $0xa84] sm:$0xf] }
 0x116   : > { %v12662_v44 = vld [vmem:[%s18718_s1 + $0xb84] sm:$0xf] }
 0x117   : > { %v2393_v46 = vadd.f32 %v2392_v9, %v2344_v63  ;;  %v549_v9 = vrot.slane %v467_v39, 4  ;;  %v12566_v39 = vld [vmem:[%s18718_s1 + $0x884] sm:$0xf]  ;;  %v9895_v63 = vor.u32 %v12630_v26, %v9892_v52 }
 0x118   : > { %2590 = vmatmul.bf16.gmra.mxu2 %v13428_v11  ;;  %2639 = vmatmul.bf16.gmra.mxu3 %v13430_v12  ;;  %v9639_v43 = vor.u32 %v12566_v39, %v9636_v19 }
 0x119   : > { %v13808_v30 = vadd.f32 %v2441_v25, %v2393_v46  ;;  %v10020_v46 = vld [vmem:[%s18718_s1 + $0xb90] sm:$0xf0]  ;;  %v551_v28 = vor.u32 %v550_v14, %v549_v9  ;;  %2776 = vmatpush.bf16.msra.mxu2 %v9895_v63  ;;  %v590_v9 = vld [vmem:[#allocation2 + $0x100] sm:$0xff]  ;;  %v9188_v63 = vld [vmem:[#allocation2 + $0xb8] sm:$0xf0] }
 0x11a   : > { %v10023_v31 = vor.u32 %v12662_v44, %v10020_v46  ;;  %2678 = vmatpush.bf16.msra.mxu0 %v9639_v43  ;;  %v9186_v44 = vld [vmem:[#allocation2 + $0xa0] sm:$0xf]  ;;  %v12455_v46 = vld [vmem:[#allocation2 + $0xb4] sm:$0xf0] }
 0x11b   : > { %v2395_v0 = vpop.f32.mrf.mxu2  ;;  %v2444_v20 = vpop.f32.mrf.mxu3  ;;  %v13852_v43 = vor.u32 %v12455_v46, %v9186_v44 }
 0x11c   : > { %v2297_v21 = vpop.f32.mrf.mxu0  ;;  %v2346_v2 = vpop.f32.mrf.mxu1  ;;  %2825 = vmatpush.bf16.msra.mxu3 %v10023_v31  ;;  %v13854_v31 = vor.u32 %v12452_v7, %v9188_v63  ;;  %v12626_v7 = vld [vmem:[%s18718_s1 + $0xa64] sm:$0xf] }
 0x11d   : > { %v2347_v35 = vadd.f32 %v2346_v2, %v2297_v21  ;;  %v9764_v21 = vld [vmem:[%s18718_s1 + $0x990] sm:$0xf0] }
 0x11f   : > { %2492 = vmatmul.bf16.gmra.mxu0 %v13810_v27  ;;  %2541 = vmatmul.bf16.gmra.mxu1 %v13812_v37  ;;  %v2396_v25 = vadd.f32 %v2395_v0, %v2347_v35  ;;  %v12598_v0 = vld [vmem:[%s18718_s1 + $0x984] sm:$0xf]  ;;  %v552_v35 = vrot.slane %v551_v28, 4 }
 0x120   : > { %v9767_v2 = vor.u32 %v12598_v0, %v9764_v21 }
 0x121   : > { %v13838_v47 = vadd.f32 %v2444_v20, %v2396_v25  ;;  %v591_v25 = vsel %vm13680_vm11, %v552_v35, %v590_v9 }
 0x122   : > { %2727 = vmatpush.bf16.msra.mxu1 %v9767_v2  ;;  %592 = vst [vmem:[#allocation2 + $0x100] sm:$0xff] %v591_v25 }
 0x123   : > { %v2397_v26 = vpop.f32.mrf.mxu2  ;;  %v2446_v52 = vpop.f32.mrf.mxu3 }
 0x124   : > { %v2299_v20 = vpop.f32.mrf.mxu0  ;;  %v2348_v14 = vpop.f32.mrf.mxu1 }
 0x125   : > { %v2349_v39 = vadd.f32 %v2348_v14, %v2299_v20  ;;  %v554_v20 = vrot.slane %v477_v56, 5  ;;  %v9876_v14 = vld [vmem:[%s18718_s1 + $0xa70] sm:$0xf0]  ;;  %v12658_v56 = vld [vmem:[%s18718_s1 + $0xb64] sm:$0xf] }
 0x126   : > { %v9879_v25 = vor.u32 %v12626_v7, %v9876_v14 }
 0x127   : > { %v2398_v19 = vadd.f32 %v2397_v26, %v2349_v39  ;;  %v553_v26 = vrot.slane %v474_v55, 4  ;;  %v12562_v55 = vld [vmem:[%s18718_s1 + $0x864] sm:$0xf]  ;;  %v10004_v39 = vld [vmem:[%s18718_s1 + $0xb70] sm:$0xf0] }
 0x128   : > { %2595 = vmatmul.bf16.gmra.mxu2 %v13483_v13  ;;  %2644 = vmatmul.bf16.gmra.mxu3 %v13485_v18  ;;  %v9623_v46 = vor.u32 %v12562_v55, %v9620_v24  ;;  %v10007_v63 = vor.u32 %v12658_v56, %v10004_v39  ;;  %v9210_v56 = vld [vmem:[#allocation2 + $0xd0] sm:$0xf]  ;;  %v12461_v39 = vld [vmem:[#allocation2 + $0xe4] sm:$0xf0]  ;;  %v12458_v18 = vld [vmem:[#allocation2 + $0xd4] sm:$0xf] }
 0x129   : > { %v13850_v28 = vadd.f32 %v2446_v52, %v2398_v19  ;;  %v555_v19 = vor.u32 %v554_v20, %v553_v26  ;;  %2777 = vmatpush.bf16.msra.mxu2 %v9879_v25  ;;  %v593_v26 = vld [vmem:[#allocation2 + $0x130] sm:$0xff]  ;;  %v9212_v25 = vld [vmem:[#allocation2 + $0xe8] sm:$0xf0]  ;;  %v12464_v13 = vld [vmem:[#allocation2 + $0x104] sm:$0xf] }
 0x12a   : > { %2679 = vmatpush.bf16.msra.mxu0 %v9623_v46  ;;  %2826 = vmatpush.bf16.msra.mxu3 %v10007_v63  ;;  %v13894_v46 = vor.u32 %v12461_v39, %v9210_v56  ;;  %v13896_v63 = vor.u32 %v12458_v18, %v9212_v25  ;;  %v12622_v18 = vld [vmem:[%s18718_s1 + $0xa44] sm:$0xf]  ;;  %v9988_v25 = vld [vmem:[%s18718_s1 + $0xb50] sm:$0xf0] }
 0x12b   : > { %v2400_v0 = vpop.f32.mrf.mxu2  ;;  %v2449_v21 = vpop.f32.mrf.mxu3  ;;  %v12654_v39 = vld [vmem:[%s18718_s1 + $0xb44] sm:$0xf] }
 0x12c   : > { %v2302_v2 = vpop.f32.mrf.mxu0  ;;  %v2351_v35 = vpop.f32.mrf.mxu1 }
 0x12d   : > { %v2352_v9 = vadd.f32 %v2351_v35, %v2302_v2  ;;  %v9748_v2 = vld [vmem:[%s18718_s1 + $0x970] sm:$0xf0] }
 0x12f   : > { %2497 = vmatmul.bf16.gmra.mxu0 %v13852_v43  ;;  %2546 = vmatmul.bf16.gmra.mxu1 %v13854_v31  ;;  %v2401_v52 = vadd.f32 %v2400_v0, %v2352_v9  ;;  %v12594_v0 = vld [vmem:[%s18718_s1 + $0x964] sm:$0xf]  ;;  %v556_v9 = vrot.slane %v555_v19, 4 }
 0x130   : > { %v9751_v35 = vor.u32 %v12594_v0, %v9748_v2 }
 0x131   : > { %v13880_v44 = vadd.f32 %v2449_v21, %v2401_v52  ;;  %v594_v52 = vsel %vm13680_vm11, %v556_v9, %v593_v26 }
 0x132   : > { %2728 = vmatpush.bf16.msra.mxu1 %v9751_v35  ;;  %595 = vst [vmem:[#allocation2 + $0x130] sm:$0xff] %v594_v52 }
 0x133   : > { %v2402_v7 = vpop.f32.mrf.mxu2  ;;  %v2451_v14 = vpop.f32.mrf.mxu3 }
 0x134   : > { %v2304_v21 = vpop.f32.mrf.mxu0  ;;  %v2353_v20 = vpop.f32.mrf.mxu1 }
 0x135   : > { %v2354_v55 = vadd.f32 %v2353_v20, %v2304_v21  ;;  %v18887_v20 = vshll.u32 %v13542_v36, 16 }
 0x137   : > { %v2403_v24 = vadd.f32 %v2402_v7, %v2354_v55  ;;  %v18886_v7 = vshrl.u32 %v13542_v36, 16  ;;  %v558_v52 = vrot.slane %v18887_v20, 5  ;;  %v9860_v55 = vld [vmem:[%s18718_s1 + $0xa50] sm:$0xf0] }
 0x138   : > { %2600 = vmatmul.bf16.gmra.mxu2 %v13538_v32  ;;  %2649 = vmatmul.bf16.gmra.mxu3 %v13540_v33  ;;  %v9863_v56 = vor.u32 %v12622_v18, %v9860_v55  ;;  %v9604_v36 = vld [vmem:[%s18718_s1 + $0x850] sm:$0xf0] }
 0x139   : > { %v13892_v19 = vadd.f32 %v2451_v14, %v2403_v24  ;;  %v557_v21 = vrot.slane %v18886_v7, 4  ;;  %v12558_v24 = vld [vmem:[%s18718_s1 + $0x844] sm:$0xf]  ;;  %v9732_v20 = vld [vmem:[%s18718_s1 + $0x950] sm:$0xf0] }
 0x13a   : > { %v12590_v7 = vld [vmem:[%s18718_s1 + $0x944] sm:$0xf]  ;;  %2778 = vmatpush.bf16.msra.mxu2 %v9863_v56  ;;  %v9236_v56 = vld [vmem:[#allocation2 + $0x118] sm:$0xf0]  ;;  %v12470_v12 = vld [vmem:[#allocation2 + $0x134] sm:$0xf] }
 0x13b   : > { %v2405_v0 = vpop.f32.mrf.mxu2  ;;  %v2454_v2 = vpop.f32.mrf.mxu3  ;;  %v9735_v18 = vor.u32 %v12590_v7, %v9732_v20 }
 0x13c   : > { %v2307_v35 = vpop.f32.mrf.mxu0  ;;  %v2356_v9 = vpop.f32.mrf.mxu1 }
 0x13d   : > { %v2357_v26 = vadd.f32 %v2356_v9, %v2307_v35  ;;  %v9607_v9 = vor.u32 %v12558_v24, %v9604_v36  ;;  %2729 = vmatpush.bf16.msra.mxu1 %v9735_v18 }
 0x13f   : > { %2502 = vmatmul.bf16.gmra.mxu0 %v13894_v46  ;;  %2551 = vmatmul.bf16.gmra.mxu1 %v13896_v63  ;;  %v2406_v14 = vadd.f32 %v2405_v0, %v2357_v26  ;;  %v559_v0 = vor.u32 %v558_v52, %v557_v21  ;;  %v9991_v26 = vor.u32 %v12654_v39, %v9988_v25  ;;  %v596_v21 = vld [vmem:[#allocation2 + $0x160] sm:$0xff]  ;;  %v12467_v25 = vld [vmem:[#allocation2 + $0x114] sm:$0xf0] }
 0x140   : > { %2680 = vmatpush.bf16.msra.mxu0 %v9607_v9  ;;  %v9234_v39 = vld [vmem:[#allocation2 + $0x100] sm:$0xf] }
 0x141   : > { %v13922_v35 = vadd.f32 %v2454_v2, %v2406_v14  ;;  %v560_v55 = vrot.slane %v559_v0, 4  ;;  %2827 = vmatpush.bf16.msra.mxu3 %v9991_v26  ;;  %v13936_v9 = vor.u32 %v12467_v25, %v9234_v39  ;;  %v13938_v26 = vor.u32 %v12464_v13, %v9236_v56  ;;  %v12618_v13 = vld [vmem:[%s18718_s1 + $0xa24] sm:$0xf]  ;;  %v9972_v56 = vld [vmem:[%s18718_s1 + $0xb30] sm:$0xf0] }
 0x142   : > { %v12650_v25 = vld [vmem:[%s18718_s1 + $0xb24] sm:$0xf] }
 0x143   : > { %v2407_v33 = vpop.f32.mrf.mxu2  ;;  %v2456_v32 = vpop.f32.mrf.mxu3  ;;  %v597_v14 = vsel %vm13680_vm11, %v560_v55, %v596_v21 }
 0x144   : > { %v2309_v2 = vpop.f32.mrf.mxu0  ;;  %v2358_v52 = vpop.f32.mrf.mxu1  ;;  %598 = vst [vmem:[#allocation2 + $0x160] sm:$0xff] %v597_v14 }
 0x145   : > { %v2359_v24 = vadd.f32 %v2358_v52, %v2309_v2  ;;  %v18889_v52 = vshll.u32 %v13597_v23, 16 }
 0x147   : > { %v2408_v36 = vadd.f32 %v2407_v33, %v2359_v24  ;;  %v18888_v33 = vshrl.u32 %v13597_v23, 16  ;;  %v562_v14 = vrot.slane %v18889_v52, 5  ;;  %v9844_v24 = vld [vmem:[%s18718_s1 + $0xa30] sm:$0xf0] }
 0x148   : > { %2605 = vmatmul.bf16.gmra.mxu2 %v13593_v4  ;;  %2654 = vmatmul.bf16.gmra.mxu3 %v13595_v5  ;;  %v9847_v39 = vor.u32 %v12618_v13, %v9844_v24  ;;  %v9588_v23 = vld [vmem:[%s18718_s1 + $0x830] sm:$0xf0] }
 0x149   : > { %v13934_v0 = vadd.f32 %v2456_v32, %v2408_v36  ;;  %v561_v2 = vrot.slane %v18888_v33, 4  ;;  %v12554_v36 = vld [vmem:[%s18718_s1 + $0x824] sm:$0xf]  ;;  %v9716_v52 = vld [vmem:[%s18718_s1 + $0x930] sm:$0xf0] }
 0x14a   : > { %v12586_v33 = vld [vmem:[%s18718_s1 + $0x924] sm:$0xf]  ;;  %2779 = vmatpush.bf16.msra.mxu2 %v9847_v39  ;;  %v9260_v39 = vld [vmem:[#allocation2 + $0x148] sm:$0xf0] }
 0x14b   : > { %v2410_v7 = vpop.f32.mrf.mxu2  ;;  %v2459_v20 = vpop.f32.mrf.mxu3  ;;  %v9719_v13 = vor.u32 %v12586_v33, %v9716_v52 }
 0x14c   : > { %v2312_v18 = vpop.f32.mrf.mxu0  ;;  %v2361_v55 = vpop.f32.mrf.mxu1 }
 0x14d   : > { %v2362_v21 = vadd.f32 %v2361_v55, %v2312_v18  ;;  %v9591_v55 = vor.u32 %v12554_v36, %v9588_v23  ;;  %2730 = vmatpush.bf16.msra.mxu1 %v9719_v13 }
 0x14f   : > { %2507 = vmatmul.bf16.gmra.mxu0 %v13936_v9  ;;  %2556 = vmatmul.bf16.gmra.mxu1 %v13938_v26  ;;  %v2411_v32 = vadd.f32 %v2410_v7, %v2362_v21  ;;  %v563_v7 = vor.u32 %v562_v14, %v561_v2  ;;  %v9975_v21 = vor.u32 %v12650_v25, %v9972_v56  ;;  %v599_v2 = vld [vmem:[#allocation2 + $0x190] sm:$0xff]  ;;  %v12473_v56 = vld [vmem:[#allocation2 + $0x144] sm:$0xf0] }
 0x150   : > { %2681 = vmatpush.bf16.msra.mxu0 %v9591_v55  ;;  %v9258_v25 = vld [vmem:[#allocation2 + $0x130] sm:$0xf] }
 0x151   : > { %v13964_v18 = vadd.f32 %v2459_v20, %v2411_v32  ;;  %v564_v24 = vrot.slane %v563_v7, 4  ;;  %2828 = vmatpush.bf16.msra.mxu3 %v9975_v21  ;;  %v13978_v55 = vor.u32 %v12473_v56, %v9258_v25  ;;  %v13980_v21 = vor.u32 %v12470_v12, %v9260_v39  ;;  %v12550_v12 = vld [vmem:[%s18718_s1 + $0x804] sm:$0xf] }
 0x152   : > { %v12582_v39 = vld [vmem:[%s18718_s1 + $0x904] sm:$0xf] }
 0x153   : > { %v2412_v5 = vpop.f32.mrf.mxu2  ;;  %v2461_v4 = vpop.f32.mrf.mxu3  ;;  %v600_v32 = vsel %vm13680_vm11, %v564_v24, %v599_v2  ;;  %v12614_v2 = vld [vmem:[%s18718_s1 + $0xa04] sm:$0xf] }
 0x154   : > { %v2314_v20 = vpop.f32.mrf.mxu0  ;;  %v2363_v14 = vpop.f32.mrf.mxu1  ;;  %601 = vst [vmem:[#allocation2 + $0x190] sm:$0xff] %v600_v32  ;;  %v12646_v32 = vld [vmem:[%s18718_s1 + $0xb04] sm:$0xf] }
 0x155   : > { %v2364_v36 = vadd.f32 %v2363_v14, %v2314_v20  ;;  %v9572_v14 = vld [vmem:[%s18718_s1 + $0x810] sm:$0xf0] }
 0x156   : > { %v9575_v25 = vor.u32 %v12550_v12, %v9572_v14  ;;  %v9282_v12 = vld [vmem:[#allocation2 + $0x160] sm:$0xf]  ;;  %v12479_v14 = vld [vmem:[#allocation2 + $0x174] sm:$0xf0] }
 0x157   : > { %v2413_v23 = vadd.f32 %v2412_v5, %v2364_v36  ;;  %v9956_v36 = vld [vmem:[%s18718_s1 + $0xb10] sm:$0xf0] }
 0x158   : > { %2610 = vmatmul.bf16.gmra.mxu2 %v13640_v34  ;;  %2659 = vmatmul.bf16.gmra.mxu3 %v13642_v29  ;;  %v9959_v56 = vor.u32 %v12646_v32, %v9956_v36  ;;  %v12476_v32 = vld [vmem:[#allocation2 + $0x164] sm:$0xf]  ;;  %v9284_v36 = vld [vmem:[#allocation2 + $0x178] sm:$0xf0] }
 0x159   : > { %v13976_v7 = vadd.f32 %v2461_v4, %v2413_v23  ;;  %v9828_v4 = vld [vmem:[%s18718_s1 + $0xa10] sm:$0xf0]  ;;  %2682 = vmatpush.bf16.msra.mxu0 %v9575_v25 }
 0x15a   : > { %v9831_v20 = vor.u32 %v12614_v2, %v9828_v4  ;;  %2829 = vmatpush.bf16.msra.mxu3 %v9959_v56 }
 0x15b   : > { %v2415_v33 = vpop.f32.mrf.mxu2  ;;  %v2464_v62 = vpop.f32.mrf.mxu3 }
 0x15c   : > { %v2317_v52 = vpop.f32.mrf.mxu0  ;;  %v2366_v13 = vpop.f32.mrf.mxu1  ;;  %2780 = vmatpush.bf16.msra.mxu2 %v9831_v20  ;;  %v14014_v20 = vor.u32 %v12479_v14, %v9282_v12  ;;  %v12517_v12 = vld [vmem:[%s18718_s1 + $0x6f4] sm:$0xf0]  ;;  %v9818_v14 = vld [vmem:[%s18718_s1 + $0x9e8] sm:$0xf] }
 0x15d   : > { %v2367_v24 = vadd.f32 %v2366_v13, %v2317_v52 }
 0x15f   : > { %2512 = vmatmul.bf16.gmra.mxu0 %v13978_v55  ;;  %2561 = vmatmul.bf16.gmra.mxu1 %v13980_v21  ;;  %v2416_v5 = vadd.f32 %v2415_v33, %v2367_v24  ;;  %v9700_v33 = vld [vmem:[%s18718_s1 + $0x910] sm:$0xf0] }
 0x160   : > { %v9703_v52 = vor.u32 %v12582_v39, %v9700_v33  ;;  %v14016_v39 = vor.u32 %v12476_v32, %v9284_v36  ;;  %v12613_v32 = vld [vmem:[%s18718_s1 + $0x9f4] sm:$0xf0] }
 0x161   : > { %v14002_v23 = vadd.f32 %v2464_v62, %v2416_v5 }
 0x162   : > { %2731 = vmatpush.bf16.msra.mxu1 %v9703_v52  ;;  %18890 = vst [vmem:[#allocation20_spill] sm:$0xff] %v14016_v39 }
 0x163   : > { %v2417_v13 = vpop.f32.mrf.mxu2  ;;  %v2466_v24 = vpop.f32.mrf.mxu3 }
 0x164   : > { %v2319_v2 = vpop.f32.mrf.mxu0  ;;  %v2368_v4 = vpop.f32.mrf.mxu1 }
 0x165   : > { %v2369_v62 = vadd.f32 %v2368_v4, %v2319_v2  ;;  %v9690_v4 = vld [vmem:[%s18718_s1 + $0x8e8] sm:$0xf] }
 0x167   : > { %v2418_v5 = vadd.f32 %v2417_v13, %v2369_v62  ;;  %v9434_v62 = vld [vmem:[%s18718_s1 + $0x6e8] sm:$0xf] }
 0x168   : > { %2615 = vmatmul.bf16.gmra.mxu2 %v13688_v54  ;;  %2664 = vmatmul.bf16.gmra.mxu3 %v13690_v57 }
 0x169   : > { %v14012_v29 = vadd.f32 %v2466_v24, %v2418_v5  ;;  %v12581_v24 = vld [vmem:[%s18718_s1 + $0x8f4] sm:$0xf0] }
 0x16a   : > { %v9691_v5 = vor.u32 %v12581_v24, %v9690_v4 }
 0x16b   : > { %v2420_v25 = vpop.f32.mrf.mxu2  ;;  %v2469_v56 = vpop.f32.mrf.mxu3 }
 0x16c   : > { %v2322_v33 = vpop.f32.mrf.mxu0  ;;  %v2371_v52 = vpop.f32.mrf.mxu1  ;;  %2969 = vmatpush.bf16.msrb.mxu2 %v9691_v5 }
 0x16d   : > { %v2372_v2 = vadd.f32 %v2371_v52, %v2322_v33  ;;  %v9819_v33 = vor.u32 %v12613_v32, %v9818_v14  ;;  %v9562_v52 = vld [vmem:[%s18718_s1 + $0x7e8] sm:$0xf]  ;;  %v12482_v14 = vld [vmem:[#allocation2 + $0x194] sm:$0xf]  ;;  %v9308_v32 = vld [vmem:[#allocation2 + $0x1a8] sm:$0xf0] }
 0x16f   : > { %2517 = vmatmul.bf16.gmra.mxu0 %v14014_v20  ;;  %2566 = vmatmul.bf16.gmra.mxu1 %v14016_v39  ;;  %v2421_v13 = vadd.f32 %v2420_v25, %v2372_v2  ;;  %v9435_v25 = vor.u32 %v12517_v12, %v9434_v62  ;;  %v12549_v2 = vld [vmem:[%s18718_s1 + $0x7f4] sm:$0xf0]  ;;  %v9306_v62 = vld [vmem:[#allocation2 + $0x190] sm:$0xf]  ;;  %v12485_v12 = vld [vmem:[#allocation2 + $0x1a4] sm:$0xf0] }
 0x170   : > { %v9563_v4 = vor.u32 %v12549_v2, %v9562_v52  ;;  %3018 = vmatpush.bf16.msrb.mxu3 %v9819_v33  ;;  %v14050_v5 = vor.u32 %v12485_v12, %v9306_v62  ;;  %v14052_v52 = vor.u32 %v12482_v14, %v9308_v32  ;;  %v12513_v62 = vld [vmem:[%s18718_s1 + $0x6d4] sm:$0xf0]  ;;  %v9802_v12 = vld [vmem:[%s18718_s1 + $0x9c8] sm:$0xf] }
 0x171   : > { %v14038_v36 = vadd.f32 %v2469_v56, %v2421_v13  ;;  %2871 = vmatpush.bf16.msrb.mxu0 %v9435_v25  ;;  %v12609_v14 = vld [vmem:[%s18718_s1 + $0x9d4] sm:$0xf0] }
 0x172   : > { %2920 = vmatpush.bf16.msrb.mxu1 %v9563_v4 }
 0x173   : > { %v2422_v24 = vpop.f32.mrf.mxu2  ;;  %v2471_v57 = vpop.f32.mrf.mxu3 }
 0x174   : > { %v2324_v54 = vpop.f32.mrf.mxu0  ;;  %v2373_v34 = vpop.f32.mrf.mxu1 }
 0x175   : > { %v2374_v56 = vadd.f32 %v2373_v34, %v2324_v54 }
 0x177   : > { %v2423_v13 = vadd.f32 %v2422_v24, %v2374_v56  ;;  %v9674_v24 = vld [vmem:[%s18718_s1 + $0x8c8] sm:$0xf] }
 0x178   : > { %2620 = vmatmul.bf16.gmra.mxu2 %v13730_v42  ;;  %2669 = vmatmul.bf16.gmra.mxu3 %v13732_v61  ;;  %v9418_v56 = vld [vmem:[%s18718_s1 + $0x6c8] sm:$0xf] }
 0x179   : > { %v14048_v11 = vadd.f32 %v2471_v57, %v2423_v13  ;;  %v12577_v57 = vld [vmem:[%s18718_s1 + $0x8d4] sm:$0xf0] }
 0x17a   : > { %v9675_v13 = vor.u32 %v12577_v57, %v9674_v24 }
 0x17b   : > { %v2425_v25 = vpop.f32.mrf.mxu2  ;;  %v2474_v33 = vpop.f32.mrf.mxu3 }
 0x17c   : > { %v2327_v2 = vpop.f32.mrf.mxu0  ;;  %v2376_v4 = vpop.f32.mrf.mxu1  ;;  %2970 = vmatpush.bf16.msrb.mxu2 %v9675_v13 }
 0x17d   : > { %v2377_v34 = vadd.f32 %v2376_v4, %v2327_v2  ;;  %v9803_v2 = vor.u32 %v12609_v14, %v9802_v12  ;;  %v9546_v4 = vld [vmem:[%s18718_s1 + $0x7c8] sm:$0xf] }
 0x17f   : > { %2522 = vmatmul.bf16.gmra.mxu0 %v14050_v5  ;;  %2571 = vmatmul.bf16.gmra.mxu1 %v14052_v52  ;;  %v2426_v54 = vadd.f32 %v2425_v25, %v2377_v34  ;;  %v9419_v25 = vor.u32 %v12513_v62, %v9418_v56  ;;  %v12545_v34 = vld [vmem:[%s18718_s1 + $0x7d4] sm:$0xf0] }
 0x180   : > { %v9547_v24 = vor.u32 %v12545_v34, %v9546_v4  ;;  %3019 = vmatpush.bf16.msrb.mxu3 %v9803_v2 }
 0x181   : > { %v14074_v32 = vadd.f32 %v2474_v33, %v2426_v54  ;;  %2872 = vmatpush.bf16.msrb.mxu0 %v9419_v25 }
 0x182   : > { %2921 = vmatpush.bf16.msrb.mxu1 %v9547_v24  ;;  %v9786_v24 = vld [vmem:[%s18718_s1 + $0x9a8] sm:$0xf] }
 0x183   : > { %v2427_v57 = vpop.f32.mrf.mxu2  ;;  %v2476_v61 = vpop.f32.mrf.mxu3 }
 0x184   : > { %v2329_v42 = vpop.f32.mrf.mxu0  ;;  %v2378_v17 = vpop.f32.mrf.mxu1 }
 0x185   : > { %v2379_v33 = vadd.f32 %v2378_v17, %v2329_v42  ;;  %v9658_v17 = vld [vmem:[%s18718_s1 + $0x8a8] sm:$0xf]  ;;  %v12573_v42 = vld [vmem:[%s18718_s1 + $0x8b4] sm:$0xf0] }
 0x186   : > { %v9659_v34 = vor.u32 %v12573_v42, %v9658_v17 }
 0x187   : > { %v2428_v54 = vadd.f32 %v2427_v57, %v2379_v33  ;;  %v12605_v57 = vld [vmem:[%s18718_s1 + $0x9b4] sm:$0xf0] }
 0x188   : > { %2781 = vmatmul.bf16.vlgmr.msra.gmra.mxu2 %v13768_v1  ;;  %2830 = vmatmul.bf16.vlgmr.msra.gmra.mxu3 %v13770_v38 }
 0x189   : > { %v14084_v56 = vadd.f32 %v2476_v61, %v2428_v54  ;;  %v9402_v61 = vld [vmem:[%s18718_s1 + $0x6a8] sm:$0xf]  ;;  %v9787_v54 = vor.u32 %v12605_v57, %v9786_v24  ;;  %2971 = vmatpush.bf16.msrb.mxu2 %v9659_v34 }
 0x18b   : > { %v2586_v62 = vpop.f32.mrf.mxu2  ;;  %v2635_v12 = vpop.f32.mrf.mxu3  ;;  %3020 = vmatpush.bf16.msrb.mxu3 %v9787_v54 }
 0x18c   : > { %v2488_v14 = vpop.f32.mrf.mxu0  ;;  %v2537_v13 = vpop.f32.mrf.mxu1  ;;  %v14086_v4 = vadd.f32 %v2635_v12, %v2586_v62  ;;  %v9530_v62 = vld [vmem:[%s18718_s1 + $0x7a8] sm:$0xf]  ;;  %v12541_v12 = vld [vmem:[%s18718_s1 + $0x7b4] sm:$0xf0] }
 0x18d   : > { %v2489_v25 = vadd.f32 %v2488_v14, %v13796_v45  ;;  %v12509_v45 = vld [vmem:[%s18718_s1 + $0x6b4] sm:$0xf0]  ;;  %v9531_v14 = vor.u32 %v12541_v12, %v9530_v62 }
 0x18e   : > { %v9403_v33 = vor.u32 %v12509_v45, %v9402_v61 }
 0x18f   : > { %v14089_v2 = vadd.f32 %v2537_v13, %v2489_v25  ;;  %2683 = vmatmul.bf16.vlgmr.msra.gmra.mxu0 %v13334_v40  ;;  %2732 = vmatmul.bf16.vlgmr.msra.gmra.mxu1 %v13336_v41 }
 0x190   : > { %2873 = vmatpush.bf16.msrb.mxu0 %v9403_v33  ;;  %2922 = vmatpush.bf16.msrb.mxu1 %v9531_v14  ;;  %v12569_v14 = vld [vmem:[%s18718_s1 + $0x894] sm:$0xf0] }
 0x191   : > { %18891 = vst [vmem:[#allocation21_spill] sm:$0xff] %v14089_v2 }
 0x193   : > { %v2588_v13 = vpop.f32.mrf.mxu2  ;;  %v2637_v25 = vpop.f32.mrf.mxu3 }
 0x194   : > { %v2490_v17 = vpop.f32.mrf.mxu0  ;;  %v2539_v42 = vpop.f32.mrf.mxu1  ;;  %v14117_v2 = vadd.f32 %v2637_v25, %v2588_v13  ;;  %v9386_v13 = vld [vmem:[%s18718_s1 + $0x688] sm:$0xf] }
 0x195   : > { %v2491_v61 = vadd.f32 %v2490_v17, %v13808_v30  ;;  %v9642_v30 = vld [vmem:[%s18718_s1 + $0x888] sm:$0xf] }
 0x196   : > { %v9643_v25 = vor.u32 %v12569_v14, %v9642_v30  ;;  %v9770_v17 = vld [vmem:[%s18718_s1 + $0x988] sm:$0xf] }
 0x197   : > { %v14120_v45 = vadd.f32 %v2539_v42, %v2491_v61  ;;  %v12601_v42 = vld [vmem:[%s18718_s1 + $0x994] sm:$0xf0] }
 0x198   : > { %2786 = vmatmul.bf16.gmra.mxu2 %v13810_v27  ;;  %2835 = vmatmul.bf16.gmra.mxu3 %v13812_v37 }
 0x199   : > { %18892 = vst [vmem:[#allocation22_spill] sm:$0xff] %v14120_v45  ;;  %2972 = vmatpush.bf16.msrb.mxu2 %v9643_v25 }
 0x19b   : > { %v2591_v24 = vpop.f32.mrf.mxu2  ;;  %v2640_v34 = vpop.f32.mrf.mxu3 }
 0x19c   : > { %v2493_v57 = vpop.f32.mrf.mxu0  ;;  %v2542_v62 = vpop.f32.mrf.mxu1  ;;  %v14124_v12 = vadd.f32 %v2640_v34, %v2591_v24  ;;  %v9771_v24 = vor.u32 %v12601_v42, %v9770_v17  ;;  %v9514_v34 = vld [vmem:[%s18718_s1 + $0x788] sm:$0xf] }
 0x19d   : > { %v2494_v33 = vadd.f32 %v2493_v57, %v13838_v47  ;;  %v12505_v47 = vld [vmem:[%s18718_s1 + $0x694] sm:$0xf0] }
 0x19e   : > { %v9387_v61 = vor.u32 %v12505_v47, %v9386_v13  ;;  %v12537_v57 = vld [vmem:[%s18718_s1 + $0x794] sm:$0xf0]  ;;  %3021 = vmatpush.bf16.msrb.mxu3 %v9771_v24 }
 0x19f   : > { %v14127_v54 = vadd.f32 %v2542_v62, %v2494_v33  ;;  %2688 = vmatmul.bf16.gmra.mxu0 %v13406_v49  ;;  %2737 = vmatmul.bf16.gmra.mxu1 %v13408_v50  ;;  %v9515_v62 = vor.u32 %v12537_v57, %v9514_v34 }
 0x1a0   : > { %2874 = vmatpush.bf16.msrb.mxu0 %v9387_v61 }
 0x1a1   : > { %18893 = vst [vmem:[#allocation23_spill] sm:$0xff] %v14127_v54  ;;  %2923 = vmatpush.bf16.msrb.mxu1 %v9515_v62  ;;  %v9370_v62 = vld [vmem:[%s18718_s1 + $0x668] sm:$0xf] }
 0x1a3   : > { %v2593_v33 = vpop.f32.mrf.mxu2  ;;  %v2642_v30 = vpop.f32.mrf.mxu3 }
 0x1a4   : > { %v2495_v14 = vpop.f32.mrf.mxu0  ;;  %v2544_v54 = vpop.f32.mrf.mxu1  ;;  %v14155_v45 = vadd.f32 %v2642_v30, %v2593_v33  ;;  %v9754_v30 = vld [vmem:[%s18718_s1 + $0x968] sm:$0xf] }
 0x1a5   : > { %v2496_v13 = vadd.f32 %v2495_v14, %v13850_v28  ;;  %v9626_v28 = vld [vmem:[%s18718_s1 + $0x868] sm:$0xf]  ;;  %v12597_v14 = vld [vmem:[%s18718_s1 + $0x974] sm:$0xf0] }
 0x1a7   : > { %v14158_v47 = vadd.f32 %v2544_v54, %v2496_v13  ;;  %v12565_v54 = vld [vmem:[%s18718_s1 + $0x874] sm:$0xf0] }
 0x1a8   : > { %2791 = vmatmul.bf16.gmra.mxu2 %v13852_v43  ;;  %2840 = vmatmul.bf16.gmra.mxu3 %v13854_v31  ;;  %v9627_v33 = vor.u32 %v12565_v54, %v9626_v28 }
 0x1a9   : > { %18894 = vst [vmem:[#allocation24_spill] sm:$0xff] %v14158_v47 }
 0x1aa   : > { %2973 = vmatpush.bf16.msrb.mxu2 %v9627_v33 }
 0x1ab   : > { %v2596_v17 = vpop.f32.mrf.mxu2  ;;  %v2645_v25 = vpop.f32.mrf.mxu3 }
 0x1ac   : > { %v2498_v42 = vpop.f32.mrf.mxu0  ;;  %v2547_v34 = vpop.f32.mrf.mxu1  ;;  %v14162_v57 = vadd.f32 %v2645_v25, %v2596_v17  ;;  %v9755_v17 = vor.u32 %v12597_v14, %v9754_v30  ;;  %v9498_v25 = vld [vmem:[%s18718_s1 + $0x768] sm:$0xf] }
 0x1ad   : > { %v2499_v61 = vadd.f32 %v2498_v42, %v13880_v44  ;;  %v12501_v44 = vld [vmem:[%s18718_s1 + $0x674] sm:$0xf0] }
 0x1ae   : > { %v9371_v13 = vor.u32 %v12501_v44, %v9370_v62  ;;  %v12533_v42 = vld [vmem:[%s18718_s1 + $0x774] sm:$0xf0]  ;;  %3022 = vmatpush.bf16.msrb.mxu3 %v9755_v17 }
 0x1af   : > { %v14165_v24 = vadd.f32 %v2547_v34, %v2499_v61  ;;  %2693 = vmatmul.bf16.gmra.mxu0 %v13463_v48  ;;  %2742 = vmatmul.bf16.gmra.mxu1 %v13465_v51  ;;  %v9499_v34 = vor.u32 %v12533_v42, %v9498_v25 }
 0x1b0   : > { %2875 = vmatpush.bf16.msrb.mxu0 %v9371_v13 }
 0x1b1   : > { %18895 = vst [vmem:[#allocation25_spill] sm:$0xff] %v14165_v24  ;;  %2924 = vmatpush.bf16.msrb.mxu1 %v9499_v34  ;;  %v9354_v34 = vld [vmem:[%s18718_s1 + $0x648] sm:$0xf] }
 0x1b3   : > { %v2598_v61 = vpop.f32.mrf.mxu2  ;;  %v2647_v28 = vpop.f32.mrf.mxu3 }
 0x1b4   : > { %v2500_v54 = vpop.f32.mrf.mxu0  ;;  %v2549_v24 = vpop.f32.mrf.mxu1  ;;  %v14193_v47 = vadd.f32 %v2647_v28, %v2598_v61  ;;  %v9738_v28 = vld [vmem:[%s18718_s1 + $0x948] sm:$0xf] }
 0x1b5   : > { %v2501_v62 = vadd.f32 %v2500_v54, %v13892_v19  ;;  %v9610_v19 = vld [vmem:[%s18718_s1 + $0x848] sm:$0xf]  ;;  %v12593_v54 = vld [vmem:[%s18718_s1 + $0x954] sm:$0xf0] }
 0x1b7   : > { %v14196_v44 = vadd.f32 %v2549_v24, %v2501_v62  ;;  %v12561_v24 = vld [vmem:[%s18718_s1 + $0x854] sm:$0xf0] }
 0x1b8   : > { %2796 = vmatmul.bf16.gmra.mxu2 %v13894_v46  ;;  %2845 = vmatmul.bf16.gmra.mxu3 %v13896_v63  ;;  %v9611_v61 = vor.u32 %v12561_v24, %v9610_v19 }
 0x1b9   : > { %18896 = vst [vmem:[#allocation26_spill] sm:$0xff] %v14196_v44 }
 0x1ba   : > { %2974 = vmatpush.bf16.msrb.mxu2 %v9611_v61 }
 0x1bb   : > { %v2601_v30 = vpop.f32.mrf.mxu2  ;;  %v2650_v33 = vpop.f32.mrf.mxu3 }
 0x1bc   : > { %v2503_v14 = vpop.f32.mrf.mxu0  ;;  %v2552_v25 = vpop.f32.mrf.mxu1  ;;  %v14200_v42 = vadd.f32 %v2650_v33, %v2601_v30  ;;  %v9739_v30 = vor.u32 %v12593_v54, %v9738_v28  ;;  %v9482_v33 = vld [vmem:[%s18718_s1 + $0x748] sm:$0xf] }
 0x1bd   : > { %v2504_v13 = vadd.f32 %v2503_v14, %v13922_v35  ;;  %v12497_v35 = vld [vmem:[%s18718_s1 + $0x654] sm:$0xf0] }
 0x1be   : > { %v9355_v62 = vor.u32 %v12497_v35, %v9354_v34  ;;  %v12529_v14 = vld [vmem:[%s18718_s1 + $0x754] sm:$0xf0]  ;;  %3023 = vmatpush.bf16.msrb.mxu3 %v9739_v30 }
 0x1bf   : > { %v14203_v17 = vadd.f32 %v2552_v25, %v2504_v13  ;;  %2698 = vmatmul.bf16.gmra.mxu0 %v13518_v58  ;;  %2747 = vmatmul.bf16.gmra.mxu1 %v13520_v59  ;;  %v9483_v25 = vor.u32 %v12529_v14, %v9482_v33 }
 0x1c0   : > { %2876 = vmatpush.bf16.msrb.mxu0 %v9355_v62 }
 0x1c1   : > { %18897 = vst [vmem:[#allocation27_spill] sm:$0xff] %v14203_v17  ;;  %2925 = vmatpush.bf16.msrb.mxu1 %v9483_v25  ;;  %v9338_v25 = vld [vmem:[%s18718_s1 + $0x628] sm:$0xf] }
 0x1c3   : > { %v2603_v13 = vpop.f32.mrf.mxu2  ;;  %v2652_v19 = vpop.f32.mrf.mxu3 }
 0x1c4   : > { %v2505_v24 = vpop.f32.mrf.mxu0  ;;  %v2554_v17 = vpop.f32.mrf.mxu1  ;;  %v14231_v44 = vadd.f32 %v2652_v19, %v2603_v13  ;;  %v9722_v19 = vld [vmem:[%s18718_s1 + $0x928] sm:$0xf] }
 0x1c5   : > { %v2506_v34 = vadd.f32 %v2505_v24, %v13934_v0  ;;  %v9594_v0 = vld [vmem:[%s18718_s1 + $0x828] sm:$0xf]  ;;  %v12589_v24 = vld [vmem:[%s18718_s1 + $0x934] sm:$0xf0] }
 0x1c7   : > { %v14234_v35 = vadd.f32 %v2554_v17, %v2506_v34  ;;  %v12557_v17 = vld [vmem:[%s18718_s1 + $0x834] sm:$0xf0] }
 0x1c8   : > { %2801 = vmatmul.bf16.gmra.mxu2 %v13936_v9  ;;  %2850 = vmatmul.bf16.gmra.mxu3 %v13938_v26  ;;  %v9595_v13 = vor.u32 %v12557_v17, %v9594_v0 }
 0x1c9   : > { %18898 = vst [vmem:[#allocation28_spill] sm:$0xff] %v14234_v35 }
 0x1ca   : > { %2975 = vmatpush.bf16.msrb.mxu2 %v9595_v13 }
 0x1cb   : > { %v2606_v28 = vpop.f32.mrf.mxu2  ;;  %v2655_v61 = vpop.f32.mrf.mxu3 }
 0x1cc   : > { %v2508_v54 = vpop.f32.mrf.mxu0  ;;  %v2557_v33 = vpop.f32.mrf.mxu1  ;;  %v14238_v14 = vadd.f32 %v2655_v61, %v2606_v28  ;;  %v9723_v28 = vor.u32 %v12589_v24, %v9722_v19  ;;  %v9466_v61 = vld [vmem:[%s18718_s1 + $0x728] sm:$0xf] }
 0x1cd   : > { %v2509_v62 = vadd.f32 %v2508_v54, %v13964_v18  ;;  %v12493_v18 = vld [vmem:[%s18718_s1 + $0x634] sm:$0xf0] }
 0x1ce   : > { %v9339_v34 = vor.u32 %v12493_v18, %v9338_v25  ;;  %v12525_v54 = vld [vmem:[%s18718_s1 + $0x734] sm:$0xf0]  ;;  %3024 = vmatpush.bf16.msrb.mxu3 %v9723_v28 }
 0x1cf   : > { %v14241_v30 = vadd.f32 %v2557_v33, %v2509_v62  ;;  %2703 = vmatmul.bf16.gmra.mxu0 %v13573_v10  ;;  %2752 = vmatmul.bf16.gmra.mxu1 %v13575_v22  ;;  %v9467_v33 = vor.u32 %v12525_v54, %v9466_v61 }
 0x1d0   : > { %2877 = vmatpush.bf16.msrb.mxu0 %v9339_v34 }
 0x1d1   : > { %18899 = vst [vmem:[#allocation29_spill] sm:$0xff] %v14241_v30  ;;  %2926 = vmatpush.bf16.msrb.mxu1 %v9467_v33  ;;  %v9322_v33 = vld [vmem:[%s18718_s1 + $0x608] sm:$0xf] }
 0x1d3   : > { %v2608_v62 = vpop.f32.mrf.mxu2  ;;  %v2657_v0 = vpop.f32.mrf.mxu3 }
 0x1d4   : > { %v2510_v17 = vpop.f32.mrf.mxu0  ;;  %v2559_v30 = vpop.f32.mrf.mxu1  ;;  %v14269_v35 = vadd.f32 %v2657_v0, %v2608_v62  ;;  %v9706_v0 = vld [vmem:[%s18718_s1 + $0x908] sm:$0xf] }
 0x1d5   : > { %v2511_v25 = vadd.f32 %v2510_v17, %v13976_v7  ;;  %v9578_v7 = vld [vmem:[%s18718_s1 + $0x808] sm:$0xf]  ;;  %v12585_v17 = vld [vmem:[%s18718_s1 + $0x914] sm:$0xf0] }
 0x1d7   : > { %v14272_v18 = vadd.f32 %v2559_v30, %v2511_v25  ;;  %v12553_v30 = vld [vmem:[%s18718_s1 + $0x814] sm:$0xf0] }
 0x1d8   : > { %2806 = vmatmul.bf16.gmra.mxu2 %v13978_v55  ;;  %2855 = vmatmul.bf16.gmra.mxu3 %v13980_v21  ;;  %v9579_v62 = vor.u32 %v12553_v30, %v9578_v7 }
 0x1d9   : > { %18900 = vst [vmem:[#allocation30_spill] sm:$0xff] %v14272_v18 }
 0x1da   : > { %2976 = vmatpush.bf16.msrb.mxu2 %v9579_v62 }
 0x1db   : > { %v2611_v19 = vpop.f32.mrf.mxu2  ;;  %v2660_v13 = vpop.f32.mrf.mxu3 }
 0x1dc   : > { %v2513_v24 = vpop.f32.mrf.mxu0  ;;  %v2562_v61 = vpop.f32.mrf.mxu1  ;;  %v14276_v54 = vadd.f32 %v2660_v13, %v2611_v19  ;;  %v9707_v19 = vor.u32 %v12585_v17, %v9706_v0  ;;  %v9450_v13 = vld [vmem:[%s18718_s1 + $0x708] sm:$0xf] }
 0x1dd   : > { %v2514_v34 = vadd.f32 %v2513_v24, %v14002_v23  ;;  %v12489_v23 = vld [vmem:[%s18718_s1 + $0x614] sm:$0xf0] }
 0x1de   : > { %v9323_v25 = vor.u32 %v12489_v23, %v9322_v33  ;;  %v12521_v24 = vld [vmem:[%s18718_s1 + $0x714] sm:$0xf0]  ;;  %3025 = vmatpush.bf16.msrb.mxu3 %v9707_v19 }
 0x1df   : > { %v14279_v28 = vadd.f32 %v2562_v61, %v2514_v34  ;;  %2708 = vmatmul.bf16.gmra.mxu0 %v13628_v3  ;;  %2757 = vmatmul.bf16.gmra.mxu1 %v13630_v6  ;;  %v9451_v61 = vor.u32 %v12521_v24, %v9450_v13 }
 0x1e0   : > { %2878 = vmatpush.bf16.msrb.mxu0 %v9323_v25 }
 0x1e1   : > { %18901 = vst [vmem:[#allocation31_spill] sm:$0xff] %v14279_v28  ;;  %2927 = vmatpush.bf16.msrb.mxu1 %v9451_v61  ;;  %v9946_v61 = vld [vmem:[%s18718_s1 + $0xae8] sm:$0xf] }
 0x1e3   : > { %v2613_v34 = vpop.f32.mrf.mxu2  ;;  %v2662_v7 = vpop.f32.mrf.mxu3 }
 0x1e4   : > { %v2515_v30 = vpop.f32.mrf.mxu0  ;;  %v2564_v28 = vpop.f32.mrf.mxu1  ;;  %v14307_v18 = vadd.f32 %v2662_v7, %v2613_v34  ;;  %v12547_v7 = vld [vmem:[%s18718_s1 + $0x7ec] sm:$0xf] }
 0x1e5   : > { %v2516_v33 = vadd.f32 %v2515_v30, %v14012_v29  ;;  %v12515_v29 = vld [vmem:[%s18718_s1 + $0x6ec] sm:$0xf]  ;;  %v9564_v30 = vld [vmem:[%s18718_s1 + $0x7f8] sm:$0xf0] }
 0x1e7   : > { %v14310_v23 = vadd.f32 %v2564_v28, %v2516_v33  ;;  %v9436_v28 = vld [vmem:[%s18718_s1 + $0x6f8] sm:$0xf0] }
 0x1e8   : > { %2811 = vmatmul.bf16.gmra.mxu2 %v14014_v20  ;;  %2860 = vmatmul.bf16.gmra.mxu3 %v14016_v39  ;;  %v9439_v34 = vor.u32 %v12515_v29, %v9436_v28 }
 0x1e9   : > { %18902 = vst [vmem:[#allocation32_spill] sm:$0xff] %v14310_v23 }
 0x1ea   : > { %3165 = vmatpush.bf16.msra.mxu2 %v9439_v34 }
 0x1eb   : > { %v2616_v0 = vpop.f32.mrf.mxu2  ;;  %v2665_v62 = vpop.f32.mrf.mxu3 }
 0x1ec   : > { %v2518_v17 = vpop.f32.mrf.mxu0  ;;  %v2567_v13 = vpop.f32.mrf.mxu1  ;;  %v14314_v24 = vadd.f32 %v2665_v62, %v2616_v0  ;;  %v9567_v0 = vor.u32 %v12547_v7, %v9564_v30 }
 0x1ed   : > { %v2519_v25 = vadd.f32 %v2518_v17, %v14038_v36  ;;  %v12645_v36 = vld [vmem:[%s18718_s1 + $0xaf4] sm:$0xf0] }
 0x1ee   : > { %v9947_v33 = vor.u32 %v12645_v36, %v9946_v61  ;;  %3214 = vmatpush.bf16.msra.mxu3 %v9567_v0 }
 0x1ef   : > { %v14317_v19 = vadd.f32 %v2567_v13, %v2519_v25  ;;  %2713 = vmatmul.bf16.gmra.mxu0 %v13675_v15  ;;  %2762 = vmatmul.bf16.gmra.mxu1 %v13677_v60  ;;  %v10074_v13 = vld [vmem:[%s18718_s1 + $0xbe8] sm:$0xf]  ;;  %v12677_v25 = vld [vmem:[%s18718_s1 + $0xbf4] sm:$0xf0] }
 0x1f0   : > { %3067 = vmatpush.bf16.msra.mxu0 %v9947_v33  ;;  %v10075_v23 = vor.u32 %v12677_v25, %v10074_v13  ;;  %v9548_v25 = vld [vmem:[%s18718_s1 + $0x7d8] sm:$0xf0] }
 0x1f1   : > { %18903 = vst [vmem:[#allocation33_spill] sm:$0xff] %v14317_v19 }
 0x1f2   : > { %3116 = vmatpush.bf16.msra.mxu1 %v10075_v23  ;;  %v9420_v23 = vld [vmem:[%s18718_s1 + $0x6d8] sm:$0xf0] }
 0x1f3   : > { %v2618_v62 = vpop.f32.mrf.mxu2  ;;  %v2667_v17 = vpop.f32.mrf.mxu3 }
 0x1f4   : > { %v2520_v29 = vpop.f32.mrf.mxu0  ;;  %v2569_v28 = vpop.f32.mrf.mxu1  ;;  %v14345_v19 = vadd.f32 %v2667_v17, %v2618_v62  ;;  %v9930_v17 = vld [vmem:[%s18718_s1 + $0xac8] sm:$0xf] }
 0x1f5   : > { %v2521_v61 = vadd.f32 %v2520_v29, %v14048_v11  ;;  %v12511_v11 = vld [vmem:[%s18718_s1 + $0x6cc] sm:$0xf] }
 0x1f6   : > { %v9423_v13 = vor.u32 %v12511_v11, %v9420_v23 }
 0x1f7   : > { %v14348_v34 = vadd.f32 %v2569_v28, %v2521_v61 }
 0x1f8   : > { %2816 = vmatmul.bf16.gmra.mxu2 %v14050_v5  ;;  %2865 = vmatmul.bf16.gmra.mxu3 %v14052_v52 }
 0x1f9   : > { %18904 = vst [vmem:[#allocation34_spill] sm:$0xff] %v14348_v34  ;;  %3166 = vmatpush.bf16.msra.mxu2 %v9423_v13 }
 0x1fb   : > { %v2621_v36 = vpop.f32.mrf.mxu2  ;;  %v2670_v7 = vpop.f32.mrf.mxu3 }
 0x1fc   : > { %v2523_v30 = vpop.f32.mrf.mxu0  ;;  %v2572_v33 = vpop.f32.mrf.mxu1  ;;  %v14352_v0 = vadd.f32 %v2670_v7, %v2621_v36  ;;  %v10058_v7 = vld [vmem:[%s18718_s1 + $0xbc8] sm:$0xf] }
 0x1fd   : > { %v2524_v39 = vadd.f32 %v2523_v30, %v14074_v32  ;;  %v12543_v32 = vld [vmem:[%s18718_s1 + $0x7cc] sm:$0xf]  ;;  %v12673_v30 = vld [vmem:[%s18718_s1 + $0xbd4] sm:$0xf0] }
 0x1fe   : > { %v9551_v28 = vor.u32 %v12543_v32, %v9548_v25 }
 0x1ff   : > { %v14355_v62 = vadd.f32 %v2572_v33, %v2524_v39  ;;  %2718 = vmatmul.bf16.gmra.mxu0 %v13722_v8  ;;  %2767 = vmatmul.bf16.gmra.mxu1 %v13724_v53  ;;  %v12641_v39 = vld [vmem:[%s18718_s1 + $0xad4] sm:$0xf0] }
 0x200   : > { %v9931_v29 = vor.u32 %v12641_v39, %v9930_v17  ;;  %3215 = vmatpush.bf16.msra.mxu3 %v9551_v28 }
 0x201   : > { %18905 = vst [vmem:[#allocation35_spill] sm:$0xff] %v14355_v62  ;;  %v10059_v62 = vor.u32 %v12673_v30, %v10058_v7  ;;  %v12539_v30 = vld [vmem:[%s18718_s1 + $0x7ac] sm:$0xf] }
 0x202   : > { %3068 = vmatpush.bf16.msra.mxu0 %v9931_v29 }
 0x203   : > { %v2623_v61 = vpop.f32.mrf.mxu2  ;;  %v2672_v36 = vpop.f32.mrf.mxu3  ;;  %3117 = vmatpush.bf16.msra.mxu1 %v10059_v62  ;;  %v9404_v62 = vld [vmem:[%s18718_s1 + $0x6b8] sm:$0xf0] }
 0x204   : > { %v2525_v33 = vpop.f32.mrf.mxu0  ;;  %v2574_v11 = vpop.f32.mrf.mxu1  ;;  %v14383_v23 = vadd.f32 %v2672_v36, %v2623_v61  ;;  %v18907_v61 = vld [vmem:[#allocation5_spill] sm:$0xff]  ;;  %v9914_v36 = vld [vmem:[%s18718_s1 + $0xaa8] sm:$0xf] }
 0x205   : > { %v2526_v17 = vadd.f32 %v2525_v33, %v14084_v56  ;;  %v12507_v56 = vld [vmem:[%s18718_s1 + $0x6ac] sm:$0xf]  ;;  %v9532_v33 = vld [vmem:[%s18718_s1 + $0x7b8] sm:$0xf0] }
 0x206   : > { %v9407_v7 = vor.u32 %v12507_v56, %v9404_v62  ;;  %v10042_v62 = vld [vmem:[%s18718_s1 + $0xba8] sm:$0xf] }
 0x207   : > { %v14386_v13 = vadd.f32 %v2574_v11, %v2526_v17 }
 0x208   : > { %2977 = vmatmul.bf16.vlgmr.msrb.gmra.mxu2 %v13334_v40  ;;  %3026 = vmatmul.bf16.vlgmr.msrb.gmra.mxu3 %v13336_v41 }
 0x209   : > { %18906 = vst [vmem:[#allocation36_spill] sm:$0xff] %v14386_v13  ;;  %3167 = vmatpush.bf16.msra.mxu2 %v9407_v7  ;;  %v12669_v13 = vld [vmem:[%s18718_s1 + $0xbb4] sm:$0xf0] }
 0x20b   : > { %v2782_v39 = vpop.f32.mrf.mxu2  ;;  %v2831_v32 = vpop.f32.mrf.mxu3 }
 0x20c   : > { %v2684_v25 = vpop.f32.mrf.mxu0  ;;  %v2733_v29 = vpop.f32.mrf.mxu1 }
 0x20d   : > { %v2685_v28 = vadd.f32 %v2684_v25, %v14086_v4  ;;  %v12637_v4 = vld [vmem:[%s18718_s1 + $0xab4] sm:$0xf0]  ;;  %v9535_v25 = vor.u32 %v12539_v30, %v9532_v33 }
 0x20e   : > { %v9915_v17 = vor.u32 %v12637_v4, %v9914_v36 }
 0x20f   : > { %v2734_v34 = vadd.f32 %v2733_v29, %v2685_v28  ;;  %2879 = vmatmul.bf16.vlgmr.msrb.gmra.mxu0 %v13364_v16  ;;  %2928 = vmatmul.bf16.vlgmr.msrb.gmra.mxu1 %v18907_v61 }
 0x210   : > { %3069 = vmatpush.bf16.msra.mxu0 %v9915_v17  ;;  %3216 = vmatpush.bf16.msra.mxu3 %v9535_v25 }
 0x211   : > { %v2783_v11 = vadd.f32 %v2782_v39, %v2734_v34  ;;  %v10043_v34 = vor.u32 %v12669_v13, %v10042_v62  ;;  %v18911_v13 = vld [vmem:[#allocation7_spill] sm:$0xff]  ;;  %v9516_v62 = vld [vmem:[%s18718_s1 + $0x798] sm:$0xf0] }
 0x213   : > { %v14411_v29 = vadd.f32 %v2831_v32, %v2783_v11  ;;  %v2784_v28 = vpop.f32.mrf.mxu2  ;;  %v2833_v56 = vpop.f32.mrf.mxu3  ;;  %3118 = vmatpush.bf16.msra.mxu1 %v10043_v34 }
 0x214   : > { %v2686_v41 = vpop.f32.mrf.mxu0  ;;  %v2735_v40 = vpop.f32.mrf.mxu1 }
 0x215   : > { %18908 = vst [vmem:[#allocation5_spill] sm:$0xff] %v14411_v29  ;;  %v2687_v39 = vadd.f32 %v2686_v41, %v14117_v2  ;;  %v18910_v29 = vld [vmem:[#allocation6_spill] sm:$0xff]  ;;  %v9898_v2 = vld [vmem:[%s18718_s1 + $0xa88] sm:$0xf] }
 0x216   : > { %v9388_v41 = vld [vmem:[%s18718_s1 + $0x698] sm:$0xf0] }
 0x217   : > { %v2736_v32 = vadd.f32 %v2735_v40, %v2687_v39  ;;  %v12503_v40 = vld [vmem:[%s18718_s1 + $0x68c] sm:$0xf] }
 0x218   : > { %2982 = vmatmul.bf16.gmra.mxu2 %v13406_v49  ;;  %3031 = vmatmul.bf16.gmra.mxu3 %v13408_v50 }
 0x219   : > { %v2785_v36 = vadd.f32 %v2784_v28, %v2736_v32  ;;  %v9391_v28 = vor.u32 %v12503_v40, %v9388_v41  ;;  %v12665_v40 = vld [vmem:[%s18718_s1 + $0xb94] sm:$0xf0] }
 0x21b   : > { %v14422_v7 = vadd.f32 %v2833_v56, %v2785_v36  ;;  %v2787_v4 = vpop.f32.mrf.mxu2  ;;  %v2836_v30 = vpop.f32.mrf.mxu3  ;;  %v12535_v56 = vld [vmem:[%s18718_s1 + $0x78c] sm:$0xf]  ;;  %3168 = vmatpush.bf16.msra.mxu2 %v9391_v28 }
 0x21c   : > { %v2689_v33 = vpop.f32.mrf.mxu0  ;;  %v2738_v11 = vpop.f32.mrf.mxu1  ;;  %v9519_v32 = vor.u32 %v12535_v56, %v9516_v62 }
 0x21d   : > { %18909 = vst [vmem:[#allocation37_spill] sm:$0xff] %v14422_v7  ;;  %v2690_v17 = vadd.f32 %v2689_v33, %v14124_v12  ;;  %v12633_v12 = vld [vmem:[%s18718_s1 + $0xa94] sm:$0xf0] }
 0x21e   : > { %v9899_v39 = vor.u32 %v12633_v12, %v9898_v2  ;;  %3217 = vmatpush.bf16.msra.mxu3 %v9519_v32 }
 0x21f   : > { %v2739_v25 = vadd.f32 %v2738_v11, %v2690_v17  ;;  %2884 = vmatmul.bf16.gmra.mxu0 %v18910_v29  ;;  %2933 = vmatmul.bf16.gmra.mxu1 %v18911_v13  ;;  %v10026_v17 = vld [vmem:[%s18718_s1 + $0xb88] sm:$0xf] }
 0x220   : > { %3070 = vmatpush.bf16.msra.mxu0 %v9899_v39 }
 0x221   : > { %v2788_v34 = vadd.f32 %v2787_v4, %v2739_v25  ;;  %v10027_v4 = vor.u32 %v12665_v40, %v10026_v17  ;;  %v18915_v17 = vld [vmem:[#allocation9_spill] sm:$0xff]  ;;  %v12531_v40 = vld [vmem:[%s18718_s1 + $0x76c] sm:$0xf] }
 0x223   : > { %v14445_v36 = vadd.f32 %v2836_v30, %v2788_v34  ;;  %v2789_v33 = vpop.f32.mrf.mxu2  ;;  %v2838_v11 = vpop.f32.mrf.mxu3  ;;  %3119 = vmatpush.bf16.msra.mxu1 %v10027_v4 }
 0x224   : > { %v2691_v41 = vpop.f32.mrf.mxu0  ;;  %v2740_v7 = vpop.f32.mrf.mxu1 }
 0x225   : > { %18912 = vst [vmem:[#allocation6_spill] sm:$0xff] %v14445_v36  ;;  %v2692_v25 = vadd.f32 %v2691_v41, %v14155_v45  ;;  %v18914_v36 = vld [vmem:[#allocation8_spill] sm:$0xff]  ;;  %v9500_v41 = vld [vmem:[%s18718_s1 + $0x778] sm:$0xf0] }
 0x226   : > { %v12499_v45 = vld [vmem:[%s18718_s1 + $0x66c] sm:$0xf] }
 0x227   : > { %v2741_v30 = vadd.f32 %v2740_v7, %v2692_v25  ;;  %v9372_v7 = vld [vmem:[%s18718_s1 + $0x678] sm:$0xf0] }
 0x228   : > { %2987 = vmatmul.bf16.gmra.mxu2 %v13463_v48  ;;  %3036 = vmatmul.bf16.gmra.mxu3 %v13465_v51 }
 0x229   : > { %v2790_v2 = vadd.f32 %v2789_v33, %v2741_v30  ;;  %v9882_v33 = vld [vmem:[%s18718_s1 + $0xa68] sm:$0xf]  ;;  %v9503_v30 = vor.u32 %v12531_v40, %v9500_v41 }
 0x22b   : > { %v14456_v28 = vadd.f32 %v2838_v11, %v2790_v2  ;;  %v2792_v12 = vpop.f32.mrf.mxu2  ;;  %v2841_v56 = vpop.f32.mrf.mxu3  ;;  %v9375_v11 = vor.u32 %v12499_v45, %v9372_v7  ;;  %3218 = vmatpush.bf16.msra.mxu3 %v9503_v30  ;;  %v12661_v45 = vld [vmem:[%s18718_s1 + $0xb74] sm:$0xf0] }
 0x22c   : > { %v2694_v62 = vpop.f32.mrf.mxu0  ;;  %v2743_v34 = vpop.f32.mrf.mxu1 }
 0x22d   : > { %18913 = vst [vmem:[#allocation7_spill] sm:$0xff] %v14456_v28  ;;  %v2695_v39 = vadd.f32 %v2694_v62, %v14162_v57  ;;  %v12629_v57 = vld [vmem:[%s18718_s1 + $0xa74] sm:$0xf0]  ;;  %3169 = vmatpush.bf16.msra.mxu2 %v9375_v11 }
 0x22e   : > { %v9883_v25 = vor.u32 %v12629_v57, %v9882_v33 }
 0x22f   : > { %v2744_v32 = vadd.f32 %v2743_v34, %v2695_v39  ;;  %2889 = vmatmul.bf16.gmra.mxu0 %v18914_v36  ;;  %2938 = vmatmul.bf16.gmra.mxu1 %v18915_v17  ;;  %v10010_v39 = vld [vmem:[%s18718_s1 + $0xb68] sm:$0xf] }
 0x230   : > { %3071 = vmatpush.bf16.msra.mxu0 %v9883_v25 }
 0x231   : > { %v2793_v4 = vadd.f32 %v2792_v12, %v2744_v32  ;;  %v10011_v12 = vor.u32 %v12661_v45, %v10010_v39  ;;  %v18919_v39 = vld [vmem:[#allocation11_spill] sm:$0xff]  ;;  %v12527_v45 = vld [vmem:[%s18718_s1 + $0x74c] sm:$0xf] }
 0x233   : > { %v14479_v2 = vadd.f32 %v2841_v56, %v2793_v4  ;;  %v2794_v62 = vpop.f32.mrf.mxu2  ;;  %v2843_v34 = vpop.f32.mrf.mxu3  ;;  %3120 = vmatpush.bf16.msra.mxu1 %v10011_v12 }
 0x234   : > { %v2696_v7 = vpop.f32.mrf.mxu0  ;;  %v2745_v28 = vpop.f32.mrf.mxu1 }
 0x235   : > { %18916 = vst [vmem:[#allocation8_spill] sm:$0xff] %v14479_v2  ;;  %v2697_v32 = vadd.f32 %v2696_v7, %v14193_v47  ;;  %v18918_v2 = vld [vmem:[#allocation10_spill] sm:$0xff]  ;;  %v12495_v47 = vld [vmem:[%s18718_s1 + $0x64c] sm:$0xf] }
 0x236   : > { %v9484_v7 = vld [vmem:[%s18718_s1 + $0x758] sm:$0xf0] }
 0x237   : > { %v2746_v56 = vadd.f32 %v2745_v28, %v2697_v32  ;;  %v9356_v28 = vld [vmem:[%s18718_s1 + $0x658] sm:$0xf0] }
 0x238   : > { %2992 = vmatmul.bf16.gmra.mxu2 %v13518_v58  ;;  %3041 = vmatmul.bf16.gmra.mxu3 %v13520_v59 }
 0x239   : > { %v2795_v33 = vadd.f32 %v2794_v62, %v2746_v56  ;;  %v9866_v62 = vld [vmem:[%s18718_s1 + $0xa48] sm:$0xf]  ;;  %v9487_v56 = vor.u32 %v12527_v45, %v9484_v7 }
 0x23b   : > { %v14490_v11 = vadd.f32 %v2843_v34, %v2795_v33  ;;  %v2797_v57 = vpop.f32.mrf.mxu2  ;;  %v2846_v40 = vpop.f32.mrf.mxu3  ;;  %v9359_v34 = vor.u32 %v12495_v47, %v9356_v28  ;;  %3219 = vmatpush.bf16.msra.mxu3 %v9487_v56  ;;  %v12657_v47 = vld [vmem:[%s18718_s1 + $0xb54] sm:$0xf0] }
 0x23c   : > { %v2699_v41 = vpop.f32.mrf.mxu0  ;;  %v2748_v4 = vpop.f32.mrf.mxu1 }
 0x23d   : > { %18917 = vst [vmem:[#allocation9_spill] sm:$0xff] %v14490_v11  ;;  %v2700_v25 = vadd.f32 %v2699_v41, %v14200_v42  ;;  %v12625_v42 = vld [vmem:[%s18718_s1 + $0xa54] sm:$0xf0]  ;;  %3170 = vmatpush.bf16.msra.mxu2 %v9359_v34 }
 0x23e   : > { %v9867_v32 = vor.u32 %v12625_v42, %v9866_v62 }
 0x23f   : > { %v2749_v30 = vadd.f32 %v2748_v4, %v2700_v25  ;;  %2894 = vmatmul.bf16.gmra.mxu0 %v18918_v2  ;;  %2943 = vmatmul.bf16.gmra.mxu1 %v18919_v39  ;;  %v9994_v25 = vld [vmem:[%s18718_s1 + $0xb48] sm:$0xf] }
 0x240   : > { %3072 = vmatpush.bf16.msra.mxu0 %v9867_v32 }
 0x241   : > { %v2798_v12 = vadd.f32 %v2797_v57, %v2749_v30  ;;  %v9995_v57 = vor.u32 %v12657_v47, %v9994_v25  ;;  %v18923_v25 = vld [vmem:[#allocation13_spill] sm:$0xff]  ;;  %v12523_v47 = vld [vmem:[%s18718_s1 + $0x72c] sm:$0xf] }
 0x243   : > { %v14513_v33 = vadd.f32 %v2846_v40, %v2798_v12  ;;  %v2799_v41 = vpop.f32.mrf.mxu2  ;;  %v2848_v4 = vpop.f32.mrf.mxu3  ;;  %3121 = vmatpush.bf16.msra.mxu1 %v9995_v57 }
 0x244   : > { %v2701_v28 = vpop.f32.mrf.mxu0  ;;  %v2750_v11 = vpop.f32.mrf.mxu1 }
 0x245   : > { %18920 = vst [vmem:[#allocation10_spill] sm:$0xff] %v14513_v33  ;;  %v2702_v30 = vadd.f32 %v2701_v28, %v14231_v44  ;;  %v18922_v33 = vld [vmem:[#allocation12_spill] sm:$0xff]  ;;  %v9468_v28 = vld [vmem:[%s18718_s1 + $0x738] sm:$0xf0] }
 0x246   : > { %v12491_v44 = vld [vmem:[%s18718_s1 + $0x62c] sm:$0xf] }
 0x247   : > { %v2751_v40 = vadd.f32 %v2750_v11, %v2702_v30  ;;  %v9340_v11 = vld [vmem:[%s18718_s1 + $0x638] sm:$0xf0] }
 0x248   : > { %2997 = vmatmul.bf16.gmra.mxu2 %v13573_v10  ;;  %3046 = vmatmul.bf16.gmra.mxu3 %v13575_v22 }
 0x249   : > { %v2800_v62 = vadd.f32 %v2799_v41, %v2751_v40  ;;  %v9850_v41 = vld [vmem:[%s18718_s1 + $0xa28] sm:$0xf]  ;;  %v9471_v40 = vor.u32 %v12523_v47, %v9468_v28 }
 0x24b   : > { %v14524_v34 = vadd.f32 %v2848_v4, %v2800_v62  ;;  %v2802_v42 = vpop.f32.mrf.mxu2  ;;  %v2851_v45 = vpop.f32.mrf.mxu3  ;;  %v9343_v4 = vor.u32 %v12491_v44, %v9340_v11  ;;  %3220 = vmatpush.bf16.msra.mxu3 %v9471_v40  ;;  %v12653_v44 = vld [vmem:[%s18718_s1 + $0xb34] sm:$0xf0] }
 0x24c   : > { %v2704_v7 = vpop.f32.mrf.mxu0  ;;  %v2753_v12 = vpop.f32.mrf.mxu1 }
 0x24d   : > { %18921 = vst [vmem:[#allocation11_spill] sm:$0xff] %v14524_v34  ;;  %v2705_v32 = vadd.f32 %v2704_v7, %v14238_v14  ;;  %v12621_v14 = vld [vmem:[%s18718_s1 + $0xa34] sm:$0xf0]  ;;  %3171 = vmatpush.bf16.msra.mxu2 %v9343_v4 }
 0x24e   : > { %v9851_v30 = vor.u32 %v12621_v14, %v9850_v41 }
 0x24f   : > { %v2754_v56 = vadd.f32 %v2753_v12, %v2705_v32  ;;  %2899 = vmatmul.bf16.gmra.mxu0 %v18922_v33  ;;  %2948 = vmatmul.bf16.gmra.mxu1 %v18923_v25  ;;  %v9978_v32 = vld [vmem:[%s18718_s1 + $0xb28] sm:$0xf] }
 0x250   : > { %3073 = vmatpush.bf16.msra.mxu0 %v9851_v30 }
 0x251   : > { %v2803_v57 = vadd.f32 %v2802_v42, %v2754_v56  ;;  %v9979_v42 = vor.u32 %v12653_v44, %v9978_v32  ;;  %v18927_v32 = vld [vmem:[#allocation15_spill] sm:$0xff]  ;;  %v12519_v44 = vld [vmem:[%s18718_s1 + $0x70c] sm:$0xf] }
 0x253   : > { %v14547_v62 = vadd.f32 %v2851_v45, %v2803_v57  ;;  %v2804_v7 = vpop.f32.mrf.mxu2  ;;  %v2853_v12 = vpop.f32.mrf.mxu3  ;;  %3122 = vmatpush.bf16.msra.mxu1 %v9979_v42 }
 0x254   : > { %v2706_v11 = vpop.f32.mrf.mxu0  ;;  %v2755_v34 = vpop.f32.mrf.mxu1 }
 0x255   : > { %18924 = vst [vmem:[#allocation12_spill] sm:$0xff] %v14547_v62  ;;  %v2707_v56 = vadd.f32 %v2706_v11, %v14269_v35  ;;  %v18926_v62 = vld [vmem:[#allocation14_spill] sm:$0xff]  ;;  %v12487_v35 = vld [vmem:[%s18718_s1 + $0x60c] sm:$0xf] }
 0x256   : > { %v9452_v11 = vld [vmem:[%s18718_s1 + $0x718] sm:$0xf0] }
 0x257   : > { %v2756_v45 = vadd.f32 %v2755_v34, %v2707_v56  ;;  %v9324_v34 = vld [vmem:[%s18718_s1 + $0x618] sm:$0xf0] }
 0x258   : > { %3002 = vmatmul.bf16.gmra.mxu2 %v13628_v3  ;;  %3051 = vmatmul.bf16.gmra.mxu3 %v13630_v6 }
 0x259   : > { %v2805_v41 = vadd.f32 %v2804_v7, %v2756_v45  ;;  %v9834_v7 = vld [vmem:[%s18718_s1 + $0xa08] sm:$0xf]  ;;  %v9455_v45 = vor.u32 %v12519_v44, %v9452_v11 }
 0x25b   : > { %v14558_v4 = vadd.f32 %v2853_v12, %v2805_v41  ;;  %v2807_v14 = vpop.f32.mrf.mxu2  ;;  %v2856_v47 = vpop.f32.mrf.mxu3  ;;  %v9327_v12 = vor.u32 %v12487_v35, %v9324_v34  ;;  %3221 = vmatpush.bf16.msra.mxu3 %v9455_v45  ;;  %v12649_v35 = vld [vmem:[%s18718_s1 + $0xb14] sm:$0xf0] }
 0x25c   : > { %v2709_v28 = vpop.f32.mrf.mxu0  ;;  %v2758_v57 = vpop.f32.mrf.mxu1 }
 0x25d   : > { %18925 = vst [vmem:[#allocation13_spill] sm:$0xff] %v14558_v4  ;;  %v2710_v30 = vadd.f32 %v2709_v28, %v14276_v54  ;;  %v12617_v54 = vld [vmem:[%s18718_s1 + $0xa14] sm:$0xf0]  ;;  %3172 = vmatpush.bf16.msra.mxu2 %v9327_v12 }
 0x25e   : > { %v9835_v56 = vor.u32 %v12617_v54, %v9834_v7 }
 0x25f   : > { %v2759_v40 = vadd.f32 %v2758_v57, %v2710_v30  ;;  %2904 = vmatmul.bf16.gmra.mxu0 %v18926_v62  ;;  %2953 = vmatmul.bf16.gmra.mxu1 %v18927_v32  ;;  %v9962_v30 = vld [vmem:[%s18718_s1 + $0xb08] sm:$0xf] }
 0x260   : > { %3074 = vmatpush.bf16.msra.mxu0 %v9835_v56 }
 0x261   : > { %v2808_v42 = vadd.f32 %v2807_v14, %v2759_v40  ;;  %v9963_v14 = vor.u32 %v12649_v35, %v9962_v30  ;;  %v18931_v30 = vld [vmem:[#allocation17_spill] sm:$0xff]  ;;  %v12675_v35 = vld [vmem:[%s18718_s1 + $0xbec] sm:$0xf] }
 0x263   : > { %v14581_v41 = vadd.f32 %v2856_v47, %v2808_v42  ;;  %v2809_v28 = vpop.f32.mrf.mxu2  ;;  %v2858_v57 = vpop.f32.mrf.mxu3  ;;  %3123 = vmatpush.bf16.msra.mxu1 %v9963_v14 }
 0x264   : > { %v2711_v34 = vpop.f32.mrf.mxu0  ;;  %v2760_v4 = vpop.f32.mrf.mxu1 }
 0x265   : > { %18928 = vst [vmem:[#allocation14_spill] sm:$0xff] %v14581_v41  ;;  %v2712_v40 = vadd.f32 %v2711_v34, %v14307_v18  ;;  %v18930_v41 = vld [vmem:[#allocation16_spill] sm:$0xff]  ;;  %v10076_v34 = vld [vmem:[%s18718_s1 + $0xbf8] sm:$0xf0] }
 0x266   : > { %v12643_v18 = vld [vmem:[%s18718_s1 + $0xaec] sm:$0xf] }
 0x267   : > { %v2761_v47 = vadd.f32 %v2760_v4, %v2712_v40  ;;  %v9948_v4 = vld [vmem:[%s18718_s1 + $0xaf8] sm:$0xf0] }
 0x268   : > { %3007 = vmatmul.bf16.gmra.mxu2 %v13675_v15  ;;  %3056 = vmatmul.bf16.gmra.mxu3 %v13677_v60 }
 0x269   : > { %v2810_v7 = vadd.f32 %v2809_v28, %v2761_v47  ;;  %v12579_v28 = vld [vmem:[%s18718_s1 + $0x8ec] sm:$0xf]  ;;  %v10079_v47 = vor.u32 %v12675_v35, %v10076_v34 }
 0x26b   : > { %v14592_v12 = vadd.f32 %v2858_v57, %v2810_v7  ;;  %v2812_v54 = vpop.f32.mrf.mxu2  ;;  %v2861_v44 = vpop.f32.mrf.mxu3  ;;  %v9951_v57 = vor.u32 %v12643_v18, %v9948_v4  ;;  %v12611_v7 = vld [vmem:[%s18718_s1 + $0x9ec] sm:$0xf]  ;;  %3410 = vmatpush.bf16.msrb.mxu3 %v10079_v47 }
 0x26c   : > { %v2714_v11 = vpop.f32.mrf.mxu0  ;;  %v2763_v42 = vpop.f32.mrf.mxu1 }
 0x26d   : > { %18929 = vst [vmem:[#allocation15_spill] sm:$0xff] %v14592_v12  ;;  %v2715_v56 = vadd.f32 %v2714_v11, %v14314_v24  ;;  %v9692_v24 = vld [vmem:[%s18718_s1 + $0x8f8] sm:$0xf0]  ;;  %3361 = vmatpush.bf16.msrb.mxu2 %v9951_v57 }
 0x26e   : > { %v9695_v40 = vor.u32 %v12579_v28, %v9692_v24  ;;  %v9820_v11 = vld [vmem:[%s18718_s1 + $0x9f8] sm:$0xf0] }
 0x26f   : > { %v2764_v45 = vadd.f32 %v2763_v42, %v2715_v56  ;;  %2909 = vmatmul.bf16.gmra.mxu0 %v18930_v41  ;;  %2958 = vmatmul.bf16.gmra.mxu1 %v18931_v30  ;;  %v9823_v42 = vor.u32 %v12611_v7, %v9820_v11  ;;  %v18934_v7 = vld [vmem:[#allocation18_spill] sm:$0xff]  ;;  %v18935_v11 = vld [vmem:[#allocation19_spill] sm:$0xff] }
 0x270   : > { %3263 = vmatpush.bf16.msrb.mxu0 %v9695_v40 }
 0x271   : > { %v2813_v14 = vadd.f32 %v2812_v54, %v2764_v45  ;;  %3312 = vmatpush.bf16.msrb.mxu1 %v9823_v42  ;;  %v12575_v42 = vld [vmem:[%s18718_s1 + $0x8cc] sm:$0xf] }
 0x273   : > { %v14621_v56 = vadd.f32 %v2861_v44, %v2813_v14  ;;  %v2814_v18 = vpop.f32.mrf.mxu2  ;;  %v2863_v4 = vpop.f32.mrf.mxu3 }
 0x274   : > { %v2716_v12 = vpop.f32.mrf.mxu0  ;;  %v2765_v54 = vpop.f32.mrf.mxu1 }
 0x275   : > { %18932 = vst [vmem:[#allocation16_spill] sm:$0xff] %v14621_v56  ;;  %v2717_v45 = vadd.f32 %v2716_v12, %v14345_v19  ;;  %v12639_v19 = vld [vmem:[%s18718_s1 + $0xacc] sm:$0xf]  ;;  %v9932_v12 = vld [vmem:[%s18718_s1 + $0xad8] sm:$0xf0] }
 0x277   : > { %v2766_v28 = vadd.f32 %v2765_v54, %v2717_v45  ;;  %v10060_v54 = vld [vmem:[%s18718_s1 + $0xbd8] sm:$0xf0] }
 0x278   : > { %3012 = vmatmul.bf16.gmra.mxu2 %v13722_v8  ;;  %3061 = vmatmul.bf16.gmra.mxu3 %v13724_v53 }
 0x279   : > { %v2815_v24 = vadd.f32 %v2814_v18, %v2766_v28  ;;  %v9935_v18 = vor.u32 %v12639_v19, %v9932_v12 }
 0x27b   : > { %v14626_v35 = vadd.f32 %v2863_v4, %v2815_v24  ;;  %v2817_v57 = vpop.f32.mrf.mxu2  ;;  %v2866_v44 = vpop.f32.mrf.mxu3  ;;  %v12671_v4 = vld [vmem:[%s18718_s1 + $0xbcc] sm:$0xf]  ;;  %3362 = vmatpush.bf16.msrb.mxu2 %v9935_v18 }
 0x27c   : > { %v2719_v34 = vpop.f32.mrf.mxu0  ;;  %v2768_v14 = vpop.f32.mrf.mxu1  ;;  %v10063_v24 = vor.u32 %v12671_v4, %v10060_v54 }
 0x27d   : > { %18933 = vst [vmem:[#allocation17_spill] sm:$0xff] %v14626_v35  ;;  %v2720_v40 = vadd.f32 %v2719_v34, %v14352_v0  ;;  %v9676_v0 = vld [vmem:[%s18718_s1 + $0x8d8] sm:$0xf0]  ;;  %v12607_v34 = vld [vmem:[%s18718_s1 + $0x9cc] sm:$0xf] }
 0x27e   : > { %v9679_v28 = vor.u32 %v12575_v42, %v9676_v0  ;;  %3411 = vmatpush.bf16.msrb.mxu3 %v10063_v24  ;;  %v12667_v24 = vld [vmem:[%s18718_s1 + $0xbac] sm:$0xf] }
 0x27f   : > { %v2769_v47 = vadd.f32 %v2768_v14, %v2720_v40  ;;  %2914 = vmatmul.bf16.gmra.mxu0 %v18934_v7  ;;  %2963 = vmatmul.bf16.gmra.mxu1 %v18935_v11  ;;  %v9804_v14 = vld [vmem:[%s18718_s1 + $0x9d8] sm:$0xf0] }
 0x280   : > { %v9807_v40 = vor.u32 %v12607_v34, %v9804_v14  ;;  %3264 = vmatpush.bf16.msrb.mxu0 %v9679_v28  ;;  %v10044_v14 = vld [vmem:[%s18718_s1 + $0xbb8] sm:$0xf0] }
 0x281   : > { %v2818_v45 = vadd.f32 %v2817_v57, %v2769_v47 }
 0x282   : > { %3313 = vmatpush.bf16.msrb.mxu1 %v9807_v40 }
 0x283   : > { %v14655_v19 = vadd.f32 %v2866_v44, %v2818_v45  ;;  %v2819_v12 = vpop.f32.mrf.mxu2  ;;  %v2868_v35 = vpop.f32.mrf.mxu3 }
 0x284   : > { %v2721_v56 = vpop.f32.mrf.mxu0  ;;  %v2770_v57 = vpop.f32.mrf.mxu1 }
 0x285   : > { %v2722_v47 = vadd.f32 %v2721_v56, %v14383_v23  ;;  %v12635_v23 = vld [vmem:[%s18718_s1 + $0xaac] sm:$0xf] }
 0x287   : > { %v2771_v42 = vadd.f32 %v2770_v57, %v2722_v47  ;;  %v10047_v57 = vor.u32 %v12667_v24, %v10044_v14  ;;  %v12603_v47 = vld [vmem:[%s18718_s1 + $0x9ac] sm:$0xf] }
 0x288   : > { %3173 = vmatmul.bf16.vlgmr.msra.gmra.mxu2 %v13364_v16  ;;  %3222 = vmatmul.bf16.vlgmr.msra.gmra.mxu3 %v18907_v61  ;;  %v9916_v16 = vld [vmem:[%s18718_s1 + $0xab8] sm:$0xf0]  ;;  %v12571_v61 = vld [vmem:[%s18718_s1 + $0x8ac] sm:$0xf] }
 0x289   : > { %v2820_v0 = vadd.f32 %v2819_v12, %v2771_v42  ;;  %v9919_v56 = vor.u32 %v12635_v23, %v9916_v16  ;;  %v9788_v42 = vld [vmem:[%s18718_s1 + $0x9b8] sm:$0xf0]  ;;  %3412 = vmatpush.bf16.msrb.mxu3 %v10047_v57 }
 0x28b   : > { %v14660_v4 = vadd.f32 %v2868_v35, %v2820_v0  ;;  %v2978_v18 = vpop.f32.mrf.mxu2  ;;  %v3027_v44 = vpop.f32.mrf.mxu3  ;;  %v9660_v35 = vld [vmem:[%s18718_s1 + $0x8b8] sm:$0xf0]  ;;  %3363 = vmatpush.bf16.msrb.mxu2 %v9919_v56  ;;  %v9791_v0 = vor.u32 %v12603_v47, %v9788_v42  ;;  %v12663_v42 = vld [vmem:[%s18718_s1 + $0xb8c] sm:$0xf] }
 0x28c   : > { %v2880_v54 = vpop.f32.mrf.mxu0  ;;  %v2929_v45 = vpop.f32.mrf.mxu1  ;;  %v9663_v12 = vor.u32 %v12571_v61, %v9660_v35  ;;  %v9644_v47 = vld [vmem:[%s18718_s1 + $0x898] sm:$0xf0] }
 0x28d   : > { %18936 = vst [vmem:[#allocation18_spill] sm:$0xff] %v14660_v4  ;;  %v2930_v34 = vadd.f32 %v2929_v45, %v2880_v54  ;;  %3314 = vmatpush.bf16.msrb.mxu1 %v9791_v0  ;;  %v10028_v0 = vld [vmem:[%s18718_s1 + $0xb98] sm:$0xf0]  ;;  %v12242_v4 = vld [vmem:[#allocation2 + $0x164] sm:$0xf] }
 0x28e   : > { %3265 = vmatpush.bf16.msrb.mxu0 %v9663_v12  ;;  %v12631_v12 = vld [vmem:[%s18718_s1 + $0xa8c] sm:$0xf] }
 0x28f   : > { %3075 = vmatmul.bf16.vlgmr.msra.gmra.mxu0 %v13768_v1  ;;  %3124 = vmatmul.bf16.vlgmr.msra.gmra.mxu1 %v13770_v38  ;;  %v2979_v28 = vadd.f32 %v2978_v18, %v2930_v34 }
 0x291   : > { %v14682_v40 = vadd.f32 %v3027_v44, %v2979_v28 }
 0x293   : > { %v2980_v18 = vpop.f32.mrf.mxu2  ;;  %v3029_v54 = vpop.f32.mrf.mxu3 }
 0x294   : > { %v2882_v45 = vpop.f32.mrf.mxu0  ;;  %v2931_v34 = vpop.f32.mrf.mxu1 }
 0x295   : > { %v2932_v44 = vadd.f32 %v2931_v34, %v2882_v45  ;;  %v10031_v45 = vor.u32 %v12663_v42, %v10028_v0  ;;  %v12599_v34 = vld [vmem:[%s18718_s1 + $0x98c] sm:$0xf] }
 0x297   : > { %v2981_v28 = vadd.f32 %v2980_v18, %v2932_v44  ;;  %v9772_v44 = vld [vmem:[%s18718_s1 + $0x998] sm:$0xf0]  ;;  %3413 = vmatpush.bf16.msrb.mxu3 %v10031_v45 }
 0x298   : > { %3178 = vmatmul.bf16.gmra.mxu2 %v18910_v29  ;;  %3227 = vmatmul.bf16.gmra.mxu3 %v18911_v13  ;;  %v9900_v29 = vld [vmem:[%s18718_s1 + $0xa98] sm:$0xf0]  ;;  %v12567_v13 = vld [vmem:[%s18718_s1 + $0x88c] sm:$0xf] }
 0x299   : > { %v14692_v23 = vadd.f32 %v3029_v54, %v2981_v28  ;;  %v9903_v57 = vor.u32 %v12631_v12, %v9900_v29  ;;  %v9647_v54 = vor.u32 %v12567_v13, %v9644_v47  ;;  %v9775_v28 = vor.u32 %v12599_v34, %v9772_v44  ;;  %v9628_v34 = vld [vmem:[%s18718_s1 + $0x878] sm:$0xf0]  ;;  %v12659_v44 = vld [vmem:[%s18718_s1 + $0xb6c] sm:$0xf] }
 0x29b   : > { %v2983_v16 = vpop.f32.mrf.mxu2  ;;  %v3032_v61 = vpop.f32.mrf.mxu3  ;;  %3364 = vmatpush.bf16.msrb.mxu2 %v9903_v57  ;;  %3266 = vmatpush.bf16.msrb.mxu0 %v9647_v54  ;;  %v12627_v54 = vld [vmem:[%s18718_s1 + $0xa6c] sm:$0xf] }
 0x29c   : > { %v2885_v35 = vpop.f32.mrf.mxu0  ;;  %v2934_v56 = vpop.f32.mrf.mxu1  ;;  %3315 = vmatpush.bf16.msrb.mxu1 %v9775_v28  ;;  %v10012_v28 = vld [vmem:[%s18718_s1 + $0xb78] sm:$0xf0] }
 0x29d   : > { %v2935_v24 = vadd.f32 %v2934_v56, %v2885_v35 }
 0x29f   : > { %3080 = vmatmul.bf16.gmra.mxu0 %v13810_v27  ;;  %3129 = vmatmul.bf16.gmra.mxu1 %v13812_v37  ;;  %v2984_v14 = vadd.f32 %v2983_v16, %v2935_v24 }
 0x2a1   : > { %v14714_v18 = vadd.f32 %v3032_v61, %v2984_v14 }
 0x2a3   : > { %v2985_v16 = vpop.f32.mrf.mxu2  ;;  %v3034_v35 = vpop.f32.mrf.mxu3 }
 0x2a4   : > { %v2887_v56 = vpop.f32.mrf.mxu0  ;;  %v2936_v24 = vpop.f32.mrf.mxu1 }
 0x2a5   : > { %v2937_v61 = vadd.f32 %v2936_v24, %v2887_v56  ;;  %v10015_v56 = vor.u32 %v12659_v44, %v10012_v28  ;;  %v12595_v24 = vld [vmem:[%s18718_s1 + $0x96c] sm:$0xf] }
 0x2a7   : > { %v2986_v14 = vadd.f32 %v2985_v16, %v2937_v61  ;;  %v9756_v61 = vld [vmem:[%s18718_s1 + $0x978] sm:$0xf0]  ;;  %3414 = vmatpush.bf16.msrb.mxu3 %v10015_v56 }
 0x2a8   : > { %3183 = vmatmul.bf16.gmra.mxu2 %v18914_v36  ;;  %3232 = vmatmul.bf16.gmra.mxu3 %v18915_v17  ;;  %v9884_v36 = vld [vmem:[%s18718_s1 + $0xa78] sm:$0xf0]  ;;  %v12563_v17 = vld [vmem:[%s18718_s1 + $0x86c] sm:$0xf] }
 0x2a9   : > { %v14724_v12 = vadd.f32 %v3034_v35, %v2986_v14  ;;  %v9887_v45 = vor.u32 %v12627_v54, %v9884_v36  ;;  %v9631_v35 = vor.u32 %v12563_v17, %v9628_v34  ;;  %v9759_v14 = vor.u32 %v12595_v24, %v9756_v61  ;;  %v9612_v24 = vld [vmem:[%s18718_s1 + $0x858] sm:$0xf0]  ;;  %v12655_v61 = vld [vmem:[%s18718_s1 + $0xb4c] sm:$0xf] }
 0x2ab   : > { %v2988_v29 = vpop.f32.mrf.mxu2  ;;  %v3037_v13 = vpop.f32.mrf.mxu3  ;;  %3365 = vmatpush.bf16.msrb.mxu2 %v9887_v45  ;;  %3267 = vmatpush.bf16.msrb.mxu0 %v9631_v35  ;;  %v12623_v35 = vld [vmem:[%s18718_s1 + $0xa4c] sm:$0xf] }
 0x2ac   : > { %v2890_v47 = vpop.f32.mrf.mxu0  ;;  %v2939_v57 = vpop.f32.mrf.mxu1  ;;  %3316 = vmatpush.bf16.msrb.mxu1 %v9759_v14  ;;  %v9996_v14 = vld [vmem:[%s18718_s1 + $0xb58] sm:$0xf0] }
 0x2ad   : > { %v2940_v42 = vadd.f32 %v2939_v57, %v2890_v47 }
 0x2af   : > { %3085 = vmatmul.bf16.gmra.mxu0 %v13852_v43  ;;  %3134 = vmatmul.bf16.gmra.mxu1 %v13854_v31  ;;  %v2989_v0 = vadd.f32 %v2988_v29, %v2940_v42 }
 0x2b1   : > { %v14746_v16 = vadd.f32 %v3037_v13, %v2989_v0 }
 0x2b3   : > { %v2990_v29 = vpop.f32.mrf.mxu2  ;;  %v3039_v47 = vpop.f32.mrf.mxu3 }
 0x2b4   : > { %v2892_v57 = vpop.f32.mrf.mxu0  ;;  %v2941_v42 = vpop.f32.mrf.mxu1 }
 0x2b5   : > { %v2942_v13 = vadd.f32 %v2941_v42, %v2892_v57  ;;  %v9999_v57 = vor.u32 %v12655_v61, %v9996_v14  ;;  %v12591_v42 = vld [vmem:[%s18718_s1 + $0x94c] sm:$0xf] }
 0x2b7   : > { %v2991_v0 = vadd.f32 %v2990_v29, %v2942_v13  ;;  %v9740_v13 = vld [vmem:[%s18718_s1 + $0x958] sm:$0xf0]  ;;  %3415 = vmatpush.bf16.msrb.mxu3 %v9999_v57 }
 0x2b8   : > { %3188 = vmatmul.bf16.gmra.mxu2 %v18918_v2  ;;  %3237 = vmatmul.bf16.gmra.mxu3 %v18919_v39  ;;  %v9868_v2 = vld [vmem:[%s18718_s1 + $0xa58] sm:$0xf0]  ;;  %v12559_v39 = vld [vmem:[%s18718_s1 + $0x84c] sm:$0xf] }
 0x2b9   : > { %v14756_v54 = vadd.f32 %v3039_v47, %v2991_v0  ;;  %v9871_v56 = vor.u32 %v12623_v35, %v9868_v2  ;;  %v9615_v47 = vor.u32 %v12559_v39, %v9612_v24  ;;  %v9743_v0 = vor.u32 %v12591_v42, %v9740_v13  ;;  %v9596_v42 = vld [vmem:[%s18718_s1 + $0x838] sm:$0xf0]  ;;  %v12651_v13 = vld [vmem:[%s18718_s1 + $0xb2c] sm:$0xf] }
 0x2bb   : > { %v2993_v36 = vpop.f32.mrf.mxu2  ;;  %v3042_v17 = vpop.f32.mrf.mxu3  ;;  %3366 = vmatpush.bf16.msrb.mxu2 %v9871_v56  ;;  %3268 = vmatpush.bf16.msrb.mxu0 %v9615_v47  ;;  %v12619_v47 = vld [vmem:[%s18718_s1 + $0xa2c] sm:$0xf] }
 0x2bc   : > { %v2895_v34 = vpop.f32.mrf.mxu0  ;;  %v2944_v45 = vpop.f32.mrf.mxu1  ;;  %3317 = vmatpush.bf16.msrb.mxu1 %v9743_v0  ;;  %v9980_v0 = vld [vmem:[%s18718_s1 + $0xb38] sm:$0xf0] }
 0x2bd   : > { %v2945_v44 = vadd.f32 %v2944_v45, %v2895_v34 }
 0x2bf   : > { %3090 = vmatmul.bf16.gmra.mxu0 %v13894_v46  ;;  %3139 = vmatmul.bf16.gmra.mxu1 %v13896_v63  ;;  %v2994_v28 = vadd.f32 %v2993_v36, %v2945_v44 }
 0x2c1   : > { %v14778_v29 = vadd.f32 %v3042_v17, %v2994_v28 }
 0x2c3   : > { %v2995_v36 = vpop.f32.mrf.mxu2  ;;  %v3044_v34 = vpop.f32.mrf.mxu3 }
 0x2c4   : > { %v2897_v45 = vpop.f32.mrf.mxu0  ;;  %v2946_v44 = vpop.f32.mrf.mxu1 }
 0x2c5   : > { %v2947_v17 = vadd.f32 %v2946_v44, %v2897_v45  ;;  %v9983_v45 = vor.u32 %v12651_v13, %v9980_v0  ;;  %v12587_v44 = vld [vmem:[%s18718_s1 + $0x92c] sm:$0xf] }
 0x2c7   : > { %v2996_v28 = vadd.f32 %v2995_v36, %v2947_v17  ;;  %v9724_v17 = vld [vmem:[%s18718_s1 + $0x938] sm:$0xf0]  ;;  %3416 = vmatpush.bf16.msrb.mxu3 %v9983_v45 }
 0x2c8   : > { %3193 = vmatmul.bf16.gmra.mxu2 %v18922_v33  ;;  %3242 = vmatmul.bf16.gmra.mxu3 %v18923_v25  ;;  %v9852_v33 = vld [vmem:[%s18718_s1 + $0xa38] sm:$0xf0]  ;;  %v12555_v25 = vld [vmem:[%s18718_s1 + $0x82c] sm:$0xf] }
 0x2c9   : > { %v14788_v35 = vadd.f32 %v3044_v34, %v2996_v28  ;;  %v9855_v57 = vor.u32 %v12619_v47, %v9852_v33  ;;  %v9599_v34 = vor.u32 %v12555_v25, %v9596_v42  ;;  %v9727_v28 = vor.u32 %v12587_v44, %v9724_v17  ;;  %v9580_v44 = vld [vmem:[%s18718_s1 + $0x818] sm:$0xf0]  ;;  %v12647_v17 = vld [vmem:[%s18718_s1 + $0xb0c] sm:$0xf] }
 0x2cb   : > { %v2998_v2 = vpop.f32.mrf.mxu2  ;;  %v3047_v39 = vpop.f32.mrf.mxu3  ;;  %3367 = vmatpush.bf16.msrb.mxu2 %v9855_v57  ;;  %3269 = vmatpush.bf16.msrb.mxu0 %v9599_v34  ;;  %v12615_v34 = vld [vmem:[%s18718_s1 + $0xa0c] sm:$0xf] }
 0x2cc   : > { %v2900_v24 = vpop.f32.mrf.mxu0  ;;  %v2949_v56 = vpop.f32.mrf.mxu1  ;;  %3318 = vmatpush.bf16.msrb.mxu1 %v9727_v28  ;;  %v9964_v28 = vld [vmem:[%s18718_s1 + $0xb18] sm:$0xf0] }
 0x2cd   : > { %v2950_v61 = vadd.f32 %v2949_v56, %v2900_v24 }
 0x2cf   : > { %3095 = vmatmul.bf16.gmra.mxu0 %v13936_v9  ;;  %3144 = vmatmul.bf16.gmra.mxu1 %v13938_v26  ;;  %v2999_v14 = vadd.f32 %v2998_v2, %v2950_v61 }
 0x2d1   : > { %v14810_v36 = vadd.f32 %v3047_v39, %v2999_v14 }
 0x2d3   : > { %v3000_v2 = vpop.f32.mrf.mxu2  ;;  %v3049_v24 = vpop.f32.mrf.mxu3 }
 0x2d4   : > { %v2902_v56 = vpop.f32.mrf.mxu0  ;;  %v2951_v61 = vpop.f32.mrf.mxu1 }
 0x2d5   : > { %v2952_v39 = vadd.f32 %v2951_v61, %v2902_v56  ;;  %v9967_v56 = vor.u32 %v12647_v17, %v9964_v28  ;;  %v12583_v61 = vld [vmem:[%s18718_s1 + $0x90c] sm:$0xf] }
 0x2d6   : > { %v18937_v28 = vld [vmem:[#allocation20_spill] sm:$0xff] }
 0x2d7   : > { %v3001_v14 = vadd.f32 %v3000_v2, %v2952_v39  ;;  %v9708_v39 = vld [vmem:[%s18718_s1 + $0x918] sm:$0xf0]  ;;  %3417 = vmatpush.bf16.msrb.mxu3 %v9967_v56  ;;  %v10642_v56 = vld [vmem:[%s18718_s1 + $0x2e0] sm:$0xf] }
 0x2d8   : > { %3198 = vmatmul.bf16.gmra.mxu2 %v18926_v62  ;;  %3247 = vmatmul.bf16.gmra.mxu3 %v18927_v32  ;;  %v9836_v62 = vld [vmem:[%s18718_s1 + $0xa18] sm:$0xf0]  ;;  %v12551_v32 = vld [vmem:[%s18718_s1 + $0x80c] sm:$0xf] }
 0x2d9   : > { %v14820_v47 = vadd.f32 %v3049_v24, %v3001_v14  ;;  %v9839_v45 = vor.u32 %v12615_v34, %v9836_v62  ;;  %v9583_v24 = vor.u32 %v12551_v32, %v9580_v44  ;;  %v9711_v14 = vor.u32 %v12583_v61, %v9708_v39  ;;  %v12276_v39 = vld [vmem:[%s18718_s1 + $0xec] sm:$0xf0] }
 0x2db   : > { %v3003_v33 = vpop.f32.mrf.mxu2  ;;  %v3052_v25 = vpop.f32.mrf.mxu3  ;;  %3368 = vmatpush.bf16.msrb.mxu2 %v9839_v45  ;;  %3270 = vmatpush.bf16.msrb.mxu0 %v9583_v24 }
 0x2dc   : > { %v2905_v42 = vpop.f32.mrf.mxu0  ;;  %v2954_v57 = vpop.f32.mrf.mxu1  ;;  %3319 = vmatpush.bf16.msrb.mxu1 %v9711_v14  ;;  %v10770_v14 = vld [vmem:[%s18718_s1 + $0x3e0] sm:$0xf] }
 0x2dd   : > { %v2955_v13 = vadd.f32 %v2954_v57, %v2905_v42 }
 0x2df   : > { %3100 = vmatmul.bf16.gmra.mxu0 %v13978_v55  ;;  %3149 = vmatmul.bf16.gmra.mxu1 %v13980_v21  ;;  %v3004_v0 = vadd.f32 %v3003_v33, %v2955_v13 }
 0x2e1   : > { %v14842_v2 = vadd.f32 %v3052_v25, %v3004_v0 }
 0x2e3   : > { %v3005_v33 = vpop.f32.mrf.mxu2  ;;  %v3054_v42 = vpop.f32.mrf.mxu3 }
 0x2e4   : > { %v2907_v57 = vpop.f32.mrf.mxu0  ;;  %v2956_v13 = vpop.f32.mrf.mxu1 }
 0x2e5   : > { %v2957_v25 = vadd.f32 %v2956_v13, %v2907_v57 }
 0x2e7   : > { %v3006_v0 = vadd.f32 %v3005_v33, %v2957_v25  ;;  %v12372_v33 = vld [vmem:[%s18718_s1 + $0x3ec] sm:$0xf0]  ;;  %v10514_v25 = vld [vmem:[%s18718_s1 + $0x1e0] sm:$0xf] }
 0x2e8   : > { %3203 = vmatmul.bf16.gmra.mxu2 %v18930_v41  ;;  %3252 = vmatmul.bf16.gmra.mxu3 %v18931_v30  ;;  %v12340_v41 = vld [vmem:[%s18718_s1 + $0x2ec] sm:$0xf0]  ;;  %v10386_v30 = vld [vmem:[%s18718_s1 + $0xe0] sm:$0xf]  ;;  %v10771_v13 = vor.u32 %v12372_v33, %v10770_v14 }
 0x2e9   : > { %v14852_v34 = vadd.f32 %v3054_v42, %v3006_v0  ;;  %v10643_v61 = vor.u32 %v12340_v41, %v10642_v56  ;;  %v10387_v57 = vor.u32 %v12276_v39, %v10386_v30  ;;  %v12308_v0 = vld [vmem:[%s18718_s1 + $0x1ec] sm:$0xf0] }
 0x2ea   : > { %4806 = vmatpush.bf16.msra.mxu3 %v10771_v13  ;;  %v10626_v13 = vld [vmem:[%s18718_s1 + $0x2c0] sm:$0xf] }
 0x2eb   : > { %v3008_v62 = vpop.f32.mrf.mxu2  ;;  %v3057_v32 = vpop.f32.mrf.mxu3  ;;  %4757 = vmatpush.bf16.msra.mxu2 %v10643_v61  ;;  %4659 = vmatpush.bf16.msra.mxu0 %v10387_v57 }
 0x2ec   : > { %v2910_v44 = vpop.f32.mrf.mxu0  ;;  %v2959_v45 = vpop.f32.mrf.mxu1 }
 0x2ed   : > { %v2960_v17 = vadd.f32 %v2959_v45, %v2910_v44 }
 0x2ef   : > { %3105 = vmatmul.bf16.gmra.mxu0 %v14014_v20  ;;  %3154 = vmatmul.bf16.gmra.mxu1 %v18937_v28  ;;  %v3009_v24 = vadd.f32 %v3008_v62, %v2960_v17  ;;  %v10515_v62 = vor.u32 %v12308_v0, %v10514_v25  ;;  %v12272_v0 = vld [vmem:[%s18718_s1 + $0xcc] sm:$0xf0] }
 0x2f1   : > { %v14874_v42 = vadd.f32 %v3057_v32, %v3009_v24  ;;  %4708 = vmatpush.bf16.msra.mxu1 %v10515_v62  ;;  %v10754_v62 = vld [vmem:[%s18718_s1 + $0x3c0] sm:$0xf] }
 0x2f3   : > { %v3010_v44 = vpop.f32.mrf.mxu2  ;;  %v3059_v45 = vpop.f32.mrf.mxu3 }
 0x2f4   : > { %v2912_v17 = vpop.f32.mrf.mxu0  ;;  %v2961_v56 = vpop.f32.mrf.mxu1 }
 0x2f5   : > { %v2962_v32 = vadd.f32 %v2961_v56, %v2912_v17 }
 0x2f7   : > { %v3011_v24 = vadd.f32 %v3010_v44, %v2962_v32  ;;  %v12368_v44 = vld [vmem:[%s18718_s1 + $0x3cc] sm:$0xf0]  ;;  %v10498_v32 = vld [vmem:[%s18718_s1 + $0x1c0] sm:$0xf] }
 0x2f8   : > { %3208 = vmatmul.bf16.gmra.mxu2 %v18934_v7  ;;  %3257 = vmatmul.bf16.gmra.mxu3 %v18935_v11  ;;  %v12336_v7 = vld [vmem:[%s18718_s1 + $0x2cc] sm:$0xf0]  ;;  %v10370_v11 = vld [vmem:[%s18718_s1 + $0xc0] sm:$0xf]  ;;  %v10755_v56 = vor.u32 %v12368_v44, %v10754_v62 }
 0x2f9   : > { %v14884_v41 = vadd.f32 %v3059_v45, %v3011_v24  ;;  %v10627_v25 = vor.u32 %v12336_v7, %v10626_v13  ;;  %v10371_v17 = vor.u32 %v12272_v0, %v10370_v11  ;;  %v12304_v24 = vld [vmem:[%s18718_s1 + $0x1cc] sm:$0xf0] }
 0x2fa   : > { %4807 = vmatpush.bf16.msra.mxu3 %v10755_v56 }
 0x2fb   : > { %v3013_v30 = vpop.f32.mrf.mxu2  ;;  %v3062_v39 = vpop.f32.mrf.mxu3  ;;  %4758 = vmatpush.bf16.msra.mxu2 %v10627_v25  ;;  %4660 = vmatpush.bf16.msra.mxu0 %v10371_v17 }
 0x2fc   : > { %v2915_v14 = vpop.f32.mrf.mxu0  ;;  %v2964_v61 = vpop.f32.mrf.mxu1 }
 0x2fd   : > { %v2965_v33 = vadd.f32 %v2964_v61, %v2915_v14 }
 0x2ff   : > { %3110 = vmatmul.bf16.gmra.mxu0 %v14050_v5  ;;  %3159 = vmatmul.bf16.gmra.mxu1 %v14052_v52  ;;  %v3014_v57 = vadd.f32 %v3013_v30, %v2965_v33  ;;  %v10499_v30 = vor.u32 %v12304_v24, %v10498_v32  ;;  %v18939_v32 = vld [vmem:[#allocation3_spill] sm:$0xff]  ;;  %v18940_v24 = vld [vmem:[#allocation4_spill] sm:$0xff] }
 0x301   : > { %v14906_v45 = vadd.f32 %v3062_v39, %v3014_v57  ;;  %4709 = vmatpush.bf16.msra.mxu1 %v10499_v30  ;;  %v10354_v30 = vld [vmem:[%s18718_s1 + $0xa0] sm:$0xf] }
 0x303   : > { %v3015_v14 = vpop.f32.mrf.mxu2  ;;  %v3064_v61 = vpop.f32.mrf.mxu3 }
 0x304   : > { %v2917_v33 = vpop.f32.mrf.mxu0  ;;  %v2966_v13 = vpop.f32.mrf.mxu1 }
 0x305   : > { %v2967_v39 = vadd.f32 %v2966_v13, %v2917_v33  ;;  %v12364_v33 = vld [vmem:[%s18718_s1 + $0x3ac] sm:$0xf0] }
 0x307   : > { %v3016_v57 = vadd.f32 %v3015_v14, %v2967_v39 }
 0x308   : > { %3369 = vmatmul.bf16.vlgmr.msrb.gmra.mxu2 %v13768_v1  ;;  %3418 = vmatmul.bf16.vlgmr.msrb.gmra.mxu3 %v13770_v38  ;;  %v10610_v1 = vld [vmem:[%s18718_s1 + $0x2a0] sm:$0xf]  ;;  %v12332_v38 = vld [vmem:[%s18718_s1 + $0x2ac] sm:$0xf0] }
 0x309   : > { %v14916_v7 = vadd.f32 %v3064_v61, %v3016_v57  ;;  %v10611_v14 = vor.u32 %v12332_v38, %v10610_v1  ;;  %v10738_v61 = vld [vmem:[%s18718_s1 + $0x3a0] sm:$0xf] }
 0x30a   : > { %v10739_v39 = vor.u32 %v12364_v33, %v10738_v61  ;;  %v10482_v57 = vld [vmem:[%s18718_s1 + $0x1a0] sm:$0xf] }
 0x30b   : > { %v3174_v11 = vpop.f32.mrf.mxu2  ;;  %v3223_v0 = vpop.f32.mrf.mxu3  ;;  %4759 = vmatpush.bf16.msra.mxu2 %v10611_v14 }
 0x30c   : > { %v3076_v62 = vpop.f32.mrf.mxu0  ;;  %v3125_v25 = vpop.f32.mrf.mxu1  ;;  %v14918_v44 = vadd.f32 %v3223_v0, %v3174_v11  ;;  %v12300_v11 = vld [vmem:[%s18718_s1 + $0x1ac] sm:$0xf0]  ;;  %4808 = vmatpush.bf16.msra.mxu3 %v10739_v39 }
 0x30d   : > { %v3077_v17 = vadd.f32 %v3076_v62, %v14682_v40  ;;  %v12268_v40 = vld [vmem:[%s18718_s1 + $0xac] sm:$0xf0]  ;;  %v10483_v0 = vor.u32 %v12300_v11, %v10482_v57 }
 0x30e   : > { %v10355_v13 = vor.u32 %v12268_v40, %v10354_v30 }
 0x30f   : > { %v14921_v56 = vadd.f32 %v3125_v25, %v3077_v17  ;;  %3271 = vmatmul.bf16.vlgmr.msrb.gmra.mxu0 %v18939_v32  ;;  %3320 = vmatmul.bf16.vlgmr.msrb.gmra.mxu1 %v18940_v24 }
 0x310   : > { %4661 = vmatpush.bf16.msra.mxu0 %v10355_v13  ;;  %4710 = vmatpush.bf16.msra.mxu1 %v10483_v0 }
 0x311   : > { %18938 = vst [vmem:[#allocation19_spill] sm:$0xff] %v14921_v56  ;;  %v10692_v56 = vld [vmem:[%s18718_s1 + $0x350] sm:$0xf0] }
 0x313   : > { %v3176_v62 = vpop.f32.mrf.mxu2  ;;  %v3225_v25 = vpop.f32.mrf.mxu3 }
 0x314   : > { %v3078_v17 = vpop.f32.mrf.mxu0  ;;  %v3127_v32 = vpop.f32.mrf.mxu1  ;;  %v14949_v24 = vadd.f32 %v3225_v25, %v3176_v62  ;;  %v10466_v62 = vld [vmem:[%s18718_s1 + $0x180] sm:$0xf]  ;;  %v12296_v25 = vld [vmem:[%s18718_s1 + $0x18c] sm:$0xf0] }
 0x315   : > { %v3079_v1 = vadd.f32 %v3078_v17, %v14692_v23  ;;  %v10338_v23 = vld [vmem:[%s18718_s1 + $0x80] sm:$0xf]  ;;  %v10467_v17 = vor.u32 %v12296_v25, %v10466_v62 }
 0x316   : > { %v10450_v25 = vld [vmem:[%s18718_s1 + $0x160] sm:$0xf] }
 0x317   : > { %v14952_v38 = vadd.f32 %v3127_v32, %v3079_v1  ;;  %4711 = vmatpush.bf16.msra.mxu1 %v10467_v17  ;;  %v12292_v17 = vld [vmem:[%s18718_s1 + $0x16c] sm:$0xf0] }
 0x318   : > { %3374 = vmatmul.bf16.gmra.mxu2 %v13810_v27  ;;  %3423 = vmatmul.bf16.gmra.mxu3 %v13812_v37  ;;  %v10594_v27 = vld [vmem:[%s18718_s1 + $0x280] sm:$0xf]  ;;  %v12328_v37 = vld [vmem:[%s18718_s1 + $0x28c] sm:$0xf0] }
 0x319   : > { %18941 = vst [vmem:[#allocation20_spill] sm:$0xff] %v14952_v38  ;;  %v10595_v57 = vor.u32 %v12328_v37, %v10594_v27 }
 0x31b   : > { %v3179_v30 = vpop.f32.mrf.mxu2  ;;  %v3228_v14 = vpop.f32.mrf.mxu3  ;;  %4760 = vmatpush.bf16.msra.mxu2 %v10595_v57 }
 0x31c   : > { %v3081_v40 = vpop.f32.mrf.mxu0  ;;  %v3130_v61 = vpop.f32.mrf.mxu1  ;;  %v14956_v33 = vadd.f32 %v3228_v14, %v3179_v30 }
 0x31d   : > { %v3082_v13 = vadd.f32 %v3081_v40, %v14714_v18  ;;  %v12264_v18 = vld [vmem:[%s18718_s1 + $0x8c] sm:$0xf0] }
 0x31e   : > { %v10339_v11 = vor.u32 %v12264_v18, %v10338_v23 }
 0x31f   : > { %v14959_v39 = vadd.f32 %v3130_v61, %v3082_v13  ;;  %3276 = vmatmul.bf16.gmra.mxu0 %v13406_v49  ;;  %3325 = vmatmul.bf16.gmra.mxu1 %v13408_v50  ;;  %v10722_v49 = vld [vmem:[%s18718_s1 + $0x380] sm:$0xf]  ;;  %v12360_v50 = vld [vmem:[%s18718_s1 + $0x38c] sm:$0xf0] }
 0x320   : > { %v10723_v0 = vor.u32 %v12360_v50, %v10722_v49  ;;  %4662 = vmatpush.bf16.msra.mxu0 %v10339_v11 }
 0x321   : > { %18942 = vst [vmem:[#allocation3_spill] sm:$0xff] %v14959_v39 }
 0x322   : > { %4809 = vmatpush.bf16.msra.mxu3 %v10723_v0 }
 0x323   : > { %v3181_v32 = vpop.f32.mrf.mxu2  ;;  %v3230_v1 = vpop.f32.mrf.mxu3 }
 0x324   : > { %v3083_v30 = vpop.f32.mrf.mxu0  ;;  %v3132_v14 = vpop.f32.mrf.mxu1  ;;  %v14987_v40 = vadd.f32 %v3230_v1, %v3181_v32  ;;  %v10451_v32 = vor.u32 %v12292_v17, %v10450_v25  ;;  %v12288_v25 = vld [vmem:[%s18718_s1 + $0x14c] sm:$0xf0] }
 0x325   : > { %v3084_v61 = vadd.f32 %v3083_v30, %v14724_v12  ;;  %v10322_v12 = vld [vmem:[%s18718_s1 + $0x60] sm:$0xf] }
 0x326   : > { %4712 = vmatpush.bf16.msra.mxu1 %v10451_v32 }
 0x327   : > { %v14990_v13 = vadd.f32 %v3132_v14, %v3084_v61 }
 0x328   : > { %3379 = vmatmul.bf16.gmra.mxu2 %v13852_v43  ;;  %3428 = vmatmul.bf16.gmra.mxu3 %v13854_v31  ;;  %v10578_v43 = vld [vmem:[%s18718_s1 + $0x260] sm:$0xf]  ;;  %v12324_v31 = vld [vmem:[%s18718_s1 + $0x26c] sm:$0xf0] }
 0x329   : > { %18943 = vst [vmem:[#allocation4_spill] sm:$0xff] %v14990_v13  ;;  %v10579_v11 = vor.u32 %v12324_v31, %v10578_v43 }
 0x32b   : > { %v3184_v27 = vpop.f32.mrf.mxu2  ;;  %v3233_v37 = vpop.f32.mrf.mxu3  ;;  %4761 = vmatpush.bf16.msra.mxu2 %v10579_v11 }
 0x32c   : > { %v3086_v23 = vpop.f32.mrf.mxu0  ;;  %v3135_v57 = vpop.f32.mrf.mxu1  ;;  %v14994_v18 = vadd.f32 %v3233_v37, %v3184_v27 }
 0x32d   : > { %v3087_v49 = vadd.f32 %v3086_v23, %v14746_v16  ;;  %v12260_v16 = vld [vmem:[%s18718_s1 + $0x6c] sm:$0xf0] }
 0x32e   : > { %v10323_v0 = vor.u32 %v12260_v16, %v10322_v12 }
 0x32f   : > { %v14997_v50 = vadd.f32 %v3135_v57, %v3087_v49  ;;  %3281 = vmatmul.bf16.gmra.mxu0 %v13463_v48  ;;  %3330 = vmatmul.bf16.gmra.mxu1 %v13465_v51  ;;  %v10706_v48 = vld [vmem:[%s18718_s1 + $0x360] sm:$0xf]  ;;  %v12356_v51 = vld [vmem:[%s18718_s1 + $0x36c] sm:$0xf0] }
 0x330   : > { %v10707_v62 = vor.u32 %v12356_v51, %v10706_v48  ;;  %4663 = vmatpush.bf16.msra.mxu0 %v10323_v0 }
 0x331   : > { %18944 = vst [vmem:[#allocation38_spill] sm:$0xff] %v14997_v50  ;;  %v10708_v50 = vld [vmem:[%s18718_s1 + $0x370] sm:$0xf0] }
 0x332   : > { %4810 = vmatpush.bf16.msra.mxu3 %v10707_v62  ;;  %v10434_v62 = vld [vmem:[%s18718_s1 + $0x140] sm:$0xf] }
 0x333   : > { %v3186_v1 = vpop.f32.mrf.mxu2  ;;  %v3235_v30 = vpop.f32.mrf.mxu3  ;;  %v10435_v17 = vor.u32 %v12288_v25, %v10434_v62 }
 0x334   : > { %v3088_v14 = vpop.f32.mrf.mxu0  ;;  %v3137_v61 = vpop.f32.mrf.mxu1  ;;  %v15025_v27 = vadd.f32 %v3235_v30, %v3186_v1 }
 0x335   : > { %v3089_v37 = vadd.f32 %v3088_v14, %v14756_v54  ;;  %v10306_v54 = vld [vmem:[%s18718_s1 + $0x40] sm:$0xf]  ;;  %4713 = vmatpush.bf16.msra.mxu1 %v10435_v17 }
 0x337   : > { %v15028_v23 = vadd.f32 %v3137_v61, %v3089_v37 }
 0x338   : > { %3384 = vmatmul.bf16.gmra.mxu2 %v13894_v46  ;;  %3433 = vmatmul.bf16.gmra.mxu3 %v13896_v63  ;;  %v10562_v46 = vld [vmem:[%s18718_s1 + $0x240] sm:$0xf]  ;;  %v12320_v63 = vld [vmem:[%s18718_s1 + $0x24c] sm:$0xf0] }
 0x339   : > { %18945 = vst [vmem:[#allocation39_spill] sm:$0xff] %v15028_v23  ;;  %v10563_v48 = vor.u32 %v12320_v63, %v10562_v46 }
 0x33b   : > { %v3189_v57 = vpop.f32.mrf.mxu2  ;;  %v3238_v49 = vpop.f32.mrf.mxu3  ;;  %4762 = vmatpush.bf16.msra.mxu2 %v10563_v48 }
 0x33c   : > { %v3091_v43 = vpop.f32.mrf.mxu0  ;;  %v3140_v31 = vpop.f32.mrf.mxu1  ;;  %v15032_v12 = vadd.f32 %v3238_v49, %v3189_v57 }
 0x33d   : > { %v3092_v11 = vadd.f32 %v3091_v43, %v14778_v29  ;;  %v12256_v29 = vld [vmem:[%s18718_s1 + $0x4c] sm:$0xf0] }
 0x33e   : > { %v10307_v51 = vor.u32 %v12256_v29, %v10306_v54 }
 0x33f   : > { %v15035_v16 = vadd.f32 %v3140_v31, %v3092_v11  ;;  %3286 = vmatmul.bf16.gmra.mxu0 %v13518_v58  ;;  %3335 = vmatmul.bf16.gmra.mxu1 %v13520_v59  ;;  %v10690_v58 = vld [vmem:[%s18718_s1 + $0x340] sm:$0xf]  ;;  %v12352_v59 = vld [vmem:[%s18718_s1 + $0x34c] sm:$0xf0] }
 0x340   : > { %v10691_v0 = vor.u32 %v12352_v59, %v10690_v58  ;;  %4664 = vmatpush.bf16.msra.mxu0 %v10307_v51  ;;  %v10418_v59 = vld [vmem:[%s18718_s1 + $0x120] sm:$0xf]  ;;  %v12284_v51 = vld [vmem:[%s18718_s1 + $0x12c] sm:$0xf0] }
 0x341   : > { %18946 = vst [vmem:[#allocation40_spill] sm:$0xff] %v15035_v16 }
 0x342   : > { %4811 = vmatpush.bf16.msra.mxu3 %v10691_v0  ;;  %v10419_v0 = vor.u32 %v12284_v51, %v10418_v59 }
 0x343   : > { %v3191_v32 = vpop.f32.mrf.mxu2  ;;  %v3240_v1 = vpop.f32.mrf.mxu3 }
 0x344   : > { %v3093_v30 = vpop.f32.mrf.mxu0  ;;  %v3142_v14 = vpop.f32.mrf.mxu1  ;;  %v15063_v61 = vadd.f32 %v3240_v1, %v3191_v32  ;;  %4714 = vmatpush.bf16.msra.mxu1 %v10419_v0 }
 0x345   : > { %v3094_v37 = vadd.f32 %v3093_v30, %v14788_v35  ;;  %v10290_v35 = vld [vmem:[%s18718_s1 + $0x20] sm:$0xf] }
 0x347   : > { %v15066_v57 = vadd.f32 %v3142_v14, %v3094_v37 }
 0x348   : > { %3389 = vmatmul.bf16.gmra.mxu2 %v13936_v9  ;;  %3438 = vmatmul.bf16.gmra.mxu3 %v13938_v26  ;;  %v10546_v9 = vld [vmem:[%s18718_s1 + $0x220] sm:$0xf]  ;;  %v12316_v26 = vld [vmem:[%s18718_s1 + $0x22c] sm:$0xf0] }
 0x349   : > { %18947 = vst [vmem:[#allocation41_spill] sm:$0xff] %v15066_v57  ;;  %v10547_v48 = vor.u32 %v12316_v26, %v10546_v9 }
 0x34b   : > { %v3194_v49 = vpop.f32.mrf.mxu2  ;;  %v3243_v43 = vpop.f32.mrf.mxu3  ;;  %4763 = vmatpush.bf16.msra.mxu2 %v10547_v48 }
 0x34c   : > { %v3096_v31 = vpop.f32.mrf.mxu0  ;;  %v3145_v11 = vpop.f32.mrf.mxu1  ;;  %v15070_v46 = vadd.f32 %v3243_v43, %v3194_v49 }
 0x34d   : > { %v3097_v63 = vadd.f32 %v3096_v31, %v14810_v36  ;;  %v12252_v36 = vld [vmem:[%s18718_s1 + $0x2c] sm:$0xf0] }
 0x34e   : > { %v10291_v29 = vor.u32 %v12252_v36, %v10290_v35  ;;  %v10402_v36 = vld [vmem:[%s18718_s1 + $0x100] sm:$0xf] }
 0x34f   : > { %v15073_v54 = vadd.f32 %v3145_v11, %v3097_v63  ;;  %3291 = vmatmul.bf16.gmra.mxu0 %v13573_v10  ;;  %3340 = vmatmul.bf16.gmra.mxu1 %v13575_v22  ;;  %v10674_v10 = vld [vmem:[%s18718_s1 + $0x320] sm:$0xf]  ;;  %v12348_v22 = vld [vmem:[%s18718_s1 + $0x32c] sm:$0xf0] }
 0x350   : > { %v10675_v58 = vor.u32 %v12348_v22, %v10674_v10  ;;  %4665 = vmatpush.bf16.msra.mxu0 %v10291_v29  ;;  %v12280_v10 = vld [vmem:[%s18718_s1 + $0x10c] sm:$0xf0] }
 0x351   : > { %18948 = vst [vmem:[#allocation42_spill] sm:$0xff] %v15073_v54  ;;  %v10403_v22 = vor.u32 %v12280_v10, %v10402_v36  ;;  %v10724_v54 = vld [vmem:[%s18718_s1 + $0x390] sm:$0xf0] }
 0x352   : > { %4812 = vmatpush.bf16.msra.mxu3 %v10675_v58 }
 0x353   : > { %v3196_v62 = vpop.f32.mrf.mxu2  ;;  %v3245_v25 = vpop.f32.mrf.mxu3  ;;  %4715 = vmatpush.bf16.msra.mxu1 %v10403_v22 }
 0x354   : > { %v3098_v17 = vpop.f32.mrf.mxu0  ;;  %v3147_v32 = vpop.f32.mrf.mxu1  ;;  %v15101_v1 = vadd.f32 %v3245_v25, %v3196_v62 }
 0x355   : > { %v3099_v30 = vadd.f32 %v3098_v17, %v14820_v47  ;;  %v10274_v47 = vld [vmem:[%s18718_s1] sm:$0xf] }
 0x357   : > { %v15104_v14 = vadd.f32 %v3147_v32, %v3099_v30 }
 0x358   : > { %3394 = vmatmul.bf16.gmra.mxu2 %v13978_v55  ;;  %3443 = vmatmul.bf16.gmra.mxu3 %v13980_v21  ;;  %v10530_v55 = vld [vmem:[%s18718_s1 + $0x200] sm:$0xf]  ;;  %v12312_v21 = vld [vmem:[%s18718_s1 + $0x20c] sm:$0xf0] }
 0x359   : > { %18949 = vst [vmem:[#allocation43_spill] sm:$0xff] %v15104_v14  ;;  %v10531_v26 = vor.u32 %v12312_v21, %v10530_v55 }
 0x35b   : > { %v3199_v37 = vpop.f32.mrf.mxu2  ;;  %v3248_v49 = vpop.f32.mrf.mxu3  ;;  %4764 = vmatpush.bf16.msra.mxu2 %v10531_v26 }
 0x35c   : > { %v3101_v43 = vpop.f32.mrf.mxu0  ;;  %v3150_v31 = vpop.f32.mrf.mxu1  ;;  %v15108_v11 = vadd.f32 %v3248_v49, %v3199_v37 }
 0x35d   : > { %v3102_v63 = vadd.f32 %v3101_v43, %v14842_v2  ;;  %v12248_v2 = vld [vmem:[%s18718_s1 + $0xc] sm:$0xf0] }
 0x35e   : > { %v10275_v35 = vor.u32 %v12248_v2, %v10274_v47  ;;  %v11026_v2 = vld [vmem:[%s18718_s1 + $0x5e0] sm:$0xf] }
 0x35f   : > { %v15111_v9 = vadd.f32 %v3150_v31, %v3102_v63  ;;  %3296 = vmatmul.bf16.gmra.mxu0 %v13628_v3  ;;  %3345 = vmatmul.bf16.gmra.mxu1 %v13630_v6  ;;  %v10658_v3 = vld [vmem:[%s18718_s1 + $0x300] sm:$0xf]  ;;  %v12344_v6 = vld [vmem:[%s18718_s1 + $0x30c] sm:$0xf0] }
 0x360   : > { %v10659_v48 = vor.u32 %v12344_v6, %v10658_v3  ;;  %4666 = vmatpush.bf16.msra.mxu0 %v10275_v35  ;;  %v12436_v3 = vld [vmem:[%s18718_s1 + $0x5ec] sm:$0xf0] }
 0x361   : > { %18950 = vst [vmem:[#allocation44_spill] sm:$0xff] %v15111_v9  ;;  %v11027_v36 = vor.u32 %v12436_v3, %v11026_v2 }
 0x362   : > { %4813 = vmatpush.bf16.msra.mxu3 %v10659_v48 }
 0x363   : > { %v3201_v29 = vpop.f32.mrf.mxu2  ;;  %v3250_v58 = vpop.f32.mrf.mxu3  ;;  %4904 = vmatpush.bf16.msrb.mxu1 %v11027_v36 }
 0x364   : > { %v3103_v59 = vpop.f32.mrf.mxu0  ;;  %v3152_v51 = vpop.f32.mrf.mxu1  ;;  %v15139_v0 = vadd.f32 %v3250_v58, %v3201_v29 }
 0x365   : > { %v3104_v62 = vadd.f32 %v3103_v59, %v14852_v34  ;;  %v10388_v34 = vld [vmem:[%s18718_s1 + $0xf0] sm:$0xf0] }
 0x367   : > { %v15142_v25 = vadd.f32 %v3152_v51, %v3104_v62 }
 0x368   : > { %3399 = vmatmul.bf16.gmra.mxu2 %v14014_v20  ;;  %3448 = vmatmul.bf16.gmra.mxu3 %v18937_v28  ;;  %v12274_v20 = vld [vmem:[%s18718_s1 + $0xe4] sm:$0xf]  ;;  %v10898_v28 = vld [vmem:[%s18718_s1 + $0x4e0] sm:$0xf] }
 0x369   : > { %18951 = vst [vmem:[#allocation45_spill] sm:$0xff] %v15142_v25  ;;  %v10391_v63 = vor.u32 %v12274_v20, %v10388_v34  ;;  %v12199_v20 = vld [vmem:[#allocation2 + $0xc] sm:$0xf]  ;;  %v10092_v34 = vld [vmem:[#allocation2 + $0x20] sm:$0xf0] }
 0x36a   : > { %v15219_v3 = vor.u32 %v12199_v20, %v10092_v34  ;;  %v12298_v34 = vld [vmem:[%s18718_s1 + $0x1a4] sm:$0xf] }
 0x36b   : > { %v3204_v17 = vpop.f32.mrf.mxu2  ;;  %v3253_v32 = vpop.f32.mrf.mxu3  ;;  %4953 = vmatpush.bf16.msrb.mxu2 %v10391_v63 }
 0x36c   : > { %v3106_v30 = vpop.f32.mrf.mxu0  ;;  %v3155_v37 = vpop.f32.mrf.mxu1  ;;  %v15146_v49 = vadd.f32 %v3253_v32, %v3204_v17  ;;  %18955 = vst [vmem:[#allocation49_spill] sm:$0xff] %v15219_v3 }
 0x36d   : > { %v3107_v43 = vadd.f32 %v3106_v30, %v14874_v42  ;;  %v12404_v42 = vld [vmem:[%s18718_s1 + $0x4ec] sm:$0xf0]  ;;  %v10882_v30 = vld [vmem:[%s18718_s1 + $0x4c0] sm:$0xf] }
 0x36e   : > { %v10899_v55 = vor.u32 %v12404_v42, %v10898_v28 }
 0x36f   : > { %v15149_v31 = vadd.f32 %v3155_v37, %v3107_v43  ;;  %3301 = vmatmul.bf16.gmra.mxu0 %v13675_v15  ;;  %3350 = vmatmul.bf16.gmra.mxu1 %v13677_v60  ;;  %v12306_v15 = vld [vmem:[%s18718_s1 + $0x1e4] sm:$0xf]  ;;  %v10516_v60 = vld [vmem:[%s18718_s1 + $0x1f0] sm:$0xf0]  ;;  %v12202_v43 = vld [vmem:[#allocation2 + $0x1c] sm:$0xf0] }
 0x370   : > { %v10519_v21 = vor.u32 %v12306_v15, %v10516_v60  ;;  %4855 = vmatpush.bf16.msrb.mxu0 %v10899_v55  ;;  %v10500_v37 = vld [vmem:[%s18718_s1 + $0x1d0] sm:$0xf0]  ;;  %v11010_v60 = vld [vmem:[%s18718_s1 + $0x5c0] sm:$0xf]  ;;  %v12432_v55 = vld [vmem:[%s18718_s1 + $0x5cc] sm:$0xf0] }
 0x371   : > { %18952 = vst [vmem:[#allocation46_spill] sm:$0xff] %v15149_v31 }
 0x372   : > { %5002 = vmatpush.bf16.msrb.mxu3 %v10519_v21 }
 0x373   : > { %v3206_v47 = vpop.f32.mrf.mxu2  ;;  %v3255_v26 = vpop.f32.mrf.mxu3 }
 0x374   : > { %v3108_v6 = vpop.f32.mrf.mxu0  ;;  %v3157_v35 = vpop.f32.mrf.mxu1  ;;  %v15177_v48 = vadd.f32 %v3255_v26, %v3206_v47 }
 0x375   : > { %v3109_v10 = vadd.f32 %v3108_v6, %v14884_v41  ;;  %v10090_v41 = vld [vmem:[#allocation2 + $0x8] sm:$0xf]  ;;  %v11011_v6 = vor.u32 %v12432_v55, %v11010_v60  ;;  %v10116_v60 = vld [vmem:[#allocation2 + $0x50] sm:$0xf0] }
 0x376   : > { %v15217_v2 = vor.u32 %v12202_v43, %v10090_v41  ;;  %v10866_v43 = vld [vmem:[%s18718_s1 + $0x4a0] sm:$0xf] }
 0x377   : > { %v15180_v22 = vadd.f32 %v3157_v35, %v3109_v10  ;;  %4905 = vmatpush.bf16.msrb.mxu1 %v11011_v6  ;;  %v10082_v10 = vld [vmem:[#allocation2] sm:$0xf] }
 0x378   : > { %3404 = vmatmul.bf16.gmra.mxu2 %v14050_v5  ;;  %3453 = vmatmul.bf16.gmra.mxu3 %v14052_v52  ;;  %v12270_v5 = vld [vmem:[%s18718_s1 + $0xc4] sm:$0xf]  ;;  %v10372_v52 = vld [vmem:[%s18718_s1 + $0xd0] sm:$0xf0] }
 0x379   : > { %18953 = vst [vmem:[#allocation47_spill] sm:$0xff] %v15180_v22 }
 0x37b   : > { %v3209_v29 = vpop.f32.mrf.mxu2  ;;  %v3258_v58 = vpop.f32.mrf.mxu3 }
 0x37c   : > { %v3111_v59 = vpop.f32.mrf.mxu0  ;;  %v3160_v51 = vpop.f32.mrf.mxu1  ;;  %v15184_v62 = vadd.f32 %v3258_v58, %v3209_v29  ;;  %v12201_v29 = vld [vmem:[#allocation2 + $0x14] sm:$0xf0]  ;;  %v12198_v58 = vld [vmem:[#allocation2 + $0x4] sm:$0xf] }
 0x37d   : > { %v3112_v17 = vadd.f32 %v3111_v59, %v14906_v45  ;;  %v10375_v45 = vor.u32 %v12270_v5, %v10372_v52  ;;  %v10084_v59 = vld [vmem:[#allocation2 + $0x18] sm:$0xf0] }
 0x37f   : > { %v15187_v32 = vadd.f32 %v3160_v51, %v3112_v17  ;;  %3306 = vmatmul.bf16.gmra.mxu0 %v13722_v8  ;;  %3355 = vmatmul.bf16.gmra.mxu1 %v13724_v53  ;;  %v12400_v8 = vld [vmem:[%s18718_s1 + $0x4cc] sm:$0xf0]  ;;  %v12302_v53 = vld [vmem:[%s18718_s1 + $0x1c4] sm:$0xf]  ;;  %v15226_v51 = vor.u32 %v12201_v29, %v10082_v10  ;;  %v15228_v17 = vor.u32 %v12198_v58, %v10084_v59  ;;  %v10994_v10 = vld [vmem:[%s18718_s1 + $0x5a0] sm:$0xf] }
 0x380   : > { %v10883_v28 = vor.u32 %v12400_v8, %v10882_v30  ;;  %v10503_v63 = vor.u32 %v12302_v53, %v10500_v37  ;;  %4954 = vmatpush.bf16.msrb.mxu2 %v10375_v45  ;;  %v10114_v8 = vld [vmem:[#allocation2 + $0x38] sm:$0xf]  ;;  %v12266_v53 = vld [vmem:[%s18718_s1 + $0xa4] sm:$0xf]  ;;  %v10356_v37 = vld [vmem:[%s18718_s1 + $0xb0] sm:$0xf0] }
 0x381   : > { %18954 = vst [vmem:[#allocation48_spill] sm:$0xff] %v15187_v32  ;;  %v10359_v20 = vor.u32 %v12266_v53, %v10356_v37  ;;  %v12428_v29 = vld [vmem:[%s18718_s1 + $0x5ac] sm:$0xf0]  ;;  %v12207_v53 = vld [vmem:[#allocation2 + $0x44] sm:$0xf0] }
 0x382   : > { %4856 = vmatpush.bf16.msrb.mxu0 %v10883_v28  ;;  %5003 = vmatpush.bf16.msrb.mxu3 %v10503_v63  ;;  %18957 = vst [vmem:[#allocation51_spill] sm:$0xff] %v15226_v51  ;;  %v10484_v28 = vld [vmem:[%s18718_s1 + $0x1b0] sm:$0xf0] }
 0x383   : > { %v3211_v42 = vpop.f32.mrf.mxu2  ;;  %v3260_v15 = vpop.f32.mrf.mxu3  ;;  %18958 = vst [vmem:[#allocation52_spill] sm:$0xff] %v15228_v17  ;;  %v12204_v37 = vld [vmem:[#allocation2 + $0x34] sm:$0xf] }
 0x384   : > { %v3113_v21 = vpop.f32.mrf.mxu0  ;;  %v3162_v47 = vpop.f32.mrf.mxu1  ;;  %v15215_v26 = vadd.f32 %v3260_v15, %v3211_v42  ;;  %v12208_v42 = vld [vmem:[#allocation2 + $0x4c] sm:$0xf0]  ;;  %v12205_v15 = vld [vmem:[#allocation2 + $0x3c] sm:$0xf]  ;;  %4955 = vmatpush.bf16.msrb.mxu2 %v10359_v20 }
 0x385   : > { %v3114_v35 = vadd.f32 %v3113_v21, %v14916_v7  ;;  %v10487_v21 = vor.u32 %v12298_v34, %v10484_v28 }
 0x387   : > { %v15222_v36 = vadd.f32 %v3162_v47, %v3114_v35  ;;  %5004 = vmatpush.bf16.msrb.mxu3 %v10487_v21  ;;  %v12262_v21 = vld [vmem:[%s18718_s1 + $0x84] sm:$0xf] }
 0x388   : > { %4765 = vmatmul.bf16.vlgmr.msra.gmra.mxu2 %v15217_v2  ;;  %4814 = vmatmul.bf16.vlgmr.msra.gmra.mxu3 %v15219_v3 }
 0x389   : > { %18956 = vst [vmem:[#allocation50_spill] sm:$0xff] %v15222_v36 }
 0x38b   : > { %v3370_v41 = vpop.f32.mrf.mxu2  ;;  %v3419_v5 = vpop.f32.mrf.mxu3 }
 0x38c   : > { %v3272_v52 = vpop.f32.mrf.mxu0  ;;  %v3321_v30 = vpop.f32.mrf.mxu1 }
 0x38d   : > { %v3273_v7 = vadd.f32 %v3272_v52, %v14918_v44  ;;  %v12396_v44 = vld [vmem:[%s18718_s1 + $0x4ac] sm:$0xf0]  ;;  %v15261_v52 = vor.u32 %v12205_v15, %v10116_v60 }
 0x38e   : > { %v10867_v55 = vor.u32 %v12396_v44, %v10866_v43  ;;  %v10108_v43 = vld [vmem:[#allocation2 + $0x48] sm:$0xf0] }
 0x38f   : > { %v3322_v45 = vadd.f32 %v3321_v30, %v3273_v7  ;;  %4667 = vmatmul.bf16.vlgmr.msra.gmra.mxu0 %v15226_v51  ;;  %4716 = vmatmul.bf16.vlgmr.msra.gmra.mxu1 %v15228_v17  ;;  %v15270_v34 = vor.u32 %v12204_v37, %v10108_v43 }
 0x390   : > { %4857 = vmatpush.bf16.msrb.mxu0 %v10867_v55  ;;  %v10138_v55 = vld [vmem:[#allocation2 + $0x68] sm:$0xf] }
 0x391   : > { %v3371_v63 = vadd.f32 %v3370_v41, %v3322_v45  ;;  %v15259_v41 = vor.u32 %v12208_v42, %v10114_v8  ;;  %v10106_v45 = vld [vmem:[#allocation2 + $0x30] sm:$0xf]  ;;  %18962 = vst [vmem:[#allocation56_spill] sm:$0xff] %v15270_v34 }
 0x392   : > { %v15268_v8 = vor.u32 %v12207_v53, %v10106_v45 }
 0x393   : > { %v15251_v47 = vadd.f32 %v3419_v5, %v3371_v63  ;;  %v3372_v6 = vpop.f32.mrf.mxu2  ;;  %v3421_v35 = vpop.f32.mrf.mxu3  ;;  %v10995_v5 = vor.u32 %v12428_v29, %v10994_v10  ;;  %v12294_v29 = vld [vmem:[%s18718_s1 + $0x184] sm:$0xf] }
 0x394   : > { %v3274_v58 = vpop.f32.mrf.mxu0  ;;  %v3323_v59 = vpop.f32.mrf.mxu1  ;;  %18961 = vst [vmem:[#allocation55_spill] sm:$0xff] %v15268_v8 }
 0x395   : > { %18959 = vst [vmem:[#allocation53_spill] sm:$0xff] %v15251_v47  ;;  %v3275_v30 = vadd.f32 %v3274_v58, %v14949_v24  ;;  %4906 = vmatpush.bf16.msrb.mxu1 %v10995_v5  ;;  %v10468_v58 = vld [vmem:[%s18718_s1 + $0x190] sm:$0xf0]  ;;  %v12214_v5 = vld [vmem:[#allocation2 + $0x7c] sm:$0xf0] }
 0x396   : > { %v10471_v53 = vor.u32 %v12294_v29, %v10468_v58  ;;  %v12210_v29 = vld [vmem:[#allocation2 + $0x64] sm:$0xf]  ;;  %v10132_v58 = vld [vmem:[#allocation2 + $0x78] sm:$0xf0] }
 0x397   : > { %v3324_v7 = vadd.f32 %v3323_v59, %v3275_v30  ;;  %v12211_v30 = vld [vmem:[#allocation2 + $0x6c] sm:$0xf] }
 0x398   : > { %4770 = vmatmul.bf16.gmra.mxu2 %v15259_v41  ;;  %4819 = vmatmul.bf16.gmra.mxu3 %v15261_v52 }
 0x399   : > { %v3373_v20 = vadd.f32 %v3372_v6, %v3324_v7  ;;  %v10340_v6 = vld [vmem:[%s18718_s1 + $0x90] sm:$0xf0]  ;;  %v10140_v7 = vld [vmem:[#allocation2 + $0x80] sm:$0xf0]  ;;  %5005 = vmatpush.bf16.msrb.mxu3 %v10471_v53 }
 0x39a   : > { %v10343_v10 = vor.u32 %v12262_v21, %v10340_v6  ;;  %v15303_v21 = vor.u32 %v12211_v30, %v10140_v7 }
 0x39b   : > { %v15266_v44 = vadd.f32 %v3421_v35, %v3373_v20  ;;  %v3375_v28 = vpop.f32.mrf.mxu2  ;;  %v3424_v63 = vpop.f32.mrf.mxu3  ;;  %v10850_v35 = vld [vmem:[%s18718_s1 + $0x480] sm:$0xf] }
 0x39c   : > { %v3277_v24 = vpop.f32.mrf.mxu0  ;;  %v3326_v42 = vpop.f32.mrf.mxu1  ;;  %4956 = vmatpush.bf16.msrb.mxu2 %v10343_v10  ;;  %v10130_v10 = vld [vmem:[#allocation2 + $0x60] sm:$0xf] }
 0x39d   : > { %18960 = vst [vmem:[#allocation54_spill] sm:$0xff] %v15266_v44  ;;  %v3278_v15 = vadd.f32 %v3277_v24, %v14956_v33  ;;  %v12392_v33 = vld [vmem:[%s18718_s1 + $0x48c] sm:$0xf0]  ;;  %v10978_v24 = vld [vmem:[%s18718_s1 + $0x580] sm:$0xf] }
 0x39e   : > { %v10851_v45 = vor.u32 %v12392_v33, %v10850_v35  ;;  %v12213_v33 = vld [vmem:[#allocation2 + $0x74] sm:$0xf0] }
 0x39f   : > { %v3327_v60 = vadd.f32 %v3326_v42, %v3278_v15  ;;  %4672 = vmatmul.bf16.gmra.mxu0 %v15268_v8  ;;  %4721 = vmatmul.bf16.gmra.mxu1 %v15270_v34 }
 0x3a0   : > { %4858 = vmatpush.bf16.msrb.mxu0 %v10851_v45 }
 0x3a1   : > { %v3376_v59 = vadd.f32 %v3375_v28, %v3327_v60  ;;  %v12424_v28 = vld [vmem:[%s18718_s1 + $0x58c] sm:$0xf0]  ;;  %v15301_v60 = vor.u32 %v12214_v5, %v10138_v55  ;;  %v15310_v55 = vor.u32 %v12213_v33, %v10130_v10  ;;  %v15312_v5 = vor.u32 %v12210_v29, %v10132_v58  ;;  %v12217_v29 = vld [vmem:[#allocation2 + $0x9c] sm:$0xf]  ;;  %v10164_v58 = vld [vmem:[#allocation2 + $0xb0] sm:$0xf0] }
 0x3a2   : > { %v12220_v33 = vld [vmem:[#allocation2 + $0xac] sm:$0xf0] }
 0x3a3   : > { %v15293_v37 = vadd.f32 %v3424_v63, %v3376_v59  ;;  %v3377_v43 = vpop.f32.mrf.mxu2  ;;  %v3426_v20 = vpop.f32.mrf.mxu3  ;;  %v10979_v63 = vor.u32 %v12424_v28, %v10978_v24  ;;  %18965 = vst [vmem:[#allocation59_spill] sm:$0xff] %v15310_v55 }
 0x3a4   : > { %v3279_v42 = vpop.f32.mrf.mxu0  ;;  %v3328_v15 = vpop.f32.mrf.mxu1  ;;  %18966 = vst [vmem:[#allocation60_spill] sm:$0xff] %v15312_v5 }
 0x3a5   : > { %18963 = vst [vmem:[#allocation57_spill] sm:$0xff] %v15293_v37  ;;  %v3280_v6 = vadd.f32 %v3279_v42, %v14987_v40  ;;  %4907 = vmatpush.bf16.msrb.mxu1 %v10979_v63  ;;  %v10162_v42 = vld [vmem:[#allocation2 + $0x98] sm:$0xf] }
 0x3a6   : > { %v15343_v37 = vor.u32 %v12220_v33, %v10162_v42 }
 0x3a7   : > { %v3329_v35 = vadd.f32 %v3328_v15, %v3280_v6  ;;  %v10834_v15 = vld [vmem:[%s18718_s1 + $0x460] sm:$0xf]  ;;  %v12290_v6 = vld [vmem:[%s18718_s1 + $0x164] sm:$0xf] }
 0x3a8   : > { %4775 = vmatmul.bf16.gmra.mxu2 %v15301_v60  ;;  %4824 = vmatmul.bf16.gmra.mxu3 %v15303_v21 }
 0x3a9   : > { %v3378_v59 = vadd.f32 %v3377_v43, %v3329_v35  ;;  %v12258_v43 = vld [vmem:[%s18718_s1 + $0x64] sm:$0xf]  ;;  %v10452_v35 = vld [vmem:[%s18718_s1 + $0x170] sm:$0xf0] }
 0x3ab   : > { %v15308_v45 = vadd.f32 %v3426_v20, %v3378_v59  ;;  %v3380_v30 = vpop.f32.mrf.mxu2  ;;  %v3429_v7 = vpop.f32.mrf.mxu3  ;;  %v10324_v20 = vld [vmem:[%s18718_s1 + $0x70] sm:$0xf0] }
 0x3ac   : > { %v3282_v40 = vpop.f32.mrf.mxu0  ;;  %v3331_v53 = vpop.f32.mrf.mxu1  ;;  %v10327_v63 = vor.u32 %v12258_v43, %v10324_v20  ;;  %v10962_v20 = vld [vmem:[%s18718_s1 + $0x560] sm:$0xf] }
 0x3ad   : > { %18964 = vst [vmem:[#allocation58_spill] sm:$0xff] %v15308_v45  ;;  %v3283_v24 = vadd.f32 %v3282_v40, %v14994_v18  ;;  %v12388_v18 = vld [vmem:[%s18718_s1 + $0x46c] sm:$0xf0]  ;;  %v10455_v40 = vor.u32 %v12290_v6, %v10452_v35  ;;  %v12219_v35 = vld [vmem:[#allocation2 + $0xa4] sm:$0xf0] }
 0x3ae   : > { %v10835_v59 = vor.u32 %v12388_v18, %v10834_v15  ;;  %4957 = vmatpush.bf16.msrb.mxu2 %v10327_v63  ;;  %v15345_v15 = vor.u32 %v12217_v29, %v10164_v58  ;;  %v10154_v6 = vld [vmem:[#allocation2 + $0x90] sm:$0xf] }
 0x3af   : > { %v3332_v28 = vadd.f32 %v3331_v53, %v3283_v24  ;;  %4677 = vmatmul.bf16.gmra.mxu0 %v15310_v55  ;;  %4726 = vmatmul.bf16.gmra.mxu1 %v15312_v5  ;;  %v15352_v42 = vor.u32 %v12219_v35, %v10154_v6  ;;  %v10436_v6 = vld [vmem:[%s18718_s1 + $0x150] sm:$0xf0] }
 0x3b0   : > { %4859 = vmatpush.bf16.msrb.mxu0 %v10835_v59  ;;  %5006 = vmatpush.bf16.msrb.mxu3 %v10455_v40  ;;  %v10156_v59 = vld [vmem:[#allocation2 + $0xa8] sm:$0xf0] }
 0x3b1   : > { %v3381_v10 = vadd.f32 %v3380_v30, %v3332_v28  ;;  %v12420_v30 = vld [vmem:[%s18718_s1 + $0x56c] sm:$0xf0]  ;;  %18969 = vst [vmem:[#allocation63_spill] sm:$0xff] %v15352_v42 }
 0x3b3   : > { %v15335_v53 = vadd.f32 %v3429_v7, %v3381_v10  ;;  %v3382_v24 = vpop.f32.mrf.mxu2  ;;  %v3431_v43 = vpop.f32.mrf.mxu3  ;;  %v10963_v7 = vor.u32 %v12420_v30, %v10962_v20  ;;  %v12216_v10 = vld [vmem:[#allocation2 + $0x94] sm:$0xf] }
 0x3b4   : > { %v3284_v28 = vpop.f32.mrf.mxu0  ;;  %v3333_v45 = vpop.f32.mrf.mxu1  ;;  %v15354_v33 = vor.u32 %v12216_v10, %v10156_v59  ;;  %v12226_v10 = vld [vmem:[#allocation2 + $0xdc] sm:$0xf0]  ;;  %v12223_v59 = vld [vmem:[#allocation2 + $0xcc] sm:$0xf] }
 0x3b5   : > { %18967 = vst [vmem:[#allocation61_spill] sm:$0xff] %v15335_v53  ;;  %v3285_v63 = vadd.f32 %v3284_v28, %v15025_v27  ;;  %4908 = vmatpush.bf16.msrb.mxu1 %v10963_v7  ;;  %v10186_v28 = vld [vmem:[#allocation2 + $0xc8] sm:$0xf]  ;;  %v10818_v7 = vld [vmem:[%s18718_s1 + $0x440] sm:$0xf] }
 0x3b6   : > { %18970 = vst [vmem:[#allocation64_spill] sm:$0xff] %v15354_v33  ;;  %v15385_v47 = vor.u32 %v12226_v10, %v10186_v28 }
 0x3b7   : > { %v3334_v18 = vadd.f32 %v3333_v45, %v3285_v63 }
 0x3b8   : > { %4780 = vmatmul.bf16.gmra.mxu2 %v15343_v37  ;;  %4829 = vmatmul.bf16.gmra.mxu3 %v15345_v15 }
 0x3b9   : > { %v3383_v40 = vadd.f32 %v3382_v24, %v3334_v18  ;;  %v12254_v24 = vld [vmem:[%s18718_s1 + $0x44] sm:$0xf] }
 0x3ba   : > { %v12286_v18 = vld [vmem:[%s18718_s1 + $0x144] sm:$0xf] }
 0x3bb   : > { %v15350_v53 = vadd.f32 %v3431_v43, %v3383_v40  ;;  %v3385_v29 = vpop.f32.mrf.mxu2  ;;  %v3434_v58 = vpop.f32.mrf.mxu3  ;;  %v10308_v43 = vld [vmem:[%s18718_s1 + $0x50] sm:$0xf0]  ;;  %v10188_v40 = vld [vmem:[#allocation2 + $0xe0] sm:$0xf0] }
 0x3bc   : > { %v3287_v27 = vpop.f32.mrf.mxu0  ;;  %v3336_v20 = vpop.f32.mrf.mxu1  ;;  %v10311_v63 = vor.u32 %v12254_v24, %v10308_v43 }
 0x3bd   : > { %18968 = vst [vmem:[#allocation62_spill] sm:$0xff] %v15350_v53  ;;  %v3288_v45 = vadd.f32 %v3287_v27, %v15032_v12  ;;  %v12384_v12 = vld [vmem:[%s18718_s1 + $0x44c] sm:$0xf0]  ;;  %v10946_v53 = vld [vmem:[%s18718_s1 + $0x540] sm:$0xf] }
 0x3be   : > { %v10819_v27 = vor.u32 %v12384_v12, %v10818_v7  ;;  %4958 = vmatpush.bf16.msrb.mxu2 %v10311_v63  ;;  %v15387_v7 = vor.u32 %v12223_v59, %v10188_v40 }
 0x3bf   : > { %v3337_v30 = vadd.f32 %v3336_v20, %v3288_v45  ;;  %4682 = vmatmul.bf16.gmra.mxu0 %v15352_v42  ;;  %4731 = vmatmul.bf16.gmra.mxu1 %v15354_v33  ;;  %v10439_v20 = vor.u32 %v12286_v18, %v10436_v6  ;;  %v10178_v18 = vld [vmem:[#allocation2 + $0xc0] sm:$0xf]  ;;  %v12225_v6 = vld [vmem:[#allocation2 + $0xd4] sm:$0xf0] }
 0x3c0   : > { %4860 = vmatpush.bf16.msrb.mxu0 %v10819_v27  ;;  %v10180_v27 = vld [vmem:[#allocation2 + $0xd8] sm:$0xf0]  ;;  %v15394_v28 = vor.u32 %v12225_v6, %v10178_v18  ;;  %v10420_v18 = vld [vmem:[%s18718_s1 + $0x130] sm:$0xf0] }
 0x3c1   : > { %v3386_v35 = vadd.f32 %v3385_v29, %v3337_v30  ;;  %5007 = vmatpush.bf16.msrb.mxu3 %v10439_v20  ;;  %v12416_v29 = vld [vmem:[%s18718_s1 + $0x54c] sm:$0xf0] }
 0x3c2   : > { %18973 = vst [vmem:[#allocation67_spill] sm:$0xff] %v15394_v28 }
 0x3c3   : > { %v15377_v45 = vadd.f32 %v3434_v58, %v3386_v35  ;;  %v3387_v24 = vpop.f32.mrf.mxu2  ;;  %v3436_v43 = vpop.f32.mrf.mxu3  ;;  %v10947_v58 = vor.u32 %v12416_v29, %v10946_v53  ;;  %v12222_v35 = vld [vmem:[#allocation2 + $0xc4] sm:$0xf] }
 0x3c4   : > { %v3289_v30 = vpop.f32.mrf.mxu0  ;;  %v3338_v44 = vpop.f32.mrf.mxu1  ;;  %v15396_v10 = vor.u32 %v12222_v35, %v10180_v27  ;;  %v12232_v35 = vld [vmem:[#allocation2 + $0x10c] sm:$0xf0]  ;;  %v12229_v27 = vld [vmem:[#allocation2 + $0xfc] sm:$0xf] }
 0x3c5   : > { %18971 = vst [vmem:[#allocation65_spill] sm:$0xff] %v15377_v45  ;;  %v3290_v63 = vadd.f32 %v3289_v30, %v15063_v61  ;;  %4909 = vmatpush.bf16.msrb.mxu1 %v10947_v58  ;;  %v10210_v30 = vld [vmem:[#allocation2 + $0xf8] sm:$0xf]  ;;  %v10802_v58 = vld [vmem:[%s18718_s1 + $0x420] sm:$0xf] }
 0x3c6   : > { %18974 = vst [vmem:[#allocation68_spill] sm:$0xff] %v15396_v10  ;;  %v15427_v32 = vor.u32 %v12232_v35, %v10210_v30 }
 0x3c7   : > { %v3339_v12 = vadd.f32 %v3338_v44, %v3290_v63 }
 0x3c8   : > { %4785 = vmatmul.bf16.gmra.mxu2 %v15385_v47  ;;  %4834 = vmatmul.bf16.gmra.mxu3 %v15387_v7 }
 0x3c9   : > { %v3388_v20 = vadd.f32 %v3387_v24, %v3339_v12  ;;  %v12250_v24 = vld [vmem:[%s18718_s1 + $0x24] sm:$0xf] }
 0x3ca   : > { %v12282_v12 = vld [vmem:[%s18718_s1 + $0x124] sm:$0xf] }
 0x3cb   : > { %v15392_v45 = vadd.f32 %v3436_v43, %v3388_v20  ;;  %v3390_v53 = vpop.f32.mrf.mxu2  ;;  %v3439_v59 = vpop.f32.mrf.mxu3  ;;  %v10292_v43 = vld [vmem:[%s18718_s1 + $0x30] sm:$0xf0] }
 0x3cc   : > { %v3292_v61 = vpop.f32.mrf.mxu0  ;;  %v3341_v40 = vpop.f32.mrf.mxu1  ;;  %v10295_v63 = vor.u32 %v12250_v24, %v10292_v43  ;;  %v10212_v20 = vld [vmem:[#allocation2 + $0x110] sm:$0xf0] }
 0x3cd   : > { %18972 = vst [vmem:[#allocation66_spill] sm:$0xff] %v15392_v45  ;;  %v3293_v44 = vadd.f32 %v3292_v61, %v15070_v46  ;;  %v12380_v46 = vld [vmem:[%s18718_s1 + $0x42c] sm:$0xf0]  ;;  %v10930_v45 = vld [vmem:[%s18718_s1 + $0x520] sm:$0xf] }
 0x3ce   : > { %v10803_v61 = vor.u32 %v12380_v46, %v10802_v58  ;;  %4959 = vmatpush.bf16.msrb.mxu2 %v10295_v63  ;;  %v15429_v58 = vor.u32 %v12229_v27, %v10212_v20 }
 0x3cf   : > { %v3342_v29 = vadd.f32 %v3341_v40, %v3293_v44  ;;  %4687 = vmatmul.bf16.gmra.mxu0 %v15394_v28  ;;  %4736 = vmatmul.bf16.gmra.mxu1 %v15396_v10  ;;  %v10423_v40 = vor.u32 %v12282_v12, %v10420_v18  ;;  %v10202_v12 = vld [vmem:[#allocation2 + $0xf0] sm:$0xf]  ;;  %v12231_v18 = vld [vmem:[#allocation2 + $0x104] sm:$0xf0] }
 0x3d0   : > { %4861 = vmatpush.bf16.msrb.mxu0 %v10803_v61  ;;  %v10204_v61 = vld [vmem:[#allocation2 + $0x108] sm:$0xf0]  ;;  %v15436_v30 = vor.u32 %v12231_v18, %v10202_v12  ;;  %v10404_v12 = vld [vmem:[%s18718_s1 + $0x110] sm:$0xf0] }
 0x3d1   : > { %v3391_v6 = vadd.f32 %v3390_v53, %v3342_v29  ;;  %5008 = vmatpush.bf16.msrb.mxu3 %v10423_v40  ;;  %v12412_v53 = vld [vmem:[%s18718_s1 + $0x52c] sm:$0xf0] }
 0x3d2   : > { %18977 = vst [vmem:[#allocation71_spill] sm:$0xff] %v15436_v30 }
 0x3d3   : > { %v15419_v44 = vadd.f32 %v3439_v59, %v3391_v6  ;;  %v3392_v24 = vpop.f32.mrf.mxu2  ;;  %v3441_v43 = vpop.f32.mrf.mxu3  ;;  %v10931_v59 = vor.u32 %v12412_v53, %v10930_v45  ;;  %v12228_v6 = vld [vmem:[#allocation2 + $0xf4] sm:$0xf] }
 0x3d4   : > { %v3294_v29 = vpop.f32.mrf.mxu0  ;;  %v3343_v36 = vpop.f32.mrf.mxu1  ;;  %v15438_v35 = vor.u32 %v12228_v6, %v10204_v61  ;;  %v12238_v6 = vld [vmem:[#allocation2 + $0x13c] sm:$0xf0]  ;;  %v12235_v61 = vld [vmem:[#allocation2 + $0x12c] sm:$0xf] }
 0x3d5   : > { %18975 = vst [vmem:[#allocation69_spill] sm:$0xff] %v15419_v44  ;;  %v3295_v63 = vadd.f32 %v3294_v29, %v15101_v1  ;;  %4910 = vmatpush.bf16.msrb.mxu1 %v10931_v59  ;;  %v10234_v29 = vld [vmem:[#allocation2 + $0x128] sm:$0xf]  ;;  %v10786_v59 = vld [vmem:[%s18718_s1 + $0x400] sm:$0xf] }
 0x3d6   : > { %18978 = vst [vmem:[#allocation72_spill] sm:$0xff] %v15438_v35  ;;  %v15469_v31 = vor.u32 %v12238_v6, %v10234_v29 }
 0x3d7   : > { %v3344_v46 = vadd.f32 %v3343_v36, %v3295_v63 }
 0x3d8   : > { %4790 = vmatmul.bf16.gmra.mxu2 %v15427_v32  ;;  %4839 = vmatmul.bf16.gmra.mxu3 %v15429_v58 }
 0x3d9   : > { %v3393_v40 = vadd.f32 %v3392_v24, %v3344_v46  ;;  %v12246_v24 = vld [vmem:[%s18718_s1 + $0x4] sm:$0xf] }
 0x3da   : > { %v12278_v46 = vld [vmem:[%s18718_s1 + $0x104] sm:$0xf] }
 0x3db   : > { %v15434_v44 = vadd.f32 %v3441_v43, %v3393_v40  ;;  %v3395_v45 = vpop.f32.mrf.mxu2  ;;  %v3444_v27 = vpop.f32.mrf.mxu3  ;;  %v10276_v43 = vld [vmem:[%s18718_s1 + $0x10] sm:$0xf0]  ;;  %v10236_v40 = vld [vmem:[#allocation2 + $0x140] sm:$0xf0] }
 0x3dc   : > { %v3297_v1 = vpop.f32.mrf.mxu0  ;;  %v3346_v20 = vpop.f32.mrf.mxu1  ;;  %v10279_v63 = vor.u32 %v12246_v24, %v10276_v43 }
 0x3dd   : > { %18976 = vst [vmem:[#allocation70_spill] sm:$0xff] %v15434_v44  ;;  %v3298_v36 = vadd.f32 %v3297_v1, %v15108_v11  ;;  %v12376_v11 = vld [vmem:[%s18718_s1 + $0x40c] sm:$0xf0]  ;;  %v10914_v44 = vld [vmem:[%s18718_s1 + $0x500] sm:$0xf] }
 0x3de   : > { %v10787_v1 = vor.u32 %v12376_v11, %v10786_v59  ;;  %4960 = vmatpush.bf16.msrb.mxu2 %v10279_v63  ;;  %v15471_v59 = vor.u32 %v12235_v61, %v10236_v40 }
 0x3df   : > { %v3347_v53 = vadd.f32 %v3346_v20, %v3298_v36  ;;  %4692 = vmatmul.bf16.gmra.mxu0 %v15436_v30  ;;  %4741 = vmatmul.bf16.gmra.mxu1 %v15438_v35  ;;  %v10407_v20 = vor.u32 %v12278_v46, %v10404_v12  ;;  %v10226_v46 = vld [vmem:[#allocation2 + $0x120] sm:$0xf]  ;;  %v12237_v12 = vld [vmem:[#allocation2 + $0x134] sm:$0xf0] }
 0x3e0   : > { %4862 = vmatpush.bf16.msrb.mxu0 %v10787_v1  ;;  %v10228_v1 = vld [vmem:[#allocation2 + $0x138] sm:$0xf0]  ;;  %v15478_v29 = vor.u32 %v12237_v12, %v10226_v46  ;;  %v11028_v46 = vld [vmem:[%s18718_s1 + $0x5f0] sm:$0xf0] }
 0x3e1   : > { %v3396_v18 = vadd.f32 %v3395_v45, %v3347_v53  ;;  %5009 = vmatpush.bf16.msrb.mxu3 %v10407_v20  ;;  %v12408_v45 = vld [vmem:[%s18718_s1 + $0x50c] sm:$0xf0] }
 0x3e2   : > { %18981 = vst [vmem:[#allocation75_spill] sm:$0xff] %v15478_v29 }
 0x3e3   : > { %v15461_v36 = vadd.f32 %v3444_v27, %v3396_v18  ;;  %v3397_v24 = vpop.f32.mrf.mxu2  ;;  %v3446_v43 = vpop.f32.mrf.mxu3  ;;  %v10915_v27 = vor.u32 %v12408_v45, %v10914_v44  ;;  %v12234_v18 = vld [vmem:[#allocation2 + $0x124] sm:$0xf] }
 0x3e4   : > { %v3299_v53 = vpop.f32.mrf.mxu0  ;;  %v3348_v22 = vpop.f32.mrf.mxu1  ;;  %v15480_v6 = vor.u32 %v12234_v18, %v10228_v1  ;;  %v12244_v18 = vld [vmem:[#allocation2 + $0x16c] sm:$0xf0]  ;;  %v12241_v1 = vld [vmem:[#allocation2 + $0x15c] sm:$0xf] }
 0x3e5   : > { %18979 = vst [vmem:[#allocation73_spill] sm:$0xff] %v15461_v36  ;;  %v3300_v63 = vadd.f32 %v3299_v53, %v15139_v0  ;;  %4911 = vmatpush.bf16.msrb.mxu1 %v10915_v27  ;;  %v10258_v53 = vld [vmem:[#allocation2 + $0x158] sm:$0xf]  ;;  %v12338_v27 = vld [vmem:[%s18718_s1 + $0x2e4] sm:$0xf] }
 0x3e6   : > { %18982 = vst [vmem:[#allocation76_spill] sm:$0xff] %v15480_v6  ;;  %v15511_v9 = vor.u32 %v12244_v18, %v10258_v53 }
 0x3e7   : > { %v3349_v11 = vadd.f32 %v3348_v22, %v3300_v63 }
 0x3e8   : > { %4795 = vmatmul.bf16.gmra.mxu2 %v15469_v31  ;;  %4844 = vmatmul.bf16.gmra.mxu3 %v15471_v59  ;;  %18984 = vst [vmem:[#allocation78_spill] sm:$0xff] %v15511_v9 }
 0x3e9   : > { %v3398_v20 = vadd.f32 %v3397_v24, %v3349_v11  ;;  %v12402_v24 = vld [vmem:[%s18718_s1 + $0x4e4] sm:$0xf] }
 0x3ea   : > { %v12434_v11 = vld [vmem:[%s18718_s1 + $0x5e4] sm:$0xf] }
 0x3eb   : > { %v15476_v36 = vadd.f32 %v3446_v43, %v3398_v20  ;;  %v3400_v44 = vpop.f32.mrf.mxu2  ;;  %v3449_v61 = vpop.f32.mrf.mxu3  ;;  %v10900_v43 = vld [vmem:[%s18718_s1 + $0x4f0] sm:$0xf0] }
 0x3ec   : > { %v3302_v0 = vpop.f32.mrf.mxu0  ;;  %v3351_v40 = vpop.f32.mrf.mxu1  ;;  %v10903_v63 = vor.u32 %v12402_v24, %v10900_v43  ;;  %v10260_v20 = vld [vmem:[#allocation2 + $0x170] sm:$0xf0] }
 0x3ed   : > { %18980 = vst [vmem:[#allocation74_spill] sm:$0xff] %v15476_v36  ;;  %v3303_v22 = vadd.f32 %v3302_v0, %v15146_v49  ;;  %v10644_v49 = vld [vmem:[%s18718_s1 + $0x2f0] sm:$0xf0]  ;;  %v12370_v36 = vld [vmem:[%s18718_s1 + $0x3e4] sm:$0xf] }
 0x3ee   : > { %v10647_v0 = vor.u32 %v12338_v27, %v10644_v49  ;;  %5149 = vmatpush.bf16.msra.mxu2 %v10903_v63  ;;  %v15513_v27 = vor.u32 %v12241_v1, %v10260_v20 }
 0x3ef   : > { %v3352_v45 = vadd.f32 %v3351_v40, %v3303_v22  ;;  %4697 = vmatmul.bf16.gmra.mxu0 %v15478_v29  ;;  %4746 = vmatmul.bf16.gmra.mxu1 %v15480_v6  ;;  %v11031_v40 = vor.u32 %v12434_v11, %v11028_v46  ;;  %v10250_v11 = vld [vmem:[#allocation2 + $0x150] sm:$0xf]  ;;  %v12243_v46 = vld [vmem:[#allocation2 + $0x164] sm:$0xf0] }
 0x3f0   : > { %5051 = vmatpush.bf16.msra.mxu0 %v10647_v0  ;;  %18985 = vst [vmem:[#allocation79_spill] sm:$0xff] %v15513_v27  ;;  %v10252_v0 = vld [vmem:[#allocation2 + $0x168] sm:$0xf0]  ;;  %v15520_v53 = vor.u32 %v12243_v46, %v10250_v11 }
 0x3f1   : > { %v3401_v12 = vadd.f32 %v3400_v44, %v3352_v45  ;;  %5198 = vmatpush.bf16.msra.mxu3 %v11031_v40  ;;  %v10772_v44 = vld [vmem:[%s18718_s1 + $0x3f0] sm:$0xf0] }
 0x3f2   : > { %18987 = vst [vmem:[#allocation81_spill] sm:$0xff] %v15520_v53 }
 0x3f3   : > { %v15503_v22 = vadd.f32 %v3449_v61, %v3401_v12  ;;  %v3402_v24 = vpop.f32.mrf.mxu2  ;;  %v3451_v43 = vpop.f32.mrf.mxu3  ;;  %v10775_v61 = vor.u32 %v12370_v36, %v10772_v44  ;;  %v12240_v12 = vld [vmem:[#allocation2 + $0x154] sm:$0xf] }
 0x3f4   : > { %v3304_v45 = vpop.f32.mrf.mxu0  ;;  %v3353_v25 = vpop.f32.mrf.mxu1  ;;  %v15522_v18 = vor.u32 %v12240_v12, %v10252_v0 }
 0x3f5   : > { %18983 = vst [vmem:[#allocation77_spill] sm:$0xff] %v15503_v22  ;;  %v3305_v63 = vadd.f32 %v3304_v45, %v15177_v48  ;;  %5100 = vmatpush.bf16.msra.mxu1 %v10775_v61  ;;  %v12334_v45 = vld [vmem:[%s18718_s1 + $0x2c4] sm:$0xf] }
 0x3f6   : > { %18988 = vst [vmem:[#allocation82_spill] sm:$0xff] %v15522_v18 }
 0x3f7   : > { %v3354_v49 = vadd.f32 %v3353_v25, %v3305_v63  ;;  %v12430_v63 = vld [vmem:[%s18718_s1 + $0x5c4] sm:$0xf] }
 0x3f8   : > { %4800 = vmatmul.bf16.gmra.mxu2 %v15511_v9  ;;  %4849 = vmatmul.bf16.gmra.mxu3 %v15513_v27  ;;  %v10268_v27 = vld [vmem:[#allocation2 + $0x178] sm:$0xf0] }
 0x3f9   : > { %v3403_v40 = vadd.f32 %v3402_v24, %v3354_v49  ;;  %v12398_v24 = vld [vmem:[%s18718_s1 + $0x4c4] sm:$0xf]  ;;  %v11012_v49 = vld [vmem:[%s18718_s1 + $0x5d0] sm:$0xf0] }
 0x3fa   : > { %v11015_v12 = vor.u32 %v12430_v63, %v11012_v49  ;;  %v10100_v63 = vld [vmem:[#allocation2 + $0x28] sm:$0xf0] }
 0x3fb   : > { %v15518_v22 = vadd.f32 %v3451_v43, %v3403_v40  ;;  %v3405_v36 = vpop.f32.mrf.mxu2  ;;  %v3454_v1 = vpop.f32.mrf.mxu3  ;;  %v10884_v43 = vld [vmem:[%s18718_s1 + $0x4d0] sm:$0xf0] }
 0x3fc   : > { %v3307_v48 = vpop.f32.mrf.mxu0  ;;  %v3356_v20 = vpop.f32.mrf.mxu1  ;;  %v10887_v61 = vor.u32 %v12398_v24, %v10884_v43  ;;  %5199 = vmatpush.bf16.msra.mxu3 %v11015_v12 }
 0x3fd   : > { %18986 = vst [vmem:[#allocation80_spill] sm:$0xff] %v15518_v22  ;;  %v3308_v25 = vadd.f32 %v3307_v48, %v15184_v62  ;;  %v10628_v62 = vld [vmem:[%s18718_s1 + $0x2d0] sm:$0xf0] }
 0x3fe   : > { %v10631_v46 = vor.u32 %v12334_v45, %v10628_v62  ;;  %5150 = vmatpush.bf16.msra.mxu2 %v10887_v61  ;;  %v10098_v45 = vld [vmem:[#allocation2 + $0x10] sm:$0xf]  ;;  %v12203_v61 = vld [vmem:[#allocation2 + $0x24] sm:$0xf0]  ;;  %v12200_v62 = vld [vmem:[#allocation2 + $0x14] sm:$0xf] }
 0x3ff   : > { %v3357_v44 = vadd.f32 %v3356_v20, %v3308_v25  ;;  %4702 = vmatmul.bf16.gmra.mxu0 %v15520_v53  ;;  %4751 = vmatmul.bf16.gmra.mxu1 %v15522_v18  ;;  %v12366_v20 = vld [vmem:[%s18718_s1 + $0x3c4] sm:$0xf]  ;;  %v10756_v25 = vld [vmem:[%s18718_s1 + $0x3d0] sm:$0xf0]  ;;  %v15560_v12 = vor.u32 %v12200_v62, %v10100_v63 }
 0x400   : > { %5052 = vmatpush.bf16.msra.mxu0 %v10631_v46  ;;  %v15558_v46 = vor.u32 %v12203_v61, %v10098_v45  ;;  %v10612_v61 = vld [vmem:[%s18718_s1 + $0x2b0] sm:$0xf0]  ;;  %v12426_v62 = vld [vmem:[%s18718_s1 + $0x5a4] sm:$0xf] }
 0x401   : > { %v3406_v11 = vadd.f32 %v3405_v36, %v3357_v44  ;;  %v10759_v36 = vor.u32 %v12366_v20, %v10756_v25  ;;  %v10996_v63 = vld [vmem:[%s18718_s1 + $0x5b0] sm:$0xf0] }
 0x403   : > { %v15545_v0 = vadd.f32 %v3454_v1, %v3406_v11  ;;  %v3407_v40 = vpop.f32.mrf.mxu2  ;;  %v3456_v48 = vpop.f32.mrf.mxu3  ;;  %5101 = vmatpush.bf16.msra.mxu1 %v10759_v36 }
 0x404   : > { %v3309_v24 = vpop.f32.mrf.mxu0  ;;  %v3358_v43 = vpop.f32.mrf.mxu1 }
 0x405   : > { %18989 = vst [vmem:[#allocation83_spill] sm:$0xff] %v15545_v0  ;;  %v3310_v44 = vadd.f32 %v3309_v24, %v15215_v26 }
 0x407   : > { %v3359_v1 = vadd.f32 %v3358_v43, %v3310_v44  ;;  %v18991_v43 = vld [vmem:[#allocation21_spill] sm:$0xff] }
 0x408   : > { %4961 = vmatmul.bf16.vlgmr.msrb.gmra.mxu2 %v15226_v51  ;;  %5010 = vmatmul.bf16.vlgmr.msrb.gmra.mxu3 %v15228_v17 }
 0x409   : > { %v3408_v49 = vadd.f32 %v3407_v40, %v3359_v1  ;;  %v12394_v40 = vld [vmem:[%s18718_s1 + $0x4a4] sm:$0xf] }
 0x40a   : > { %v12330_v1 = vld [vmem:[%s18718_s1 + $0x2a4] sm:$0xf] }
 0x40b   : > { %v15556_v11 = vadd.f32 %v3456_v48, %v3408_v49  ;;  %v4766_v20 = vpop.f32.mrf.mxu2  ;;  %v4815_v25 = vpop.f32.mrf.mxu3  ;;  %v10868_v48 = vld [vmem:[%s18718_s1 + $0x4b0] sm:$0xf0] }
 0x40c   : > { %v4668_v26 = vpop.f32.mrf.mxu0  ;;  %v4717_v24 = vpop.f32.mrf.mxu1  ;;  %v10871_v45 = vor.u32 %v12394_v40, %v10868_v48  ;;  %v12362_v48 = vld [vmem:[%s18718_s1 + $0x3a4] sm:$0xf] }
 0x40d   : > { %18990 = vst [vmem:[#allocation84_spill] sm:$0xff] %v15556_v11  ;;  %v4669_v36 = vadd.f32 %v4668_v26, %v18991_v43  ;;  %v10615_v26 = vor.u32 %v12330_v1, %v10612_v61  ;;  %v10740_v11 = vld [vmem:[%s18718_s1 + $0x3b0] sm:$0xf0]  ;;  %v12209_v61 = vld [vmem:[#allocation2 + $0x54] sm:$0xf0] }
 0x40e   : > { %5151 = vmatpush.bf16.msra.mxu2 %v10871_v45  ;;  %v10122_v45 = vld [vmem:[#allocation2 + $0x40] sm:$0xf] }
 0x40f   : > { %v4718_v44 = vadd.f32 %v4717_v24, %v4669_v36  ;;  %4863 = vmatmul.bf16.vlgmr.msrb.gmra.mxu0 %v15558_v46  ;;  %4912 = vmatmul.bf16.vlgmr.msrb.gmra.mxu1 %v15560_v12  ;;  %v10999_v24 = vor.u32 %v12426_v62, %v10996_v63  ;;  %v12206_v62 = vld [vmem:[#allocation2 + $0x44] sm:$0xf]  ;;  %v10124_v63 = vld [vmem:[#allocation2 + $0x58] sm:$0xf0] }
 0x410   : > { %5053 = vmatpush.bf16.msra.mxu0 %v10615_v26  ;;  %v15598_v14 = vor.u32 %v12206_v62, %v10124_v63  ;;  %v12422_v62 = vld [vmem:[%s18718_s1 + $0x584] sm:$0xf]  ;;  %v10980_v63 = vld [vmem:[%s18718_s1 + $0x590] sm:$0xf0] }
 0x411   : > { %v4767_v49 = vadd.f32 %v4766_v20, %v4718_v44  ;;  %5200 = vmatpush.bf16.msra.mxu3 %v10999_v24  ;;  %v10743_v20 = vor.u32 %v12362_v48, %v10740_v11  ;;  %v18992_v44 = vld [vmem:[#allocation22_spill] sm:$0xff]  ;;  %v15596_v24 = vor.u32 %v12209_v61, %v10122_v45  ;;  %v10596_v61 = vld [vmem:[%s18718_s1 + $0x290] sm:$0xf0] }
 0x413   : > { %v15583_v43 = vadd.f32 %v4815_v25, %v4767_v49  ;;  %v4768_v36 = vpop.f32.mrf.mxu2  ;;  %v4817_v40 = vpop.f32.mrf.mxu3  ;;  %5102 = vmatpush.bf16.msra.mxu1 %v10743_v20 }
 0x414   : > { %v4670_v0 = vpop.f32.mrf.mxu0  ;;  %v4719_v22 = vpop.f32.mrf.mxu1 }
 0x415   : > { %v4671_v1 = vadd.f32 %v4670_v0, %v18992_v44 }
 0x417   : > { %v4720_v25 = vadd.f32 %v4719_v22, %v4671_v1  ;;  %v18993_v22 = vld [vmem:[#allocation23_spill] sm:$0xff] }
 0x418   : > { %4966 = vmatmul.bf16.gmra.mxu2 %v15268_v8  ;;  %5015 = vmatmul.bf16.gmra.mxu3 %v15270_v34 }
 0x419   : > { %v4769_v49 = vadd.f32 %v4768_v36, %v4720_v25  ;;  %v12390_v36 = vld [vmem:[%s18718_s1 + $0x484] sm:$0xf] }
 0x41a   : > { %v12326_v25 = vld [vmem:[%s18718_s1 + $0x284] sm:$0xf] }
 0x41b   : > { %v15594_v26 = vadd.f32 %v4817_v40, %v4769_v49  ;;  %v4771_v11 = vpop.f32.mrf.mxu2  ;;  %v4820_v48 = vpop.f32.mrf.mxu3  ;;  %v10852_v40 = vld [vmem:[%s18718_s1 + $0x490] sm:$0xf0] }
 0x41c   : > { %v4673_v0 = vpop.f32.mrf.mxu0  ;;  %v4722_v20 = vpop.f32.mrf.mxu1  ;;  %v10855_v45 = vor.u32 %v12390_v36, %v10852_v40  ;;  %v12358_v40 = vld [vmem:[%s18718_s1 + $0x384] sm:$0xf] }
 0x41d   : > { %v4674_v44 = vadd.f32 %v4673_v0, %v18993_v22  ;;  %v10599_v0 = vor.u32 %v12326_v25, %v10596_v61  ;;  %v12215_v61 = vld [vmem:[#allocation2 + $0x84] sm:$0xf0] }
 0x41e   : > { %5152 = vmatpush.bf16.msra.mxu2 %v10855_v45  ;;  %v10146_v45 = vld [vmem:[#allocation2 + $0x70] sm:$0xf] }
 0x41f   : > { %v4723_v1 = vadd.f32 %v4722_v20, %v4674_v44  ;;  %4868 = vmatmul.bf16.gmra.mxu0 %v15596_v24  ;;  %4917 = vmatmul.bf16.gmra.mxu1 %v15598_v14  ;;  %v10983_v20 = vor.u32 %v12422_v62, %v10980_v63  ;;  %v12212_v62 = vld [vmem:[#allocation2 + $0x74] sm:$0xf]  ;;  %v10148_v63 = vld [vmem:[#allocation2 + $0x88] sm:$0xf0] }
 0x420   : > { %5054 = vmatpush.bf16.msra.mxu0 %v10599_v0  ;;  %v15636_v23 = vor.u32 %v12212_v62, %v10148_v63  ;;  %v12418_v62 = vld [vmem:[%s18718_s1 + $0x564] sm:$0xf]  ;;  %v10964_v63 = vld [vmem:[%s18718_s1 + $0x570] sm:$0xf0] }
 0x421   : > { %v4772_v49 = vadd.f32 %v4771_v11, %v4723_v1  ;;  %5201 = vmatpush.bf16.msra.mxu3 %v10983_v20  ;;  %v10727_v11 = vor.u32 %v12358_v40, %v10724_v54  ;;  %v18994_v1 = vld [vmem:[#allocation24_spill] sm:$0xff]  ;;  %v15634_v20 = vor.u32 %v12215_v61, %v10146_v45  ;;  %v10580_v61 = vld [vmem:[%s18718_s1 + $0x270] sm:$0xf0] }
 0x423   : > { %v15621_v22 = vadd.f32 %v4820_v48, %v4772_v49  ;;  %v4773_v44 = vpop.f32.mrf.mxu2  ;;  %v4822_v36 = vpop.f32.mrf.mxu3  ;;  %5103 = vmatpush.bf16.msra.mxu1 %v10727_v11 }
 0x424   : > { %v4675_v57 = vpop.f32.mrf.mxu0  ;;  %v4724_v16 = vpop.f32.mrf.mxu1 }
 0x425   : > { %v4676_v25 = vadd.f32 %v4675_v57, %v18994_v1 }
 0x427   : > { %v4725_v48 = vadd.f32 %v4724_v16, %v4676_v25  ;;  %v18995_v16 = vld [vmem:[#allocation25_spill] sm:$0xff] }
 0x428   : > { %4971 = vmatmul.bf16.gmra.mxu2 %v15310_v55  ;;  %5020 = vmatmul.bf16.gmra.mxu3 %v15312_v5 }
 0x429   : > { %v4774_v49 = vadd.f32 %v4773_v44, %v4725_v48  ;;  %v12386_v44 = vld [vmem:[%s18718_s1 + $0x464] sm:$0xf] }
 0x42a   : > { %v12322_v48 = vld [vmem:[%s18718_s1 + $0x264] sm:$0xf] }
 0x42b   : > { %v15632_v0 = vadd.f32 %v4822_v36, %v4774_v49  ;;  %v4776_v54 = vpop.f32.mrf.mxu2  ;;  %v4825_v40 = vpop.f32.mrf.mxu3  ;;  %v10836_v36 = vld [vmem:[%s18718_s1 + $0x470] sm:$0xf0] }
 0x42c   : > { %v4678_v57 = vpop.f32.mrf.mxu0  ;;  %v4727_v11 = vpop.f32.mrf.mxu1  ;;  %v10839_v45 = vor.u32 %v12386_v44, %v10836_v36  ;;  %v12354_v36 = vld [vmem:[%s18718_s1 + $0x364] sm:$0xf] }
 0x42d   : > { %v4679_v1 = vadd.f32 %v4678_v57, %v18995_v16  ;;  %v10583_v57 = vor.u32 %v12322_v48, %v10580_v61  ;;  %v12221_v61 = vld [vmem:[#allocation2 + $0xb4] sm:$0xf0] }
 0x42e   : > { %5153 = vmatpush.bf16.msra.mxu2 %v10839_v45  ;;  %v10170_v45 = vld [vmem:[#allocation2 + $0xa0] sm:$0xf] }
 0x42f   : > { %v4728_v25 = vadd.f32 %v4727_v11, %v4679_v1  ;;  %4873 = vmatmul.bf16.gmra.mxu0 %v15634_v20  ;;  %4922 = vmatmul.bf16.gmra.mxu1 %v15636_v23  ;;  %v10967_v11 = vor.u32 %v12418_v62, %v10964_v63  ;;  %v12218_v62 = vld [vmem:[#allocation2 + $0xa4] sm:$0xf]  ;;  %v10172_v63 = vld [vmem:[#allocation2 + $0xb8] sm:$0xf0] }
 0x430   : > { %5055 = vmatpush.bf16.msra.mxu0 %v10583_v57  ;;  %v15674_v38 = vor.u32 %v12218_v62, %v10172_v63  ;;  %v12414_v62 = vld [vmem:[%s18718_s1 + $0x544] sm:$0xf]  ;;  %v10948_v63 = vld [vmem:[%s18718_s1 + $0x550] sm:$0xf0] }
 0x431   : > { %v4777_v49 = vadd.f32 %v4776_v54, %v4728_v25  ;;  %5202 = vmatpush.bf16.msra.mxu3 %v10967_v11  ;;  %v10711_v54 = vor.u32 %v12354_v36, %v10708_v50  ;;  %v18996_v25 = vld [vmem:[#allocation26_spill] sm:$0xff]  ;;  %v15672_v11 = vor.u32 %v12221_v61, %v10170_v45  ;;  %v10564_v61 = vld [vmem:[%s18718_s1 + $0x250] sm:$0xf0] }
 0x433   : > { %v15659_v16 = vadd.f32 %v4825_v40, %v4777_v49  ;;  %v4778_v1 = vpop.f32.mrf.mxu2  ;;  %v4827_v44 = vpop.f32.mrf.mxu3  ;;  %5104 = vmatpush.bf16.msra.mxu1 %v10711_v54 }
 0x434   : > { %v4680_v13 = vpop.f32.mrf.mxu0  ;;  %v4729_v39 = vpop.f32.mrf.mxu1 }
 0x435   : > { %v4681_v48 = vadd.f32 %v4680_v13, %v18996_v25 }
 0x437   : > { %v4730_v40 = vadd.f32 %v4729_v39, %v4681_v48  ;;  %v18997_v39 = vld [vmem:[#allocation27_spill] sm:$0xff] }
 0x438   : > { %4976 = vmatmul.bf16.gmra.mxu2 %v15352_v42  ;;  %5025 = vmatmul.bf16.gmra.mxu3 %v15354_v33 }
 0x439   : > { %v4779_v49 = vadd.f32 %v4778_v1, %v4730_v40  ;;  %v12382_v1 = vld [vmem:[%s18718_s1 + $0x444] sm:$0xf] }
 0x43a   : > { %v12318_v40 = vld [vmem:[%s18718_s1 + $0x244] sm:$0xf] }
 0x43b   : > { %v15670_v57 = vadd.f32 %v4827_v44, %v4779_v49  ;;  %v4781_v50 = vpop.f32.mrf.mxu2  ;;  %v4830_v36 = vpop.f32.mrf.mxu3  ;;  %v10820_v44 = vld [vmem:[%s18718_s1 + $0x450] sm:$0xf0] }
 0x43c   : > { %v4683_v13 = vpop.f32.mrf.mxu0  ;;  %v4732_v54 = vpop.f32.mrf.mxu1  ;;  %v10823_v45 = vor.u32 %v12382_v1, %v10820_v44  ;;  %v12350_v44 = vld [vmem:[%s18718_s1 + $0x344] sm:$0xf] }
 0x43d   : > { %v4684_v25 = vadd.f32 %v4683_v13, %v18997_v39  ;;  %v10567_v13 = vor.u32 %v12318_v40, %v10564_v61  ;;  %v12227_v61 = vld [vmem:[#allocation2 + $0xe4] sm:$0xf0] }
 0x43e   : > { %5154 = vmatpush.bf16.msra.mxu2 %v10823_v45  ;;  %v10194_v45 = vld [vmem:[#allocation2 + $0xd0] sm:$0xf] }
 0x43f   : > { %v4733_v48 = vadd.f32 %v4732_v54, %v4684_v25  ;;  %4878 = vmatmul.bf16.gmra.mxu0 %v15672_v11  ;;  %4927 = vmatmul.bf16.gmra.mxu1 %v15674_v38  ;;  %v10951_v54 = vor.u32 %v12414_v62, %v10948_v63  ;;  %v12224_v62 = vld [vmem:[#allocation2 + $0xd4] sm:$0xf]  ;;  %v10196_v63 = vld [vmem:[#allocation2 + $0xe8] sm:$0xf0] }
 0x440   : > { %5056 = vmatpush.bf16.msra.mxu0 %v10567_v13  ;;  %v15712_v5 = vor.u32 %v12224_v62, %v10196_v63  ;;  %v12410_v62 = vld [vmem:[%s18718_s1 + $0x524] sm:$0xf]  ;;  %v10932_v63 = vld [vmem:[%s18718_s1 + $0x530] sm:$0xf0] }
 0x441   : > { %v4782_v49 = vadd.f32 %v4781_v50, %v4733_v48  ;;  %5203 = vmatpush.bf16.msra.mxu3 %v10951_v54  ;;  %v10695_v50 = vor.u32 %v12350_v44, %v10692_v56  ;;  %v18998_v48 = vld [vmem:[#allocation28_spill] sm:$0xff]  ;;  %v15710_v54 = vor.u32 %v12227_v61, %v10194_v45  ;;  %v10548_v61 = vld [vmem:[%s18718_s1 + $0x230] sm:$0xf0] }
 0x443   : > { %v15697_v39 = vadd.f32 %v4830_v36, %v4782_v49  ;;  %v4783_v25 = vpop.f32.mrf.mxu2  ;;  %v4832_v1 = vpop.f32.mrf.mxu3  ;;  %5105 = vmatpush.bf16.msra.mxu1 %v10695_v50 }
 0x444   : > { %v4685_v33 = vpop.f32.mrf.mxu0  ;;  %v4734_v42 = vpop.f32.mrf.mxu1 }
 0x445   : > { %v4686_v40 = vadd.f32 %v4685_v33, %v18998_v48 }
 0x447   : > { %v4735_v36 = vadd.f32 %v4734_v42, %v4686_v40  ;;  %v18999_v42 = vld [vmem:[#allocation29_spill] sm:$0xff] }
 0x448   : > { %4981 = vmatmul.bf16.gmra.mxu2 %v15394_v28  ;;  %5030 = vmatmul.bf16.gmra.mxu3 %v15396_v10  ;;  %v10676_v10 = vld [vmem:[%s18718_s1 + $0x330] sm:$0xf0] }
 0x449   : > { %v4784_v49 = vadd.f32 %v4783_v25, %v4735_v36  ;;  %v12378_v25 = vld [vmem:[%s18718_s1 + $0x424] sm:$0xf] }
 0x44a   : > { %v12314_v36 = vld [vmem:[%s18718_s1 + $0x224] sm:$0xf] }
 0x44b   : > { %v15708_v13 = vadd.f32 %v4832_v1, %v4784_v49  ;;  %v4786_v56 = vpop.f32.mrf.mxu2  ;;  %v4835_v44 = vpop.f32.mrf.mxu3  ;;  %v10804_v1 = vld [vmem:[%s18718_s1 + $0x430] sm:$0xf0] }
 0x44c   : > { %v4688_v33 = vpop.f32.mrf.mxu0  ;;  %v4737_v50 = vpop.f32.mrf.mxu1  ;;  %v10807_v45 = vor.u32 %v12378_v25, %v10804_v1  ;;  %v12346_v1 = vld [vmem:[%s18718_s1 + $0x324] sm:$0xf] }
 0x44d   : > { %v4689_v48 = vadd.f32 %v4688_v33, %v18999_v42  ;;  %v10551_v33 = vor.u32 %v12314_v36, %v10548_v61  ;;  %v12233_v61 = vld [vmem:[#allocation2 + $0x114] sm:$0xf0] }
 0x44e   : > { %5155 = vmatpush.bf16.msra.mxu2 %v10807_v45  ;;  %v10218_v45 = vld [vmem:[#allocation2 + $0x100] sm:$0xf] }
 0x44f   : > { %v4738_v40 = vadd.f32 %v4737_v50, %v4689_v48  ;;  %4883 = vmatmul.bf16.gmra.mxu0 %v15710_v54  ;;  %4932 = vmatmul.bf16.gmra.mxu1 %v15712_v5  ;;  %v10935_v50 = vor.u32 %v12410_v62, %v10932_v63  ;;  %v12230_v62 = vld [vmem:[#allocation2 + $0x104] sm:$0xf]  ;;  %v10220_v63 = vld [vmem:[#allocation2 + $0x118] sm:$0xf0] }
 0x450   : > { %5057 = vmatpush.bf16.msra.mxu0 %v10551_v33  ;;  %v15750_v34 = vor.u32 %v12230_v62, %v10220_v63  ;;  %v12406_v62 = vld [vmem:[%s18718_s1 + $0x504] sm:$0xf]  ;;  %v10916_v63 = vld [vmem:[%s18718_s1 + $0x510] sm:$0xf0] }
 0x451   : > { %v4787_v49 = vadd.f32 %v4786_v56, %v4738_v40  ;;  %5204 = vmatpush.bf16.msra.mxu3 %v10935_v50  ;;  %v10679_v56 = vor.u32 %v12346_v1, %v10676_v10  ;;  %v19000_v40 = vld [vmem:[#allocation30_spill] sm:$0xff]  ;;  %v15748_v50 = vor.u32 %v12233_v61, %v10218_v45  ;;  %v10532_v61 = vld [vmem:[%s18718_s1 + $0x210] sm:$0xf0] }
 0x453   : > { %v15735_v42 = vadd.f32 %v4835_v44, %v4787_v49  ;;  %v4788_v48 = vpop.f32.mrf.mxu2  ;;  %v4837_v25 = vpop.f32.mrf.mxu3  ;;  %5106 = vmatpush.bf16.msra.mxu1 %v10679_v56 }
 0x454   : > { %v4690_v28 = vpop.f32.mrf.mxu0  ;;  %v4739_v55 = vpop.f32.mrf.mxu1 }
 0x455   : > { %v4691_v36 = vadd.f32 %v4690_v28, %v19000_v40 }
 0x457   : > { %v4740_v44 = vadd.f32 %v4739_v55, %v4691_v36  ;;  %v19001_v55 = vld [vmem:[#allocation31_spill] sm:$0xff] }
 0x458   : > { %4986 = vmatmul.bf16.gmra.mxu2 %v15436_v30  ;;  %5035 = vmatmul.bf16.gmra.mxu3 %v15438_v35  ;;  %v10660_v35 = vld [vmem:[%s18718_s1 + $0x310] sm:$0xf0] }
 0x459   : > { %v4789_v49 = vadd.f32 %v4788_v48, %v4740_v44  ;;  %v12374_v48 = vld [vmem:[%s18718_s1 + $0x404] sm:$0xf] }
 0x45a   : > { %v12310_v44 = vld [vmem:[%s18718_s1 + $0x204] sm:$0xf] }
 0x45b   : > { %v15746_v33 = vadd.f32 %v4837_v25, %v4789_v49  ;;  %v4791_v10 = vpop.f32.mrf.mxu2  ;;  %v4840_v1 = vpop.f32.mrf.mxu3  ;;  %v10788_v25 = vld [vmem:[%s18718_s1 + $0x410] sm:$0xf0] }
 0x45c   : > { %v4693_v28 = vpop.f32.mrf.mxu0  ;;  %v4742_v56 = vpop.f32.mrf.mxu1  ;;  %v10791_v45 = vor.u32 %v12374_v48, %v10788_v25  ;;  %v12342_v25 = vld [vmem:[%s18718_s1 + $0x304] sm:$0xf] }
 0x45d   : > { %v4694_v40 = vadd.f32 %v4693_v28, %v19001_v55  ;;  %v10535_v28 = vor.u32 %v12310_v44, %v10532_v61  ;;  %v12239_v61 = vld [vmem:[#allocation2 + $0x144] sm:$0xf0] }
 0x45e   : > { %5156 = vmatpush.bf16.msra.mxu2 %v10791_v45  ;;  %v10242_v45 = vld [vmem:[#allocation2 + $0x130] sm:$0xf] }
 0x45f   : > { %v4743_v36 = vadd.f32 %v4742_v56, %v4694_v40  ;;  %4888 = vmatmul.bf16.gmra.mxu0 %v15748_v50  ;;  %4937 = vmatmul.bf16.gmra.mxu1 %v15750_v34  ;;  %v10919_v56 = vor.u32 %v12406_v62, %v10916_v63  ;;  %v12236_v62 = vld [vmem:[#allocation2 + $0x134] sm:$0xf]  ;;  %v10244_v63 = vld [vmem:[#allocation2 + $0x148] sm:$0xf0] }
 0x460   : > { %5058 = vmatpush.bf16.msra.mxu0 %v10535_v28  ;;  %v15788_v17 = vor.u32 %v12236_v62, %v10244_v63  ;;  %v10778_v62 = vld [vmem:[%s18718_s1 + $0x3e8] sm:$0xf]  ;;  %v12373_v63 = vld [vmem:[%s18718_s1 + $0x3f4] sm:$0xf0] }
 0x461   : > { %v4792_v49 = vadd.f32 %v4791_v10, %v4743_v36  ;;  %5205 = vmatpush.bf16.msra.mxu3 %v10919_v56  ;;  %v10663_v10 = vor.u32 %v12342_v25, %v10660_v35  ;;  %v19002_v36 = vld [vmem:[#allocation32_spill] sm:$0xff]  ;;  %v15786_v56 = vor.u32 %v12239_v61, %v10242_v45  ;;  %v12277_v61 = vld [vmem:[%s18718_s1 + $0xf4] sm:$0xf0] }
 0x463   : > { %v15773_v55 = vadd.f32 %v4840_v1, %v4792_v49  ;;  %v4793_v40 = vpop.f32.mrf.mxu2  ;;  %v4842_v48 = vpop.f32.mrf.mxu3  ;;  %5107 = vmatpush.bf16.msra.mxu1 %v10663_v10 }
 0x464   : > { %v4695_v30 = vpop.f32.mrf.mxu0  ;;  %v4744_v8 = vpop.f32.mrf.mxu1 }
 0x465   : > { %v4696_v44 = vadd.f32 %v4695_v30, %v19002_v36 }
 0x467   : > { %v4745_v1 = vadd.f32 %v4744_v8, %v4696_v44  ;;  %v19003_v8 = vld [vmem:[#allocation33_spill] sm:$0xff] }
 0x468   : > { %4991 = vmatmul.bf16.gmra.mxu2 %v15478_v29  ;;  %5040 = vmatmul.bf16.gmra.mxu3 %v15480_v6 }
 0x469   : > { %v4794_v49 = vadd.f32 %v4793_v40, %v4745_v1  ;;  %v10650_v40 = vld [vmem:[%s18718_s1 + $0x2e8] sm:$0xf] }
 0x46a   : > { %v10394_v1 = vld [vmem:[%s18718_s1 + $0xe8] sm:$0xf] }
 0x46b   : > { %v15784_v28 = vadd.f32 %v4842_v48, %v4794_v49  ;;  %v4796_v35 = vpop.f32.mrf.mxu2  ;;  %v4845_v25 = vpop.f32.mrf.mxu3  ;;  %v12341_v48 = vld [vmem:[%s18718_s1 + $0x2f4] sm:$0xf0] }
 0x46c   : > { %v4698_v30 = vpop.f32.mrf.mxu0  ;;  %v4747_v10 = vpop.f32.mrf.mxu1  ;;  %v10651_v45 = vor.u32 %v12341_v48, %v10650_v40 }
 0x46d   : > { %v4699_v36 = vadd.f32 %v4698_v30, %v19003_v8  ;;  %v10395_v30 = vor.u32 %v12277_v61, %v10394_v1  ;;  %v10522_v8 = vld [vmem:[%s18718_s1 + $0x1e8] sm:$0xf] }
 0x46e   : > { %5345 = vmatpush.bf16.msrb.mxu2 %v10651_v45 }
 0x46f   : > { %v4748_v44 = vadd.f32 %v4747_v10, %v4699_v36  ;;  %4893 = vmatmul.bf16.gmra.mxu0 %v15786_v56  ;;  %4942 = vmatmul.bf16.gmra.mxu1 %v15788_v17  ;;  %v10779_v10 = vor.u32 %v12373_v63, %v10778_v62  ;;  %v12309_v36 = vld [vmem:[%s18718_s1 + $0x1f4] sm:$0xf0]  ;;  %v10266_v62 = vld [vmem:[#allocation2 + $0x160] sm:$0xf] }
 0x470   : > { %v10523_v40 = vor.u32 %v12309_v36, %v10522_v8  ;;  %5247 = vmatpush.bf16.msrb.mxu0 %v10395_v30  ;;  %v12245_v63 = vld [vmem:[#allocation2 + $0x174] sm:$0xf0]  ;;  %v15826_v30 = vor.u32 %v12242_v4, %v10268_v27 }
 0x471   : > { %v4797_v49 = vadd.f32 %v4796_v35, %v4748_v44  ;;  %5394 = vmatpush.bf16.msrb.mxu3 %v10779_v10  ;;  %v19004_v44 = vld [vmem:[#allocation34_spill] sm:$0xff] }
 0x472   : > { %5296 = vmatpush.bf16.msrb.mxu1 %v10523_v40  ;;  %19006 = vst [vmem:[#allocation22_spill] sm:$0xff] %v15826_v30  ;;  %v19007_v40 = vld [vmem:[#allocation35_spill] sm:$0xff]  ;;  %v12337_v4 = vld [vmem:[%s18718_s1 + $0x2d4] sm:$0xf0] }
 0x473   : > { %v15817_v48 = vadd.f32 %v4845_v25, %v4797_v49  ;;  %v4798_v6 = vpop.f32.mrf.mxu2  ;;  %v4847_v29 = vpop.f32.mrf.mxu3  ;;  %v15824_v49 = vor.u32 %v12245_v63, %v10266_v62  ;;  %v12369_v62 = vld [vmem:[%s18718_s1 + $0x3d4] sm:$0xf0] }
 0x474   : > { %v4700_v51 = vpop.f32.mrf.mxu0  ;;  %v4749_v35 = vpop.f32.mrf.mxu1 }
 0x475   : > { %v4701_v1 = vadd.f32 %v4700_v51, %v19004_v44  ;;  %19005 = vst [vmem:[#allocation21_spill] sm:$0xff] %v15824_v49 }
 0x477   : > { %v4750_v61 = vadd.f32 %v4749_v35, %v4701_v1  ;;  %v12273_v1 = vld [vmem:[%s18718_s1 + $0xd4] sm:$0xf0] }
 0x478   : > { %4996 = vmatmul.bf16.gmra.mxu2 %v15520_v53  ;;  %5045 = vmatmul.bf16.gmra.mxu3 %v15522_v18 }
 0x479   : > { %v4799_v25 = vadd.f32 %v4798_v6, %v4750_v61  ;;  %v10378_v6 = vld [vmem:[%s18718_s1 + $0xc8] sm:$0xf] }
 0x47a   : > { %v10762_v61 = vld [vmem:[%s18718_s1 + $0x3c8] sm:$0xf] }
 0x47b   : > { %v15822_v45 = vadd.f32 %v4847_v29, %v4799_v25  ;;  %v4801_v10 = vpop.f32.mrf.mxu2  ;;  %v4850_v8 = vpop.f32.mrf.mxu3  ;;  %v10634_v29 = vld [vmem:[%s18718_s1 + $0x2c8] sm:$0xf]  ;;  %v10379_v25 = vor.u32 %v12273_v1, %v10378_v6 }
 0x47c   : > { %v4703_v36 = vpop.f32.mrf.mxu0  ;;  %v4752_v51 = vpop.f32.mrf.mxu1  ;;  %v10635_v27 = vor.u32 %v12337_v4, %v10634_v29 }
 0x47d   : > { %v4704_v35 = vadd.f32 %v4703_v36, %v19007_v40  ;;  %v10763_v36 = vor.u32 %v12369_v62, %v10762_v61  ;;  %v12305_v40 = vld [vmem:[%s18718_s1 + $0x1d4] sm:$0xf0]  ;;  %5248 = vmatpush.bf16.msrb.mxu0 %v10379_v25 }
 0x47e   : > { %5346 = vmatpush.bf16.msrb.mxu2 %v10635_v27 }
 0x47f   : > { %v4753_v44 = vadd.f32 %v4752_v51, %v4704_v35  ;;  %4898 = vmatmul.bf16.gmra.mxu0 %v15824_v49  ;;  %4947 = vmatmul.bf16.gmra.mxu1 %v15826_v30  ;;  %v10506_v51 = vld [vmem:[%s18718_s1 + $0x1c8] sm:$0xf] }
 0x480   : > { %v10507_v35 = vor.u32 %v12305_v40, %v10506_v51  ;;  %5395 = vmatpush.bf16.msrb.mxu3 %v10763_v36  ;;  %v19009_v40 = vld [vmem:[#allocation5_spill] sm:$0xff] }
 0x481   : > { %v4802_v63 = vadd.f32 %v4801_v10, %v4753_v44  ;;  %v19008_v44 = vld [vmem:[#allocation36_spill] sm:$0xff] }
 0x482   : > { %5297 = vmatpush.bf16.msrb.mxu1 %v10507_v35 }
 0x483   : > { %v15855_v29 = vadd.f32 %v4850_v8, %v4802_v63  ;;  %v4803_v4 = vpop.f32.mrf.mxu2  ;;  %v4852_v18 = vpop.f32.mrf.mxu3 }
 0x484   : > { %v4705_v53 = vpop.f32.mrf.mxu0  ;;  %v4754_v10 = vpop.f32.mrf.mxu1 }
 0x485   : > { %v4706_v6 = vadd.f32 %v4705_v53, %v19008_v44  ;;  %v10618_v53 = vld [vmem:[%s18718_s1 + $0x2a8] sm:$0xf] }
 0x486   : > { %v10746_v44 = vld [vmem:[%s18718_s1 + $0x3a8] sm:$0xf] }
 0x487   : > { %v4755_v1 = vadd.f32 %v4754_v10, %v4706_v6  ;;  %v12269_v10 = vld [vmem:[%s18718_s1 + $0xb4] sm:$0xf0] }
 0x488   : > { %5157 = vmatmul.bf16.vlgmr.msra.gmra.mxu2 %v15558_v46  ;;  %5206 = vmatmul.bf16.vlgmr.msra.gmra.mxu3 %v15560_v12  ;;  %v12365_v6 = vld [vmem:[%s18718_s1 + $0x3b4] sm:$0xf0] }
 0x489   : > { %v4804_v61 = vadd.f32 %v4803_v4, %v4755_v1 }
 0x48b   : > { %v15860_v62 = vadd.f32 %v4852_v18, %v4804_v61  ;;  %v4962_v27 = vpop.f32.mrf.mxu2  ;;  %v5011_v8 = vpop.f32.mrf.mxu3  ;;  %v12333_v18 = vld [vmem:[%s18718_s1 + $0x2b4] sm:$0xf0]  ;;  %v10747_v61 = vor.u32 %v12365_v6, %v10746_v44 }
 0x48c   : > { %v4864_v63 = vpop.f32.mrf.mxu0  ;;  %v4913_v51 = vpop.f32.mrf.mxu1  ;;  %v4963_v25 = vadd.f32 %v4962_v27, %v19009_v40  ;;  %v10619_v4 = vor.u32 %v12333_v18, %v10618_v53  ;;  %v10490_v27 = vld [vmem:[%s18718_s1 + $0x1a8] sm:$0xf]  ;;  %v19011_v53 = vld [vmem:[#allocation37_spill] sm:$0xff] }
 0x48d   : > { %v4865_v36 = vadd.f32 %v4864_v63, %v15583_v43  ;;  %v10362_v43 = vld [vmem:[%s18718_s1 + $0xa8] sm:$0xf]  ;;  %5396 = vmatpush.bf16.msrb.mxu3 %v10747_v61  ;;  %v19013_v61 = vld [vmem:[#allocation6_spill] sm:$0xff] }
 0x48e   : > { %v15864_v9 = vadd.f32 %v5011_v8, %v4963_v25  ;;  %v10363_v1 = vor.u32 %v12269_v10, %v10362_v43  ;;  %v12301_v8 = vld [vmem:[%s18718_s1 + $0x1b4] sm:$0xf0]  ;;  %5347 = vmatpush.bf16.msrb.mxu2 %v10619_v4 }
 0x48f   : > { %v15866_v35 = vadd.f32 %v4913_v51, %v4865_v36  ;;  %5059 = vmatmul.bf16.vlgmr.msra.gmra.mxu0 %v15217_v2  ;;  %5108 = vmatmul.bf16.vlgmr.msra.gmra.mxu1 %v15219_v3  ;;  %v10491_v63 = vor.u32 %v12301_v8, %v10490_v27 }
 0x490   : > { %5249 = vmatpush.bf16.msrb.mxu0 %v10363_v1 }
 0x491   : > { %19010 = vst [vmem:[#allocation23_spill] sm:$0xff] %v15866_v35  ;;  %5298 = vmatpush.bf16.msrb.mxu1 %v10491_v63 }
 0x493   : > { %v4964_v51 = vpop.f32.mrf.mxu2  ;;  %v5013_v40 = vpop.f32.mrf.mxu3 }
 0x494   : > { %v4866_v25 = vpop.f32.mrf.mxu0  ;;  %v4915_v36 = vpop.f32.mrf.mxu1  ;;  %v4965_v18 = vadd.f32 %v4964_v51, %v19011_v53  ;;  %v12361_v53 = vld [vmem:[%s18718_s1 + $0x394] sm:$0xf0] }
 0x495   : > { %v4867_v43 = vadd.f32 %v4866_v25, %v15594_v26  ;;  %v10602_v26 = vld [vmem:[%s18718_s1 + $0x288] sm:$0xf] }
 0x496   : > { %v15896_v10 = vadd.f32 %v5013_v40, %v4965_v18  ;;  %v12329_v40 = vld [vmem:[%s18718_s1 + $0x294] sm:$0xf0] }
 0x497   : > { %v15898_v44 = vadd.f32 %v4915_v36, %v4867_v43  ;;  %v10603_v25 = vor.u32 %v12329_v40, %v10602_v26  ;;  %v10730_v36 = vld [vmem:[%s18718_s1 + $0x388] sm:$0xf]  ;;  %v19015_v40 = vld [vmem:[#allocation7_spill] sm:$0xff] }
 0x498   : > { %5162 = vmatmul.bf16.gmra.mxu2 %v15596_v24  ;;  %5211 = vmatmul.bf16.gmra.mxu3 %v15598_v14  ;;  %v10731_v43 = vor.u32 %v12361_v53, %v10730_v36 }
 0x499   : > { %19012 = vst [vmem:[#allocation24_spill] sm:$0xff] %v15898_v44  ;;  %5348 = vmatpush.bf16.msrb.mxu2 %v10603_v25 }
 0x49a   : > { %5397 = vmatpush.bf16.msrb.mxu3 %v10731_v43  ;;  %v19017_v43 = vld [vmem:[#allocation8_spill] sm:$0xff] }
 0x49b   : > { %v4967_v4 = vpop.f32.mrf.mxu2  ;;  %v5016_v6 = vpop.f32.mrf.mxu3 }
 0x49c   : > { %v4869_v27 = vpop.f32.mrf.mxu0  ;;  %v4918_v1 = vpop.f32.mrf.mxu1  ;;  %v4968_v8 = vadd.f32 %v4967_v4, %v19013_v61  ;;  %v10474_v4 = vld [vmem:[%s18718_s1 + $0x188] sm:$0xf] }
 0x49d   : > { %v4870_v35 = vadd.f32 %v4869_v27, %v15621_v22  ;;  %v10346_v22 = vld [vmem:[%s18718_s1 + $0x88] sm:$0xf] }
 0x49e   : > { %v15904_v51 = vadd.f32 %v5016_v6, %v4968_v8  ;;  %v12297_v6 = vld [vmem:[%s18718_s1 + $0x194] sm:$0xf0] }
 0x49f   : > { %v15906_v63 = vadd.f32 %v4918_v1, %v4870_v35  ;;  %5064 = vmatmul.bf16.gmra.mxu0 %v15259_v41  ;;  %5113 = vmatmul.bf16.gmra.mxu1 %v15261_v52  ;;  %v12265_v35 = vld [vmem:[%s18718_s1 + $0x94] sm:$0xf0]  ;;  %v10475_v27 = vor.u32 %v12297_v6, %v10474_v4 }
 0x4a0   : > { %v10347_v18 = vor.u32 %v12265_v35, %v10346_v22 }
 0x4a1   : > { %19014 = vst [vmem:[#allocation25_spill] sm:$0xff] %v15906_v63  ;;  %5299 = vmatpush.bf16.msrb.mxu1 %v10475_v27 }
 0x4a2   : > { %5250 = vmatpush.bf16.msrb.mxu0 %v10347_v18 }
 0x4a3   : > { %v4969_v1 = vpop.f32.mrf.mxu2  ;;  %v5018_v61 = vpop.f32.mrf.mxu3 }
 0x4a4   : > { %v4871_v8 = vpop.f32.mrf.mxu0  ;;  %v4920_v26 = vpop.f32.mrf.mxu1  ;;  %v4970_v63 = vadd.f32 %v4969_v1, %v19015_v40 }
 0x4a5   : > { %v4872_v22 = vadd.f32 %v4871_v8, %v15632_v0  ;;  %v10586_v0 = vld [vmem:[%s18718_s1 + $0x268] sm:$0xf] }
 0x4a6   : > { %v15936_v35 = vadd.f32 %v5018_v61, %v4970_v63  ;;  %v12325_v63 = vld [vmem:[%s18718_s1 + $0x274] sm:$0xf0]  ;;  %v10714_v8 = vld [vmem:[%s18718_s1 + $0x368] sm:$0xf] }
 0x4a7   : > { %v15938_v36 = vadd.f32 %v4920_v26, %v4872_v22  ;;  %v10587_v61 = vor.u32 %v12325_v63, %v10586_v0  ;;  %v12357_v26 = vld [vmem:[%s18718_s1 + $0x374] sm:$0xf0]  ;;  %v19019_v63 = vld [vmem:[#allocation9_spill] sm:$0xff] }
 0x4a8   : > { %5167 = vmatmul.bf16.gmra.mxu2 %v15634_v20  ;;  %5216 = vmatmul.bf16.gmra.mxu3 %v15636_v23  ;;  %v10715_v22 = vor.u32 %v12357_v26, %v10714_v8 }
 0x4a9   : > { %19016 = vst [vmem:[#allocation26_spill] sm:$0xff] %v15938_v36  ;;  %5349 = vmatpush.bf16.msrb.mxu2 %v10587_v61 }
 0x4aa   : > { %5398 = vmatpush.bf16.msrb.mxu3 %v10715_v22  ;;  %v19021_v22 = vld [vmem:[#allocation10_spill] sm:$0xff] }
 0x4ab   : > { %v4972_v25 = vpop.f32.mrf.mxu2  ;;  %v5021_v53 = vpop.f32.mrf.mxu3 }
 0x4ac   : > { %v4874_v4 = vpop.f32.mrf.mxu0  ;;  %v4923_v18 = vpop.f32.mrf.mxu1  ;;  %v4973_v6 = vadd.f32 %v4972_v25, %v19017_v43  ;;  %v10458_v25 = vld [vmem:[%s18718_s1 + $0x168] sm:$0xf] }
 0x4ad   : > { %v4875_v44 = vadd.f32 %v4874_v4, %v15659_v16  ;;  %v10330_v16 = vld [vmem:[%s18718_s1 + $0x68] sm:$0xf] }
 0x4ae   : > { %v15944_v1 = vadd.f32 %v5021_v53, %v4973_v6  ;;  %v12293_v53 = vld [vmem:[%s18718_s1 + $0x174] sm:$0xf0] }
 0x4af   : > { %v15946_v27 = vadd.f32 %v4923_v18, %v4875_v44  ;;  %5069 = vmatmul.bf16.gmra.mxu0 %v15301_v60  ;;  %5118 = vmatmul.bf16.gmra.mxu1 %v15303_v21  ;;  %v12261_v44 = vld [vmem:[%s18718_s1 + $0x74] sm:$0xf0]  ;;  %v10459_v4 = vor.u32 %v12293_v53, %v10458_v25 }
 0x4b0   : > { %v10331_v40 = vor.u32 %v12261_v44, %v10330_v16 }
 0x4b1   : > { %19018 = vst [vmem:[#allocation27_spill] sm:$0xff] %v15946_v27  ;;  %5300 = vmatpush.bf16.msrb.mxu1 %v10459_v4 }
 0x4b2   : > { %5251 = vmatpush.bf16.msrb.mxu0 %v10331_v40 }
 0x4b3   : > { %v4974_v18 = vpop.f32.mrf.mxu2  ;;  %v5023_v43 = vpop.f32.mrf.mxu3 }
 0x4b4   : > { %v4876_v6 = vpop.f32.mrf.mxu0  ;;  %v4925_v0 = vpop.f32.mrf.mxu1  ;;  %v4975_v27 = vadd.f32 %v4974_v18, %v19019_v63 }
 0x4b5   : > { %v4877_v16 = vadd.f32 %v4876_v6, %v15670_v57  ;;  %v10570_v57 = vld [vmem:[%s18718_s1 + $0x248] sm:$0xf] }
 0x4b6   : > { %v15976_v44 = vadd.f32 %v5023_v43, %v4975_v27  ;;  %v12321_v27 = vld [vmem:[%s18718_s1 + $0x254] sm:$0xf0]  ;;  %v10698_v6 = vld [vmem:[%s18718_s1 + $0x348] sm:$0xf] }
 0x4b7   : > { %v15978_v8 = vadd.f32 %v4925_v0, %v4877_v16  ;;  %v10571_v43 = vor.u32 %v12321_v27, %v10570_v57  ;;  %v12353_v0 = vld [vmem:[%s18718_s1 + $0x354] sm:$0xf0]  ;;  %v19023_v27 = vld [vmem:[#allocation11_spill] sm:$0xff] }
 0x4b8   : > { %5172 = vmatmul.bf16.gmra.mxu2 %v15672_v11  ;;  %5221 = vmatmul.bf16.gmra.mxu3 %v15674_v38  ;;  %v10699_v16 = vor.u32 %v12353_v0, %v10698_v6 }
 0x4b9   : > { %19020 = vst [vmem:[#allocation28_spill] sm:$0xff] %v15978_v8  ;;  %5350 = vmatpush.bf16.msrb.mxu2 %v10571_v43 }
 0x4ba   : > { %5399 = vmatpush.bf16.msrb.mxu3 %v10699_v16  ;;  %v19025_v16 = vld [vmem:[#allocation12_spill] sm:$0xff] }
 0x4bb   : > { %v4977_v61 = vpop.f32.mrf.mxu2  ;;  %v5026_v26 = vpop.f32.mrf.mxu3 }
 0x4bc   : > { %v4879_v25 = vpop.f32.mrf.mxu0  ;;  %v4928_v40 = vpop.f32.mrf.mxu1  ;;  %v4978_v53 = vadd.f32 %v4977_v61, %v19021_v22  ;;  %v10442_v61 = vld [vmem:[%s18718_s1 + $0x148] sm:$0xf] }
 0x4bd   : > { %v4880_v36 = vadd.f32 %v4879_v25, %v15697_v39  ;;  %v10314_v39 = vld [vmem:[%s18718_s1 + $0x48] sm:$0xf] }
 0x4be   : > { %v15984_v18 = vadd.f32 %v5026_v26, %v4978_v53  ;;  %v12289_v26 = vld [vmem:[%s18718_s1 + $0x154] sm:$0xf0] }
 0x4bf   : > { %v15986_v4 = vadd.f32 %v4928_v40, %v4880_v36  ;;  %5074 = vmatmul.bf16.gmra.mxu0 %v15343_v37  ;;  %5123 = vmatmul.bf16.gmra.mxu1 %v15345_v15  ;;  %v12257_v36 = vld [vmem:[%s18718_s1 + $0x54] sm:$0xf0]  ;;  %v10443_v25 = vor.u32 %v12289_v26, %v10442_v61 }
 0x4c0   : > { %v10315_v63 = vor.u32 %v12257_v36, %v10314_v39 }
 0x4c1   : > { %19022 = vst [vmem:[#allocation29_spill] sm:$0xff] %v15986_v4  ;;  %5301 = vmatpush.bf16.msrb.mxu1 %v10443_v25 }
 0x4c2   : > { %5252 = vmatpush.bf16.msrb.mxu0 %v10315_v63 }
 0x4c3   : > { %v4979_v40 = vpop.f32.mrf.mxu2  ;;  %v5028_v22 = vpop.f32.mrf.mxu3 }
 0x4c4   : > { %v4881_v53 = vpop.f32.mrf.mxu0  ;;  %v4930_v57 = vpop.f32.mrf.mxu1  ;;  %v4980_v4 = vadd.f32 %v4979_v40, %v19023_v27 }
 0x4c5   : > { %v4882_v39 = vadd.f32 %v4881_v53, %v15708_v13  ;;  %v10554_v13 = vld [vmem:[%s18718_s1 + $0x228] sm:$0xf] }
 0x4c6   : > { %v16016_v36 = vadd.f32 %v5028_v22, %v4980_v4  ;;  %v12317_v4 = vld [vmem:[%s18718_s1 + $0x234] sm:$0xf0]  ;;  %v10682_v53 = vld [vmem:[%s18718_s1 + $0x328] sm:$0xf] }
 0x4c7   : > { %v16018_v6 = vadd.f32 %v4930_v57, %v4882_v39  ;;  %v10555_v22 = vor.u32 %v12317_v4, %v10554_v13  ;;  %v12349_v57 = vld [vmem:[%s18718_s1 + $0x334] sm:$0xf0]  ;;  %v19027_v4 = vld [vmem:[#allocation13_spill] sm:$0xff] }
 0x4c8   : > { %5177 = vmatmul.bf16.gmra.mxu2 %v15710_v54  ;;  %5226 = vmatmul.bf16.gmra.mxu3 %v15712_v5  ;;  %v10683_v39 = vor.u32 %v12349_v57, %v10682_v53 }
 0x4c9   : > { %19024 = vst [vmem:[#allocation30_spill] sm:$0xff] %v16018_v6  ;;  %5351 = vmatpush.bf16.msrb.mxu2 %v10555_v22 }
 0x4ca   : > { %5400 = vmatpush.bf16.msrb.mxu3 %v10683_v39  ;;  %v19029_v39 = vld [vmem:[#allocation14_spill] sm:$0xff] }
 0x4cb   : > { %v4982_v43 = vpop.f32.mrf.mxu2  ;;  %v5031_v0 = vpop.f32.mrf.mxu3 }
 0x4cc   : > { %v4884_v61 = vpop.f32.mrf.mxu0  ;;  %v4933_v63 = vpop.f32.mrf.mxu1  ;;  %v4983_v26 = vadd.f32 %v4982_v43, %v19025_v16  ;;  %v10426_v43 = vld [vmem:[%s18718_s1 + $0x128] sm:$0xf] }
 0x4cd   : > { %v4885_v8 = vadd.f32 %v4884_v61, %v15735_v42  ;;  %v10298_v42 = vld [vmem:[%s18718_s1 + $0x28] sm:$0xf] }
 0x4ce   : > { %v16024_v40 = vadd.f32 %v5031_v0, %v4983_v26  ;;  %v12285_v0 = vld [vmem:[%s18718_s1 + $0x134] sm:$0xf0] }
 0x4cf   : > { %v16026_v25 = vadd.f32 %v4933_v63, %v4885_v8  ;;  %5079 = vmatmul.bf16.gmra.mxu0 %v15385_v47  ;;  %5128 = vmatmul.bf16.gmra.mxu1 %v15387_v7  ;;  %v12253_v8 = vld [vmem:[%s18718_s1 + $0x34] sm:$0xf0]  ;;  %v10427_v61 = vor.u32 %v12285_v0, %v10426_v43 }
 0x4d0   : > { %v10299_v27 = vor.u32 %v12253_v8, %v10298_v42 }
 0x4d1   : > { %19026 = vst [vmem:[#allocation31_spill] sm:$0xff] %v16026_v25  ;;  %5302 = vmatpush.bf16.msrb.mxu1 %v10427_v61 }
 0x4d2   : > { %5253 = vmatpush.bf16.msrb.mxu0 %v10299_v27 }
 0x4d3   : > { %v4984_v63 = vpop.f32.mrf.mxu2  ;;  %v5033_v16 = vpop.f32.mrf.mxu3 }
 0x4d4   : > { %v4886_v26 = vpop.f32.mrf.mxu0  ;;  %v4935_v13 = vpop.f32.mrf.mxu1  ;;  %v4985_v25 = vadd.f32 %v4984_v63, %v19027_v4 }
 0x4d5   : > { %v4887_v42 = vadd.f32 %v4886_v26, %v15746_v33  ;;  %v10538_v33 = vld [vmem:[%s18718_s1 + $0x208] sm:$0xf] }
 0x4d6   : > { %v16056_v8 = vadd.f32 %v5033_v16, %v4985_v25  ;;  %v12313_v25 = vld [vmem:[%s18718_s1 + $0x214] sm:$0xf0]  ;;  %v10666_v26 = vld [vmem:[%s18718_s1 + $0x308] sm:$0xf] }
 0x4d7   : > { %v16058_v53 = vadd.f32 %v4935_v13, %v4887_v42  ;;  %v10539_v16 = vor.u32 %v12313_v25, %v10538_v33  ;;  %v12345_v13 = vld [vmem:[%s18718_s1 + $0x314] sm:$0xf0]  ;;  %v19031_v25 = vld [vmem:[#allocation15_spill] sm:$0xff] }
 0x4d8   : > { %5182 = vmatmul.bf16.gmra.mxu2 %v15748_v50  ;;  %5231 = vmatmul.bf16.gmra.mxu3 %v15750_v34  ;;  %v10667_v42 = vor.u32 %v12345_v13, %v10666_v26 }
 0x4d9   : > { %19028 = vst [vmem:[#allocation32_spill] sm:$0xff] %v16058_v53  ;;  %5352 = vmatpush.bf16.msrb.mxu2 %v10539_v16 }
 0x4da   : > { %5401 = vmatpush.bf16.msrb.mxu3 %v10667_v42  ;;  %v19033_v42 = vld [vmem:[#allocation16_spill] sm:$0xff] }
 0x4db   : > { %v4987_v22 = vpop.f32.mrf.mxu2  ;;  %v5036_v57 = vpop.f32.mrf.mxu3 }
 0x4dc   : > { %v4889_v43 = vpop.f32.mrf.mxu0  ;;  %v4938_v27 = vpop.f32.mrf.mxu1  ;;  %v4988_v0 = vadd.f32 %v4987_v22, %v19029_v39  ;;  %v10410_v22 = vld [vmem:[%s18718_s1 + $0x108] sm:$0xf] }
 0x4dd   : > { %v4890_v6 = vadd.f32 %v4889_v43, %v15773_v55  ;;  %v10282_v55 = vld [vmem:[%s18718_s1 + $0x8] sm:$0xf] }
 0x4de   : > { %v16064_v63 = vadd.f32 %v5036_v57, %v4988_v0  ;;  %v12281_v57 = vld [vmem:[%s18718_s1 + $0x114] sm:$0xf0] }
 0x4df   : > { %v16066_v61 = vadd.f32 %v4938_v27, %v4890_v6  ;;  %5084 = vmatmul.bf16.gmra.mxu0 %v15427_v32  ;;  %5133 = vmatmul.bf16.gmra.mxu1 %v15429_v58  ;;  %v12249_v6 = vld [vmem:[%s18718_s1 + $0x14] sm:$0xf0]  ;;  %v10411_v43 = vor.u32 %v12281_v57, %v10410_v22 }
 0x4e0   : > { %v10283_v4 = vor.u32 %v12249_v6, %v10282_v55 }
 0x4e1   : > { %19030 = vst [vmem:[#allocation33_spill] sm:$0xff] %v16066_v61  ;;  %5303 = vmatpush.bf16.msrb.mxu1 %v10411_v43 }
 0x4e2   : > { %5254 = vmatpush.bf16.msrb.mxu0 %v10283_v4 }
 0x4e3   : > { %v4989_v27 = vpop.f32.mrf.mxu2  ;;  %v5038_v39 = vpop.f32.mrf.mxu3 }
 0x4e4   : > { %v4891_v0 = vpop.f32.mrf.mxu0  ;;  %v4940_v33 = vpop.f32.mrf.mxu1  ;;  %v4990_v61 = vadd.f32 %v4989_v27, %v19031_v25 }
 0x4e5   : > { %v4892_v55 = vadd.f32 %v4891_v0, %v15784_v28  ;;  %v12275_v28 = vld [vmem:[%s18718_s1 + $0xec] sm:$0xf] }
 0x4e6   : > { %v16096_v6 = vadd.f32 %v5038_v39, %v4990_v61  ;;  %v10396_v61 = vld [vmem:[%s18718_s1 + $0xf8] sm:$0xf0]  ;;  %v12307_v0 = vld [vmem:[%s18718_s1 + $0x1ec] sm:$0xf] }
 0x4e7   : > { %v16098_v26 = vadd.f32 %v4940_v33, %v4892_v55  ;;  %v10399_v39 = vor.u32 %v12275_v28, %v10396_v61  ;;  %v10524_v33 = vld [vmem:[%s18718_s1 + $0x1f8] sm:$0xf0]  ;;  %v19035_v28 = vld [vmem:[#allocation17_spill] sm:$0xff] }
 0x4e8   : > { %5187 = vmatmul.bf16.gmra.mxu2 %v15786_v56  ;;  %5236 = vmatmul.bf16.gmra.mxu3 %v15788_v17  ;;  %v10527_v55 = vor.u32 %v12307_v0, %v10524_v33 }
 0x4e9   : > { %19032 = vst [vmem:[#allocation34_spill] sm:$0xff] %v16098_v26  ;;  %5541 = vmatpush.bf16.msra.mxu2 %v10399_v39 }
 0x4ea   : > { %5590 = vmatpush.bf16.msra.mxu3 %v10527_v55 }
 0x4eb   : > { %v4992_v16 = vpop.f32.mrf.mxu2  ;;  %v5041_v13 = vpop.f32.mrf.mxu3 }
 0x4ec   : > { %v4894_v22 = vpop.f32.mrf.mxu0  ;;  %v4943_v4 = vpop.f32.mrf.mxu1  ;;  %v4993_v57 = vadd.f32 %v4992_v16, %v19033_v42 }
 0x4ed   : > { %v4895_v53 = vadd.f32 %v4894_v22, %v15817_v48  ;;  %v10906_v48 = vld [vmem:[%s18718_s1 + $0x4e8] sm:$0xf] }
 0x4ee   : > { %v16104_v27 = vadd.f32 %v5041_v13, %v4993_v57  ;;  %v11034_v22 = vld [vmem:[%s18718_s1 + $0x5e8] sm:$0xf] }
 0x4ef   : > { %v16106_v43 = vadd.f32 %v4943_v4, %v4895_v53  ;;  %5089 = vmatmul.bf16.gmra.mxu0 %v15469_v31  ;;  %5138 = vmatmul.bf16.gmra.mxu1 %v15471_v59  ;;  %v12405_v53 = vld [vmem:[%s18718_s1 + $0x4f4] sm:$0xf0] }
 0x4f0   : > { %v10907_v25 = vor.u32 %v12405_v53, %v10906_v48  ;;  %v12437_v4 = vld [vmem:[%s18718_s1 + $0x5f4] sm:$0xf0] }
 0x4f1   : > { %19034 = vst [vmem:[#allocation35_spill] sm:$0xff] %v16106_v43  ;;  %v11035_v43 = vor.u32 %v12437_v4, %v11034_v22  ;;  %v12271_v4 = vld [vmem:[%s18718_s1 + $0xcc] sm:$0xf] }
 0x4f2   : > { %5443 = vmatpush.bf16.msra.mxu0 %v10907_v25 }
 0x4f3   : > { %v4994_v16 = vpop.f32.mrf.mxu2  ;;  %v5043_v13 = vpop.f32.mrf.mxu3  ;;  %5492 = vmatpush.bf16.msra.mxu1 %v11035_v43  ;;  %v19039_v43 = vld [vmem:[#allocation79_spill] sm:$0xff] }
 0x4f4   : > { %v4896_v42 = vpop.f32.mrf.mxu0  ;;  %v4945_v57 = vpop.f32.mrf.mxu1  ;;  %v4995_v61 = vadd.f32 %v4994_v16, %v19035_v28  ;;  %v10508_v28 = vld [vmem:[%s18718_s1 + $0x1d8] sm:$0xf0] }
 0x4f5   : > { %v4897_v48 = vadd.f32 %v4896_v42, %v15822_v45  ;;  %v10380_v42 = vld [vmem:[%s18718_s1 + $0xd8] sm:$0xf0] }
 0x4f6   : > { %v16136_v39 = vadd.f32 %v5043_v13, %v4995_v61  ;;  %v19038_v13 = vld [vmem:[#allocation78_spill] sm:$0xff] }
 0x4f7   : > { %v16138_v53 = vadd.f32 %v4945_v57, %v4897_v48  ;;  %v12303_v57 = vld [vmem:[%s18718_s1 + $0x1cc] sm:$0xf] }
 0x4f8   : > { %5192 = vmatmul.bf16.gmra.mxu2 %v15824_v49  ;;  %5241 = vmatmul.bf16.gmra.mxu3 %v15826_v30  ;;  %v10511_v48 = vor.u32 %v12303_v57, %v10508_v28 }
 0x4f9   : > { %19036 = vst [vmem:[#allocation36_spill] sm:$0xff] %v16138_v53 }
 0x4fa   : > { %5591 = vmatpush.bf16.msra.mxu3 %v10511_v48 }
 0x4fb   : > { %v4997_v0 = vpop.f32.mrf.mxu2  ;;  %v5046_v33 = vpop.f32.mrf.mxu3 }
 0x4fc   : > { %v4899_v25 = vpop.f32.mrf.mxu0  ;;  %v4948_v55 = vpop.f32.mrf.mxu1  ;;  %v4998_v26 = vadd.f32 %v4997_v0, %v14655_v19  ;;  %v10890_v19 = vld [vmem:[%s18718_s1 + $0x4c8] sm:$0xf] }
 0x4fd   : > { %v4900_v16 = vadd.f32 %v4899_v25, %v15855_v29  ;;  %v10383_v29 = vor.u32 %v12271_v4, %v10380_v42  ;;  %v11018_v25 = vld [vmem:[%s18718_s1 + $0x5c8] sm:$0xf]  ;;  %v19040_v42 = vld [vmem:[#allocation18_spill] sm:$0xff] }
 0x4fe   : > { %v16144_v22 = vadd.f32 %v5046_v33, %v4998_v26  ;;  %v12401_v26 = vld [vmem:[%s18718_s1 + $0x4d4] sm:$0xf0] }
 0x4ff   : > { %v16146_v45 = vadd.f32 %v4948_v55, %v4900_v16  ;;  %5094 = vmatmul.bf16.gmra.mxu0 %v19038_v13  ;;  %5143 = vmatmul.bf16.gmra.mxu1 %v19039_v43  ;;  %v10891_v61 = vor.u32 %v12401_v26, %v10890_v19  ;;  %v12433_v55 = vld [vmem:[%s18718_s1 + $0x5d4] sm:$0xf0] }
 0x500   : > { %5542 = vmatpush.bf16.msra.mxu2 %v10383_v29  ;;  %v11019_v53 = vor.u32 %v12433_v55, %v11018_v25  ;;  %v19043_v25 = vld [vmem:[#allocation52_spill] sm:$0xff]  ;;  %v10492_v55 = vld [vmem:[%s18718_s1 + $0x1b8] sm:$0xf0] }
 0x501   : > { %19037 = vst [vmem:[#allocation5_spill] sm:$0xff] %v16146_v45  ;;  %5444 = vmatpush.bf16.msra.mxu0 %v10891_v61 }
 0x502   : > { %5493 = vmatpush.bf16.msra.mxu1 %v11019_v53  ;;  %v10364_v53 = vld [vmem:[%s18718_s1 + $0xb8] sm:$0xf0] }
 0x503   : > { %v4999_v0 = vpop.f32.mrf.mxu2  ;;  %v5048_v33 = vpop.f32.mrf.mxu3 }
 0x504   : > { %v4901_v16 = vpop.f32.mrf.mxu0  ;;  %v4950_v4 = vpop.f32.mrf.mxu1  ;;  %v5000_v45 = vadd.f32 %v4999_v0, %v19040_v42  ;;  %v19042_v0 = vld [vmem:[#allocation51_spill] sm:$0xff] }
 0x505   : > { %v4902_v19 = vadd.f32 %v4901_v16, %v15860_v62  ;;  %v12267_v62 = vld [vmem:[%s18718_s1 + $0xac] sm:$0xf] }
 0x506   : > { %v16176_v29 = vadd.f32 %v5048_v33, %v5000_v45  ;;  %v10874_v45 = vld [vmem:[%s18718_s1 + $0x4a8] sm:$0xf]  ;;  %v10367_v33 = vor.u32 %v12267_v62, %v10364_v53  ;;  %v12429_v53 = vld [vmem:[%s18718_s1 + $0x5b4] sm:$0xf0] }
 0x507   : > { %v16178_v26 = vadd.f32 %v4950_v4, %v4902_v19  ;;  %v11002_v62 = vld [vmem:[%s18718_s1 + $0x5a8] sm:$0xf] }
 0x508   : > { %5353 = vmatmul.bf16.vlgmr.msrb.gmra.mxu2 %v15217_v2  ;;  %5402 = vmatmul.bf16.vlgmr.msrb.gmra.mxu3 %v15219_v3 }
 0x509   : > { %19041 = vst [vmem:[#allocation37_spill] sm:$0xff] %v16178_v26  ;;  %5543 = vmatpush.bf16.msra.mxu2 %v10367_v33 }
 0x50b   : > { %v5158_v57 = vpop.f32.mrf.mxu2  ;;  %v5207_v28 = vpop.f32.mrf.mxu3 }
 0x50c   : > { %v5060_v61 = vpop.f32.mrf.mxu0  ;;  %v5109_v48 = vpop.f32.mrf.mxu1 }
 0x50d   : > { %v5061_v30 = vadd.f32 %v5060_v61, %v15864_v9  ;;  %v12397_v9 = vld [vmem:[%s18718_s1 + $0x4b4] sm:$0xf0] }
 0x50e   : > { %v10875_v4 = vor.u32 %v12397_v9, %v10874_v45 }
 0x50f   : > { %v5110_v49 = vadd.f32 %v5109_v48, %v5061_v30  ;;  %5255 = vmatmul.bf16.vlgmr.msrb.gmra.mxu0 %v19042_v0  ;;  %5304 = vmatmul.bf16.vlgmr.msrb.gmra.mxu1 %v19043_v25  ;;  %v12299_v30 = vld [vmem:[%s18718_s1 + $0x1ac] sm:$0xf] }
 0x510   : > { %v10495_v42 = vor.u32 %v12299_v30, %v10492_v55  ;;  %5445 = vmatpush.bf16.msra.mxu0 %v10875_v4 }
 0x511   : > { %v5159_v16 = vadd.f32 %v5158_v57, %v5110_v49  ;;  %v11003_v49 = vor.u32 %v12429_v53, %v11002_v62  ;;  %v19047_v62 = vld [vmem:[#allocation56_spill] sm:$0xff]  ;;  %v10476_v53 = vld [vmem:[%s18718_s1 + $0x198] sm:$0xf0] }
 0x512   : > { %5592 = vmatpush.bf16.msra.mxu3 %v10495_v42 }
 0x513   : > { %v16203_v19 = vadd.f32 %v5207_v28, %v5159_v16  ;;  %v5160_v61 = vpop.f32.mrf.mxu2  ;;  %v5209_v48 = vpop.f32.mrf.mxu3  ;;  %5494 = vmatpush.bf16.msra.mxu1 %v11003_v49 }
 0x514   : > { %v5062_v26 = vpop.f32.mrf.mxu0  ;;  %v5111_v3 = vpop.f32.mrf.mxu1 }
 0x515   : > { %19044 = vst [vmem:[#allocation6_spill] sm:$0xff] %v16203_v19  ;;  %v5063_v57 = vadd.f32 %v5062_v26, %v15896_v10  ;;  %v19046_v19 = vld [vmem:[#allocation55_spill] sm:$0xff]  ;;  %v10348_v10 = vld [vmem:[%s18718_s1 + $0x98] sm:$0xf0]  ;;  %v10858_v26 = vld [vmem:[%s18718_s1 + $0x488] sm:$0xf] }
 0x517   : > { %v5112_v28 = vadd.f32 %v5111_v3, %v5063_v57  ;;  %v12263_v3 = vld [vmem:[%s18718_s1 + $0x8c] sm:$0xf] }
 0x518   : > { %5358 = vmatmul.bf16.gmra.mxu2 %v15259_v41  ;;  %5407 = vmatmul.bf16.gmra.mxu3 %v15261_v52 }
 0x519   : > { %v5161_v45 = vadd.f32 %v5160_v61, %v5112_v28  ;;  %v10351_v61 = vor.u32 %v12263_v3, %v10348_v10  ;;  %v12425_v3 = vld [vmem:[%s18718_s1 + $0x594] sm:$0xf0] }
 0x51b   : > { %v16214_v33 = vadd.f32 %v5209_v48, %v5161_v45  ;;  %v5163_v9 = vpop.f32.mrf.mxu2  ;;  %v5212_v30 = vpop.f32.mrf.mxu3  ;;  %v12295_v48 = vld [vmem:[%s18718_s1 + $0x18c] sm:$0xf]  ;;  %5544 = vmatpush.bf16.msra.mxu2 %v10351_v61 }
 0x51c   : > { %v5065_v55 = vpop.f32.mrf.mxu0  ;;  %v5114_v16 = vpop.f32.mrf.mxu1  ;;  %v10479_v28 = vor.u32 %v12295_v48, %v10476_v53 }
 0x51d   : > { %19045 = vst [vmem:[#allocation7_spill] sm:$0xff] %v16214_v33  ;;  %v5066_v4 = vadd.f32 %v5065_v55, %v15904_v51  ;;  %v12393_v51 = vld [vmem:[%s18718_s1 + $0x494] sm:$0xf0] }
 0x51e   : > { %v10859_v57 = vor.u32 %v12393_v51, %v10858_v26  ;;  %5593 = vmatpush.bf16.msra.mxu3 %v10479_v28 }
 0x51f   : > { %v5115_v42 = vadd.f32 %v5114_v16, %v5066_v4  ;;  %5260 = vmatmul.bf16.gmra.mxu0 %v19046_v19  ;;  %5309 = vmatmul.bf16.gmra.mxu1 %v19047_v62  ;;  %v10986_v4 = vld [vmem:[%s18718_s1 + $0x588] sm:$0xf] }
 0x520   : > { %5446 = vmatpush.bf16.msra.mxu0 %v10859_v57 }
 0x521   : > { %v5164_v49 = vadd.f32 %v5163_v9, %v5115_v42  ;;  %v10987_v9 = vor.u32 %v12425_v3, %v10986_v4  ;;  %v19051_v4 = vld [vmem:[#allocation60_spill] sm:$0xff] }
 0x522   : > { %v12291_v3 = vld [vmem:[%s18718_s1 + $0x16c] sm:$0xf] }
 0x523   : > { %v16237_v45 = vadd.f32 %v5212_v30, %v5164_v49  ;;  %v5165_v55 = vpop.f32.mrf.mxu2  ;;  %v5214_v16 = vpop.f32.mrf.mxu3  ;;  %5495 = vmatpush.bf16.msra.mxu1 %v10987_v9 }
 0x524   : > { %v5067_v10 = vpop.f32.mrf.mxu0  ;;  %v5116_v33 = vpop.f32.mrf.mxu1 }
 0x525   : > { %19048 = vst [vmem:[#allocation8_spill] sm:$0xff] %v16237_v45  ;;  %v5068_v42 = vadd.f32 %v5067_v10, %v15936_v35  ;;  %v19050_v45 = vld [vmem:[#allocation59_spill] sm:$0xff]  ;;  %v12259_v35 = vld [vmem:[%s18718_s1 + $0x6c] sm:$0xf]  ;;  %v10460_v10 = vld [vmem:[%s18718_s1 + $0x178] sm:$0xf0] }
 0x527   : > { %v5117_v30 = vadd.f32 %v5116_v33, %v5068_v42  ;;  %v10332_v33 = vld [vmem:[%s18718_s1 + $0x78] sm:$0xf0] }
 0x528   : > { %5363 = vmatmul.bf16.gmra.mxu2 %v15301_v60  ;;  %5412 = vmatmul.bf16.gmra.mxu3 %v15303_v21 }
 0x529   : > { %v5166_v26 = vadd.f32 %v5165_v55, %v5117_v30  ;;  %v10842_v55 = vld [vmem:[%s18718_s1 + $0x468] sm:$0xf]  ;;  %v10463_v30 = vor.u32 %v12291_v3, %v10460_v10 }
 0x52b   : > { %v16248_v61 = vadd.f32 %v5214_v16, %v5166_v26  ;;  %v5168_v51 = vpop.f32.mrf.mxu2  ;;  %v5217_v48 = vpop.f32.mrf.mxu3  ;;  %v10335_v16 = vor.u32 %v12259_v35, %v10332_v33  ;;  %5594 = vmatpush.bf16.msra.mxu3 %v10463_v30  ;;  %v12421_v35 = vld [vmem:[%s18718_s1 + $0x574] sm:$0xf0] }
 0x52c   : > { %v5070_v53 = vpop.f32.mrf.mxu0  ;;  %v5119_v49 = vpop.f32.mrf.mxu1 }
 0x52d   : > { %19049 = vst [vmem:[#allocation9_spill] sm:$0xff] %v16248_v61  ;;  %v5071_v57 = vadd.f32 %v5070_v53, %v15944_v1  ;;  %v12389_v1 = vld [vmem:[%s18718_s1 + $0x474] sm:$0xf0]  ;;  %5545 = vmatpush.bf16.msra.mxu2 %v10335_v16 }
 0x52e   : > { %v10843_v42 = vor.u32 %v12389_v1, %v10842_v55 }
 0x52f   : > { %v5120_v28 = vadd.f32 %v5119_v49, %v5071_v57  ;;  %5265 = vmatmul.bf16.gmra.mxu0 %v19050_v45  ;;  %5314 = vmatmul.bf16.gmra.mxu1 %v19051_v4  ;;  %v10970_v57 = vld [vmem:[%s18718_s1 + $0x568] sm:$0xf] }
 0x530   : > { %5447 = vmatpush.bf16.msra.mxu0 %v10843_v42 }
 0x531   : > { %v5169_v9 = vadd.f32 %v5168_v51, %v5120_v28  ;;  %v10971_v51 = vor.u32 %v12421_v35, %v10970_v57  ;;  %v19055_v57 = vld [vmem:[#allocation64_spill] sm:$0xff] }
 0x532   : > { %v12287_v35 = vld [vmem:[%s18718_s1 + $0x14c] sm:$0xf] }
 0x533   : > { %v16271_v26 = vadd.f32 %v5217_v48, %v5169_v9  ;;  %v5170_v53 = vpop.f32.mrf.mxu2  ;;  %v5219_v49 = vpop.f32.mrf.mxu3  ;;  %5496 = vmatpush.bf16.msra.mxu1 %v10971_v51 }
 0x534   : > { %v5072_v33 = vpop.f32.mrf.mxu0  ;;  %v5121_v61 = vpop.f32.mrf.mxu1 }
 0x535   : > { %19052 = vst [vmem:[#allocation10_spill] sm:$0xff] %v16271_v26  ;;  %v5073_v28 = vadd.f32 %v5072_v33, %v15976_v44  ;;  %v19054_v26 = vld [vmem:[#allocation63_spill] sm:$0xff]  ;;  %v12255_v44 = vld [vmem:[%s18718_s1 + $0x4c] sm:$0xf]  ;;  %v10444_v33 = vld [vmem:[%s18718_s1 + $0x158] sm:$0xf0] }
 0x537   : > { %v5122_v48 = vadd.f32 %v5121_v61, %v5073_v28  ;;  %v10316_v61 = vld [vmem:[%s18718_s1 + $0x58] sm:$0xf0] }
 0x538   : > { %5368 = vmatmul.bf16.gmra.mxu2 %v15343_v37  ;;  %5417 = vmatmul.bf16.gmra.mxu3 %v15345_v15 }
 0x539   : > { %v5171_v55 = vadd.f32 %v5170_v53, %v5122_v48  ;;  %v10826_v53 = vld [vmem:[%s18718_s1 + $0x448] sm:$0xf]  ;;  %v10447_v48 = vor.u32 %v12287_v35, %v10444_v33 }
 0x53b   : > { %v16282_v16 = vadd.f32 %v5219_v49, %v5171_v55  ;;  %v5173_v1 = vpop.f32.mrf.mxu2  ;;  %v5222_v3 = vpop.f32.mrf.mxu3  ;;  %v10319_v49 = vor.u32 %v12255_v44, %v10316_v61  ;;  %5595 = vmatpush.bf16.msra.mxu3 %v10447_v48  ;;  %v12417_v44 = vld [vmem:[%s18718_s1 + $0x554] sm:$0xf0] }
 0x53c   : > { %v5075_v10 = vpop.f32.mrf.mxu0  ;;  %v5124_v9 = vpop.f32.mrf.mxu1 }
 0x53d   : > { %19053 = vst [vmem:[#allocation11_spill] sm:$0xff] %v16282_v16  ;;  %v5076_v42 = vadd.f32 %v5075_v10, %v15984_v18  ;;  %v12385_v18 = vld [vmem:[%s18718_s1 + $0x454] sm:$0xf0]  ;;  %5546 = vmatpush.bf16.msra.mxu2 %v10319_v49 }
 0x53e   : > { %v10827_v28 = vor.u32 %v12385_v18, %v10826_v53 }
 0x53f   : > { %v5125_v30 = vadd.f32 %v5124_v9, %v5076_v42  ;;  %5270 = vmatmul.bf16.gmra.mxu0 %v19054_v26  ;;  %5319 = vmatmul.bf16.gmra.mxu1 %v19055_v57  ;;  %v10954_v42 = vld [vmem:[%s18718_s1 + $0x548] sm:$0xf] }
 0x540   : > { %5448 = vmatpush.bf16.msra.mxu0 %v10827_v28 }
 0x541   : > { %v5174_v51 = vadd.f32 %v5173_v1, %v5125_v30  ;;  %v10955_v1 = vor.u32 %v12417_v44, %v10954_v42  ;;  %v19059_v42 = vld [vmem:[#allocation68_spill] sm:$0xff] }
 0x542   : > { %v12283_v44 = vld [vmem:[%s18718_s1 + $0x12c] sm:$0xf] }
 0x543   : > { %v16305_v55 = vadd.f32 %v5222_v3, %v5174_v51  ;;  %v5175_v10 = vpop.f32.mrf.mxu2  ;;  %v5224_v9 = vpop.f32.mrf.mxu3  ;;  %5497 = vmatpush.bf16.msra.mxu1 %v10955_v1 }
 0x544   : > { %v5077_v61 = vpop.f32.mrf.mxu0  ;;  %v5126_v16 = vpop.f32.mrf.mxu1 }
 0x545   : > { %19056 = vst [vmem:[#allocation12_spill] sm:$0xff] %v16305_v55  ;;  %v5078_v30 = vadd.f32 %v5077_v61, %v16016_v36  ;;  %v19058_v55 = vld [vmem:[#allocation67_spill] sm:$0xff]  ;;  %v12251_v36 = vld [vmem:[%s18718_s1 + $0x2c] sm:$0xf]  ;;  %v10428_v61 = vld [vmem:[%s18718_s1 + $0x138] sm:$0xf0] }
 0x547   : > { %v5127_v3 = vadd.f32 %v5126_v16, %v5078_v30  ;;  %v10300_v16 = vld [vmem:[%s18718_s1 + $0x38] sm:$0xf0] }
 0x548   : > { %5373 = vmatmul.bf16.gmra.mxu2 %v15385_v47  ;;  %5422 = vmatmul.bf16.gmra.mxu3 %v15387_v7 }
 0x549   : > { %v5176_v53 = vadd.f32 %v5175_v10, %v5127_v3  ;;  %v10810_v10 = vld [vmem:[%s18718_s1 + $0x428] sm:$0xf]  ;;  %v10431_v3 = vor.u32 %v12283_v44, %v10428_v61 }
 0x54b   : > { %v16316_v49 = vadd.f32 %v5224_v9, %v5176_v53  ;;  %v5178_v18 = vpop.f32.mrf.mxu2  ;;  %v5227_v35 = vpop.f32.mrf.mxu3  ;;  %v10303_v9 = vor.u32 %v12251_v36, %v10300_v16  ;;  %5596 = vmatpush.bf16.msra.mxu3 %v10431_v3  ;;  %v12413_v36 = vld [vmem:[%s18718_s1 + $0x534] sm:$0xf0] }
 0x54c   : > { %v5080_v33 = vpop.f32.mrf.mxu0  ;;  %v5129_v51 = vpop.f32.mrf.mxu1 }
 0x54d   : > { %19057 = vst [vmem:[#allocation13_spill] sm:$0xff] %v16316_v49  ;;  %v5081_v28 = vadd.f32 %v5080_v33, %v16024_v40  ;;  %v12381_v40 = vld [vmem:[%s18718_s1 + $0x434] sm:$0xf0]  ;;  %5547 = vmatpush.bf16.msra.mxu2 %v10303_v9 }
 0x54e   : > { %v10811_v30 = vor.u32 %v12381_v40, %v10810_v10 }
 0x54f   : > { %v5130_v48 = vadd.f32 %v5129_v51, %v5081_v28  ;;  %5275 = vmatmul.bf16.gmra.mxu0 %v19058_v55  ;;  %5324 = vmatmul.bf16.gmra.mxu1 %v19059_v42  ;;  %v10938_v28 = vld [vmem:[%s18718_s1 + $0x528] sm:$0xf] }
 0x550   : > { %5449 = vmatpush.bf16.msra.mxu0 %v10811_v30 }
 0x551   : > { %v5179_v1 = vadd.f32 %v5178_v18, %v5130_v48  ;;  %v10939_v18 = vor.u32 %v12413_v36, %v10938_v28  ;;  %v19063_v28 = vld [vmem:[#allocation72_spill] sm:$0xff] }
 0x552   : > { %v12279_v36 = vld [vmem:[%s18718_s1 + $0x10c] sm:$0xf] }
 0x553   : > { %v16339_v53 = vadd.f32 %v5227_v35, %v5179_v1  ;;  %v5180_v33 = vpop.f32.mrf.mxu2  ;;  %v5229_v51 = vpop.f32.mrf.mxu3  ;;  %5498 = vmatpush.bf16.msra.mxu1 %v10939_v18 }
 0x554   : > { %v5082_v16 = vpop.f32.mrf.mxu0  ;;  %v5131_v49 = vpop.f32.mrf.mxu1 }
 0x555   : > { %19060 = vst [vmem:[#allocation14_spill] sm:$0xff] %v16339_v53  ;;  %v5083_v48 = vadd.f32 %v5082_v16, %v16056_v8  ;;  %v19062_v53 = vld [vmem:[#allocation71_spill] sm:$0xff]  ;;  %v12247_v8 = vld [vmem:[%s18718_s1 + $0xc] sm:$0xf]  ;;  %v10412_v16 = vld [vmem:[%s18718_s1 + $0x118] sm:$0xf0] }
 0x557   : > { %v5132_v35 = vadd.f32 %v5131_v49, %v5083_v48  ;;  %v10284_v49 = vld [vmem:[%s18718_s1 + $0x18] sm:$0xf0] }
 0x558   : > { %5378 = vmatmul.bf16.gmra.mxu2 %v15427_v32  ;;  %5427 = vmatmul.bf16.gmra.mxu3 %v15429_v58 }
 0x559   : > { %v5181_v10 = vadd.f32 %v5180_v33, %v5132_v35  ;;  %v10794_v33 = vld [vmem:[%s18718_s1 + $0x408] sm:$0xf]  ;;  %v10415_v35 = vor.u32 %v12279_v36, %v10412_v16 }
 0x55b   : > { %v16350_v9 = vadd.f32 %v5229_v51, %v5181_v10  ;;  %v5183_v40 = vpop.f32.mrf.mxu2  ;;  %v5232_v44 = vpop.f32.mrf.mxu3  ;;  %v10287_v51 = vor.u32 %v12247_v8, %v10284_v49  ;;  %5597 = vmatpush.bf16.msra.mxu3 %v10415_v35  ;;  %v12409_v8 = vld [vmem:[%s18718_s1 + $0x514] sm:$0xf0] }
 0x55c   : > { %v5085_v61 = vpop.f32.mrf.mxu0  ;;  %v5134_v1 = vpop.f32.mrf.mxu1 }
 0x55d   : > { %19061 = vst [vmem:[#allocation15_spill] sm:$0xff] %v16350_v9  ;;  %v5086_v30 = vadd.f32 %v5085_v61, %v16064_v63  ;;  %v12377_v63 = vld [vmem:[%s18718_s1 + $0x414] sm:$0xf0]  ;;  %5548 = vmatpush.bf16.msra.mxu2 %v10287_v51 }
 0x55e   : > { %v10795_v48 = vor.u32 %v12377_v63, %v10794_v33 }
 0x55f   : > { %v5135_v3 = vadd.f32 %v5134_v1, %v5086_v30  ;;  %5280 = vmatmul.bf16.gmra.mxu0 %v19062_v53  ;;  %5329 = vmatmul.bf16.gmra.mxu1 %v19063_v28  ;;  %v10922_v30 = vld [vmem:[%s18718_s1 + $0x508] sm:$0xf] }
 0x560   : > { %5450 = vmatpush.bf16.msra.mxu0 %v10795_v48 }
 0x561   : > { %v5184_v18 = vadd.f32 %v5183_v40, %v5135_v3  ;;  %v10923_v40 = vor.u32 %v12409_v8, %v10922_v30  ;;  %v19067_v30 = vld [vmem:[#allocation76_spill] sm:$0xff] }
 0x562   : > { %v12435_v8 = vld [vmem:[%s18718_s1 + $0x5ec] sm:$0xf] }
 0x563   : > { %v16373_v10 = vadd.f32 %v5232_v44, %v5184_v18  ;;  %v5185_v61 = vpop.f32.mrf.mxu2  ;;  %v5234_v1 = vpop.f32.mrf.mxu3  ;;  %5499 = vmatpush.bf16.msra.mxu1 %v10923_v40 }
 0x564   : > { %v5087_v49 = vpop.f32.mrf.mxu0  ;;  %v5136_v9 = vpop.f32.mrf.mxu1 }
 0x565   : > { %19064 = vst [vmem:[#allocation16_spill] sm:$0xff] %v16373_v10  ;;  %v5088_v3 = vadd.f32 %v5087_v49, %v16096_v6  ;;  %v19066_v10 = vld [vmem:[#allocation75_spill] sm:$0xff]  ;;  %v12403_v6 = vld [vmem:[%s18718_s1 + $0x4ec] sm:$0xf]  ;;  %v11036_v49 = vld [vmem:[%s18718_s1 + $0x5f8] sm:$0xf0] }
 0x567   : > { %v5137_v44 = vadd.f32 %v5136_v9, %v5088_v3  ;;  %v10908_v9 = vld [vmem:[%s18718_s1 + $0x4f8] sm:$0xf0] }
 0x568   : > { %5383 = vmatmul.bf16.gmra.mxu2 %v15469_v31  ;;  %5432 = vmatmul.bf16.gmra.mxu3 %v15471_v59 }
 0x569   : > { %v5186_v33 = vadd.f32 %v5185_v61, %v5137_v44  ;;  %v12339_v61 = vld [vmem:[%s18718_s1 + $0x2ec] sm:$0xf]  ;;  %v11039_v44 = vor.u32 %v12435_v8, %v11036_v49 }
 0x56b   : > { %v16384_v51 = vadd.f32 %v5234_v1, %v5186_v33  ;;  %v5188_v63 = vpop.f32.mrf.mxu2  ;;  %v5237_v36 = vpop.f32.mrf.mxu3  ;;  %v10911_v1 = vor.u32 %v12403_v6, %v10908_v9  ;;  %5786 = vmatpush.bf16.msrb.mxu3 %v11039_v44  ;;  %v10780_v6 = vld [vmem:[%s18718_s1 + $0x3f8] sm:$0xf0] }
 0x56c   : > { %v5090_v16 = vpop.f32.mrf.mxu0  ;;  %v5139_v18 = vpop.f32.mrf.mxu1 }
 0x56d   : > { %19065 = vst [vmem:[#allocation17_spill] sm:$0xff] %v16384_v51  ;;  %v5091_v48 = vadd.f32 %v5090_v16, %v16104_v27  ;;  %v10652_v27 = vld [vmem:[%s18718_s1 + $0x2f8] sm:$0xf0]  ;;  %5737 = vmatpush.bf16.msrb.mxu2 %v10911_v1 }
 0x56e   : > { %v10655_v3 = vor.u32 %v12339_v61, %v10652_v27 }
 0x56f   : > { %v5140_v35 = vadd.f32 %v5139_v18, %v5091_v48  ;;  %5285 = vmatmul.bf16.gmra.mxu0 %v19066_v10  ;;  %5334 = vmatmul.bf16.gmra.mxu1 %v19067_v30  ;;  %v12371_v48 = vld [vmem:[%s18718_s1 + $0x3ec] sm:$0xf] }
 0x570   : > { %5639 = vmatpush.bf16.msrb.mxu0 %v10655_v3 }
 0x571   : > { %v5189_v40 = vadd.f32 %v5188_v63, %v5140_v35  ;;  %v10783_v63 = vor.u32 %v12371_v48, %v10780_v6  ;;  %v19071_v48 = vld [vmem:[#allocation82_spill] sm:$0xff]  ;;  %v12431_v6 = vld [vmem:[%s18718_s1 + $0x5cc] sm:$0xf] }
 0x573   : > { %v16407_v33 = vadd.f32 %v5237_v36, %v5189_v40  ;;  %v5190_v16 = vpop.f32.mrf.mxu2  ;;  %v5239_v18 = vpop.f32.mrf.mxu3  ;;  %5688 = vmatpush.bf16.msrb.mxu1 %v10783_v63 }
 0x574   : > { %v5092_v9 = vpop.f32.mrf.mxu0  ;;  %v5141_v51 = vpop.f32.mrf.mxu1 }
 0x575   : > { %19068 = vst [vmem:[#allocation78_spill] sm:$0xff] %v16407_v33  ;;  %v5093_v35 = vadd.f32 %v5092_v9, %v16136_v39  ;;  %v19070_v33 = vld [vmem:[#allocation81_spill] sm:$0xff]  ;;  %v12399_v39 = vld [vmem:[%s18718_s1 + $0x4cc] sm:$0xf]  ;;  %v11020_v9 = vld [vmem:[%s18718_s1 + $0x5d8] sm:$0xf0] }
 0x577   : > { %v5142_v36 = vadd.f32 %v5141_v51, %v5093_v35  ;;  %v10892_v51 = vld [vmem:[%s18718_s1 + $0x4d8] sm:$0xf0] }
 0x578   : > { %5388 = vmatmul.bf16.gmra.mxu2 %v19038_v13  ;;  %5437 = vmatmul.bf16.gmra.mxu3 %v19039_v43 }
 0x579   : > { %v5191_v61 = vadd.f32 %v5190_v16, %v5142_v36  ;;  %v12335_v16 = vld [vmem:[%s18718_s1 + $0x2cc] sm:$0xf]  ;;  %v11023_v36 = vor.u32 %v12431_v6, %v11020_v9 }
 0x57b   : > { %v16418_v1 = vadd.f32 %v5239_v18, %v5191_v61  ;;  %v5193_v27 = vpop.f32.mrf.mxu2  ;;  %v5242_v8 = vpop.f32.mrf.mxu3  ;;  %v10895_v18 = vor.u32 %v12399_v39, %v10892_v51  ;;  %5787 = vmatpush.bf16.msrb.mxu3 %v11023_v36  ;;  %v10764_v39 = vld [vmem:[%s18718_s1 + $0x3d8] sm:$0xf0] }
 0x57c   : > { %v5095_v49 = vpop.f32.mrf.mxu0  ;;  %v5144_v40 = vpop.f32.mrf.mxu1 }
 0x57d   : > { %19069 = vst [vmem:[#allocation79_spill] sm:$0xff] %v16418_v1  ;;  %v5096_v3 = vadd.f32 %v5095_v49, %v16144_v22  ;;  %v10636_v22 = vld [vmem:[%s18718_s1 + $0x2d8] sm:$0xf0]  ;;  %5738 = vmatpush.bf16.msrb.mxu2 %v10895_v18 }
 0x57e   : > { %v10639_v35 = vor.u32 %v12335_v16, %v10636_v22 }
 0x57f   : > { %v5145_v44 = vadd.f32 %v5144_v40, %v5096_v3  ;;  %5290 = vmatmul.bf16.gmra.mxu0 %v19070_v33  ;;  %5339 = vmatmul.bf16.gmra.mxu1 %v19071_v48  ;;  %v12367_v3 = vld [vmem:[%s18718_s1 + $0x3cc] sm:$0xf] }
 0x580   : > { %5640 = vmatpush.bf16.msrb.mxu0 %v10639_v35  ;;  %v19074_v35 = vld [vmem:[#allocation19_spill] sm:$0xff] }
 0x581   : > { %v5194_v63 = vadd.f32 %v5193_v27, %v5145_v44  ;;  %v10767_v27 = vor.u32 %v12367_v3, %v10764_v39  ;;  %v11004_v3 = vld [vmem:[%s18718_s1 + $0x5b8] sm:$0xf0] }
 0x583   : > { %v16441_v61 = vadd.f32 %v5242_v8, %v5194_v63  ;;  %v5195_v49 = vpop.f32.mrf.mxu2  ;;  %v5244_v40 = vpop.f32.mrf.mxu3  ;;  %5689 = vmatpush.bf16.msrb.mxu1 %v10767_v27 }
 0x584   : > { %v5097_v51 = vpop.f32.mrf.mxu0  ;;  %v5146_v1 = vpop.f32.mrf.mxu1 }
 0x585   : > { %19072 = vst [vmem:[#allocation18_spill] sm:$0xff] %v16441_v61  ;;  %v5098_v44 = vadd.f32 %v5097_v51, %v16176_v29  ;;  %v12395_v29 = vld [vmem:[%s18718_s1 + $0x4ac] sm:$0xf] }
 0x587   : > { %v5147_v8 = vadd.f32 %v5146_v1, %v5098_v44 }
 0x588   : > { %5549 = vmatmul.bf16.vlgmr.msra.gmra.mxu2 %v19042_v0  ;;  %5598 = vmatmul.bf16.vlgmr.msra.gmra.mxu3 %v19043_v25  ;;  %v10876_v0 = vld [vmem:[%s18718_s1 + $0x4b8] sm:$0xf0]  ;;  %v12331_v25 = vld [vmem:[%s18718_s1 + $0x2ac] sm:$0xf] }
 0x589   : > { %v5196_v16 = vadd.f32 %v5195_v49, %v5147_v8  ;;  %v10879_v1 = vor.u32 %v12395_v29, %v10876_v0  ;;  %v10620_v49 = vld [vmem:[%s18718_s1 + $0x2b8] sm:$0xf0] }
 0x58a   : > { %v10623_v51 = vor.u32 %v12331_v25, %v10620_v49 }
 0x58b   : > { %v16452_v18 = vadd.f32 %v5244_v40, %v5196_v16  ;;  %v5354_v22 = vpop.f32.mrf.mxu2  ;;  %v5403_v6 = vpop.f32.mrf.mxu3  ;;  %v12427_v40 = vld [vmem:[%s18718_s1 + $0x5ac] sm:$0xf]  ;;  %5739 = vmatpush.bf16.msrb.mxu2 %v10879_v1 }
 0x58c   : > { %v5256_v9 = vpop.f32.mrf.mxu0  ;;  %v5305_v63 = vpop.f32.mrf.mxu1  ;;  %v11007_v27 = vor.u32 %v12427_v40, %v11004_v3  ;;  %5641 = vmatpush.bf16.msrb.mxu0 %v10623_v51 }
 0x58d   : > { %19073 = vst [vmem:[#allocation51_spill] sm:$0xff] %v16452_v18  ;;  %v5257_v36 = vadd.f32 %v5256_v9, %v19074_v35  ;;  %v12363_v9 = vld [vmem:[%s18718_s1 + $0x3ac] sm:$0xf] }
 0x58e   : > { %5788 = vmatpush.bf16.msrb.mxu3 %v11007_v27 }
 0x58f   : > { %v5306_v61 = vadd.f32 %v5305_v63, %v5257_v36  ;;  %5451 = vmatmul.bf16.vlgmr.msra.gmra.mxu0 %v15558_v46  ;;  %5500 = vmatmul.bf16.vlgmr.msra.gmra.mxu1 %v15560_v12  ;;  %v10748_v63 = vld [vmem:[%s18718_s1 + $0x3b8] sm:$0xf0] }
 0x591   : > { %v5355_v39 = vadd.f32 %v5354_v22, %v5306_v61  ;;  %v10751_v61 = vor.u32 %v12363_v9, %v10748_v63  ;;  %v19075_v22 = vld [vmem:[#allocation20_spill] sm:$0xff]  ;;  %v10604_v9 = vld [vmem:[%s18718_s1 + $0x298] sm:$0xf0] }
 0x592   : > { %v12423_v63 = vld [vmem:[%s18718_s1 + $0x58c] sm:$0xf] }
 0x593   : > { %v16475_v44 = vadd.f32 %v5403_v6, %v5355_v39  ;;  %v5356_v8 = vpop.f32.mrf.mxu2  ;;  %v5405_v16 = vpop.f32.mrf.mxu3  ;;  %5690 = vmatpush.bf16.msrb.mxu1 %v10751_v61  ;;  %v19076_v39 = vld [vmem:[#allocation3_spill] sm:$0xff] }
 0x594   : > { %v5258_v35 = vpop.f32.mrf.mxu0  ;;  %v5307_v36 = vpop.f32.mrf.mxu1 }
 0x595   : > { %v5259_v29 = vadd.f32 %v5258_v35, %v19075_v22  ;;  %v10988_v35 = vld [vmem:[%s18718_s1 + $0x598] sm:$0xf0] }
 0x596   : > { %v10991_v22 = vor.u32 %v12423_v63, %v10988_v35 }
 0x597   : > { %v5308_v6 = vadd.f32 %v5307_v36, %v5259_v29 }
 0x598   : > { %5554 = vmatmul.bf16.gmra.mxu2 %v19046_v19  ;;  %5603 = vmatmul.bf16.gmra.mxu3 %v19047_v62  ;;  %v12391_v19 = vld [vmem:[%s18718_s1 + $0x48c] sm:$0xf]  ;;  %v10860_v62 = vld [vmem:[%s18718_s1 + $0x498] sm:$0xf0] }
 0x599   : > { %v5357_v0 = vadd.f32 %v5356_v8, %v5308_v6  ;;  %v12327_v8 = vld [vmem:[%s18718_s1 + $0x28c] sm:$0xf]  ;;  %5789 = vmatpush.bf16.msrb.mxu3 %v10991_v22 }
 0x59a   : > { %v10607_v61 = vor.u32 %v12327_v8, %v10604_v9 }
 0x59b   : > { %v16486_v25 = vadd.f32 %v5405_v16, %v5357_v0  ;;  %v5359_v1 = vpop.f32.mrf.mxu2  ;;  %v5408_v49 = vpop.f32.mrf.mxu3  ;;  %v10863_v16 = vor.u32 %v12391_v19, %v10860_v62 }
 0x59c   : > { %v5261_v40 = vpop.f32.mrf.mxu0  ;;  %v5310_v3 = vpop.f32.mrf.mxu1  ;;  %5642 = vmatpush.bf16.msrb.mxu0 %v10607_v61 }
 0x59d   : > { %v5262_v51 = vadd.f32 %v5261_v40, %v19076_v39  ;;  %5740 = vmatpush.bf16.msrb.mxu2 %v10863_v16  ;;  %v12359_v40 = vld [vmem:[%s18718_s1 + $0x38c] sm:$0xf] }
 0x59f   : > { %v5311_v27 = vadd.f32 %v5310_v3, %v5262_v51  ;;  %5456 = vmatmul.bf16.gmra.mxu0 %v15596_v24  ;;  %5505 = vmatmul.bf16.gmra.mxu1 %v15598_v14  ;;  %v10732_v3 = vld [vmem:[%s18718_s1 + $0x398] sm:$0xf0] }
 0x5a1   : > { %v5360_v36 = vadd.f32 %v5359_v1, %v5311_v27  ;;  %v10735_v1 = vor.u32 %v12359_v40, %v10732_v3  ;;  %v19077_v27 = vld [vmem:[#allocation4_spill] sm:$0xff]  ;;  %v10588_v40 = vld [vmem:[%s18718_s1 + $0x278] sm:$0xf0] }
 0x5a2   : > { %v12419_v3 = vld [vmem:[%s18718_s1 + $0x56c] sm:$0xf] }
 0x5a3   : > { %v16509_v29 = vadd.f32 %v5408_v49, %v5360_v36  ;;  %v5361_v6 = vpop.f32.mrf.mxu2  ;;  %v5410_v0 = vpop.f32.mrf.mxu3  ;;  %5691 = vmatpush.bf16.msrb.mxu1 %v10735_v1  ;;  %v19078_v36 = vld [vmem:[#allocation38_spill] sm:$0xff] }
 0x5a4   : > { %v5263_v39 = vpop.f32.mrf.mxu0  ;;  %v5312_v51 = vpop.f32.mrf.mxu1 }
 0x5a5   : > { %v5264_v19 = vadd.f32 %v5263_v39, %v19077_v27  ;;  %v10972_v39 = vld [vmem:[%s18718_s1 + $0x578] sm:$0xf0] }
 0x5a6   : > { %v10975_v27 = vor.u32 %v12419_v3, %v10972_v39 }
 0x5a7   : > { %v5313_v49 = vadd.f32 %v5312_v51, %v5264_v19 }
 0x5a8   : > { %5559 = vmatmul.bf16.gmra.mxu2 %v19050_v45  ;;  %5608 = vmatmul.bf16.gmra.mxu3 %v19051_v4  ;;  %v12387_v45 = vld [vmem:[%s18718_s1 + $0x46c] sm:$0xf]  ;;  %v10844_v4 = vld [vmem:[%s18718_s1 + $0x478] sm:$0xf0] }
 0x5a9   : > { %v5362_v62 = vadd.f32 %v5361_v6, %v5313_v49  ;;  %v12323_v6 = vld [vmem:[%s18718_s1 + $0x26c] sm:$0xf]  ;;  %5790 = vmatpush.bf16.msrb.mxu3 %v10975_v27 }
 0x5aa   : > { %v10591_v1 = vor.u32 %v12323_v6, %v10588_v40 }
 0x5ab   : > { %v16520_v8 = vadd.f32 %v5410_v0, %v5362_v62  ;;  %v5364_v16 = vpop.f32.mrf.mxu2  ;;  %v5413_v9 = vpop.f32.mrf.mxu3  ;;  %v10847_v0 = vor.u32 %v12387_v45, %v10844_v4 }
 0x5ac   : > { %v5266_v63 = vpop.f32.mrf.mxu0  ;;  %v5315_v35 = vpop.f32.mrf.mxu1  ;;  %5643 = vmatpush.bf16.msrb.mxu0 %v10591_v1 }
 0x5ad   : > { %v5267_v61 = vadd.f32 %v5266_v63, %v19078_v36  ;;  %5741 = vmatpush.bf16.msrb.mxu2 %v10847_v0  ;;  %v12355_v63 = vld [vmem:[%s18718_s1 + $0x36c] sm:$0xf] }
 0x5af   : > { %v5316_v22 = vadd.f32 %v5315_v35, %v5267_v61  ;;  %5461 = vmatmul.bf16.gmra.mxu0 %v15634_v20  ;;  %5510 = vmatmul.bf16.gmra.mxu1 %v15636_v23  ;;  %v10716_v35 = vld [vmem:[%s18718_s1 + $0x378] sm:$0xf0] }
 0x5b1   : > { %v5365_v51 = vadd.f32 %v5364_v16, %v5316_v22  ;;  %v10719_v16 = vor.u32 %v12355_v63, %v10716_v35  ;;  %v19079_v22 = vld [vmem:[#allocation39_spill] sm:$0xff]  ;;  %v10572_v63 = vld [vmem:[%s18718_s1 + $0x258] sm:$0xf0]  ;;  %v12415_v35 = vld [vmem:[%s18718_s1 + $0x54c] sm:$0xf] }
 0x5b3   : > { %v16543_v19 = vadd.f32 %v5413_v9, %v5365_v51  ;;  %v5366_v49 = vpop.f32.mrf.mxu2  ;;  %v5415_v62 = vpop.f32.mrf.mxu3  ;;  %5692 = vmatpush.bf16.msrb.mxu1 %v10719_v16  ;;  %v19080_v51 = vld [vmem:[#allocation40_spill] sm:$0xff] }
 0x5b4   : > { %v5268_v36 = vpop.f32.mrf.mxu0  ;;  %v5317_v61 = vpop.f32.mrf.mxu1 }
 0x5b5   : > { %v5269_v45 = vadd.f32 %v5268_v36, %v19079_v22  ;;  %v10956_v36 = vld [vmem:[%s18718_s1 + $0x558] sm:$0xf0] }
 0x5b6   : > { %v10959_v22 = vor.u32 %v12415_v35, %v10956_v36 }
 0x5b7   : > { %v5318_v9 = vadd.f32 %v5317_v61, %v5269_v45 }
 0x5b8   : > { %5564 = vmatmul.bf16.gmra.mxu2 %v19054_v26  ;;  %5613 = vmatmul.bf16.gmra.mxu3 %v19055_v57  ;;  %v12383_v26 = vld [vmem:[%s18718_s1 + $0x44c] sm:$0xf]  ;;  %v10828_v57 = vld [vmem:[%s18718_s1 + $0x458] sm:$0xf0] }
 0x5b9   : > { %v5367_v4 = vadd.f32 %v5366_v49, %v5318_v9  ;;  %v12319_v49 = vld [vmem:[%s18718_s1 + $0x24c] sm:$0xf]  ;;  %5791 = vmatpush.bf16.msrb.mxu3 %v10959_v22 }
 0x5ba   : > { %v10575_v16 = vor.u32 %v12319_v49, %v10572_v63 }
 0x5bb   : > { %v16554_v6 = vadd.f32 %v5415_v62, %v5367_v4  ;;  %v5369_v0 = vpop.f32.mrf.mxu2  ;;  %v5418_v40 = vpop.f32.mrf.mxu3  ;;  %v10831_v62 = vor.u32 %v12383_v26, %v10828_v57 }
 0x5bc   : > { %v5271_v3 = vpop.f32.mrf.mxu0  ;;  %v5320_v39 = vpop.f32.mrf.mxu1  ;;  %5644 = vmatpush.bf16.msrb.mxu0 %v10575_v16 }
 0x5bd   : > { %v5272_v1 = vadd.f32 %v5271_v3, %v19080_v51  ;;  %5742 = vmatpush.bf16.msrb.mxu2 %v10831_v62  ;;  %v12351_v3 = vld [vmem:[%s18718_s1 + $0x34c] sm:$0xf] }
 0x5bf   : > { %v5321_v27 = vadd.f32 %v5320_v39, %v5272_v1  ;;  %5466 = vmatmul.bf16.gmra.mxu0 %v15672_v11  ;;  %5515 = vmatmul.bf16.gmra.mxu1 %v15674_v38  ;;  %v10700_v39 = vld [vmem:[%s18718_s1 + $0x358] sm:$0xf0] }
 0x5c1   : > { %v5370_v61 = vadd.f32 %v5369_v0, %v5321_v27  ;;  %v10703_v0 = vor.u32 %v12351_v3, %v10700_v39  ;;  %v19081_v27 = vld [vmem:[#allocation41_spill] sm:$0xff]  ;;  %v10556_v3 = vld [vmem:[%s18718_s1 + $0x238] sm:$0xf0]  ;;  %v12411_v39 = vld [vmem:[%s18718_s1 + $0x52c] sm:$0xf] }
 0x5c3   : > { %v16577_v45 = vadd.f32 %v5418_v40, %v5370_v61  ;;  %v5371_v9 = vpop.f32.mrf.mxu2  ;;  %v5420_v4 = vpop.f32.mrf.mxu3  ;;  %5693 = vmatpush.bf16.msrb.mxu1 %v10703_v0  ;;  %v19082_v61 = vld [vmem:[#allocation42_spill] sm:$0xff] }
 0x5c4   : > { %v5273_v51 = vpop.f32.mrf.mxu0  ;;  %v5322_v1 = vpop.f32.mrf.mxu1 }
 0x5c5   : > { %v5274_v26 = vadd.f32 %v5273_v51, %v19081_v27  ;;  %v10940_v51 = vld [vmem:[%s18718_s1 + $0x538] sm:$0xf0] }
 0x5c6   : > { %v10943_v27 = vor.u32 %v12411_v39, %v10940_v51 }
 0x5c7   : > { %v5323_v40 = vadd.f32 %v5322_v1, %v5274_v26 }
 0x5c8   : > { %5569 = vmatmul.bf16.gmra.mxu2 %v19058_v55  ;;  %5618 = vmatmul.bf16.gmra.mxu3 %v19059_v42  ;;  %v12379_v55 = vld [vmem:[%s18718_s1 + $0x42c] sm:$0xf]  ;;  %v10812_v42 = vld [vmem:[%s18718_s1 + $0x438] sm:$0xf0] }
 0x5c9   : > { %v5372_v57 = vadd.f32 %v5371_v9, %v5323_v40  ;;  %v12315_v9 = vld [vmem:[%s18718_s1 + $0x22c] sm:$0xf]  ;;  %5792 = vmatpush.bf16.msrb.mxu3 %v10943_v27 }
 0x5ca   : > { %v10559_v0 = vor.u32 %v12315_v9, %v10556_v3 }
 0x5cb   : > { %v16588_v49 = vadd.f32 %v5420_v4, %v5372_v57  ;;  %v5374_v62 = vpop.f32.mrf.mxu2  ;;  %v5423_v63 = vpop.f32.mrf.mxu3  ;;  %v10815_v4 = vor.u32 %v12379_v55, %v10812_v42 }
 0x5cc   : > { %v5276_v35 = vpop.f32.mrf.mxu0  ;;  %v5325_v36 = vpop.f32.mrf.mxu1  ;;  %5645 = vmatpush.bf16.msrb.mxu0 %v10559_v0 }
 0x5cd   : > { %v5277_v16 = vadd.f32 %v5276_v35, %v19082_v61  ;;  %5743 = vmatpush.bf16.msrb.mxu2 %v10815_v4  ;;  %v12347_v35 = vld [vmem:[%s18718_s1 + $0x32c] sm:$0xf] }
 0x5cf   : > { %v5326_v22 = vadd.f32 %v5325_v36, %v5277_v16  ;;  %5471 = vmatmul.bf16.gmra.mxu0 %v15710_v54  ;;  %5520 = vmatmul.bf16.gmra.mxu1 %v15712_v5  ;;  %v10684_v36 = vld [vmem:[%s18718_s1 + $0x338] sm:$0xf0] }
 0x5d1   : > { %v5375_v1 = vadd.f32 %v5374_v62, %v5326_v22  ;;  %v10687_v62 = vor.u32 %v12347_v35, %v10684_v36  ;;  %v19083_v22 = vld [vmem:[#allocation43_spill] sm:$0xff]  ;;  %v10540_v35 = vld [vmem:[%s18718_s1 + $0x218] sm:$0xf0]  ;;  %v12407_v36 = vld [vmem:[%s18718_s1 + $0x50c] sm:$0xf] }
 0x5d3   : > { %v16611_v26 = vadd.f32 %v5423_v63, %v5375_v1  ;;  %v5376_v40 = vpop.f32.mrf.mxu2  ;;  %v5425_v57 = vpop.f32.mrf.mxu3  ;;  %5694 = vmatpush.bf16.msrb.mxu1 %v10687_v62  ;;  %v19084_v1 = vld [vmem:[#allocation44_spill] sm:$0xff] }
 0x5d4   : > { %v5278_v61 = vpop.f32.mrf.mxu0  ;;  %v5327_v16 = vpop.f32.mrf.mxu1 }
 0x5d5   : > { %v5279_v55 = vadd.f32 %v5278_v61, %v19083_v22  ;;  %v10924_v61 = vld [vmem:[%s18718_s1 + $0x518] sm:$0xf0] }
 0x5d6   : > { %v10927_v22 = vor.u32 %v12407_v36, %v10924_v61 }
 0x5d7   : > { %v5328_v63 = vadd.f32 %v5327_v16, %v5279_v55 }
 0x5d8   : > { %5574 = vmatmul.bf16.gmra.mxu2 %v19062_v53  ;;  %5623 = vmatmul.bf16.gmra.mxu3 %v19063_v28  ;;  %v12375_v53 = vld [vmem:[%s18718_s1 + $0x40c] sm:$0xf]  ;;  %v10796_v28 = vld [vmem:[%s18718_s1 + $0x418] sm:$0xf0] }
 0x5d9   : > { %v5377_v42 = vadd.f32 %v5376_v40, %v5328_v63  ;;  %v12311_v40 = vld [vmem:[%s18718_s1 + $0x20c] sm:$0xf]  ;;  %5793 = vmatpush.bf16.msrb.mxu3 %v10927_v22 }
 0x5da   : > { %v10543_v62 = vor.u32 %v12311_v40, %v10540_v35 }
 0x5db   : > { %v16622_v9 = vadd.f32 %v5425_v57, %v5377_v42  ;;  %v5379_v4 = vpop.f32.mrf.mxu2  ;;  %v5428_v3 = vpop.f32.mrf.mxu3  ;;  %v10799_v57 = vor.u32 %v12375_v53, %v10796_v28 }
 0x5dc   : > { %v5281_v39 = vpop.f32.mrf.mxu0  ;;  %v5330_v51 = vpop.f32.mrf.mxu1  ;;  %5646 = vmatpush.bf16.msrb.mxu0 %v10543_v62 }
 0x5dd   : > { %v5282_v0 = vadd.f32 %v5281_v39, %v19084_v1  ;;  %5744 = vmatpush.bf16.msrb.mxu2 %v10799_v57  ;;  %v12343_v39 = vld [vmem:[%s18718_s1 + $0x30c] sm:$0xf] }
 0x5df   : > { %v5331_v27 = vadd.f32 %v5330_v51, %v5282_v0  ;;  %5476 = vmatmul.bf16.gmra.mxu0 %v15748_v50  ;;  %5525 = vmatmul.bf16.gmra.mxu1 %v15750_v34  ;;  %v10668_v51 = vld [vmem:[%s18718_s1 + $0x318] sm:$0xf0] }
 0x5e1   : > { %v5380_v16 = vadd.f32 %v5379_v4, %v5331_v27  ;;  %v10671_v4 = vor.u32 %v12343_v39, %v10668_v51  ;;  %v19085_v27 = vld [vmem:[#allocation45_spill] sm:$0xff]  ;;  %v11922_v51 = vld [vmem:[%s18718_s1 + $0xfe0] sm:$0xf] }
 0x5e2   : > { %v12756_v39 = vld [vmem:[%s18718_s1 + $0xcec] sm:$0xf0] }
 0x5e3   : > { %v16645_v55 = vadd.f32 %v5428_v3, %v5380_v16  ;;  %v5381_v63 = vpop.f32.mrf.mxu2  ;;  %v5430_v42 = vpop.f32.mrf.mxu3  ;;  %5695 = vmatpush.bf16.msrb.mxu1 %v10671_v4  ;;  %v19086_v16 = vld [vmem:[#allocation46_spill] sm:$0xff] }
 0x5e4   : > { %v5283_v1 = vpop.f32.mrf.mxu0  ;;  %v5332_v0 = vpop.f32.mrf.mxu1 }
 0x5e5   : > { %v5284_v53 = vadd.f32 %v5283_v1, %v19085_v27  ;;  %v12852_v1 = vld [vmem:[%s18718_s1 + $0xfec] sm:$0xf0] }
 0x5e6   : > { %v11923_v27 = vor.u32 %v12852_v1, %v11922_v51 }
 0x5e7   : > { %v5333_v3 = vadd.f32 %v5332_v0, %v5284_v53  ;;  %v11666_v53 = vld [vmem:[%s18718_s1 + $0xde0] sm:$0xf] }
 0x5e8   : > { %5579 = vmatmul.bf16.gmra.mxu2 %v19066_v10  ;;  %5628 = vmatmul.bf16.gmra.mxu3 %v19067_v30  ;;  %v11794_v10 = vld [vmem:[%s18718_s1 + $0xee0] sm:$0xf]  ;;  %v12820_v30 = vld [vmem:[%s18718_s1 + $0xeec] sm:$0xf0] }
 0x5e9   : > { %v5382_v28 = vadd.f32 %v5381_v63, %v5333_v3  ;;  %v11538_v63 = vld [vmem:[%s18718_s1 + $0xce0] sm:$0xf]  ;;  %v12788_v3 = vld [vmem:[%s18718_s1 + $0xdec] sm:$0xf0]  ;;  %7424 = vmatpush.bf16.msra.mxu3 %v11923_v27 }
 0x5ea   : > { %v11539_v4 = vor.u32 %v12756_v39, %v11538_v63 }
 0x5eb   : > { %v16656_v40 = vadd.f32 %v5430_v42, %v5382_v28  ;;  %v5384_v57 = vpop.f32.mrf.mxu2  ;;  %v5433_v35 = vpop.f32.mrf.mxu3  ;;  %v11795_v42 = vor.u32 %v12820_v30, %v11794_v10  ;;  %v11667_v28 = vor.u32 %v12788_v3, %v11666_v53  ;;  %v19089_v53 = vld [vmem:[#allocation21_spill] sm:$0xff]  ;;  %v19090_v3 = vld [vmem:[#allocation22_spill] sm:$0xff] }
 0x5ec   : > { %v5286_v36 = vpop.f32.mrf.mxu0  ;;  %v5335_v61 = vpop.f32.mrf.mxu1  ;;  %7277 = vmatpush.bf16.msra.mxu0 %v11539_v4 }
 0x5ed   : > { %v5287_v62 = vadd.f32 %v5286_v36, %v19086_v16  ;;  %7375 = vmatpush.bf16.msra.mxu2 %v11795_v42  ;;  %7326 = vmatpush.bf16.msra.mxu1 %v11667_v28  ;;  %v11522_v28 = vld [vmem:[%s18718_s1 + $0xcc0] sm:$0xf] }
 0x5ef   : > { %v5336_v22 = vadd.f32 %v5335_v61, %v5287_v62  ;;  %5481 = vmatmul.bf16.gmra.mxu0 %v15786_v56  ;;  %5530 = vmatmul.bf16.gmra.mxu1 %v15788_v17 }
 0x5f1   : > { %v5385_v0 = vadd.f32 %v5384_v57, %v5336_v22  ;;  %v19087_v22 = vld [vmem:[#allocation47_spill] sm:$0xff] }
 0x5f3   : > { %v16685_v36 = vadd.f32 %v5433_v35, %v5385_v0  ;;  %v5386_v61 = vpop.f32.mrf.mxu2  ;;  %v5435_v16 = vpop.f32.mrf.mxu3  ;;  %v19088_v0 = vld [vmem:[#allocation48_spill] sm:$0xff] }
 0x5f4   : > { %v5288_v62 = vpop.f32.mrf.mxu0  ;;  %v5337_v57 = vpop.f32.mrf.mxu1 }
 0x5f5   : > { %v5289_v10 = vadd.f32 %v5288_v62, %v19087_v22  ;;  %v11906_v62 = vld [vmem:[%s18718_s1 + $0xfc0] sm:$0xf] }
 0x5f7   : > { %v5338_v30 = vadd.f32 %v5337_v57, %v5289_v10  ;;  %v12848_v57 = vld [vmem:[%s18718_s1 + $0xfcc] sm:$0xf0] }
 0x5f8   : > { %5584 = vmatmul.bf16.gmra.mxu2 %v19070_v33  ;;  %5633 = vmatmul.bf16.gmra.mxu3 %v19071_v48  ;;  %v11778_v33 = vld [vmem:[%s18718_s1 + $0xec0] sm:$0xf]  ;;  %v12816_v48 = vld [vmem:[%s18718_s1 + $0xecc] sm:$0xf0] }
 0x5f9   : > { %v5387_v63 = vadd.f32 %v5386_v61, %v5338_v30  ;;  %v11779_v61 = vor.u32 %v12816_v48, %v11778_v33  ;;  %v11907_v30 = vor.u32 %v12848_v57, %v11906_v62 }
 0x5fb   : > { %v16690_v39 = vadd.f32 %v5435_v16, %v5387_v63  ;;  %v5389_v42 = vpop.f32.mrf.mxu2  ;;  %v5438_v35 = vpop.f32.mrf.mxu3  ;;  %v12752_v16 = vld [vmem:[%s18718_s1 + $0xccc] sm:$0xf0]  ;;  %v11650_v63 = vld [vmem:[%s18718_s1 + $0xdc0] sm:$0xf]  ;;  %7376 = vmatpush.bf16.msra.mxu2 %v11779_v61  ;;  %7425 = vmatpush.bf16.msra.mxu3 %v11907_v30 }
 0x5fc   : > { %v5291_v51 = vpop.f32.mrf.mxu0  ;;  %v5340_v1 = vpop.f32.mrf.mxu1  ;;  %v11523_v10 = vor.u32 %v12752_v16, %v11522_v28 }
 0x5fd   : > { %v5292_v4 = vadd.f32 %v5291_v51, %v19088_v0  ;;  %v12784_v51 = vld [vmem:[%s18718_s1 + $0xdcc] sm:$0xf0] }
 0x5fe   : > { %7278 = vmatpush.bf16.msra.mxu0 %v11523_v10 }
 0x5ff   : > { %v5341_v27 = vadd.f32 %v5340_v1, %v5292_v4  ;;  %5486 = vmatmul.bf16.gmra.mxu0 %v19089_v53  ;;  %5535 = vmatmul.bf16.gmra.mxu1 %v19090_v3  ;;  %v11651_v1 = vor.u32 %v12784_v51, %v11650_v63  ;;  %v19092_v51 = vld [vmem:[#allocation53_spill] sm:$0xff] }
 0x601   : > { %v5390_v22 = vadd.f32 %v5389_v42, %v5341_v27  ;;  %7327 = vmatpush.bf16.msra.mxu1 %v11651_v1  ;;  %v19091_v27 = vld [vmem:[#allocation50_spill] sm:$0xff] }
 0x603   : > { %v16719_v0 = vadd.f32 %v5438_v35, %v5390_v22  ;;  %v5391_v4 = vpop.f32.mrf.mxu2  ;;  %v5440_v33 = vpop.f32.mrf.mxu3 }
 0x604   : > { %v5293_v48 = vpop.f32.mrf.mxu0  ;;  %v5342_v42 = vpop.f32.mrf.mxu1 }
 0x605   : > { %v5294_v28 = vadd.f32 %v5293_v48, %v19091_v27  ;;  %v12748_v48 = vld [vmem:[%s18718_s1 + $0xcac] sm:$0xf0] }
 0x607   : > { %v5343_v16 = vadd.f32 %v5342_v42, %v5294_v28  ;;  %v12844_v42 = vld [vmem:[%s18718_s1 + $0xfac] sm:$0xf0] }
 0x608   : > { %5745 = vmatmul.bf16.vlgmr.msrb.gmra.mxu2 %v15558_v46  ;;  %5794 = vmatmul.bf16.vlgmr.msrb.gmra.mxu3 %v15560_v12  ;;  %v19094_v46 = vld [vmem:[#allocation49_spill] sm:$0xff]  ;;  %v11762_v12 = vld [vmem:[%s18718_s1 + $0xea0] sm:$0xf] }
 0x609   : > { %v5392_v62 = vadd.f32 %v5391_v4, %v5343_v16  ;;  %v12812_v4 = vld [vmem:[%s18718_s1 + $0xeac] sm:$0xf0]  ;;  %v11634_v16 = vld [vmem:[%s18718_s1 + $0xda0] sm:$0xf] }
 0x60b   : > { %v16724_v57 = vadd.f32 %v5440_v33, %v5392_v62  ;;  %v5550_v61 = vpop.f32.mrf.mxu2  ;;  %v5599_v35 = vpop.f32.mrf.mxu3  ;;  %v11763_v33 = vor.u32 %v12812_v4, %v11762_v12  ;;  %v12780_v62 = vld [vmem:[%s18718_s1 + $0xdac] sm:$0xf0] }
 0x60c   : > { %v5452_v22 = vpop.f32.mrf.mxu0  ;;  %v5501_v63 = vpop.f32.mrf.mxu1  ;;  %v5551_v10 = vadd.f32 %v5550_v61, %v19092_v51  ;;  %v11635_v61 = vor.u32 %v12780_v62, %v11634_v16 }
 0x60d   : > { %v5453_v30 = vadd.f32 %v5452_v22, %v16475_v44  ;;  %v11506_v44 = vld [vmem:[%s18718_s1 + $0xca0] sm:$0xf]  ;;  %7377 = vmatpush.bf16.msra.mxu2 %v11763_v33 }
 0x60e   : > { %v16728_v18 = vadd.f32 %v5599_v35, %v5551_v10  ;;  %v11507_v27 = vor.u32 %v12748_v48, %v11506_v44  ;;  %v19095_v10 = vld [vmem:[#allocation54_spill] sm:$0xff]  ;;  %7328 = vmatpush.bf16.msra.mxu1 %v11635_v61  ;;  %v12744_v61 = vld [vmem:[%s18718_s1 + $0xc8c] sm:$0xf0] }
 0x60f   : > { %v16730_v1 = vadd.f32 %v5501_v63, %v5453_v30  ;;  %5647 = vmatmul.bf16.vlgmr.msrb.gmra.mxu0 %v15217_v2  ;;  %5696 = vmatmul.bf16.vlgmr.msrb.gmra.mxu1 %v19094_v46  ;;  %v11890_v2 = vld [vmem:[%s18718_s1 + $0xfa0] sm:$0xf] }
 0x610   : > { %v11891_v28 = vor.u32 %v12844_v42, %v11890_v2  ;;  %7279 = vmatpush.bf16.msra.mxu0 %v11507_v27  ;;  %v19097_v42 = vld [vmem:[#allocation57_spill] sm:$0xff] }
 0x611   : > { %19093 = vst [vmem:[#allocation52_spill] sm:$0xff] %v16730_v1 }
 0x612   : > { %7426 = vmatpush.bf16.msra.mxu3 %v11891_v28 }
 0x613   : > { %v5552_v35 = vpop.f32.mrf.mxu2  ;;  %v5601_v22 = vpop.f32.mrf.mxu3 }
 0x614   : > { %v5454_v63 = vpop.f32.mrf.mxu0  ;;  %v5503_v51 = vpop.f32.mrf.mxu1  ;;  %v5553_v30 = vadd.f32 %v5552_v35, %v19095_v10 }
 0x615   : > { %v5455_v46 = vadd.f32 %v5454_v63, %v16486_v25  ;;  %v11490_v25 = vld [vmem:[%s18718_s1 + $0xc80] sm:$0xf] }
 0x616   : > { %v16760_v12 = vadd.f32 %v5601_v22, %v5553_v30  ;;  %v11491_v35 = vor.u32 %v12744_v61, %v11490_v25  ;;  %v11618_v63 = vld [vmem:[%s18718_s1 + $0xd80] sm:$0xf]  ;;  %v19101_v61 = vld [vmem:[#allocation61_spill] sm:$0xff] }
 0x617   : > { %v16762_v4 = vadd.f32 %v5503_v51, %v5455_v46  ;;  %v12776_v51 = vld [vmem:[%s18718_s1 + $0xd8c] sm:$0xf0] }
 0x618   : > { %5750 = vmatmul.bf16.gmra.mxu2 %v15596_v24  ;;  %5799 = vmatmul.bf16.gmra.mxu3 %v15598_v14  ;;  %v11746_v14 = vld [vmem:[%s18718_s1 + $0xe80] sm:$0xf]  ;;  %v12808_v24 = vld [vmem:[%s18718_s1 + $0xe8c] sm:$0xf0]  ;;  %v11619_v10 = vor.u32 %v12776_v51, %v11618_v63 }
 0x619   : > { %19096 = vst [vmem:[#allocation55_spill] sm:$0xff] %v16762_v4  ;;  %7280 = vmatpush.bf16.msra.mxu0 %v11491_v35  ;;  %v12740_v63 = vld [vmem:[%s18718_s1 + $0xc6c] sm:$0xf0] }
 0x61a   : > { %7329 = vmatpush.bf16.msra.mxu1 %v11619_v10 }
 0x61b   : > { %v5555_v44 = vpop.f32.mrf.mxu2  ;;  %v5604_v33 = vpop.f32.mrf.mxu3 }
 0x61c   : > { %v5457_v48 = vpop.f32.mrf.mxu0  ;;  %v5506_v2 = vpop.f32.mrf.mxu1  ;;  %v5556_v27 = vadd.f32 %v5555_v44, %v19097_v42 }
 0x61d   : > { %v5458_v28 = vadd.f32 %v5457_v48, %v16509_v29  ;;  %v11747_v29 = vor.u32 %v12808_v24, %v11746_v14  ;;  %v19099_v48 = vld [vmem:[#allocation58_spill] sm:$0xff] }
 0x61e   : > { %v16768_v16 = vadd.f32 %v5604_v33, %v5556_v27 }
 0x61f   : > { %v16770_v62 = vadd.f32 %v5506_v2, %v5458_v28  ;;  %5652 = vmatmul.bf16.gmra.mxu0 %v15259_v41  ;;  %5701 = vmatmul.bf16.gmra.mxu1 %v15261_v52  ;;  %v11874_v41 = vld [vmem:[%s18718_s1 + $0xf80] sm:$0xf]  ;;  %v12840_v52 = vld [vmem:[%s18718_s1 + $0xf8c] sm:$0xf0] }
 0x620   : > { %v11875_v22 = vor.u32 %v12840_v52, %v11874_v41  ;;  %7378 = vmatpush.bf16.msra.mxu2 %v11747_v29 }
 0x621   : > { %19098 = vst [vmem:[#allocation56_spill] sm:$0xff] %v16770_v62 }
 0x622   : > { %7427 = vmatpush.bf16.msra.mxu3 %v11875_v22 }
 0x623   : > { %v5557_v30 = vpop.f32.mrf.mxu2  ;;  %v5606_v46 = vpop.f32.mrf.mxu3 }
 0x624   : > { %v5459_v44 = vpop.f32.mrf.mxu0  ;;  %v5508_v33 = vpop.f32.mrf.mxu1  ;;  %v5558_v2 = vadd.f32 %v5557_v30, %v19099_v48  ;;  %v11602_v30 = vld [vmem:[%s18718_s1 + $0xd60] sm:$0xf] }
 0x625   : > { %v5460_v42 = vadd.f32 %v5459_v44, %v16520_v8  ;;  %v11474_v8 = vld [vmem:[%s18718_s1 + $0xc60] sm:$0xf] }
 0x626   : > { %v16800_v27 = vadd.f32 %v5606_v46, %v5558_v2  ;;  %v11475_v51 = vor.u32 %v12740_v63, %v11474_v8  ;;  %v12772_v46 = vld [vmem:[%s18718_s1 + $0xd6c] sm:$0xf0] }
 0x627   : > { %v16802_v28 = vadd.f32 %v5508_v33, %v5460_v42  ;;  %v11603_v44 = vor.u32 %v12772_v46, %v11602_v30  ;;  %v19105_v8 = vld [vmem:[#allocation65_spill] sm:$0xff]  ;;  %v11586_v46 = vld [vmem:[%s18718_s1 + $0xd40] sm:$0xf] }
 0x628   : > { %5755 = vmatmul.bf16.gmra.mxu2 %v15634_v20  ;;  %5804 = vmatmul.bf16.gmra.mxu3 %v15636_v23  ;;  %v11730_v23 = vld [vmem:[%s18718_s1 + $0xe60] sm:$0xf]  ;;  %v12804_v20 = vld [vmem:[%s18718_s1 + $0xe6c] sm:$0xf0] }
 0x629   : > { %19100 = vst [vmem:[#allocation59_spill] sm:$0xff] %v16802_v28  ;;  %7281 = vmatpush.bf16.msra.mxu0 %v11475_v51  ;;  %7330 = vmatpush.bf16.msra.mxu1 %v11603_v44  ;;  %v12736_v51 = vld [vmem:[%s18718_s1 + $0xc4c] sm:$0xf0] }
 0x62a   : > { %v12768_v44 = vld [vmem:[%s18718_s1 + $0xd4c] sm:$0xf0] }
 0x62b   : > { %v5560_v14 = vpop.f32.mrf.mxu2  ;;  %v5609_v24 = vpop.f32.mrf.mxu3 }
 0x62c   : > { %v5462_v25 = vpop.f32.mrf.mxu0  ;;  %v5511_v29 = vpop.f32.mrf.mxu1  ;;  %v5561_v41 = vadd.f32 %v5560_v14, %v19101_v61  ;;  %v19103_v14 = vld [vmem:[#allocation62_spill] sm:$0xff] }
 0x62d   : > { %v5463_v52 = vadd.f32 %v5462_v25, %v16543_v19  ;;  %v11731_v19 = vor.u32 %v12804_v20, %v11730_v23 }
 0x62e   : > { %v16808_v35 = vadd.f32 %v5609_v24, %v5561_v41 }
 0x62f   : > { %v16810_v22 = vadd.f32 %v5511_v29, %v5463_v52  ;;  %5657 = vmatmul.bf16.gmra.mxu0 %v15301_v60  ;;  %5706 = vmatmul.bf16.gmra.mxu1 %v15303_v21  ;;  %v11858_v60 = vld [vmem:[%s18718_s1 + $0xf60] sm:$0xf]  ;;  %v12836_v21 = vld [vmem:[%s18718_s1 + $0xf6c] sm:$0xf0] }
 0x630   : > { %v11859_v10 = vor.u32 %v12836_v21, %v11858_v60  ;;  %7379 = vmatpush.bf16.msra.mxu2 %v11731_v19 }
 0x631   : > { %19102 = vst [vmem:[#allocation60_spill] sm:$0xff] %v16810_v22 }
 0x632   : > { %7428 = vmatpush.bf16.msra.mxu3 %v11859_v10 }
 0x633   : > { %v5562_v33 = vpop.f32.mrf.mxu2  ;;  %v5611_v48 = vpop.f32.mrf.mxu3 }
 0x634   : > { %v5464_v2 = vpop.f32.mrf.mxu0  ;;  %v5513_v42 = vpop.f32.mrf.mxu1  ;;  %v5563_v24 = vadd.f32 %v5562_v33, %v19103_v14  ;;  %v11587_v33 = vor.u32 %v12768_v44, %v11586_v46  ;;  %v12764_v46 = vld [vmem:[%s18718_s1 + $0xd2c] sm:$0xf0] }
 0x635   : > { %v5465_v25 = vadd.f32 %v5464_v2, %v16554_v6  ;;  %v11458_v6 = vld [vmem:[%s18718_s1 + $0xc40] sm:$0xf] }
 0x636   : > { %v16840_v29 = vadd.f32 %v5611_v48, %v5563_v24  ;;  %v11459_v10 = vor.u32 %v12736_v51, %v11458_v6  ;;  %v19107_v24 = vld [vmem:[#allocation66_spill] sm:$0xff]  ;;  %7331 = vmatpush.bf16.msra.mxu1 %v11587_v33 }
 0x637   : > { %v16842_v61 = vadd.f32 %v5513_v42, %v5465_v25 }
 0x638   : > { %5760 = vmatmul.bf16.gmra.mxu2 %v15672_v11  ;;  %5809 = vmatmul.bf16.gmra.mxu3 %v15674_v38  ;;  %v11714_v38 = vld [vmem:[%s18718_s1 + $0xe40] sm:$0xf]  ;;  %v12800_v11 = vld [vmem:[%s18718_s1 + $0xe4c] sm:$0xf0] }
 0x639   : > { %19104 = vst [vmem:[#allocation63_spill] sm:$0xff] %v16842_v61  ;;  %7282 = vmatpush.bf16.msra.mxu0 %v11459_v10 }
 0x63b   : > { %v5565_v41 = vpop.f32.mrf.mxu2  ;;  %v5614_v52 = vpop.f32.mrf.mxu3 }
 0x63c   : > { %v5467_v23 = vpop.f32.mrf.mxu0  ;;  %v5516_v20 = vpop.f32.mrf.mxu1  ;;  %v5566_v19 = vadd.f32 %v5565_v41, %v19105_v8 }
 0x63d   : > { %v5468_v63 = vadd.f32 %v5467_v23, %v16577_v45  ;;  %v11715_v45 = vor.u32 %v12800_v11, %v11714_v38  ;;  %v19109_v38 = vld [vmem:[#allocation69_spill] sm:$0xff] }
 0x63e   : > { %v16848_v60 = vadd.f32 %v5614_v52, %v5566_v19 }
 0x63f   : > { %v16850_v21 = vadd.f32 %v5516_v20, %v5468_v63  ;;  %5662 = vmatmul.bf16.gmra.mxu0 %v15343_v37  ;;  %5711 = vmatmul.bf16.gmra.mxu1 %v15345_v15  ;;  %v11842_v37 = vld [vmem:[%s18718_s1 + $0xf40] sm:$0xf]  ;;  %v12832_v15 = vld [vmem:[%s18718_s1 + $0xf4c] sm:$0xf0] }
 0x640   : > { %v11843_v30 = vor.u32 %v12832_v15, %v11842_v37  ;;  %7380 = vmatpush.bf16.msra.mxu2 %v11715_v45  ;;  %v12732_v37 = vld [vmem:[%s18718_s1 + $0xc2c] sm:$0xf0] }
 0x641   : > { %19106 = vst [vmem:[#allocation64_spill] sm:$0xff] %v16850_v21 }
 0x642   : > { %7429 = vmatpush.bf16.msra.mxu3 %v11843_v30  ;;  %v11570_v30 = vld [vmem:[%s18718_s1 + $0xd20] sm:$0xf] }
 0x643   : > { %v5567_v48 = vpop.f32.mrf.mxu2  ;;  %v5616_v2 = vpop.f32.mrf.mxu3  ;;  %v11571_v44 = vor.u32 %v12764_v46, %v11570_v30 }
 0x644   : > { %v5469_v42 = vpop.f32.mrf.mxu0  ;;  %v5518_v14 = vpop.f32.mrf.mxu1  ;;  %v5568_v25 = vadd.f32 %v5567_v48, %v19107_v24 }
 0x645   : > { %v5470_v41 = vadd.f32 %v5469_v42, %v16588_v49  ;;  %v11442_v49 = vld [vmem:[%s18718_s1 + $0xc20] sm:$0xf]  ;;  %7332 = vmatpush.bf16.msra.mxu1 %v11571_v44 }
 0x646   : > { %v16880_v52 = vadd.f32 %v5616_v2, %v5568_v25  ;;  %v11443_v15 = vor.u32 %v12732_v37, %v11442_v49 }
 0x647   : > { %v16882_v23 = vadd.f32 %v5518_v14, %v5470_v41  ;;  %v19111_v14 = vld [vmem:[#allocation70_spill] sm:$0xff] }
 0x648   : > { %5765 = vmatmul.bf16.gmra.mxu2 %v15710_v54  ;;  %5814 = vmatmul.bf16.gmra.mxu3 %v15712_v5  ;;  %v11698_v5 = vld [vmem:[%s18718_s1 + $0xe20] sm:$0xf]  ;;  %v12796_v54 = vld [vmem:[%s18718_s1 + $0xe2c] sm:$0xf0] }
 0x649   : > { %19108 = vst [vmem:[#allocation67_spill] sm:$0xff] %v16882_v23  ;;  %7283 = vmatpush.bf16.msra.mxu0 %v11443_v15  ;;  %v12760_v15 = vld [vmem:[%s18718_s1 + $0xd0c] sm:$0xf0] }
 0x64b   : > { %v5570_v20 = vpop.f32.mrf.mxu2  ;;  %v5619_v8 = vpop.f32.mrf.mxu3 }
 0x64c   : > { %v5472_v19 = vpop.f32.mrf.mxu0  ;;  %v5521_v63 = vpop.f32.mrf.mxu1  ;;  %v5571_v11 = vadd.f32 %v5570_v20, %v19109_v38 }
 0x64d   : > { %v5473_v6 = vadd.f32 %v5472_v19, %v16611_v26  ;;  %v11699_v26 = vor.u32 %v12796_v54, %v11698_v5 }
 0x64e   : > { %v16888_v45 = vadd.f32 %v5619_v8, %v5571_v11  ;;  %v19113_v11 = vld [vmem:[#allocation73_spill] sm:$0xff] }
 0x64f   : > { %v16890_v51 = vadd.f32 %v5521_v63, %v5473_v6  ;;  %5667 = vmatmul.bf16.gmra.mxu0 %v15385_v47  ;;  %5716 = vmatmul.bf16.gmra.mxu1 %v15387_v7  ;;  %v11826_v47 = vld [vmem:[%s18718_s1 + $0xf20] sm:$0xf]  ;;  %v12828_v7 = vld [vmem:[%s18718_s1 + $0xf2c] sm:$0xf0] }
 0x650   : > { %v11827_v10 = vor.u32 %v12828_v7, %v11826_v47  ;;  %7381 = vmatpush.bf16.msra.mxu2 %v11699_v26  ;;  %v12728_v26 = vld [vmem:[%s18718_s1 + $0xc0c] sm:$0xf0]  ;;  %v11554_v7 = vld [vmem:[%s18718_s1 + $0xd00] sm:$0xf] }
 0x651   : > { %19110 = vst [vmem:[#allocation68_spill] sm:$0xff] %v16890_v51 }
 0x652   : > { %7430 = vmatpush.bf16.msra.mxu3 %v11827_v10  ;;  %v11555_v10 = vor.u32 %v12760_v15, %v11554_v7  ;;  %v19119_v15 = vld [vmem:[#allocation80_spill] sm:$0xff] }
 0x653   : > { %v5572_v33 = vpop.f32.mrf.mxu2  ;;  %v5621_v48 = vpop.f32.mrf.mxu3 }
 0x654   : > { %v5474_v2 = vpop.f32.mrf.mxu0  ;;  %v5523_v42 = vpop.f32.mrf.mxu1  ;;  %v5573_v24 = vadd.f32 %v5572_v33, %v19111_v14  ;;  %7333 = vmatpush.bf16.msra.mxu1 %v11555_v10 }
 0x655   : > { %v5475_v25 = vadd.f32 %v5474_v2, %v16622_v9  ;;  %v11426_v9 = vld [vmem:[%s18718_s1 + $0xc00] sm:$0xf] }
 0x656   : > { %v16920_v41 = vadd.f32 %v5621_v48, %v5573_v24  ;;  %v11427_v37 = vor.u32 %v12728_v26, %v11426_v9  ;;  %v19115_v48 = vld [vmem:[#allocation74_spill] sm:$0xff] }
 0x657   : > { %v16922_v20 = vadd.f32 %v5523_v42, %v5475_v25 }
 0x658   : > { %5770 = vmatmul.bf16.gmra.mxu2 %v15748_v50  ;;  %5819 = vmatmul.bf16.gmra.mxu3 %v15750_v34  ;;  %v11682_v34 = vld [vmem:[%s18718_s1 + $0xe00] sm:$0xf]  ;;  %v12792_v50 = vld [vmem:[%s18718_s1 + $0xe0c] sm:$0xf0] }
 0x659   : > { %19112 = vst [vmem:[#allocation71_spill] sm:$0xff] %v16922_v20  ;;  %7284 = vmatpush.bf16.msra.mxu0 %v11427_v37  ;;  %v12916_v37 = vld [vmem:[%s18718_s1 + $0x11ec] sm:$0xf0] }
 0x65b   : > { %v5575_v8 = vpop.f32.mrf.mxu2  ;;  %v5624_v19 = vpop.f32.mrf.mxu3 }
 0x65c   : > { %v5477_v63 = vpop.f32.mrf.mxu0  ;;  %v5526_v38 = vpop.f32.mrf.mxu1  ;;  %v5576_v6 = vadd.f32 %v5575_v8, %v19113_v11 }
 0x65d   : > { %v5478_v5 = vadd.f32 %v5477_v63, %v16645_v55  ;;  %v11683_v55 = vor.u32 %v12792_v50, %v11682_v34  ;;  %v12884_v50 = vld [vmem:[%s18718_s1 + $0x10ec] sm:$0xf0] }
 0x65e   : > { %v16928_v54 = vadd.f32 %v5624_v19, %v5576_v6 }
 0x65f   : > { %v16930_v49 = vadd.f32 %v5526_v38, %v5478_v5  ;;  %5672 = vmatmul.bf16.gmra.mxu0 %v15427_v32  ;;  %5721 = vmatmul.bf16.gmra.mxu1 %v15429_v58  ;;  %v11810_v32 = vld [vmem:[%s18718_s1 + $0xf00] sm:$0xf]  ;;  %v12824_v58 = vld [vmem:[%s18718_s1 + $0xf0c] sm:$0xf0] }
 0x660   : > { %v11811_v47 = vor.u32 %v12824_v58, %v11810_v32  ;;  %7382 = vmatpush.bf16.msra.mxu2 %v11683_v55  ;;  %v19117_v38 = vld [vmem:[#allocation77_spill] sm:$0xff]  ;;  %v12178_v58 = vld [vmem:[%s18718_s1 + $0x11e0] sm:$0xf] }
 0x661   : > { %19114 = vst [vmem:[#allocation72_spill] sm:$0xff] %v16930_v49  ;;  %v12723_v49 = vld [vmem:[#allocation2 + $0x1c4] sm:$0xf0] }
 0x662   : > { %7431 = vmatpush.bf16.msra.mxu3 %v11811_v47 }
 0x663   : > { %v5577_v30 = vpop.f32.mrf.mxu2  ;;  %v5626_v46 = vpop.f32.mrf.mxu3 }
 0x664   : > { %v5479_v44 = vpop.f32.mrf.mxu0  ;;  %v5528_v33 = vpop.f32.mrf.mxu1  ;;  %v5578_v2 = vadd.f32 %v5577_v30, %v19115_v48  ;;  %v12179_v30 = vor.u32 %v12916_v37, %v12178_v58  ;;  %v19123_v37 = vld [vmem:[#allocation84_spill] sm:$0xff] }
 0x665   : > { %v5480_v42 = vadd.f32 %v5479_v44, %v16656_v40  ;;  %v12050_v40 = vld [vmem:[%s18718_s1 + $0x10e0] sm:$0xf] }
 0x666   : > { %v16960_v14 = vadd.f32 %v5626_v46, %v5578_v2  ;;  %v12051_v9 = vor.u32 %v12884_v50, %v12050_v40  ;;  %7522 = vmatpush.bf16.msrb.mxu1 %v12179_v30  ;;  %v12679_v40 = vld [vmem:[#allocation2 + $0x6c] sm:$0xf] }
 0x667   : > { %v16962_v24 = vadd.f32 %v5528_v33, %v5480_v42 }
 0x668   : > { %5775 = vmatmul.bf16.gmra.mxu2 %v15786_v56  ;;  %5824 = vmatmul.bf16.gmra.mxu3 %v15788_v17  ;;  %v12754_v17 = vld [vmem:[%s18718_s1 + $0xce4] sm:$0xf]  ;;  %v11540_v56 = vld [vmem:[%s18718_s1 + $0xcf0] sm:$0xf0] }
 0x669   : > { %19116 = vst [vmem:[#allocation75_spill] sm:$0xff] %v16962_v24  ;;  %7473 = vmatpush.bf16.msrb.mxu0 %v12051_v9  ;;  %v11402_v24 = vld [vmem:[#allocation2 + $0x1b0] sm:$0xf] }
 0x66b   : > { %v5580_v25 = vpop.f32.mrf.mxu2  ;;  %v5629_v8 = vpop.f32.mrf.mxu3 }
 0x66c   : > { %v5482_v19 = vpop.f32.mrf.mxu0  ;;  %v5531_v63 = vpop.f32.mrf.mxu1  ;;  %v5581_v11 = vadd.f32 %v5580_v25, %v19117_v38 }
 0x66d   : > { %v5483_v6 = vadd.f32 %v5482_v19, %v16685_v36  ;;  %v11543_v36 = vor.u32 %v12754_v17, %v11540_v56  ;;  %v11652_v17 = vld [vmem:[%s18718_s1 + $0xdd0] sm:$0xf0]  ;;  %v12682_v56 = vld [vmem:[#allocation2 + $0x7c] sm:$0xf0] }
 0x66e   : > { %v16968_v5 = vadd.f32 %v5629_v8, %v5581_v11  ;;  %v19121_v8 = vld [vmem:[#allocation83_spill] sm:$0xff]  ;;  %v11242_v11 = vld [vmem:[#allocation2 + $0x68] sm:$0xf] }
 0x66f   : > { %v16970_v34 = vadd.f32 %v5531_v63, %v5483_v6  ;;  %5677 = vmatmul.bf16.gmra.mxu0 %v15469_v31  ;;  %5726 = vmatmul.bf16.gmra.mxu1 %v15471_v59  ;;  %v12786_v31 = vld [vmem:[%s18718_s1 + $0xde4] sm:$0xf]  ;;  %v11668_v59 = vld [vmem:[%s18718_s1 + $0xdf0] sm:$0xf0] }
 0x670   : > { %v11671_v55 = vor.u32 %v12786_v31, %v11668_v59  ;;  %7571 = vmatpush.bf16.msrb.mxu2 %v11543_v36  ;;  %v11244_v36 = vld [vmem:[#allocation2 + $0x80] sm:$0xf0] }
 0x671   : > { %19118 = vst [vmem:[#allocation76_spill] sm:$0xff] %v16970_v34 }
 0x672   : > { %7620 = vmatpush.bf16.msrb.mxu3 %v11671_v55  ;;  %v12162_v55 = vld [vmem:[%s18718_s1 + $0x11c0] sm:$0xf] }
 0x673   : > { %v5582_v26 = vpop.f32.mrf.mxu2  ;;  %v5631_v32 = vpop.f32.mrf.mxu3 }
 0x674   : > { %v5484_v47 = vpop.f32.mrf.mxu0  ;;  %v5533_v7 = vpop.f32.mrf.mxu1  ;;  %v5583_v10 = vadd.f32 %v5582_v26, %v19119_v15  ;;  %v12912_v26 = vld [vmem:[%s18718_s1 + $0x11cc] sm:$0xf0]  ;;  %v17041_v15 = vor.u32 %v12679_v40, %v11244_v36  ;;  %v12778_v36 = vld [vmem:[%s18718_s1 + $0xda4] sm:$0xf] }
 0x675   : > { %v5485_v46 = vadd.f32 %v5484_v47, %v16690_v39 }
 0x676   : > { %v17000_v44 = vadd.f32 %v5631_v32, %v5583_v10  ;;  %19125 = vst [vmem:[#allocation20_spill] sm:$0xff] %v17041_v15  ;;  %v12163_v10 = vor.u32 %v12912_v26, %v12162_v55  ;;  %v11268_v55 = vld [vmem:[#allocation2 + $0xb0] sm:$0xf0] }
 0x677   : > { %v17002_v33 = vadd.f32 %v5533_v7, %v5485_v46  ;;  %v17039_v7 = vor.u32 %v12682_v56, %v11242_v11  ;;  %v12018_v56 = vld [vmem:[%s18718_s1 + $0x10a0] sm:$0xf] }
 0x678   : > { %5780 = vmatmul.bf16.gmra.mxu2 %v19089_v53  ;;  %5829 = vmatmul.bf16.gmra.mxu3 %v19090_v3  ;;  %v12750_v53 = vld [vmem:[%s18718_s1 + $0xcc4] sm:$0xf]  ;;  %v11524_v3 = vld [vmem:[%s18718_s1 + $0xcd0] sm:$0xf0] }
 0x679   : > { %19120 = vst [vmem:[#allocation81_spill] sm:$0xff] %v17002_v33  ;;  %v11527_v6 = vor.u32 %v12750_v53, %v11524_v3  ;;  %7523 = vmatpush.bf16.msrb.mxu1 %v12163_v10  ;;  %v12146_v10 = vld [vmem:[%s18718_s1 + $0x11a0] sm:$0xf] }
 0x67a   : > { %19124 = vst [vmem:[#allocation19_spill] sm:$0xff] %v17039_v7 }
 0x67b   : > { %v5585_v48 = vpop.f32.mrf.mxu2  ;;  %v5634_v2 = vpop.f32.mrf.mxu3  ;;  %7572 = vmatpush.bf16.msrb.mxu2 %v11527_v6 }
 0x67c   : > { %v5487_v42 = vpop.f32.mrf.mxu0  ;;  %v5536_v25 = vpop.f32.mrf.mxu1  ;;  %v5586_v19 = vadd.f32 %v5585_v48, %v19121_v8  ;;  %v11236_v8 = vld [vmem:[#allocation2 + $0x78] sm:$0xf0] }
 0x67d   : > { %v5488_v63 = vadd.f32 %v5487_v42, %v16719_v0  ;;  %v12034_v0 = vld [vmem:[%s18718_s1 + $0x10c0] sm:$0xf]  ;;  %v12681_v42 = vld [vmem:[#allocation2 + $0x74] sm:$0xf0] }
 0x67e   : > { %v17008_v38 = vadd.f32 %v5634_v2, %v5586_v19  ;;  %v11234_v2 = vld [vmem:[#allocation2 + $0x60] sm:$0xf] }
 0x67f   : > { %v17010_v39 = vadd.f32 %v5536_v25, %v5488_v63  ;;  %5682 = vmatmul.bf16.gmra.mxu0 %v19038_v13  ;;  %5731 = vmatmul.bf16.gmra.mxu1 %v19039_v43  ;;  %v12880_v13 = vld [vmem:[%s18718_s1 + $0x10cc] sm:$0xf0]  ;;  %v12782_v43 = vld [vmem:[%s18718_s1 + $0xdc4] sm:$0xf]  ;;  %v17050_v19 = vor.u32 %v12681_v42, %v11234_v2 }
 0x680   : > { %v12035_v50 = vor.u32 %v12880_v13, %v12034_v0  ;;  %v11655_v31 = vor.u32 %v12782_v43, %v11652_v17  ;;  %v12678_v25 = vld [vmem:[#allocation2 + $0x64] sm:$0xf]  ;;  %v11266_v13 = vld [vmem:[#allocation2 + $0x98] sm:$0xf]  ;;  %v11508_v17 = vld [vmem:[%s18718_s1 + $0xcb0] sm:$0xf0] }
 0x681   : > { %19122 = vst [vmem:[#allocation82_spill] sm:$0xff] %v17010_v39  ;;  %v17052_v63 = vor.u32 %v12678_v25, %v11236_v8  ;;  %v12746_v43 = vld [vmem:[%s18718_s1 + $0xca4] sm:$0xf] }
 0x682   : > { %7474 = vmatpush.bf16.msrb.mxu0 %v12035_v50  ;;  %7621 = vmatpush.bf16.msrb.mxu3 %v11655_v31  ;;  %19127 = vst [vmem:[#allocation4_spill] sm:$0xff] %v17050_v19  ;;  %v11511_v40 = vor.u32 %v12746_v43, %v11508_v17  ;;  %v11636_v50 = vld [vmem:[%s18718_s1 + $0xdb0] sm:$0xf0]  ;;  %v11260_v43 = vld [vmem:[#allocation2 + $0xa8] sm:$0xf0] }
 0x683   : > { %v5587_v59 = vpop.f32.mrf.mxu2  ;;  %v5636_v9 = vpop.f32.mrf.mxu3  ;;  %19128 = vst [vmem:[#allocation38_spill] sm:$0xff] %v17052_v63 }
 0x684   : > { %v5489_v32 = vpop.f32.mrf.mxu0  ;;  %v5538_v58 = vpop.f32.mrf.mxu1  ;;  %v5588_v47 = vadd.f32 %v5587_v59, %v19123_v37  ;;  %v12688_v59 = vld [vmem:[#allocation2 + $0xac] sm:$0xf0]  ;;  %7573 = vmatpush.bf16.msrb.mxu2 %v11511_v40 }
 0x685   : > { %v5490_v30 = vadd.f32 %v5489_v32, %v16724_v57  ;;  %v11639_v32 = vor.u32 %v12778_v36, %v11636_v50  ;;  %v17083_v25 = vor.u32 %v12688_v59, %v11266_v13 }
 0x686   : > { %v17044_v46 = vadd.f32 %v5636_v9, %v5588_v47  ;;  %v12685_v9 = vld [vmem:[#allocation2 + $0x9c] sm:$0xf] }
 0x687   : > { %v17046_v48 = vadd.f32 %v5538_v58, %v5490_v30  ;;  %7622 = vmatpush.bf16.msrb.mxu3 %v11639_v32  ;;  %v12908_v30 = vld [vmem:[%s18718_s1 + $0x11ac] sm:$0xf0]  ;;  %19130 = vst [vmem:[#allocation40_spill] sm:$0xff] %v17083_v25  ;;  %v17085_v8 = vor.u32 %v12685_v9, %v11268_v55  ;;  %v11290_v9 = vld [vmem:[#allocation2 + $0xc8] sm:$0xf] }
 0x688   : > { %7383 = vmatmul.bf16.vlgmr.msra.gmra.mxu2 %v17039_v7  ;;  %7432 = vmatmul.bf16.vlgmr.msra.gmra.mxu3 %v17041_v15  ;;  %v12742_v55 = vld [vmem:[%s18718_s1 + $0xc84] sm:$0xf]  ;;  %v12002_v32 = vld [vmem:[%s18718_s1 + $0x1080] sm:$0xf] }
 0x689   : > { %19126 = vst [vmem:[#allocation3_spill] sm:$0xff] %v17046_v48 }
 0x68a   : > { %19131 = vst [vmem:[#allocation41_spill] sm:$0xff] %v17085_v8 }
 0x68b   : > { %v5746_v11 = vpop.f32.mrf.mxu2  ;;  %v5795_v53 = vpop.f32.mrf.mxu3 }
 0x68c   : > { %v5648_v57 = vpop.f32.mrf.mxu0  ;;  %v5697_v3 = vpop.f32.mrf.mxu1 }
 0x68d   : > { %v5649_v0 = vadd.f32 %v5648_v57, %v16728_v18  ;;  %v12876_v18 = vld [vmem:[%s18718_s1 + $0x10ac] sm:$0xf0] }
 0x68e   : > { %v12019_v26 = vor.u32 %v12876_v18, %v12018_v56 }
 0x68f   : > { %v5698_v6 = vadd.f32 %v5697_v3, %v5649_v0  ;;  %7285 = vmatmul.bf16.vlgmr.msra.gmra.mxu0 %v17050_v19  ;;  %7334 = vmatmul.bf16.vlgmr.msra.gmra.mxu1 %v17052_v63  ;;  %v11258_v3 = vld [vmem:[#allocation2 + $0x90] sm:$0xf]  ;;  %v12687_v0 = vld [vmem:[#allocation2 + $0xa4] sm:$0xf0] }
 0x690   : > { %7475 = vmatpush.bf16.msrb.mxu0 %v12019_v26  ;;  %v17092_v13 = vor.u32 %v12687_v0, %v11258_v3  ;;  %v11492_v26 = vld [vmem:[%s18718_s1 + $0xc90] sm:$0xf0] }
 0x691   : > { %v5747_v31 = vadd.f32 %v5746_v11, %v5698_v6  ;;  %v12147_v11 = vor.u32 %v12908_v30, %v12146_v10  ;;  %v12684_v6 = vld [vmem:[#allocation2 + $0x94] sm:$0xf] }
 0x692   : > { %19133 = vst [vmem:[#allocation43_spill] sm:$0xff] %v17092_v13  ;;  %v17094_v40 = vor.u32 %v12684_v6, %v11260_v43  ;;  %v11620_v10 = vld [vmem:[%s18718_s1 + $0xd90] sm:$0xf0]  ;;  %v12130_v43 = vld [vmem:[%s18718_s1 + $0x1180] sm:$0xf] }
 0x693   : > { %v17075_v58 = vadd.f32 %v5795_v53, %v5747_v31  ;;  %v5748_v37 = vpop.f32.mrf.mxu2  ;;  %v5797_v47 = vpop.f32.mrf.mxu3  ;;  %7524 = vmatpush.bf16.msrb.mxu1 %v12147_v11  ;;  %v11292_v11 = vld [vmem:[#allocation2 + $0xe0] sm:$0xf0] }
 0x694   : > { %v5650_v2 = vpop.f32.mrf.mxu0  ;;  %v5699_v42 = vpop.f32.mrf.mxu1  ;;  %19134 = vst [vmem:[#allocation44_spill] sm:$0xff] %v17094_v40 }
 0x695   : > { %19129 = vst [vmem:[#allocation39_spill] sm:$0xff] %v17075_v58  ;;  %v5651_v53 = vadd.f32 %v5650_v2, %v16760_v12  ;;  %v12694_v2 = vld [vmem:[#allocation2 + $0xdc] sm:$0xf0] }
 0x697   : > { %v5700_v57 = vadd.f32 %v5699_v42, %v5651_v53  ;;  %v12691_v42 = vld [vmem:[#allocation2 + $0xcc] sm:$0xf] }
 0x698   : > { %7388 = vmatmul.bf16.gmra.mxu2 %v17083_v25  ;;  %7437 = vmatmul.bf16.gmra.mxu3 %v17085_v8 }
 0x699   : > { %v5749_v17 = vadd.f32 %v5748_v37, %v5700_v57  ;;  %v11495_v37 = vor.u32 %v12742_v55, %v11492_v26  ;;  %v11282_v26 = vld [vmem:[#allocation2 + $0xc0] sm:$0xf] }
 0x69b   : > { %v17090_v56 = vadd.f32 %v5797_v47, %v5749_v17  ;;  %v5751_v18 = vpop.f32.mrf.mxu2  ;;  %v5800_v36 = vpop.f32.mrf.mxu3  ;;  %v12774_v47 = vld [vmem:[%s18718_s1 + $0xd84] sm:$0xf]  ;;  %7574 = vmatpush.bf16.msrb.mxu2 %v11495_v37  ;;  %v12904_v17 = vld [vmem:[%s18718_s1 + $0x118c] sm:$0xf0] }
 0x69c   : > { %v5653_v12 = vpop.f32.mrf.mxu0  ;;  %v5702_v50 = vpop.f32.mrf.mxu1  ;;  %v11623_v57 = vor.u32 %v12774_v47, %v11620_v10  ;;  %v12690_v37 = vld [vmem:[#allocation2 + $0xc4] sm:$0xf] }
 0x69d   : > { %19132 = vst [vmem:[#allocation42_spill] sm:$0xff] %v17090_v56  ;;  %v5654_v31 = vadd.f32 %v5653_v12, %v16768_v16  ;;  %v12872_v16 = vld [vmem:[%s18718_s1 + $0x108c] sm:$0xf0] }
 0x69e   : > { %v12003_v53 = vor.u32 %v12872_v16, %v12002_v32  ;;  %7623 = vmatpush.bf16.msrb.mxu3 %v11623_v57  ;;  %v12693_v32 = vld [vmem:[#allocation2 + $0xd4] sm:$0xf0]  ;;  %v11284_v16 = vld [vmem:[#allocation2 + $0xd8] sm:$0xf0] }
 0x69f   : > { %v5703_v59 = vadd.f32 %v5702_v50, %v5654_v31  ;;  %7290 = vmatmul.bf16.gmra.mxu0 %v17092_v13  ;;  %7339 = vmatmul.bf16.gmra.mxu1 %v17094_v40  ;;  %v17125_v50 = vor.u32 %v12694_v2, %v11290_v9  ;;  %v17127_v31 = vor.u32 %v12691_v42, %v11292_v11 }
 0x6a0   : > { %7476 = vmatpush.bf16.msrb.mxu0 %v12003_v53  ;;  %v17134_v9 = vor.u32 %v12693_v32, %v11282_v26  ;;  %v12697_v26 = vld [vmem:[#allocation2 + $0xfc] sm:$0xf]  ;;  %v11316_v32 = vld [vmem:[#allocation2 + $0x110] sm:$0xf0] }
 0x6a1   : > { %v5752_v30 = vadd.f32 %v5751_v18, %v5703_v59 }
 0x6a2   : > { %19137 = vst [vmem:[#allocation47_spill] sm:$0xff] %v17134_v9 }
 0x6a3   : > { %v17117_v3 = vadd.f32 %v5800_v36, %v5752_v30  ;;  %v5753_v0 = vpop.f32.mrf.mxu2  ;;  %v5802_v6 = vpop.f32.mrf.mxu3  ;;  %v12131_v36 = vor.u32 %v12904_v17, %v12130_v43  ;;  %v17136_v30 = vor.u32 %v12690_v37, %v11284_v16  ;;  %v11314_v43 = vld [vmem:[#allocation2 + $0xf8] sm:$0xf]  ;;  %v11986_v17 = vld [vmem:[%s18718_s1 + $0x1060] sm:$0xf] }
 0x6a4   : > { %v5655_v18 = vpop.f32.mrf.mxu0  ;;  %v5704_v12 = vpop.f32.mrf.mxu1 }
 0x6a5   : > { %19135 = vst [vmem:[#allocation45_spill] sm:$0xff] %v17117_v3  ;;  %v5656_v59 = vadd.f32 %v5655_v18, %v16800_v27  ;;  %7525 = vmatpush.bf16.msrb.mxu1 %v12131_v36  ;;  %v11604_v36 = vld [vmem:[%s18718_s1 + $0xd70] sm:$0xf0] }
 0x6a6   : > { %19138 = vst [vmem:[#allocation48_spill] sm:$0xff] %v17136_v30 }
 0x6a7   : > { %v5705_v55 = vadd.f32 %v5704_v12, %v5656_v59  ;;  %v12770_v12 = vld [vmem:[%s18718_s1 + $0xd64] sm:$0xf] }
 0x6a8   : > { %7393 = vmatmul.bf16.gmra.mxu2 %v17125_v50  ;;  %7442 = vmatmul.bf16.gmra.mxu3 %v17127_v31  ;;  %v11607_v16 = vor.u32 %v12770_v12, %v11604_v36  ;;  %v11306_v12 = vld [vmem:[#allocation2 + $0xf0] sm:$0xf]  ;;  %v12699_v36 = vld [vmem:[#allocation2 + $0x104] sm:$0xf0] }
 0x6a9   : > { %v5754_v47 = vadd.f32 %v5753_v0, %v5705_v55  ;;  %v12738_v0 = vld [vmem:[%s18718_s1 + $0xc64] sm:$0xf]  ;;  %v12700_v55 = vld [vmem:[#allocation2 + $0x10c] sm:$0xf0] }
 0x6aa   : > { %7624 = vmatpush.bf16.msrb.mxu3 %v11607_v16 }
 0x6ab   : > { %v17132_v10 = vadd.f32 %v5802_v6, %v5754_v47  ;;  %v5756_v2 = vpop.f32.mrf.mxu2  ;;  %v5805_v42 = vpop.f32.mrf.mxu3  ;;  %v11476_v6 = vld [vmem:[%s18718_s1 + $0xc70] sm:$0xf0] }
 0x6ac   : > { %v5658_v27 = vpop.f32.mrf.mxu0  ;;  %v5707_v11 = vpop.f32.mrf.mxu1  ;;  %v11479_v18 = vor.u32 %v12738_v0, %v11476_v6  ;;  %v17167_v6 = vor.u32 %v12700_v55, %v11314_v43  ;;  %v17176_v43 = vor.u32 %v12699_v36, %v11306_v12  ;;  %v11588_v12 = vld [vmem:[%s18718_s1 + $0xd50] sm:$0xf0] }
 0x6ad   : > { %19136 = vst [vmem:[#allocation46_spill] sm:$0xff] %v17132_v10  ;;  %v5659_v53 = vadd.f32 %v5658_v27, %v16808_v35  ;;  %v12868_v35 = vld [vmem:[%s18718_s1 + $0x106c] sm:$0xf0] }
 0x6ae   : > { %v11987_v37 = vor.u32 %v12868_v35, %v11986_v17  ;;  %7575 = vmatpush.bf16.msrb.mxu2 %v11479_v18  ;;  %v17169_v17 = vor.u32 %v12697_v26, %v11316_v32  ;;  %19141 = vst [vmem:[#allocation50_spill] sm:$0xff] %v17176_v43 }
 0x6af   : > { %v5708_v57 = vadd.f32 %v5707_v11, %v5659_v53  ;;  %7295 = vmatmul.bf16.gmra.mxu0 %v17134_v9  ;;  %7344 = vmatmul.bf16.gmra.mxu1 %v17136_v30  ;;  %v12114_v53 = vld [vmem:[%s18718_s1 + $0x1160] sm:$0xf] }
 0x6b0   : > { %7477 = vmatpush.bf16.msrb.mxu0 %v11987_v37  ;;  %v11308_v37 = vld [vmem:[#allocation2 + $0x108] sm:$0xf0] }
 0x6b1   : > { %v5757_v59 = vadd.f32 %v5756_v2, %v5708_v57  ;;  %v12900_v2 = vld [vmem:[%s18718_s1 + $0x116c] sm:$0xf0] }
 0x6b3   : > { %v17159_v47 = vadd.f32 %v5805_v42, %v5757_v59  ;;  %v5758_v27 = vpop.f32.mrf.mxu2  ;;  %v5807_v11 = vpop.f32.mrf.mxu3  ;;  %v12115_v42 = vor.u32 %v12900_v2, %v12114_v53  ;;  %v12696_v59 = vld [vmem:[#allocation2 + $0xf4] sm:$0xf] }
 0x6b4   : > { %v5660_v57 = vpop.f32.mrf.mxu0  ;;  %v5709_v0 = vpop.f32.mrf.mxu1  ;;  %v17178_v55 = vor.u32 %v12696_v59, %v11308_v37  ;;  %v12706_v59 = vld [vmem:[#allocation2 + $0x13c] sm:$0xf0]  ;;  %v12703_v37 = vld [vmem:[#allocation2 + $0x12c] sm:$0xf] }
 0x6b5   : > { %19139 = vst [vmem:[#allocation21_spill] sm:$0xff] %v17159_v47  ;;  %v5661_v18 = vadd.f32 %v5660_v57, %v16840_v29  ;;  %7526 = vmatpush.bf16.msrb.mxu1 %v12115_v42  ;;  %v11970_v42 = vld [vmem:[%s18718_s1 + $0x1040] sm:$0xf] }
 0x6b6   : > { %19142 = vst [vmem:[#allocation53_spill] sm:$0xff] %v17178_v55 }
 0x6b7   : > { %v5710_v35 = vadd.f32 %v5709_v0, %v5661_v18  ;;  %v11338_v0 = vld [vmem:[#allocation2 + $0x128] sm:$0xf] }
 0x6b8   : > { %7398 = vmatmul.bf16.gmra.mxu2 %v17167_v6  ;;  %7447 = vmatmul.bf16.gmra.mxu3 %v17169_v17  ;;  %v17209_v3 = vor.u32 %v12706_v59, %v11338_v0 }
 0x6b9   : > { %v5759_v16 = vadd.f32 %v5758_v27, %v5710_v35  ;;  %v12734_v27 = vld [vmem:[%s18718_s1 + $0xc44] sm:$0xf] }
 0x6ba   : > { %v12766_v35 = vld [vmem:[%s18718_s1 + $0xd44] sm:$0xf] }
 0x6bb   : > { %v17174_v47 = vadd.f32 %v5807_v11, %v5759_v16  ;;  %v5761_v26 = vpop.f32.mrf.mxu2  ;;  %v5810_v32 = vpop.f32.mrf.mxu3  ;;  %v11460_v11 = vld [vmem:[%s18718_s1 + $0xc50] sm:$0xf0]  ;;  %v11340_v16 = vld [vmem:[#allocation2 + $0x140] sm:$0xf0] }
 0x6bc   : > { %v5663_v29 = vpop.f32.mrf.mxu0  ;;  %v5712_v53 = vpop.f32.mrf.mxu1  ;;  %v11463_v18 = vor.u32 %v12734_v27, %v11460_v11 }
 0x6bd   : > { %19140 = vst [vmem:[#allocation22_spill] sm:$0xff] %v17174_v47  ;;  %v5664_v2 = vadd.f32 %v5663_v29, %v16848_v60  ;;  %v12864_v60 = vld [vmem:[%s18718_s1 + $0x104c] sm:$0xf0]  ;;  %v12098_v47 = vld [vmem:[%s18718_s1 + $0x1140] sm:$0xf] }
 0x6be   : > { %v11971_v29 = vor.u32 %v12864_v60, %v11970_v42  ;;  %7576 = vmatpush.bf16.msrb.mxu2 %v11463_v18  ;;  %v17211_v42 = vor.u32 %v12703_v37, %v11340_v16 }
 0x6bf   : > { %v5713_v57 = vadd.f32 %v5712_v53, %v5664_v2  ;;  %7300 = vmatmul.bf16.gmra.mxu0 %v17176_v43  ;;  %7349 = vmatmul.bf16.gmra.mxu1 %v17178_v55  ;;  %v11591_v53 = vor.u32 %v12766_v35, %v11588_v12  ;;  %v11330_v35 = vld [vmem:[#allocation2 + $0x120] sm:$0xf]  ;;  %v12705_v12 = vld [vmem:[#allocation2 + $0x134] sm:$0xf0] }
 0x6c0   : > { %7478 = vmatpush.bf16.msrb.mxu0 %v11971_v29  ;;  %v11332_v29 = vld [vmem:[#allocation2 + $0x138] sm:$0xf0]  ;;  %v17218_v0 = vor.u32 %v12705_v12, %v11330_v35  ;;  %v11572_v35 = vld [vmem:[%s18718_s1 + $0xd30] sm:$0xf0] }
 0x6c1   : > { %v5762_v36 = vadd.f32 %v5761_v26, %v5713_v57  ;;  %7625 = vmatpush.bf16.msrb.mxu3 %v11591_v53  ;;  %v12896_v26 = vld [vmem:[%s18718_s1 + $0x114c] sm:$0xf0] }
 0x6c2   : > { %19145 = vst [vmem:[#allocation57_spill] sm:$0xff] %v17218_v0 }
 0x6c3   : > { %v17201_v2 = vadd.f32 %v5810_v32, %v5762_v36  ;;  %v5763_v27 = vpop.f32.mrf.mxu2  ;;  %v5812_v11 = vpop.f32.mrf.mxu3  ;;  %v12099_v32 = vor.u32 %v12896_v26, %v12098_v47  ;;  %v12702_v36 = vld [vmem:[#allocation2 + $0x124] sm:$0xf] }
 0x6c4   : > { %v5665_v57 = vpop.f32.mrf.mxu0  ;;  %v5714_v10 = vpop.f32.mrf.mxu1  ;;  %v17220_v59 = vor.u32 %v12702_v36, %v11332_v29  ;;  %v12712_v36 = vld [vmem:[#allocation2 + $0x16c] sm:$0xf0]  ;;  %v12709_v29 = vld [vmem:[#allocation2 + $0x15c] sm:$0xf] }
 0x6c5   : > { %19143 = vst [vmem:[#allocation49_spill] sm:$0xff] %v17201_v2  ;;  %v5666_v18 = vadd.f32 %v5665_v57, %v16880_v52  ;;  %7527 = vmatpush.bf16.msrb.mxu1 %v12099_v32  ;;  %v11362_v57 = vld [vmem:[#allocation2 + $0x158] sm:$0xf]  ;;  %v11954_v32 = vld [vmem:[%s18718_s1 + $0x1020] sm:$0xf] }
 0x6c6   : > { %19146 = vst [vmem:[#allocation58_spill] sm:$0xff] %v17220_v59  ;;  %v17251_v58 = vor.u32 %v12712_v36, %v11362_v57 }
 0x6c7   : > { %v5715_v60 = vadd.f32 %v5714_v10, %v5666_v18 }
 0x6c8   : > { %7403 = vmatmul.bf16.gmra.mxu2 %v17209_v3  ;;  %7452 = vmatmul.bf16.gmra.mxu3 %v17211_v42 }
 0x6c9   : > { %v5764_v53 = vadd.f32 %v5763_v27, %v5715_v60  ;;  %v12730_v27 = vld [vmem:[%s18718_s1 + $0xc24] sm:$0xf] }
 0x6ca   : > { %v12762_v60 = vld [vmem:[%s18718_s1 + $0xd24] sm:$0xf] }
 0x6cb   : > { %v17216_v2 = vadd.f32 %v5812_v11, %v5764_v53  ;;  %v5766_v47 = vpop.f32.mrf.mxu2  ;;  %v5815_v37 = vpop.f32.mrf.mxu3  ;;  %v11444_v11 = vld [vmem:[%s18718_s1 + $0xc30] sm:$0xf0] }
 0x6cc   : > { %v5668_v52 = vpop.f32.mrf.mxu0  ;;  %v5717_v16 = vpop.f32.mrf.mxu1  ;;  %v11447_v18 = vor.u32 %v12730_v27, %v11444_v11  ;;  %v11364_v53 = vld [vmem:[#allocation2 + $0x170] sm:$0xf0] }
 0x6cd   : > { %19144 = vst [vmem:[#allocation54_spill] sm:$0xff] %v17216_v2  ;;  %v5669_v10 = vadd.f32 %v5668_v52, %v16888_v45  ;;  %v12860_v45 = vld [vmem:[%s18718_s1 + $0x102c] sm:$0xf0]  ;;  %v12082_v2 = vld [vmem:[%s18718_s1 + $0x1120] sm:$0xf] }
 0x6ce   : > { %v11955_v52 = vor.u32 %v12860_v45, %v11954_v32  ;;  %7577 = vmatpush.bf16.msrb.mxu2 %v11447_v18  ;;  %v17253_v32 = vor.u32 %v12709_v29, %v11364_v53 }
 0x6cf   : > { %v5718_v26 = vadd.f32 %v5717_v16, %v5669_v10  ;;  %7305 = vmatmul.bf16.gmra.mxu0 %v17218_v0  ;;  %7354 = vmatmul.bf16.gmra.mxu1 %v17220_v59  ;;  %v11575_v16 = vor.u32 %v12762_v60, %v11572_v35  ;;  %v11354_v60 = vld [vmem:[#allocation2 + $0x150] sm:$0xf]  ;;  %v12711_v35 = vld [vmem:[#allocation2 + $0x164] sm:$0xf0] }
 0x6d0   : > { %7479 = vmatpush.bf16.msrb.mxu0 %v11955_v52  ;;  %v11356_v52 = vld [vmem:[#allocation2 + $0x168] sm:$0xf0]  ;;  %v17260_v57 = vor.u32 %v12711_v35, %v11354_v60  ;;  %v11556_v60 = vld [vmem:[%s18718_s1 + $0xd10] sm:$0xf0] }
 0x6d1   : > { %v5767_v12 = vadd.f32 %v5766_v47, %v5718_v26  ;;  %7626 = vmatpush.bf16.msrb.mxu3 %v11575_v16  ;;  %v12892_v47 = vld [vmem:[%s18718_s1 + $0x112c] sm:$0xf0] }
 0x6d2   : > { %19149 = vst [vmem:[#allocation65_spill] sm:$0xff] %v17260_v57 }
 0x6d3   : > { %v17243_v10 = vadd.f32 %v5815_v37, %v5767_v12  ;;  %v5768_v27 = vpop.f32.mrf.mxu2  ;;  %v5817_v11 = vpop.f32.mrf.mxu3  ;;  %v12083_v37 = vor.u32 %v12892_v47, %v12082_v2  ;;  %v12708_v12 = vld [vmem:[#allocation2 + $0x154] sm:$0xf] }
 0x6d4   : > { %v5670_v26 = vpop.f32.mrf.mxu0  ;;  %v5719_v56 = vpop.f32.mrf.mxu1  ;;  %v17262_v36 = vor.u32 %v12708_v12, %v11356_v52  ;;  %v12718_v12 = vld [vmem:[#allocation2 + $0x19c] sm:$0xf0]  ;;  %v12715_v52 = vld [vmem:[#allocation2 + $0x18c] sm:$0xf] }
 0x6d5   : > { %19147 = vst [vmem:[#allocation61_spill] sm:$0xff] %v17243_v10  ;;  %v5671_v18 = vadd.f32 %v5670_v26, %v16920_v41  ;;  %7528 = vmatpush.bf16.msrb.mxu1 %v12083_v37  ;;  %v11386_v26 = vld [vmem:[#allocation2 + $0x188] sm:$0xf]  ;;  %v11938_v37 = vld [vmem:[%s18718_s1 + $0x1000] sm:$0xf] }
 0x6d6   : > { %19150 = vst [vmem:[#allocation66_spill] sm:$0xff] %v17262_v36  ;;  %v17293_v39 = vor.u32 %v12718_v12, %v11386_v26 }
 0x6d7   : > { %v5720_v45 = vadd.f32 %v5719_v56, %v5671_v18 }
 0x6d8   : > { %7408 = vmatmul.bf16.gmra.mxu2 %v17251_v58  ;;  %7457 = vmatmul.bf16.gmra.mxu3 %v17253_v32 }
 0x6d9   : > { %v5769_v16 = vadd.f32 %v5768_v27, %v5720_v45  ;;  %v12726_v27 = vld [vmem:[%s18718_s1 + $0xc04] sm:$0xf] }
 0x6da   : > { %v12758_v45 = vld [vmem:[%s18718_s1 + $0xd04] sm:$0xf] }
 0x6db   : > { %v17258_v10 = vadd.f32 %v5817_v11, %v5769_v16  ;;  %v5771_v2 = vpop.f32.mrf.mxu2  ;;  %v5820_v29 = vpop.f32.mrf.mxu3  ;;  %v11428_v11 = vld [vmem:[%s18718_s1 + $0xc10] sm:$0xf0]  ;;  %v11388_v16 = vld [vmem:[#allocation2 + $0x1a0] sm:$0xf0] }
 0x6dc   : > { %v5673_v41 = vpop.f32.mrf.mxu0  ;;  %v5722_v53 = vpop.f32.mrf.mxu1  ;;  %v11431_v18 = vor.u32 %v12726_v27, %v11428_v11 }
 0x6dd   : > { %19148 = vst [vmem:[#allocation62_spill] sm:$0xff] %v17258_v10  ;;  %v5674_v56 = vadd.f32 %v5673_v41, %v16928_v54  ;;  %v12856_v54 = vld [vmem:[%s18718_s1 + $0x100c] sm:$0xf0]  ;;  %v12066_v10 = vld [vmem:[%s18718_s1 + $0x1100] sm:$0xf] }
 0x6de   : > { %v11939_v41 = vor.u32 %v12856_v54, %v11938_v37  ;;  %7578 = vmatpush.bf16.msrb.mxu2 %v11431_v18  ;;  %v17295_v37 = vor.u32 %v12715_v52, %v11388_v16 }
 0x6df   : > { %v5723_v47 = vadd.f32 %v5722_v53, %v5674_v56  ;;  %7310 = vmatmul.bf16.gmra.mxu0 %v17260_v57  ;;  %7359 = vmatmul.bf16.gmra.mxu1 %v17262_v36  ;;  %v11559_v53 = vor.u32 %v12758_v45, %v11556_v60  ;;  %v11378_v45 = vld [vmem:[#allocation2 + $0x180] sm:$0xf]  ;;  %v12717_v60 = vld [vmem:[#allocation2 + $0x194] sm:$0xf0] }
 0x6e0   : > { %7480 = vmatpush.bf16.msrb.mxu0 %v11939_v41  ;;  %v11380_v41 = vld [vmem:[#allocation2 + $0x198] sm:$0xf0]  ;;  %v17302_v26 = vor.u32 %v12717_v60, %v11378_v45  ;;  %v11796_v45 = vld [vmem:[%s18718_s1 + $0xef0] sm:$0xf0]  ;;  %v12914_v60 = vld [vmem:[%s18718_s1 + $0x11e4] sm:$0xf] }
 0x6e1   : > { %v5772_v35 = vadd.f32 %v5771_v2, %v5723_v47  ;;  %7627 = vmatpush.bf16.msrb.mxu3 %v11559_v53  ;;  %v12888_v2 = vld [vmem:[%s18718_s1 + $0x110c] sm:$0xf0] }
 0x6e2   : > { %19153 = vst [vmem:[#allocation73_spill] sm:$0xff] %v17302_v26 }
 0x6e3   : > { %v17285_v56 = vadd.f32 %v5820_v29, %v5772_v35  ;;  %v5773_v27 = vpop.f32.mrf.mxu2  ;;  %v5822_v11 = vpop.f32.mrf.mxu3  ;;  %v12067_v29 = vor.u32 %v12888_v2, %v12066_v10  ;;  %v12714_v35 = vld [vmem:[#allocation2 + $0x184] sm:$0xf] }
 0x6e4   : > { %v5675_v47 = vpop.f32.mrf.mxu0  ;;  %v5724_v48 = vpop.f32.mrf.mxu1  ;;  %v17304_v12 = vor.u32 %v12714_v35, %v11380_v41  ;;  %v12180_v35 = vld [vmem:[%s18718_s1 + $0x11f0] sm:$0xf0] }
 0x6e5   : > { %19151 = vst [vmem:[#allocation69_spill] sm:$0xff] %v17285_v56  ;;  %v5676_v18 = vadd.f32 %v5675_v47, %v16960_v14  ;;  %7529 = vmatpush.bf16.msrb.mxu1 %v12067_v29  ;;  %v11410_v47 = vld [vmem:[#allocation2 + $0x1b8] sm:$0xf]  ;;  %v12724_v29 = vld [vmem:[#allocation2 + $0x1cc] sm:$0xf0] }
 0x6e6   : > { %19154 = vst [vmem:[#allocation74_spill] sm:$0xff] %v17304_v12 }
 0x6e7   : > { %v5725_v54 = vadd.f32 %v5724_v48, %v5676_v18  ;;  %v12052_v18 = vld [vmem:[%s18718_s1 + $0x10f0] sm:$0xf0] }
 0x6e8   : > { %7413 = vmatmul.bf16.gmra.mxu2 %v17293_v39  ;;  %7462 = vmatmul.bf16.gmra.mxu3 %v17295_v37 }
 0x6e9   : > { %v5774_v53 = vadd.f32 %v5773_v27, %v5725_v54  ;;  %v12721_v27 = vld [vmem:[#allocation2 + $0x1bc] sm:$0xf] }
 0x6eb   : > { %v17300_v56 = vadd.f32 %v5822_v11, %v5774_v53  ;;  %v5776_v10 = vpop.f32.mrf.mxu2  ;;  %v5825_v52 = vpop.f32.mrf.mxu3  ;;  %v12882_v11 = vld [vmem:[%s18718_s1 + $0x10e4] sm:$0xf]  ;;  %v11412_v53 = vld [vmem:[#allocation2 + $0x1d0] sm:$0xf0] }
 0x6ec   : > { %v5678_v14 = vpop.f32.mrf.mxu0  ;;  %v5727_v16 = vpop.f32.mrf.mxu1  ;;  %v12055_v54 = vor.u32 %v12882_v11, %v12052_v18  ;;  %v11924_v11 = vld [vmem:[%s18718_s1 + $0xff0] sm:$0xf0] }
 0x6ed   : > { %19152 = vst [vmem:[#allocation70_spill] sm:$0xff] %v17300_v56  ;;  %v5679_v48 = vadd.f32 %v5678_v14, %v16968_v5  ;;  %v12818_v5 = vld [vmem:[%s18718_s1 + $0xee4] sm:$0xf] }
 0x6ee   : > { %v11799_v14 = vor.u32 %v12818_v5, %v11796_v45  ;;  %7767 = vmatpush.bf16.msra.mxu2 %v12055_v54  ;;  %v17335_v5 = vor.u32 %v12724_v29, %v11410_v47  ;;  %v17337_v45 = vor.u32 %v12721_v27, %v11412_v53  ;;  %v12720_v54 = vld [vmem:[#allocation2 + $0x1b4] sm:$0xf] }
 0x6ef   : > { %v5728_v2 = vadd.f32 %v5727_v16, %v5679_v48  ;;  %7315 = vmatmul.bf16.gmra.mxu0 %v17302_v26  ;;  %7364 = vmatmul.bf16.gmra.mxu1 %v17304_v12  ;;  %v12183_v16 = vor.u32 %v12914_v60, %v12180_v35  ;;  %v12850_v48 = vld [vmem:[%s18718_s1 + $0xfe4] sm:$0xf] }
 0x6f0   : > { %v11927_v18 = vor.u32 %v12850_v48, %v11924_v11  ;;  %7669 = vmatpush.bf16.msra.mxu0 %v11799_v14  ;;  %19156 = vst [vmem:[#allocation80_spill] sm:$0xff] %v17337_v45  ;;  %v11404_v48 = vld [vmem:[#allocation2 + $0x1c8] sm:$0xf0]  ;;  %v17344_v14 = vor.u32 %v12723_v49, %v11402_v24  ;;  %v12036_v49 = vld [vmem:[%s18718_s1 + $0x10d0] sm:$0xf0] }
 0x6f1   : > { %v5777_v41 = vadd.f32 %v5776_v10, %v5728_v2  ;;  %7816 = vmatpush.bf16.msra.mxu3 %v12183_v16  ;;  %v17346_v47 = vor.u32 %v12720_v54, %v11404_v48  ;;  %v12814_v24 = vld [vmem:[%s18718_s1 + $0xec4] sm:$0xf]  ;;  %v11908_v48 = vld [vmem:[%s18718_s1 + $0xfd0] sm:$0xf0] }
 0x6f2   : > { %7718 = vmatpush.bf16.msra.mxu1 %v11927_v18  ;;  %19158 = vst [vmem:[#allocation84_spill] sm:$0xff] %v17344_v14  ;;  %v12910_v18 = vld [vmem:[%s18718_s1 + $0x11c4] sm:$0xf] }
 0x6f3   : > { %v17333_v56 = vadd.f32 %v5825_v52, %v5777_v41  ;;  %v5778_v33 = vpop.f32.mrf.mxu2  ;;  %v5827_v34 = vpop.f32.mrf.mxu3  ;;  %19159 = vst [vmem:[#allocation85_spill] sm:$0xff] %v17346_v47  ;;  %v12846_v54 = vld [vmem:[%s18718_s1 + $0xfc4] sm:$0xf] }
 0x6f4   : > { %v5680_v10 = vpop.f32.mrf.mxu0  ;;  %v5729_v2 = vpop.f32.mrf.mxu1 }
 0x6f5   : > { %19155 = vst [vmem:[#allocation77_spill] sm:$0xff] %v17333_v56  ;;  %v5681_v60 = vadd.f32 %v5680_v10, %v17000_v44  ;;  %v12164_v10 = vld [vmem:[%s18718_s1 + $0x11d0] sm:$0xf0] }
 0x6f7   : > { %v5730_v35 = vadd.f32 %v5729_v2, %v5681_v60 }
 0x6f8   : > { %7418 = vmatmul.bf16.gmra.mxu2 %v17335_v5  ;;  %7467 = vmatmul.bf16.gmra.mxu3 %v17337_v45  ;;  %v11420_v45 = vld [vmem:[#allocation2 + $0x1d8] sm:$0xf0] }
 0x6f9   : > { %v5779_v52 = vadd.f32 %v5778_v33, %v5730_v35  ;;  %v12167_v35 = vor.u32 %v12910_v18, %v12164_v10  ;;  %v12680_v18 = vld [vmem:[#allocation2 + $0x74] sm:$0xf]  ;;  %v11252_v10 = vld [vmem:[#allocation2 + $0x88] sm:$0xf0] }
 0x6fb   : > { %v17342_v41 = vadd.f32 %v5827_v34, %v5779_v52  ;;  %v5781_v29 = vpop.f32.mrf.mxu2  ;;  %v5830_v27 = vpop.f32.mrf.mxu3  ;;  %v12878_v34 = vld [vmem:[%s18718_s1 + $0x10c4] sm:$0xf]  ;;  %v11911_v52 = vor.u32 %v12846_v54, %v11908_v48  ;;  %7817 = vmatpush.bf16.msra.mxu3 %v12167_v35 }
 0x6fc   : > { %v5683_v53 = vpop.f32.mrf.mxu0  ;;  %v5732_v44 = vpop.f32.mrf.mxu1  ;;  %v12039_v33 = vor.u32 %v12878_v34, %v12036_v49 }
 0x6fd   : > { %19157 = vst [vmem:[#allocation83_spill] sm:$0xff] %v17342_v41  ;;  %v5684_v16 = vadd.f32 %v5683_v53, %v17008_v38  ;;  %v11780_v38 = vld [vmem:[%s18718_s1 + $0xed0] sm:$0xf0]  ;;  %7719 = vmatpush.bf16.msra.mxu1 %v11911_v52 }
 0x6fe   : > { %v11783_v60 = vor.u32 %v12814_v24, %v11780_v38  ;;  %7768 = vmatpush.bf16.msra.mxu2 %v12039_v33  ;;  %v11250_v24 = vld [vmem:[#allocation2 + $0x70] sm:$0xf]  ;;  %v12683_v38 = vld [vmem:[#allocation2 + $0x84] sm:$0xf0] }
 0x6ff   : > { %v5733_v11 = vadd.f32 %v5732_v44, %v5684_v16  ;;  %7320 = vmatmul.bf16.gmra.mxu0 %v17344_v14  ;;  %7369 = vmatmul.bf16.gmra.mxu1 %v17346_v47 }
 0x700   : > { %7670 = vmatpush.bf16.msra.mxu0 %v11783_v60  ;;  %v17384_v60 = vor.u32 %v12680_v18, %v11252_v10 }
 0x701   : > { %v5782_v2 = vadd.f32 %v5781_v29, %v5733_v11 }
 0x702   : > { %19163 = vst [vmem:[#allocation89_spill] sm:$0xff] %v17384_v60 }
 0x703   : > { %v17375_v53 = vadd.f32 %v5830_v27, %v5782_v2  ;;  %v5783_v44 = vpop.f32.mrf.mxu2  ;;  %v5832_v16 = vpop.f32.mrf.mxu3  ;;  %v17382_v2 = vor.u32 %v12683_v38, %v11250_v24  ;;  %v12906_v24 = vld [vmem:[%s18718_s1 + $0x11a4] sm:$0xf]  ;;  %v12148_v38 = vld [vmem:[%s18718_s1 + $0x11b0] sm:$0xf0] }
 0x704   : > { %v5685_v34 = vpop.f32.mrf.mxu0  ;;  %v5734_v29 = vpop.f32.mrf.mxu1 }
 0x705   : > { %19160 = vst [vmem:[#allocation86_spill] sm:$0xff] %v17375_v53  ;;  %v5686_v11 = vadd.f32 %v5685_v34, %v17044_v46 }
 0x706   : > { %19162 = vst [vmem:[#allocation88_spill] sm:$0xff] %v17382_v2 }
 0x707   : > { %v5735_v49 = vadd.f32 %v5734_v29, %v5686_v11  ;;  %v12810_v29 = vld [vmem:[%s18718_s1 + $0xea4] sm:$0xf] }
 0x708   : > { %7579 = vmatmul.bf16.vlgmr.msrb.gmra.mxu2 %v17050_v19  ;;  %7628 = vmatmul.bf16.vlgmr.msrb.gmra.mxu3 %v17052_v63  ;;  %v12725_v63 = vld [vmem:[#allocation2 + $0x1d4] sm:$0xf0]  ;;  %v12722_v19 = vld [vmem:[#allocation2 + $0x1c4] sm:$0xf] }
 0x709   : > { %v5784_v27 = vadd.f32 %v5783_v44, %v5735_v49  ;;  %v12874_v44 = vld [vmem:[%s18718_s1 + $0x10a4] sm:$0xf]  ;;  %v11764_v49 = vld [vmem:[%s18718_s1 + $0xeb0] sm:$0xf0] }
 0x70a   : > { %v11767_v10 = vor.u32 %v12810_v29, %v11764_v49  ;;  %v11274_v29 = vld [vmem:[#allocation2 + $0xa0] sm:$0xf]  ;;  %v12689_v49 = vld [vmem:[#allocation2 + $0xb4] sm:$0xf0] }
 0x70b   : > { %v17380_v33 = vadd.f32 %v5832_v16, %v5784_v27  ;;  %v7384_v35 = vpop.f32.mrf.mxu2  ;;  %v7433_v54 = vpop.f32.mrf.mxu3  ;;  %v12020_v16 = vld [vmem:[%s18718_s1 + $0x10b0] sm:$0xf0]  ;;  %v12151_v27 = vor.u32 %v12906_v24, %v12148_v38  ;;  %v12686_v24 = vld [vmem:[#allocation2 + $0xa4] sm:$0xf]  ;;  %v11276_v38 = vld [vmem:[#allocation2 + $0xb8] sm:$0xf0] }
 0x70c   : > { %v7286_v48 = vpop.f32.mrf.mxu0  ;;  %v7335_v46 = vpop.f32.mrf.mxu1  ;;  %v12023_v11 = vor.u32 %v12874_v44, %v12020_v16  ;;  %7671 = vmatpush.bf16.msra.mxu0 %v11767_v10 }
 0x70d   : > { %19161 = vst [vmem:[#allocation87_spill] sm:$0xff] %v17380_v33  ;;  %v7336_v52 = vadd.f32 %v7335_v46, %v7286_v48  ;;  %v11892_v48 = vld [vmem:[%s18718_s1 + $0xfb0] sm:$0xf0]  ;;  %7818 = vmatpush.bf16.msra.mxu3 %v12151_v27 }
 0x70e   : > { %7769 = vmatpush.bf16.msra.mxu2 %v12023_v11  ;;  %v17418_v11 = vor.u32 %v12689_v49, %v11274_v29  ;;  %v11748_v29 = vld [vmem:[%s18718_s1 + $0xe90] sm:$0xf0]  ;;  %v12902_v49 = vld [vmem:[%s18718_s1 + $0x1184] sm:$0xf] }
 0x70f   : > { %7481 = vmatmul.bf16.vlgmr.msrb.gmra.mxu0 %v17382_v2  ;;  %7530 = vmatmul.bf16.vlgmr.msrb.gmra.mxu1 %v17384_v60  ;;  %v7385_v34 = vadd.f32 %v7384_v35, %v7336_v52  ;;  %v12842_v35 = vld [vmem:[%s18718_s1 + $0xfa4] sm:$0xf] }
 0x710   : > { %v11895_v46 = vor.u32 %v12842_v35, %v11892_v48  ;;  %19164 = vst [vmem:[#allocation90_spill] sm:$0xff] %v17418_v11  ;;  %v17420_v35 = vor.u32 %v12686_v24, %v11276_v38  ;;  %v12132_v24 = vld [vmem:[%s18718_s1 + $0x1190] sm:$0xf0] }
 0x711   : > { %v17406_v18 = vadd.f32 %v7433_v54, %v7385_v34 }
 0x712   : > { %7720 = vmatpush.bf16.msra.mxu1 %v11895_v46  ;;  %19165 = vst [vmem:[#allocation91_spill] sm:$0xff] %v17420_v35 }
 0x713   : > { %v7386_v52 = vpop.f32.mrf.mxu2  ;;  %v7435_v44 = vpop.f32.mrf.mxu3 }
 0x714   : > { %v7288_v16 = vpop.f32.mrf.mxu0  ;;  %v7337_v33 = vpop.f32.mrf.mxu1 }
 0x715   : > { %v7338_v54 = vadd.f32 %v7337_v33, %v7288_v16  ;;  %v12870_v16 = vld [vmem:[%s18718_s1 + $0x1084] sm:$0xf] }
 0x717   : > { %v7387_v34 = vadd.f32 %v7386_v52, %v7338_v54  ;;  %v12806_v54 = vld [vmem:[%s18718_s1 + $0xe84] sm:$0xf] }
 0x718   : > { %7584 = vmatmul.bf16.gmra.mxu2 %v17092_v13  ;;  %7633 = vmatmul.bf16.gmra.mxu3 %v17094_v40  ;;  %v11418_v13 = vld [vmem:[#allocation2 + $0x1c0] sm:$0xf] }
 0x719   : > { %v17416_v53 = vadd.f32 %v7435_v44, %v7387_v34  ;;  %v12004_v44 = vld [vmem:[%s18718_s1 + $0x1090] sm:$0xf0] }
 0x71a   : > { %v12007_v34 = vor.u32 %v12870_v16, %v12004_v44 }
 0x71b   : > { %v7389_v10 = vpop.f32.mrf.mxu2  ;;  %v7438_v27 = vpop.f32.mrf.mxu3 }
 0x71c   : > { %v7291_v48 = vpop.f32.mrf.mxu0  ;;  %v7340_v46 = vpop.f32.mrf.mxu1  ;;  %7770 = vmatpush.bf16.msra.mxu2 %v12007_v34 }
 0x71d   : > { %v7341_v33 = vadd.f32 %v7340_v46, %v7291_v48  ;;  %v12135_v48 = vor.u32 %v12902_v49, %v12132_v24  ;;  %v12838_v46 = vld [vmem:[%s18718_s1 + $0xf84] sm:$0xf]  ;;  %v12692_v49 = vld [vmem:[#allocation2 + $0xd4] sm:$0xf]  ;;  %v11300_v24 = vld [vmem:[#allocation2 + $0xe8] sm:$0xf0] }
 0x71f   : > { %7486 = vmatmul.bf16.gmra.mxu0 %v17418_v11  ;;  %7535 = vmatmul.bf16.gmra.mxu1 %v17420_v35  ;;  %v7390_v52 = vadd.f32 %v7389_v10, %v7341_v33  ;;  %v11751_v10 = vor.u32 %v12806_v54, %v11748_v29  ;;  %v11876_v33 = vld [vmem:[%s18718_s1 + $0xf90] sm:$0xf0]  ;;  %v11298_v54 = vld [vmem:[#allocation2 + $0xd0] sm:$0xf]  ;;  %v12695_v29 = vld [vmem:[#allocation2 + $0xe4] sm:$0xf0] }
 0x720   : > { %v11879_v16 = vor.u32 %v12838_v46, %v11876_v33  ;;  %7819 = vmatpush.bf16.msra.mxu3 %v12135_v48  ;;  %v17454_v34 = vor.u32 %v12695_v29, %v11298_v54  ;;  %v17456_v46 = vor.u32 %v12692_v49, %v11300_v24  ;;  %v11732_v54 = vld [vmem:[%s18718_s1 + $0xe70] sm:$0xf0]  ;;  %v12898_v29 = vld [vmem:[%s18718_s1 + $0x1164] sm:$0xf] }
 0x721   : > { %v17442_v38 = vadd.f32 %v7438_v27, %v7390_v52  ;;  %7672 = vmatpush.bf16.msra.mxu0 %v11751_v10  ;;  %v12116_v49 = vld [vmem:[%s18718_s1 + $0x1170] sm:$0xf0] }
 0x722   : > { %7721 = vmatpush.bf16.msra.mxu1 %v11879_v16  ;;  %19166 = vst [vmem:[#allocation92_spill] sm:$0xff] %v17454_v34 }
 0x723   : > { %v7391_v44 = vpop.f32.mrf.mxu2  ;;  %v7440_v41 = vpop.f32.mrf.mxu3  ;;  %19167 = vst [vmem:[#allocation93_spill] sm:$0xff] %v17456_v46 }
 0x724   : > { %v7293_v56 = vpop.f32.mrf.mxu0  ;;  %v7342_v20 = vpop.f32.mrf.mxu1 }
 0x725   : > { %v7343_v27 = vadd.f32 %v7342_v20, %v7293_v56 }
 0x727   : > { %v7392_v52 = vadd.f32 %v7391_v44, %v7343_v27  ;;  %v12866_v44 = vld [vmem:[%s18718_s1 + $0x1064] sm:$0xf] }
 0x728   : > { %7589 = vmatmul.bf16.gmra.mxu2 %v17134_v9  ;;  %7638 = vmatmul.bf16.gmra.mxu3 %v17136_v30  ;;  %v12802_v27 = vld [vmem:[%s18718_s1 + $0xe64] sm:$0xf] }
 0x729   : > { %v17452_v51 = vadd.f32 %v7440_v41, %v7392_v52  ;;  %v11988_v41 = vld [vmem:[%s18718_s1 + $0x1070] sm:$0xf0] }
 0x72a   : > { %v11991_v52 = vor.u32 %v12866_v44, %v11988_v41 }
 0x72b   : > { %v7394_v10 = vpop.f32.mrf.mxu2  ;;  %v7443_v48 = vpop.f32.mrf.mxu3 }
 0x72c   : > { %v7296_v33 = vpop.f32.mrf.mxu0  ;;  %v7345_v16 = vpop.f32.mrf.mxu1  ;;  %7771 = vmatpush.bf16.msra.mxu2 %v11991_v52 }
 0x72d   : > { %v7346_v20 = vadd.f32 %v7345_v16, %v7296_v33  ;;  %v12119_v33 = vor.u32 %v12898_v29, %v12116_v49  ;;  %v12834_v16 = vld [vmem:[%s18718_s1 + $0xf64] sm:$0xf]  ;;  %v11324_v49 = vld [vmem:[#allocation2 + $0x118] sm:$0xf0] }
 0x72e   : > { %v12698_v29 = vld [vmem:[#allocation2 + $0x104] sm:$0xf] }
 0x72f   : > { %7491 = vmatmul.bf16.gmra.mxu0 %v17454_v34  ;;  %7540 = vmatmul.bf16.gmra.mxu1 %v17456_v46  ;;  %v7395_v56 = vadd.f32 %v7394_v10, %v7346_v20  ;;  %v11735_v10 = vor.u32 %v12802_v27, %v11732_v54  ;;  %v11860_v20 = vld [vmem:[%s18718_s1 + $0xf70] sm:$0xf0]  ;;  %v11322_v27 = vld [vmem:[#allocation2 + $0x100] sm:$0xf]  ;;  %v12701_v54 = vld [vmem:[#allocation2 + $0x114] sm:$0xf0] }
 0x730   : > { %v11863_v44 = vor.u32 %v12834_v16, %v11860_v20  ;;  %7820 = vmatpush.bf16.msra.mxu3 %v12119_v33  ;;  %v17490_v52 = vor.u32 %v12701_v54, %v11322_v27  ;;  %v17492_v16 = vor.u32 %v12698_v29, %v11324_v49  ;;  %v11716_v27 = vld [vmem:[%s18718_s1 + $0xe50] sm:$0xf0]  ;;  %v12894_v54 = vld [vmem:[%s18718_s1 + $0x1144] sm:$0xf] }
 0x731   : > { %v17478_v24 = vadd.f32 %v7443_v48, %v7395_v56  ;;  %7673 = vmatpush.bf16.msra.mxu0 %v11735_v10  ;;  %v12100_v29 = vld [vmem:[%s18718_s1 + $0x1150] sm:$0xf0] }
 0x732   : > { %7722 = vmatpush.bf16.msra.mxu1 %v11863_v44  ;;  %19168 = vst [vmem:[#allocation94_spill] sm:$0xff] %v17490_v52 }
 0x733   : > { %v7396_v41 = vpop.f32.mrf.mxu2  ;;  %v7445_v23 = vpop.f32.mrf.mxu3 }
 0x734   : > { %v7298_v21 = vpop.f32.mrf.mxu0  ;;  %v7347_v61 = vpop.f32.mrf.mxu1 }
 0x735   : > { %v7348_v48 = vadd.f32 %v7347_v61, %v7298_v21 }
 0x737   : > { %v7397_v56 = vadd.f32 %v7396_v41, %v7348_v48  ;;  %v12862_v41 = vld [vmem:[%s18718_s1 + $0x1044] sm:$0xf] }
 0x738   : > { %7594 = vmatmul.bf16.gmra.mxu2 %v17176_v43  ;;  %7643 = vmatmul.bf16.gmra.mxu3 %v17178_v55  ;;  %v12798_v48 = vld [vmem:[%s18718_s1 + $0xe44] sm:$0xf] }
 0x739   : > { %v17488_v22 = vadd.f32 %v7445_v23, %v7397_v56  ;;  %v11972_v23 = vld [vmem:[%s18718_s1 + $0x1050] sm:$0xf0] }
 0x73a   : > { %v11975_v56 = vor.u32 %v12862_v41, %v11972_v23 }
 0x73b   : > { %v7399_v10 = vpop.f32.mrf.mxu2  ;;  %v7448_v33 = vpop.f32.mrf.mxu3 }
 0x73c   : > { %v7301_v20 = vpop.f32.mrf.mxu0  ;;  %v7350_v44 = vpop.f32.mrf.mxu1  ;;  %7772 = vmatpush.bf16.msra.mxu2 %v11975_v56 }
 0x73d   : > { %v7351_v61 = vadd.f32 %v7350_v44, %v7301_v20  ;;  %v12103_v20 = vor.u32 %v12894_v54, %v12100_v29  ;;  %v12830_v44 = vld [vmem:[%s18718_s1 + $0xf44] sm:$0xf]  ;;  %v12704_v54 = vld [vmem:[#allocation2 + $0x134] sm:$0xf]  ;;  %v11348_v29 = vld [vmem:[#allocation2 + $0x148] sm:$0xf0] }
 0x73f   : > { %7496 = vmatmul.bf16.gmra.mxu0 %v17490_v52  ;;  %7545 = vmatmul.bf16.gmra.mxu1 %v17492_v16  ;;  %v7400_v21 = vadd.f32 %v7399_v10, %v7351_v61  ;;  %v11719_v10 = vor.u32 %v12798_v48, %v11716_v27  ;;  %v11844_v61 = vld [vmem:[%s18718_s1 + $0xf50] sm:$0xf0]  ;;  %v11346_v48 = vld [vmem:[#allocation2 + $0x130] sm:$0xf]  ;;  %v12707_v27 = vld [vmem:[#allocation2 + $0x144] sm:$0xf0] }
 0x740   : > { %v11847_v41 = vor.u32 %v12830_v44, %v11844_v61  ;;  %7821 = vmatpush.bf16.msra.mxu3 %v12103_v20  ;;  %v17526_v56 = vor.u32 %v12707_v27, %v11346_v48  ;;  %v17528_v44 = vor.u32 %v12704_v54, %v11348_v29  ;;  %v11700_v48 = vld [vmem:[%s18718_s1 + $0xe30] sm:$0xf0]  ;;  %v12890_v27 = vld [vmem:[%s18718_s1 + $0x1124] sm:$0xf] }
 0x741   : > { %v17514_v49 = vadd.f32 %v7448_v33, %v7400_v21  ;;  %7674 = vmatpush.bf16.msra.mxu0 %v11719_v10  ;;  %v12084_v54 = vld [vmem:[%s18718_s1 + $0x1130] sm:$0xf0] }
 0x742   : > { %7723 = vmatpush.bf16.msra.mxu1 %v11847_v41  ;;  %19169 = vst [vmem:[#allocation95_spill] sm:$0xff] %v17526_v56 }
 0x743   : > { %v7401_v23 = vpop.f32.mrf.mxu2  ;;  %v7450_v28 = vpop.f32.mrf.mxu3 }
 0x744   : > { %v7303_v62 = vpop.f32.mrf.mxu0  ;;  %v7352_v4 = vpop.f32.mrf.mxu1 }
 0x745   : > { %v7353_v33 = vadd.f32 %v7352_v4, %v7303_v62 }
 0x747   : > { %v7402_v21 = vadd.f32 %v7401_v23, %v7353_v33  ;;  %v12858_v23 = vld [vmem:[%s18718_s1 + $0x1024] sm:$0xf] }
 0x748   : > { %7599 = vmatmul.bf16.gmra.mxu2 %v17218_v0  ;;  %7648 = vmatmul.bf16.gmra.mxu3 %v17220_v59  ;;  %v12794_v33 = vld [vmem:[%s18718_s1 + $0xe24] sm:$0xf] }
 0x749   : > { %v17524_v1 = vadd.f32 %v7450_v28, %v7402_v21  ;;  %v11956_v28 = vld [vmem:[%s18718_s1 + $0x1030] sm:$0xf0] }
 0x74a   : > { %v11959_v21 = vor.u32 %v12858_v23, %v11956_v28 }
 0x74b   : > { %v7404_v10 = vpop.f32.mrf.mxu2  ;;  %v7453_v20 = vpop.f32.mrf.mxu3 }
 0x74c   : > { %v7306_v61 = vpop.f32.mrf.mxu0  ;;  %v7355_v41 = vpop.f32.mrf.mxu1  ;;  %7773 = vmatpush.bf16.msra.mxu2 %v11959_v21 }
 0x74d   : > { %v7356_v4 = vadd.f32 %v7355_v41, %v7306_v61  ;;  %v12087_v61 = vor.u32 %v12890_v27, %v12084_v54  ;;  %v12826_v41 = vld [vmem:[%s18718_s1 + $0xf24] sm:$0xf]  ;;  %v11372_v54 = vld [vmem:[#allocation2 + $0x178] sm:$0xf0] }
 0x74e   : > { %v12710_v27 = vld [vmem:[#allocation2 + $0x164] sm:$0xf] }
 0x74f   : > { %7501 = vmatmul.bf16.gmra.mxu0 %v17526_v56  ;;  %7550 = vmatmul.bf16.gmra.mxu1 %v17528_v44  ;;  %v7405_v62 = vadd.f32 %v7404_v10, %v7356_v4  ;;  %v11703_v10 = vor.u32 %v12794_v33, %v11700_v48  ;;  %v11828_v4 = vld [vmem:[%s18718_s1 + $0xf30] sm:$0xf0]  ;;  %v11370_v33 = vld [vmem:[#allocation2 + $0x160] sm:$0xf]  ;;  %v12713_v48 = vld [vmem:[#allocation2 + $0x174] sm:$0xf0] }
 0x750   : > { %v11831_v23 = vor.u32 %v12826_v41, %v11828_v4  ;;  %7822 = vmatpush.bf16.msra.mxu3 %v12087_v61  ;;  %v17562_v21 = vor.u32 %v12713_v48, %v11370_v33  ;;  %v17564_v41 = vor.u32 %v12710_v27, %v11372_v54  ;;  %v11684_v33 = vld [vmem:[%s18718_s1 + $0xe10] sm:$0xf0]  ;;  %v12886_v48 = vld [vmem:[%s18718_s1 + $0x1104] sm:$0xf] }
 0x751   : > { %v17550_v29 = vadd.f32 %v7453_v20, %v7405_v62  ;;  %7675 = vmatpush.bf16.msra.mxu0 %v11703_v10  ;;  %v12068_v27 = vld [vmem:[%s18718_s1 + $0x1110] sm:$0xf0] }
 0x752   : > { %7724 = vmatpush.bf16.msra.mxu1 %v11831_v23  ;;  %19170 = vst [vmem:[#allocation96_spill] sm:$0xff] %v17562_v21 }
 0x753   : > { %v7406_v28 = vpop.f32.mrf.mxu2  ;;  %v7455_v59 = vpop.f32.mrf.mxu3 }
 0x754   : > { %v7308_v0 = vpop.f32.mrf.mxu0  ;;  %v7357_v55 = vpop.f32.mrf.mxu1 }
 0x755   : > { %v7358_v20 = vadd.f32 %v7357_v55, %v7308_v0 }
 0x757   : > { %v7407_v62 = vadd.f32 %v7406_v28, %v7358_v20  ;;  %v12854_v28 = vld [vmem:[%s18718_s1 + $0x1004] sm:$0xf] }
 0x758   : > { %7604 = vmatmul.bf16.gmra.mxu2 %v17260_v57  ;;  %7653 = vmatmul.bf16.gmra.mxu3 %v17262_v36  ;;  %v12790_v20 = vld [vmem:[%s18718_s1 + $0xe04] sm:$0xf] }
 0x759   : > { %v17560_v43 = vadd.f32 %v7455_v59, %v7407_v62  ;;  %v11940_v59 = vld [vmem:[%s18718_s1 + $0x1010] sm:$0xf0] }
 0x75a   : > { %v11943_v62 = vor.u32 %v12854_v28, %v11940_v59 }
 0x75b   : > { %v7409_v10 = vpop.f32.mrf.mxu2  ;;  %v7458_v61 = vpop.f32.mrf.mxu3 }
 0x75c   : > { %v7311_v4 = vpop.f32.mrf.mxu0  ;;  %v7360_v23 = vpop.f32.mrf.mxu1  ;;  %7774 = vmatpush.bf16.msra.mxu2 %v11943_v62 }
 0x75d   : > { %v7361_v55 = vadd.f32 %v7360_v23, %v7311_v4  ;;  %v12071_v4 = vor.u32 %v12886_v48, %v12068_v27  ;;  %v12822_v23 = vld [vmem:[%s18718_s1 + $0xf04] sm:$0xf]  ;;  %v12716_v48 = vld [vmem:[#allocation2 + $0x194] sm:$0xf]  ;;  %v11396_v27 = vld [vmem:[#allocation2 + $0x1a8] sm:$0xf0] }
 0x75f   : > { %7506 = vmatmul.bf16.gmra.mxu0 %v17562_v21  ;;  %7555 = vmatmul.bf16.gmra.mxu1 %v17564_v41  ;;  %v7410_v0 = vadd.f32 %v7409_v10, %v7361_v55  ;;  %v11687_v10 = vor.u32 %v12790_v20, %v11684_v33  ;;  %v11812_v55 = vld [vmem:[%s18718_s1 + $0xf10] sm:$0xf0]  ;;  %v11394_v20 = vld [vmem:[#allocation2 + $0x190] sm:$0xf]  ;;  %v12719_v33 = vld [vmem:[#allocation2 + $0x1a4] sm:$0xf0] }
 0x760   : > { %v11815_v28 = vor.u32 %v12822_v23, %v11812_v55  ;;  %7823 = vmatpush.bf16.msra.mxu3 %v12071_v4  ;;  %v17598_v62 = vor.u32 %v12719_v33, %v11394_v20  ;;  %v17600_v23 = vor.u32 %v12716_v48, %v11396_v27  ;;  %v11546_v20 = vld [vmem:[%s18718_s1 + $0xce8] sm:$0xf] }
 0x761   : > { %v17586_v54 = vadd.f32 %v7458_v61, %v7410_v0  ;;  %7676 = vmatpush.bf16.msra.mxu0 %v11687_v10 }
 0x762   : > { %7725 = vmatpush.bf16.msra.mxu1 %v11815_v28  ;;  %19171 = vst [vmem:[#allocation97_spill] sm:$0xff] %v17598_v62 }
 0x763   : > { %v7411_v59 = vpop.f32.mrf.mxu2  ;;  %v7460_v36 = vpop.f32.mrf.mxu3 }
 0x764   : > { %v7313_v57 = vpop.f32.mrf.mxu0  ;;  %v7362_v30 = vpop.f32.mrf.mxu1 }
 0x765   : > { %v7363_v61 = vadd.f32 %v7362_v30, %v7313_v57 }
 0x767   : > { %v7412_v0 = vadd.f32 %v7411_v59, %v7363_v61 }
 0x768   : > { %7609 = vmatmul.bf16.gmra.mxu2 %v17302_v26  ;;  %7658 = vmatmul.bf16.gmra.mxu3 %v17304_v12  ;;  %v11674_v26 = vld [vmem:[%s18718_s1 + $0xde8] sm:$0xf] }
 0x769   : > { %v17596_v9 = vadd.f32 %v7460_v36, %v7412_v0  ;;  %v11802_v36 = vld [vmem:[%s18718_s1 + $0xee8] sm:$0xf]  ;;  %v12821_v0 = vld [vmem:[%s18718_s1 + $0xef4] sm:$0xf0] }
 0x76a   : > { %v11803_v27 = vor.u32 %v12821_v0, %v11802_v36  ;;  %v12789_v36 = vld [vmem:[%s18718_s1 + $0xdf4] sm:$0xf0] }
 0x76b   : > { %v7414_v10 = vpop.f32.mrf.mxu2  ;;  %v7463_v4 = vpop.f32.mrf.mxu3  ;;  %v11675_v0 = vor.u32 %v12789_v36, %v11674_v26 }
 0x76c   : > { %v7316_v55 = vpop.f32.mrf.mxu0  ;;  %v7365_v28 = vpop.f32.mrf.mxu1  ;;  %7963 = vmatpush.bf16.msrb.mxu2 %v11803_v27 }
 0x76d   : > { %v7366_v30 = vadd.f32 %v7365_v28, %v7316_v55  ;;  %v12853_v55 = vld [vmem:[%s18718_s1 + $0xff4] sm:$0xf0]  ;;  %7914 = vmatpush.bf16.msrb.mxu1 %v11675_v0 }
 0x76e   : > { %v12753_v0 = vld [vmem:[%s18718_s1 + $0xcd4] sm:$0xf0] }
 0x76f   : > { %7511 = vmatmul.bf16.gmra.mxu0 %v17598_v62  ;;  %7560 = vmatmul.bf16.gmra.mxu1 %v17600_v23  ;;  %v7415_v57 = vadd.f32 %v7414_v10, %v7366_v30  ;;  %v12757_v10 = vld [vmem:[%s18718_s1 + $0xcf4] sm:$0xf0] }
 0x770   : > { %v11547_v30 = vor.u32 %v12757_v10, %v11546_v20 }
 0x771   : > { %v17604_v59 = vadd.f32 %v7463_v4, %v7415_v57  ;;  %v11930_v4 = vld [vmem:[%s18718_s1 + $0xfe8] sm:$0xf] }
 0x772   : > { %v11931_v57 = vor.u32 %v12853_v55, %v11930_v4  ;;  %7865 = vmatpush.bf16.msrb.mxu0 %v11547_v30 }
 0x773   : > { %v7416_v61 = vpop.f32.mrf.mxu2  ;;  %v7465_v12 = vpop.f32.mrf.mxu3 }
 0x774   : > { %v7318_v33 = vpop.f32.mrf.mxu0  ;;  %v7367_v48 = vpop.f32.mrf.mxu1  ;;  %8012 = vmatpush.bf16.msrb.mxu3 %v11931_v57 }
 0x775   : > { %v7368_v28 = vadd.f32 %v7367_v48, %v7318_v33  ;;  %v17634_v33 = vor.u32 %v12725_v63, %v11418_v13  ;;  %v17636_v48 = vor.u32 %v12722_v19, %v11420_v45  ;;  %v11786_v19 = vld [vmem:[%s18718_s1 + $0xec8] sm:$0xf]  ;;  %v12817_v13 = vld [vmem:[%s18718_s1 + $0xed4] sm:$0xf0] }
 0x776   : > { %v11530_v45 = vld [vmem:[%s18718_s1 + $0xcc8] sm:$0xf]  ;;  %v11787_v36 = vor.u32 %v12817_v13, %v11786_v19 }
 0x777   : > { %v7417_v40 = vadd.f32 %v7416_v61, %v7368_v28  ;;  %19172 = vst [vmem:[#allocation98_spill] sm:$0xff] %v17636_v48 }
 0x778   : > { %7614 = vmatmul.bf16.gmra.mxu2 %v17344_v14  ;;  %7663 = vmatmul.bf16.gmra.mxu3 %v17346_v47 }
 0x779   : > { %v17632_v20 = vadd.f32 %v7465_v12, %v7417_v40  ;;  %7964 = vmatpush.bf16.msrb.mxu2 %v11787_v36 }
 0x77b   : > { %v7419_v27 = vpop.f32.mrf.mxu2  ;;  %v7468_v26 = vpop.f32.mrf.mxu3 }
 0x77c   : > { %v7321_v61 = vpop.f32.mrf.mxu0  ;;  %v7370_v10 = vpop.f32.mrf.mxu1 }
 0x77d   : > { %v7371_v4 = vadd.f32 %v7370_v10, %v7321_v61  ;;  %v11531_v10 = vor.u32 %v12753_v0, %v11530_v45 }
 0x77f   : > { %7516 = vmatmul.bf16.gmra.mxu0 %v17634_v33  ;;  %7565 = vmatmul.bf16.gmra.mxu1 %v17636_v48  ;;  %v7420_v55 = vadd.f32 %v7419_v27, %v7371_v4  ;;  %v11914_v27 = vld [vmem:[%s18718_s1 + $0xfc8] sm:$0xf] }
 0x780   : > { %7866 = vmatpush.bf16.msrb.mxu0 %v11531_v10 }
 0x781   : > { %v17640_v28 = vadd.f32 %v7468_v26, %v7420_v55  ;;  %v12849_v26 = vld [vmem:[%s18718_s1 + $0xfd4] sm:$0xf0]  ;;  %v11658_v55 = vld [vmem:[%s18718_s1 + $0xdc8] sm:$0xf] }
 0x782   : > { %v11915_v4 = vor.u32 %v12849_v26, %v11914_v27 }
 0x783   : > { %v7421_v30 = vpop.f32.mrf.mxu2  ;;  %v7470_v40 = vpop.f32.mrf.mxu3 }
 0x784   : > { %v7323_v12 = vpop.f32.mrf.mxu0  ;;  %v7372_v57 = vpop.f32.mrf.mxu1  ;;  %8013 = vmatpush.bf16.msrb.mxu3 %v11915_v4 }
 0x785   : > { %v7373_v63 = vadd.f32 %v7372_v57, %v7323_v12  ;;  %v12785_v12 = vld [vmem:[%s18718_s1 + $0xdd4] sm:$0xf0] }
 0x786   : > { %v11659_v57 = vor.u32 %v12785_v12, %v11658_v55  ;;  %v19173_v55 = vld [vmem:[#allocation23_spill] sm:$0xff] }
 0x787   : > { %v7422_v61 = vadd.f32 %v7421_v30, %v7373_v63 }
 0x788   : > { %7775 = vmatmul.bf16.vlgmr.msra.gmra.mxu2 %v17382_v2  ;;  %7824 = vmatmul.bf16.vlgmr.msra.gmra.mxu3 %v17384_v60 }
 0x789   : > { %v17668_v19 = vadd.f32 %v7470_v40, %v7422_v61  ;;  %7915 = vmatpush.bf16.msrb.mxu1 %v11659_v57 }
 0x78b   : > { %v7580_v30 = vpop.f32.mrf.mxu2  ;;  %v7629_v63 = vpop.f32.mrf.mxu3 }
 0x78c   : > { %v7482_v13 = vpop.f32.mrf.mxu0  ;;  %v7531_v45 = vpop.f32.mrf.mxu1  ;;  %v17670_v0 = vadd.f32 %v7629_v63, %v7580_v30  ;;  %v12813_v30 = vld [vmem:[%s18718_s1 + $0xeb4] sm:$0xf0]  ;;  %v11514_v63 = vld [vmem:[%s18718_s1 + $0xca8] sm:$0xf] }
 0x78d   : > { %v7483_v27 = vadd.f32 %v7482_v13, %v17406_v18  ;;  %v11770_v18 = vld [vmem:[%s18718_s1 + $0xea8] sm:$0xf] }
 0x78e   : > { %v11771_v13 = vor.u32 %v12813_v30, %v11770_v18  ;;  %v19174_v30 = vld [vmem:[#allocation24_spill] sm:$0xff] }
 0x78f   : > { %v7532_v26 = vadd.f32 %v7531_v45, %v7483_v27  ;;  %7677 = vmatmul.bf16.vlgmr.msra.gmra.mxu0 %v17039_v7  ;;  %7726 = vmatmul.bf16.vlgmr.msra.gmra.mxu1 %v17041_v15  ;;  %v12749_v45 = vld [vmem:[%s18718_s1 + $0xcb4] sm:$0xf0] }
 0x790   : > { %v12845_v27 = vld [vmem:[%s18718_s1 + $0xfb4] sm:$0xf0]  ;;  %7965 = vmatpush.bf16.msrb.mxu2 %v11771_v13  ;;  %v19175_v13 = vld [vmem:[#allocation25_spill] sm:$0xff] }
 0x791   : > { %v17676_v40 = vadd.f32 %v7532_v26, %v19173_v55  ;;  %v11515_v55 = vor.u32 %v12749_v45, %v11514_v63 }
 0x793   : > { %v7582_v36 = vpop.f32.mrf.mxu2  ;;  %v7631_v61 = vpop.f32.mrf.mxu3  ;;  %7867 = vmatpush.bf16.msrb.mxu0 %v11515_v55 }
 0x794   : > { %v7484_v10 = vpop.f32.mrf.mxu0  ;;  %v7533_v4 = vpop.f32.mrf.mxu1  ;;  %v17678_v12 = vadd.f32 %v7631_v61, %v7582_v36  ;;  %v11642_v61 = vld [vmem:[%s18718_s1 + $0xda8] sm:$0xf] }
 0x795   : > { %v7485_v57 = vadd.f32 %v7484_v10, %v17416_v53  ;;  %v11898_v53 = vld [vmem:[%s18718_s1 + $0xfa8] sm:$0xf]  ;;  %v12781_v10 = vld [vmem:[%s18718_s1 + $0xdb4] sm:$0xf0] }
 0x796   : > { %v11899_v36 = vor.u32 %v12845_v27, %v11898_v53  ;;  %v11643_v18 = vor.u32 %v12781_v10, %v11642_v61 }
 0x797   : > { %v7534_v26 = vadd.f32 %v7533_v4, %v7485_v57  ;;  %v8625_v4 = vmul.f32 %v17676_v40, %v17676_v40 }
 0x798   : > { %7780 = vmatmul.bf16.gmra.mxu2 %v17418_v11  ;;  %7829 = vmatmul.bf16.gmra.mxu3 %v17420_v35 }
 0x799   : > { %v8457_v60 = vadd.f32 %v7534_v26, %v19174_v30  ;;  %8014 = vmatpush.bf16.msrb.mxu3 %v11899_v36  ;;  %7916 = vmatpush.bf16.msrb.mxu1 %v11643_v18 }
 0x79b   : > { %v8553_v57 = vadd.f32 %v8457_v60, %v17676_v40  ;;  %v8629_v63 = vmul.f32 %v8457_v60, %v8457_v60  ;;  %v7585_v45 = vpop.f32.mrf.mxu2  ;;  %v7634_v53 = vpop.f32.mrf.mxu3 }
 0x79c   : > { %v7487_v27 = vpop.f32.mrf.mxu0  ;;  %v7536_v2 = vpop.f32.mrf.mxu1  ;;  %v17711_v11 = vadd.f32 %v7634_v53, %v7585_v45  ;;  %v11498_v53 = vld [vmem:[%s18718_s1 + $0xc88] sm:$0xf] }
 0x79d   : > { %v8689_v35 = vadd.f32 %v8629_v63, %v8625_v4  ;;  %v7488_v61 = vadd.f32 %v7487_v27, %v17442_v38  ;;  %v11754_v63 = vld [vmem:[%s18718_s1 + $0xe88] sm:$0xf] }
 0x79f   : > { %v7537_v26 = vadd.f32 %v7536_v2, %v7488_v61  ;;  %7682 = vmatmul.bf16.gmra.mxu0 %v17083_v25  ;;  %7731 = vmatmul.bf16.gmra.mxu1 %v17085_v8  ;;  %v12745_v61 = vld [vmem:[%s18718_s1 + $0xc94] sm:$0xf0] }
 0x7a1   : > { %v17717_v55 = vadd.f32 %v7537_v26, %v19175_v13  ;;  %v11499_v13 = vor.u32 %v12745_v61, %v11498_v53 }
 0x7a3   : > { %19176 = vst [vmem:[#allocation23_spill] sm:$0xff] %v17717_v55  ;;  %v8554_v36 = vadd.f32 %v8553_v57, %v17717_v55  ;;  %v8633_v60 = vmul.f32 %v17717_v55, %v17717_v55  ;;  %v7587_v10 = vpop.f32.mrf.mxu2  ;;  %v7636_v18 = vpop.f32.mrf.mxu3  ;;  %v12809_v57 = vld [vmem:[%s18718_s1 + $0xe94] sm:$0xf0]  ;;  %7868 = vmatpush.bf16.msrb.mxu0 %v11499_v13 }
 0x7a4   : > { %v7489_v30 = vpop.f32.mrf.mxu0  ;;  %v7538_v45 = vpop.f32.mrf.mxu1  ;;  %v17722_v4 = vadd.f32 %v7636_v18, %v7587_v10  ;;  %v11755_v27 = vor.u32 %v12809_v57, %v11754_v63  ;;  %v11626_v10 = vld [vmem:[%s18718_s1 + $0xd88] sm:$0xf]  ;;  %v12777_v18 = vld [vmem:[%s18718_s1 + $0xd94] sm:$0xf0] }
 0x7a5   : > { %v8690_v38 = vadd.f32 %v8689_v35, %v8633_v60  ;;  %v7490_v2 = vadd.f32 %v7489_v30, %v17452_v51  ;;  %v11882_v51 = vld [vmem:[%s18718_s1 + $0xf88] sm:$0xf]  ;;  %v12841_v35 = vld [vmem:[%s18718_s1 + $0xf94] sm:$0xf0]  ;;  %v11627_v30 = vor.u32 %v12777_v18, %v11626_v10 }
 0x7a6   : > { %v11883_v60 = vor.u32 %v12841_v35, %v11882_v51  ;;  %v19177_v63 = vld [vmem:[#allocation26_spill] sm:$0xff]  ;;  %7966 = vmatpush.bf16.msrb.mxu2 %v11755_v27  ;;  %v19178_v27 = vld [vmem:[#allocation27_spill] sm:$0xff] }
 0x7a7   : > { %v7539_v26 = vadd.f32 %v7538_v45, %v7490_v2  ;;  %7917 = vmatpush.bf16.msrb.mxu1 %v11627_v30 }
 0x7a8   : > { %7785 = vmatmul.bf16.gmra.mxu2 %v17454_v34  ;;  %7834 = vmatmul.bf16.gmra.mxu3 %v17456_v46 }
 0x7a9   : > { %v8465_v57 = vadd.f32 %v7539_v26, %v19177_v63  ;;  %8015 = vmatpush.bf16.msrb.mxu3 %v11883_v60  ;;  %v12741_v63 = vld [vmem:[%s18718_s1 + $0xc74] sm:$0xf0] }
 0x7ab   : > { %v8555_v45 = vadd.f32 %v8554_v36, %v8465_v57  ;;  %v8637_v2 = vmul.f32 %v8465_v57, %v8465_v57  ;;  %v7590_v53 = vpop.f32.mrf.mxu2  ;;  %v7639_v61 = vpop.f32.mrf.mxu3  ;;  %v12837_v57 = vld [vmem:[%s18718_s1 + $0xf74] sm:$0xf0] }
 0x7ac   : > { %v7492_v51 = vpop.f32.mrf.mxu0  ;;  %v7541_v35 = vpop.f32.mrf.mxu1  ;;  %v17752_v47 = vadd.f32 %v7639_v61, %v7590_v53 }
 0x7ad   : > { %v8691_v14 = vadd.f32 %v8690_v38, %v8637_v2  ;;  %v7493_v34 = vadd.f32 %v7492_v51, %v17478_v24  ;;  %v11738_v24 = vld [vmem:[%s18718_s1 + $0xe68] sm:$0xf] }
 0x7af   : > { %v7542_v55 = vadd.f32 %v7541_v35, %v7493_v34  ;;  %7687 = vmatmul.bf16.gmra.mxu0 %v17125_v50  ;;  %7736 = vmatmul.bf16.gmra.mxu1 %v17127_v31  ;;  %v12805_v34 = vld [vmem:[%s18718_s1 + $0xe74] sm:$0xf0]  ;;  %v11610_v35 = vld [vmem:[%s18718_s1 + $0xd68] sm:$0xf] }
 0x7b0   : > { %v11739_v38 = vor.u32 %v12805_v34, %v11738_v24 }
 0x7b1   : > { %v17758_v26 = vadd.f32 %v7542_v55, %v19178_v27  ;;  %v11482_v55 = vld [vmem:[%s18718_s1 + $0xc68] sm:$0xf]  ;;  %v12773_v27 = vld [vmem:[%s18718_s1 + $0xd74] sm:$0xf0] }
 0x7b2   : > { %v11483_v61 = vor.u32 %v12741_v63, %v11482_v55  ;;  %7967 = vmatpush.bf16.msrb.mxu2 %v11739_v38 }
 0x7b3   : > { %v7592_v13 = vpop.f32.mrf.mxu2  ;;  %v7641_v36 = vpop.f32.mrf.mxu3  ;;  %v8641_v2 = vmul.f32 %v17758_v26, %v17758_v26 }
 0x7b4   : > { %v7494_v60 = vpop.f32.mrf.mxu0  ;;  %v7543_v10 = vpop.f32.mrf.mxu1  ;;  %v17760_v18 = vadd.f32 %v7641_v36, %v7592_v13  ;;  %v11611_v13 = vor.u32 %v12773_v27, %v11610_v35  ;;  %v8556_v36 = vadd.f32 %v8555_v45, %v17758_v26  ;;  %7869 = vmatpush.bf16.msrb.mxu0 %v11483_v61  ;;  %v19180_v45 = vld [vmem:[#allocation29_spill] sm:$0xff] }
 0x7b5   : > { %v7495_v30 = vadd.f32 %v7494_v60, %v17488_v22  ;;  %v11866_v22 = vld [vmem:[%s18718_s1 + $0xf68] sm:$0xf] }
 0x7b6   : > { %v11867_v51 = vor.u32 %v12837_v57, %v11866_v22  ;;  %v19179_v60 = vld [vmem:[#allocation28_spill] sm:$0xff]  ;;  %7918 = vmatpush.bf16.msrb.mxu1 %v11611_v13 }
 0x7b7   : > { %v7544_v53 = vadd.f32 %v7543_v10, %v7495_v30  ;;  %v8692_v10 = vadd.f32 %v8691_v14, %v8641_v2 }
 0x7b8   : > { %7790 = vmatmul.bf16.gmra.mxu2 %v17490_v52  ;;  %7839 = vmatmul.bf16.gmra.mxu3 %v17492_v16 }
 0x7b9   : > { %v8473_v24 = vadd.f32 %v7544_v53, %v19179_v60  ;;  %8016 = vmatpush.bf16.msrb.mxu3 %v11867_v51  ;;  %v11466_v60 = vld [vmem:[%s18718_s1 + $0xc48] sm:$0xf] }
 0x7bb   : > { %v8557_v30 = vadd.f32 %v8556_v36, %v8473_v24  ;;  %v8645_v34 = vmul.f32 %v8473_v24, %v8473_v24  ;;  %v7595_v55 = vpop.f32.mrf.mxu2  ;;  %v7644_v63 = vpop.f32.mrf.mxu3  ;;  %v12801_v36 = vld [vmem:[%s18718_s1 + $0xe54] sm:$0xf0] }
 0x7bc   : > { %v7497_v22 = vpop.f32.mrf.mxu0  ;;  %v7546_v57 = vpop.f32.mrf.mxu1  ;;  %v17793_v46 = vadd.f32 %v7644_v63, %v7595_v55 }
 0x7bd   : > { %v8693_v52 = vadd.f32 %v8692_v10, %v8645_v34  ;;  %v7498_v35 = vadd.f32 %v7497_v22, %v17514_v49  ;;  %v11722_v49 = vld [vmem:[%s18718_s1 + $0xe48] sm:$0xf]  ;;  %v12737_v10 = vld [vmem:[%s18718_s1 + $0xc54] sm:$0xf0] }
 0x7be   : > { %v11723_v24 = vor.u32 %v12801_v36, %v11722_v49  ;;  %v12833_v34 = vld [vmem:[%s18718_s1 + $0xf54] sm:$0xf0]  ;;  %v11467_v22 = vor.u32 %v12737_v10, %v11466_v60 }
 0x7bf   : > { %v7547_v27 = vadd.f32 %v7546_v57, %v7498_v35  ;;  %7692 = vmatmul.bf16.gmra.mxu0 %v17167_v6  ;;  %7741 = vmatmul.bf16.gmra.mxu1 %v17169_v17  ;;  %v11594_v35 = vld [vmem:[%s18718_s1 + $0xd48] sm:$0xf] }
 0x7c0   : > { %7968 = vmatpush.bf16.msrb.mxu2 %v11723_v24  ;;  %7870 = vmatpush.bf16.msrb.mxu0 %v11467_v22 }
 0x7c1   : > { %v17799_v38 = vadd.f32 %v7547_v27, %v19180_v45  ;;  %v12769_v27 = vld [vmem:[%s18718_s1 + $0xd54] sm:$0xf0] }
 0x7c2   : > { %v11595_v45 = vor.u32 %v12769_v27, %v11594_v35 }
 0x7c3   : > { %v7597_v14 = vpop.f32.mrf.mxu2  ;;  %v7646_v2 = vpop.f32.mrf.mxu3  ;;  %v8649_v55 = vmul.f32 %v17799_v38, %v17799_v38 }
 0x7c4   : > { %v7499_v53 = vpop.f32.mrf.mxu0  ;;  %v7548_v61 = vpop.f32.mrf.mxu1  ;;  %v17801_v51 = vadd.f32 %v7646_v2, %v7597_v14  ;;  %v8558_v14 = vadd.f32 %v8557_v30, %v17799_v38  ;;  %v19181_v2 = vld [vmem:[#allocation30_spill] sm:$0xff]  ;;  %7919 = vmatpush.bf16.msrb.mxu1 %v11595_v45  ;;  %v19182_v30 = vld [vmem:[#allocation31_spill] sm:$0xff] }
 0x7c5   : > { %v7500_v13 = vadd.f32 %v7499_v53, %v17524_v1  ;;  %v11850_v1 = vld [vmem:[%s18718_s1 + $0xf48] sm:$0xf] }
 0x7c6   : > { %v11851_v57 = vor.u32 %v12833_v34, %v11850_v1 }
 0x7c7   : > { %v7549_v63 = vadd.f32 %v7548_v61, %v7500_v13  ;;  %v8694_v61 = vadd.f32 %v8693_v52, %v8649_v55 }
 0x7c8   : > { %7795 = vmatmul.bf16.gmra.mxu2 %v17526_v56  ;;  %7844 = vmatmul.bf16.gmra.mxu3 %v17528_v44 }
 0x7c9   : > { %v8481_v53 = vadd.f32 %v7549_v63, %v19181_v2  ;;  %8017 = vmatpush.bf16.msrb.mxu3 %v11851_v57  ;;  %v11450_v2 = vld [vmem:[%s18718_s1 + $0xc28] sm:$0xf] }
 0x7cb   : > { %v8559_v13 = vadd.f32 %v8558_v14, %v8481_v53  ;;  %v8653_v49 = vmul.f32 %v8481_v53, %v8481_v53  ;;  %v7600_v36 = vpop.f32.mrf.mxu2  ;;  %v7649_v60 = vpop.f32.mrf.mxu3  ;;  %v12797_v14 = vld [vmem:[%s18718_s1 + $0xe34] sm:$0xf0] }
 0x7cc   : > { %v7502_v10 = vpop.f32.mrf.mxu0  ;;  %v7551_v1 = vpop.f32.mrf.mxu1  ;;  %v17834_v34 = vadd.f32 %v7649_v60, %v7600_v36 }
 0x7cd   : > { %v8695_v56 = vadd.f32 %v8694_v61, %v8653_v49  ;;  %v7503_v35 = vadd.f32 %v7502_v10, %v17550_v29  ;;  %v11706_v29 = vld [vmem:[%s18718_s1 + $0xe28] sm:$0xf]  ;;  %v12733_v61 = vld [vmem:[%s18718_s1 + $0xc34] sm:$0xf0] }
 0x7ce   : > { %v11707_v53 = vor.u32 %v12797_v14, %v11706_v29  ;;  %v12829_v49 = vld [vmem:[%s18718_s1 + $0xf34] sm:$0xf0]  ;;  %v11451_v10 = vor.u32 %v12733_v61, %v11450_v2 }
 0x7cf   : > { %v7552_v27 = vadd.f32 %v7551_v1, %v7503_v35  ;;  %7697 = vmatmul.bf16.gmra.mxu0 %v17209_v3  ;;  %7746 = vmatmul.bf16.gmra.mxu1 %v17211_v42  ;;  %v11578_v35 = vld [vmem:[%s18718_s1 + $0xd28] sm:$0xf] }
 0x7d0   : > { %7969 = vmatpush.bf16.msrb.mxu2 %v11707_v53  ;;  %7871 = vmatpush.bf16.msrb.mxu0 %v11451_v10 }
 0x7d1   : > { %v17840_v24 = vadd.f32 %v7552_v27, %v19182_v30  ;;  %v12765_v27 = vld [vmem:[%s18718_s1 + $0xd34] sm:$0xf0] }
 0x7d2   : > { %v11579_v30 = vor.u32 %v12765_v27, %v11578_v35 }
 0x7d3   : > { %v7602_v52 = vpop.f32.mrf.mxu2  ;;  %v7651_v55 = vpop.f32.mrf.mxu3  ;;  %v8657_v36 = vmul.f32 %v17840_v24, %v17840_v24 }
 0x7d4   : > { %v7504_v63 = vpop.f32.mrf.mxu0  ;;  %v7553_v22 = vpop.f32.mrf.mxu1  ;;  %v17842_v57 = vadd.f32 %v7651_v55, %v7602_v52  ;;  %v8560_v52 = vadd.f32 %v8559_v13, %v17840_v24  ;;  %v19183_v55 = vld [vmem:[#allocation32_spill] sm:$0xff]  ;;  %7920 = vmatpush.bf16.msrb.mxu1 %v11579_v30  ;;  %v19184_v13 = vld [vmem:[#allocation33_spill] sm:$0xff] }
 0x7d5   : > { %v7505_v45 = vadd.f32 %v7504_v63, %v17560_v43  ;;  %v11834_v43 = vld [vmem:[%s18718_s1 + $0xf28] sm:$0xf] }
 0x7d6   : > { %v11835_v1 = vor.u32 %v12829_v49, %v11834_v43 }
 0x7d7   : > { %v7554_v60 = vadd.f32 %v7553_v22, %v7505_v45  ;;  %v8696_v22 = vadd.f32 %v8695_v56, %v8657_v36 }
 0x7d8   : > { %7800 = vmatmul.bf16.gmra.mxu2 %v17562_v21  ;;  %7849 = vmatmul.bf16.gmra.mxu3 %v17564_v41 }
 0x7d9   : > { %v8489_v63 = vadd.f32 %v7554_v60, %v19183_v55  ;;  %8018 = vmatpush.bf16.msrb.mxu3 %v11835_v1  ;;  %v11434_v55 = vld [vmem:[%s18718_s1 + $0xc08] sm:$0xf] }
 0x7db   : > { %v8561_v45 = vadd.f32 %v8560_v52, %v8489_v63  ;;  %v8661_v29 = vmul.f32 %v8489_v63, %v8489_v63  ;;  %v7605_v14 = vpop.f32.mrf.mxu2  ;;  %v7654_v2 = vpop.f32.mrf.mxu3  ;;  %v12793_v52 = vld [vmem:[%s18718_s1 + $0xe14] sm:$0xf0] }
 0x7dc   : > { %v7507_v61 = vpop.f32.mrf.mxu0  ;;  %v7556_v43 = vpop.f32.mrf.mxu1  ;;  %v17875_v49 = vadd.f32 %v7654_v2, %v7605_v14 }
 0x7dd   : > { %v8697_v21 = vadd.f32 %v8696_v22, %v8661_v29  ;;  %v7508_v35 = vadd.f32 %v7507_v61, %v17586_v54  ;;  %v11690_v54 = vld [vmem:[%s18718_s1 + $0xe08] sm:$0xf]  ;;  %v12729_v22 = vld [vmem:[%s18718_s1 + $0xc14] sm:$0xf0] }
 0x7de   : > { %v11691_v63 = vor.u32 %v12793_v52, %v11690_v54  ;;  %v12825_v29 = vld [vmem:[%s18718_s1 + $0xf14] sm:$0xf0]  ;;  %v11435_v61 = vor.u32 %v12729_v22, %v11434_v55 }
 0x7df   : > { %v7557_v27 = vadd.f32 %v7556_v43, %v7508_v35  ;;  %7702 = vmatmul.bf16.gmra.mxu0 %v17251_v58  ;;  %7751 = vmatmul.bf16.gmra.mxu1 %v17253_v32  ;;  %v11562_v35 = vld [vmem:[%s18718_s1 + $0xd08] sm:$0xf] }
 0x7e0   : > { %7970 = vmatpush.bf16.msrb.mxu2 %v11691_v63  ;;  %7872 = vmatpush.bf16.msrb.mxu0 %v11435_v61  ;;  %v12885_v61 = vld [vmem:[%s18718_s1 + $0x10f4] sm:$0xf0] }
 0x7e1   : > { %v17881_v53 = vadd.f32 %v7557_v27, %v19184_v13  ;;  %v12761_v27 = vld [vmem:[%s18718_s1 + $0xd14] sm:$0xf0] }
 0x7e2   : > { %v11563_v13 = vor.u32 %v12761_v27, %v11562_v35 }
 0x7e3   : > { %v7607_v56 = vpop.f32.mrf.mxu2  ;;  %v7656_v36 = vpop.f32.mrf.mxu3  ;;  %v8665_v14 = vmul.f32 %v17881_v53, %v17881_v53 }
 0x7e4   : > { %v7509_v60 = vpop.f32.mrf.mxu0  ;;  %v7558_v10 = vpop.f32.mrf.mxu1  ;;  %v17883_v1 = vadd.f32 %v7656_v36, %v7607_v56  ;;  %v8562_v56 = vadd.f32 %v8561_v45, %v17881_v53  ;;  %v19185_v36 = vld [vmem:[#allocation34_spill] sm:$0xff]  ;;  %7921 = vmatpush.bf16.msrb.mxu1 %v11563_v13  ;;  %v19186_v45 = vld [vmem:[#allocation35_spill] sm:$0xff] }
 0x7e5   : > { %v7510_v30 = vadd.f32 %v7509_v60, %v17596_v9  ;;  %v11818_v9 = vld [vmem:[%s18718_s1 + $0xf08] sm:$0xf]  ;;  %v11676_v13 = vld [vmem:[%s18718_s1 + $0xdf8] sm:$0xf0] }
 0x7e6   : > { %v11819_v43 = vor.u32 %v12825_v29, %v11818_v9 }
 0x7e7   : > { %v7559_v2 = vadd.f32 %v7558_v10, %v7510_v30  ;;  %v8698_v10 = vadd.f32 %v8697_v21, %v8665_v14  ;;  %v12755_v21 = vld [vmem:[%s18718_s1 + $0xcec] sm:$0xf]  ;;  %v11548_v14 = vld [vmem:[%s18718_s1 + $0xcf8] sm:$0xf0] }
 0x7e8   : > { %7805 = vmatmul.bf16.gmra.mxu2 %v17598_v62  ;;  %7854 = vmatmul.bf16.gmra.mxu3 %v17600_v23 }
 0x7e9   : > { %v8497_v60 = vadd.f32 %v7559_v2, %v19185_v36  ;;  %8019 = vmatpush.bf16.msrb.mxu3 %v11819_v43  ;;  %v11551_v2 = vor.u32 %v12755_v21, %v11548_v14  ;;  %v12787_v43 = vld [vmem:[%s18718_s1 + $0xdec] sm:$0xf]  ;;  %v12186_v14 = vld [vmem:[%s18718_s1 + $0x11e8] sm:$0xf] }
 0x7eb   : > { %v8563_v30 = vadd.f32 %v8562_v56, %v8497_v60  ;;  %v8669_v54 = vmul.f32 %v8497_v60, %v8497_v60  ;;  %v7610_v52 = vpop.f32.mrf.mxu2  ;;  %v7659_v55 = vpop.f32.mrf.mxu3  ;;  %8159 = vmatpush.bf16.msra.mxu2 %v11551_v2 }
 0x7ec   : > { %v7512_v22 = vpop.f32.mrf.mxu0  ;;  %v7561_v9 = vpop.f32.mrf.mxu1  ;;  %v17916_v29 = vadd.f32 %v7659_v55, %v7610_v52 }
 0x7ed   : > { %v8699_v62 = vadd.f32 %v8698_v10, %v8669_v54  ;;  %v7513_v35 = vadd.f32 %v7512_v22, %v17604_v59  ;;  %v12058_v59 = vld [vmem:[%s18718_s1 + $0x10e8] sm:$0xf]  ;;  %v11679_v10 = vor.u32 %v12787_v43, %v11676_v13 }
 0x7ee   : > { %v12059_v60 = vor.u32 %v12885_v61, %v12058_v59 }
 0x7ef   : > { %v7562_v27 = vadd.f32 %v7561_v9, %v7513_v35  ;;  %7707 = vmatmul.bf16.gmra.mxu0 %v17293_v39  ;;  %7756 = vmatmul.bf16.gmra.mxu1 %v17295_v37 }
 0x7f0   : > { %8061 = vmatpush.bf16.msra.mxu0 %v12059_v60  ;;  %8208 = vmatpush.bf16.msra.mxu3 %v11679_v10 }
 0x7f1   : > { %v17922_v63 = vadd.f32 %v7562_v27, %v19186_v45  ;;  %v19187_v45 = vld [vmem:[#allocation36_spill] sm:$0xff] }
 0x7f3   : > { %v7612_v56 = vpop.f32.mrf.mxu2  ;;  %v7661_v36 = vpop.f32.mrf.mxu3  ;;  %v8673_v9 = vmul.f32 %v17922_v63, %v17922_v63  ;;  %v8564_v27 = vadd.f32 %v8563_v30, %v17922_v63 }
 0x7f4   : > { %v7514_v54 = vpop.f32.mrf.mxu0  ;;  %v7563_v52 = vpop.f32.mrf.mxu1  ;;  %v17942_v55 = vadd.f32 %v7661_v36, %v7612_v56 }
 0x7f5   : > { %v7515_v22 = vadd.f32 %v7514_v54, %v17632_v20  ;;  %v12917_v20 = vld [vmem:[%s18718_s1 + $0x11f4] sm:$0xf0]  ;;  %v8700_v2 = vadd.f32 %v8699_v62, %v8673_v9  ;;  %v12751_v62 = vld [vmem:[%s18718_s1 + $0xccc] sm:$0xf]  ;;  %v11532_v9 = vld [vmem:[%s18718_s1 + $0xcd8] sm:$0xf0] }
 0x7f6   : > { %v12187_v59 = vor.u32 %v12917_v20, %v12186_v14  ;;  %v12783_v14 = vld [vmem:[%s18718_s1 + $0xdcc] sm:$0xf]  ;;  %v11660_v20 = vld [vmem:[%s18718_s1 + $0xdd8] sm:$0xf0] }
 0x7f7   : > { %v7564_v35 = vadd.f32 %v7563_v52, %v7515_v22  ;;  %v19188_v22 = vld [vmem:[#allocation80_spill] sm:$0xff] }
 0x7f8   : > { %7810 = vmatmul.bf16.gmra.mxu2 %v17634_v33  ;;  %7859 = vmatmul.bf16.gmra.mxu3 %v17636_v48 }
 0x7f9   : > { %v8505_v21 = vadd.f32 %v7564_v35, %v19187_v45  ;;  %8110 = vmatpush.bf16.msra.mxu1 %v12187_v59  ;;  %v19189_v35 = vld [vmem:[#allocation5_spill] sm:$0xff] }
 0x7fb   : > { %v8565_v61 = vadd.f32 %v8564_v27, %v8505_v21  ;;  %v8677_v43 = vmul.f32 %v8505_v21, %v8505_v21  ;;  %v7615_v13 = vpop.f32.mrf.mxu2  ;;  %v7664_v56 = vpop.f32.mrf.mxu3  ;;  %v11535_v27 = vor.u32 %v12751_v62, %v11532_v9  ;;  %v12881_v21 = vld [vmem:[%s18718_s1 + $0x10d4] sm:$0xf0]  ;;  %v19190_v9 = vld [vmem:[#allocation37_spill] sm:$0xff] }
 0x7fc   : > { %v7517_v36 = vpop.f32.mrf.mxu0  ;;  %v7566_v60 = vpop.f32.mrf.mxu1  ;;  %v17957_v10 = vadd.f32 %v7664_v56, %v7615_v13  ;;  %v11663_v13 = vor.u32 %v12783_v14, %v11660_v20 }
 0x7fd   : > { %v8701_v30 = vadd.f32 %v8700_v2, %v8677_v43  ;;  %v7518_v54 = vadd.f32 %v7517_v36, %v17640_v28  ;;  %v12042_v28 = vld [vmem:[%s18718_s1 + $0x10c8] sm:$0xf]  ;;  %8160 = vmatpush.bf16.msra.mxu2 %v11535_v27 }
 0x7fe   : > { %v12043_v43 = vor.u32 %v12881_v21, %v12042_v28  ;;  %8209 = vmatpush.bf16.msra.mxu3 %v11663_v13  ;;  %v12170_v27 = vld [vmem:[%s18718_s1 + $0x11c8] sm:$0xf]  ;;  %v8549_v21 = vld [vmem:[%s18720_s3] sm:$0xff] }
 0x7ff   : > { %v7567_v52 = vadd.f32 %v7566_v60, %v7518_v54  ;;  %7712 = vmatmul.bf16.gmra.mxu0 %v17335_v5  ;;  %7761 = vmatmul.bf16.gmra.mxu1 %v19188_v22  ;;  %v8621_v13 = vld [vmem:[%s18720_s3 + $0x20] sm:$0xff] }
 0x800   : > { %8062 = vmatpush.bf16.msra.mxu0 %v12043_v43 }
 0x801   : > { %v17963_v45 = vadd.f32 %v7567_v52, %v19189_v35 }
 0x803   : > { %v7617_v59 = vpop.f32.mrf.mxu2  ;;  %v7666_v2 = vpop.f32.mrf.mxu3  ;;  %v8681_v52 = vmul.f32 %v17963_v45, %v17963_v45  ;;  %v8566_v62 = vadd.f32 %v8565_v61, %v17963_v45 }
 0x804   : > { %v7519_v56 = vpop.f32.mrf.mxu0  ;;  %v7568_v36 = vpop.f32.mrf.mxu1  ;;  %v17983_v60 = vadd.f32 %v7666_v2, %v7617_v59 }
 0x805   : > { %v7520_v54 = vadd.f32 %v7519_v56, %v17668_v19  ;;  %v12913_v19 = vld [vmem:[%s18718_s1 + $0x11d4] sm:$0xf0]  ;;  %v8702_v20 = vadd.f32 %v8701_v30, %v8681_v52 }
 0x806   : > { %v12171_v14 = vor.u32 %v12913_v19, %v12170_v27  ;;  %v12747_v19 = vld [vmem:[%s18718_s1 + $0xcac] sm:$0xf] }
 0x807   : > { %v7569_v35 = vadd.f32 %v7568_v36, %v7520_v54 }
 0x808   : > { %7971 = vmatmul.bf16.vlgmr.msrb.gmra.mxu2 %v17039_v7  ;;  %8020 = vmatmul.bf16.vlgmr.msrb.gmra.mxu3 %v17041_v15 }
 0x809   : > { %v8513_v28 = vadd.f32 %v7569_v35, %v19190_v9  ;;  %8111 = vmatpush.bf16.msra.mxu1 %v12171_v14  ;;  %v12026_v14 = vld [vmem:[%s18718_s1 + $0x10a8] sm:$0xf] }
 0x80b   : > { %v8567_v59 = vadd.f32 %v8566_v62, %v8513_v28  ;;  %v8685_v2 = vmul.f32 %v8513_v28, %v8513_v28  ;;  %v7776_v43 = vpop.f32.mrf.mxu2  ;;  %v7825_v61 = vpop.f32.mrf.mxu3  ;;  %v19191_v62 = vld [vmem:[#allocation4_spill] sm:$0xff]  ;;  %v19192_v28 = vld [vmem:[#allocation38_spill] sm:$0xff] }
 0x80c   : > { %v7678_v56 = vpop.f32.mrf.mxu0  ;;  %v7727_v36 = vpop.f32.mrf.mxu1 }
 0x80d   : > { %v8613_v54 = vadd.f32 %v8567_v59, %v8549_v21  ;;  %v8703_v35 = vadd.f32 %v8702_v20, %v8685_v2  ;;  %v7679_v9 = vadd.f32 %v7678_v56, %v17670_v0  ;;  %v11516_v0 = vld [vmem:[%s18718_s1 + $0xcb8] sm:$0xf0]  ;;  %v12877_v20 = vld [vmem:[%s18718_s1 + $0x10b4] sm:$0xf0]  ;;  %v12779_v59 = vld [vmem:[%s18718_s1 + $0xdac] sm:$0xf] }
 0x80e   : > { %v11519_v21 = vor.u32 %v12747_v19, %v11516_v0  ;;  %v12027_v56 = vor.u32 %v12877_v20, %v12026_v14  ;;  %v12909_v14 = vld [vmem:[%s18718_s1 + $0x11b4] sm:$0xf0] }
 0x80f   : > { %8617 = vst [vmem:[%s18720_s3] sm:$0xff] %v8613_v54  ;;  %v8749_v30 = vadd.f32 %v8703_v35, %v8621_v13  ;;  %v7728_v52 = vadd.f32 %v7727_v36, %v7679_v9  ;;  %7873 = vmatmul.bf16.vlgmr.msrb.gmra.mxu0 %v19191_v62  ;;  %7922 = vmatmul.bf16.vlgmr.msrb.gmra.mxu1 %v19192_v28  ;;  %v11644_v36 = vld [vmem:[%s18718_s1 + $0xdb8] sm:$0xf0] }
 0x810   : > { %8161 = vmatpush.bf16.msra.mxu2 %v11519_v21  ;;  %v11647_v9 = vor.u32 %v12779_v59, %v11644_v36  ;;  %8063 = vmatpush.bf16.msra.mxu0 %v12027_v56  ;;  %v12154_v21 = vld [vmem:[%s18718_s1 + $0x11a8] sm:$0xf]  ;;  %v19194_v36 = vld [vmem:[#allocation7_spill] sm:$0xff] }
 0x811   : > { %8753 = vst [vmem:[%s18720_s3 + $0x20] sm:$0xff] %v8749_v30  ;;  %v7777_v27 = vadd.f32 %v7776_v43, %v7728_v52  ;;  %v19193_v30 = vld [vmem:[#allocation6_spill] sm:$0xff] }
 0x812   : > { %8210 = vmatpush.bf16.msra.mxu3 %v11647_v9 }
 0x813   : > { %v7826_v2 = vadd.f32 %v7825_v61, %v7777_v27  ;;  %v7778_v43 = vpop.f32.mrf.mxu2  ;;  %v7827_v13 = vpop.f32.mrf.mxu3 }
 0x814   : > { %v7680_v54 = vpop.f32.mrf.mxu0  ;;  %v7729_v35 = vpop.f32.mrf.mxu1 }
 0x815   : > { %v8454_v52 = vadd.f32 %v7826_v2, %v19193_v30  ;;  %v7681_v19 = vadd.f32 %v7680_v54, %v17678_v12  ;;  %v12155_v12 = vor.u32 %v12909_v14, %v12154_v21  ;;  %v12873_v14 = vld [vmem:[%s18718_s1 + $0x1094] sm:$0xf0] }
 0x817   : > { %v8517_v61 = vpack.c.bf16 %v8454_v52, %v17676_v40  ;;  %v7730_v27 = vadd.f32 %v7729_v35, %v7681_v19  ;;  %8112 = vmatpush.bf16.msra.mxu1 %v12155_v12  ;;  %v12775_v12 = vld [vmem:[%s18718_s1 + $0xd8c] sm:$0xf] }
 0x818   : > { %7976 = vmatmul.bf16.gmra.mxu2 %v17083_v25  ;;  %8025 = vmatmul.bf16.gmra.mxu3 %v17085_v8 }
 0x819   : > { %8533 = vst [vmem:[%s13011_s22] sm:$0xff] %v8517_v61  ;;  %v7779_v0 = vadd.f32 %v7778_v43, %v7730_v27  ;;  %v8626_v43 = vmul.f32 %v8454_v52, %v8454_v52  ;;  %v19195_v61 = vld [vmem:[#allocation43_spill] sm:$0xff]  ;;  %v19196_v27 = vld [vmem:[#allocation44_spill] sm:$0xff] }
 0x81b   : > { %v7828_v20 = vadd.f32 %v7827_v13, %v7779_v0  ;;  %v7781_v59 = vpop.f32.mrf.mxu2  ;;  %v7830_v2 = vpop.f32.mrf.mxu3  ;;  %v12743_v13 = vld [vmem:[%s18718_s1 + $0xc8c] sm:$0xf]  ;;  %v11500_v0 = vld [vmem:[%s18718_s1 + $0xc98] sm:$0xf0] }
 0x81c   : > { %v7683_v40 = vpop.f32.mrf.mxu0  ;;  %v7732_v56 = vpop.f32.mrf.mxu1 }
 0x81d   : > { %v8458_v54 = vadd.f32 %v7828_v20, %v19194_v36  ;;  %v7684_v35 = vadd.f32 %v7683_v40, %v17711_v11  ;;  %v12010_v11 = vld [vmem:[%s18718_s1 + $0x1088] sm:$0xf]  ;;  %v11628_v20 = vld [vmem:[%s18718_s1 + $0xd98] sm:$0xf0] }
 0x81e   : > { %v12011_v36 = vor.u32 %v12873_v14, %v12010_v11  ;;  %v12138_v11 = vld [vmem:[%s18718_s1 + $0x1188] sm:$0xf] }
 0x81f   : > { %v8568_v9 = vadd.f32 %v8458_v54, %v8454_v52  ;;  %v8630_v30 = vmul.f32 %v8458_v54, %v8458_v54  ;;  %v7733_v19 = vadd.f32 %v7732_v56, %v7684_v35  ;;  %7878 = vmatmul.bf16.gmra.mxu0 %v19195_v61  ;;  %7927 = vmatmul.bf16.gmra.mxu1 %v19196_v27 }
 0x820   : > { %v11503_v52 = vor.u32 %v12743_v13, %v11500_v0  ;;  %v11631_v54 = vor.u32 %v12775_v12, %v11628_v20  ;;  %8064 = vmatpush.bf16.msra.mxu0 %v12011_v36  ;;  %v19198_v0 = vld [vmem:[#allocation23_spill] sm:$0xff]  ;;  %v19199_v36 = vld [vmem:[#allocation9_spill] sm:$0xff] }
 0x821   : > { %v8704_v8 = vadd.f32 %v8630_v30, %v8626_v43  ;;  %v7782_v21 = vadd.f32 %v7781_v59, %v7733_v19  ;;  %v19197_v30 = vld [vmem:[#allocation8_spill] sm:$0xff] }
 0x822   : > { %8162 = vmatpush.bf16.msra.mxu2 %v11503_v52  ;;  %8211 = vmatpush.bf16.msra.mxu3 %v11631_v54 }
 0x823   : > { %v7831_v59 = vadd.f32 %v7830_v2, %v7782_v21  ;;  %v7783_v40 = vpop.f32.mrf.mxu2  ;;  %v7832_v56 = vpop.f32.mrf.mxu3 }
 0x824   : > { %v7685_v35 = vpop.f32.mrf.mxu0  ;;  %v7734_v43 = vpop.f32.mrf.mxu1 }
 0x825   : > { %v8462_v19 = vadd.f32 %v7831_v59, %v19197_v30  ;;  %v7686_v13 = vadd.f32 %v7685_v35, %v17722_v4  ;;  %v12905_v4 = vld [vmem:[%s18718_s1 + $0x1194] sm:$0xf0]  ;;  %v19201_v35 = vld [vmem:[#allocation48_spill] sm:$0xff] }
 0x826   : > { %v12139_v52 = vor.u32 %v12905_v4, %v12138_v11 }
 0x827   : > { %v8519_v25 = vpack.c.bf16 %v8462_v19, %v19198_v0  ;;  %v8569_v15 = vadd.f32 %v8568_v9, %v8462_v19  ;;  %v8634_v7 = vmul.f32 %v8462_v19, %v8462_v19  ;;  %v7735_v48 = vadd.f32 %v7734_v43, %v7686_v13  ;;  %v11484_v19 = vld [vmem:[%s18718_s1 + $0xc78] sm:$0xf0]  ;;  %v12869_v13 = vld [vmem:[%s18718_s1 + $0x1074] sm:$0xf0]  ;;  %v12771_v0 = vld [vmem:[%s18718_s1 + $0xd6c] sm:$0xf] }
 0x828   : > { %7981 = vmatmul.bf16.gmra.mxu2 %v17125_v50  ;;  %8030 = vmatmul.bf16.gmra.mxu3 %v17127_v31 }
 0x829   : > { %8535 = vst [vmem:[%s13011_s22 + $0x10] sm:$0xff] %v8519_v25  ;;  %v8705_v2 = vadd.f32 %v8704_v8, %v8634_v7  ;;  %v7784_v21 = vadd.f32 %v7783_v40, %v7735_v48  ;;  %8113 = vmatpush.bf16.msra.mxu1 %v12139_v52  ;;  %v19200_v40 = vld [vmem:[#allocation47_spill] sm:$0xff] }
 0x82b   : > { %v7833_v14 = vadd.f32 %v7832_v56, %v7784_v21  ;;  %v7786_v9 = vpop.f32.mrf.mxu2  ;;  %v7835_v12 = vpop.f32.mrf.mxu3  ;;  %v12739_v56 = vld [vmem:[%s18718_s1 + $0xc6c] sm:$0xf] }
 0x82c   : > { %v7688_v20 = vpop.f32.mrf.mxu0  ;;  %v7737_v59 = vpop.f32.mrf.mxu1 }
 0x82d   : > { %v8466_v54 = vadd.f32 %v7833_v14, %v19199_v36  ;;  %v7689_v7 = vadd.f32 %v7688_v20, %v17752_v47  ;;  %v11487_v47 = vor.u32 %v12739_v56, %v11484_v19  ;;  %v12122_v19 = vld [vmem:[%s18718_s1 + $0x1168] sm:$0xf] }
 0x82f   : > { %v8570_v25 = vadd.f32 %v8569_v15, %v8466_v54  ;;  %v8638_v8 = vmul.f32 %v8466_v54, %v8466_v54  ;;  %v7738_v48 = vadd.f32 %v7737_v59, %v7689_v7  ;;  %7883 = vmatmul.bf16.gmra.mxu0 %v19200_v40  ;;  %7932 = vmatmul.bf16.gmra.mxu1 %v19201_v35  ;;  %v11994_v15 = vld [vmem:[%s18718_s1 + $0x1068] sm:$0xf]  ;;  %v19202_v59 = vld [vmem:[#allocation10_spill] sm:$0xff] }
 0x830   : > { %v11995_v52 = vor.u32 %v12869_v13, %v11994_v15  ;;  %8163 = vmatpush.bf16.msra.mxu2 %v11487_v47 }
 0x831   : > { %v8706_v43 = vadd.f32 %v8705_v2, %v8638_v8  ;;  %v7787_v30 = vadd.f32 %v7786_v9, %v7738_v48  ;;  %v11612_v2 = vld [vmem:[%s18718_s1 + $0xd78] sm:$0xf0] }
 0x832   : > { %v11615_v14 = vor.u32 %v12771_v0, %v11612_v2  ;;  %8065 = vmatpush.bf16.msra.mxu0 %v11995_v52  ;;  %v19203_v2 = vld [vmem:[#allocation11_spill] sm:$0xff] }
 0x833   : > { %v7836_v21 = vadd.f32 %v7835_v12, %v7787_v30  ;;  %v7788_v11 = vpop.f32.mrf.mxu2  ;;  %v7837_v4 = vpop.f32.mrf.mxu3 }
 0x834   : > { %v7690_v9 = vpop.f32.mrf.mxu0  ;;  %v7739_v20 = vpop.f32.mrf.mxu1  ;;  %8212 = vmatpush.bf16.msra.mxu3 %v11615_v14 }
 0x835   : > { %v8470_v36 = vadd.f32 %v7836_v21, %v19202_v59  ;;  %v7691_v54 = vadd.f32 %v7690_v9, %v17760_v18  ;;  %v12901_v18 = vld [vmem:[%s18718_s1 + $0x1174] sm:$0xf0] }
 0x836   : > { %v12123_v15 = vor.u32 %v12901_v18, %v12122_v19  ;;  %v19204_v9 = vld [vmem:[#allocation50_spill] sm:$0xff] }
 0x837   : > { %v8521_v7 = vpack.c.bf16 %v8470_v36, %v17758_v26  ;;  %v8571_v8 = vadd.f32 %v8570_v25, %v8470_v36  ;;  %v8642_v48 = vmul.f32 %v8470_v36, %v8470_v36  ;;  %v7740_v56 = vadd.f32 %v7739_v20, %v7691_v54  ;;  %v19205_v20 = vld [vmem:[#allocation53_spill] sm:$0xff]  ;;  %v11468_v54 = vld [vmem:[%s18718_s1 + $0xc58] sm:$0xf0] }
 0x838   : > { %7986 = vmatmul.bf16.gmra.mxu2 %v17167_v6  ;;  %8035 = vmatmul.bf16.gmra.mxu3 %v17169_v17 }
 0x839   : > { %8537 = vst [vmem:[%s13011_s22 + $0x20] sm:$0xff] %v8521_v7  ;;  %v8707_v12 = vadd.f32 %v8706_v43, %v8642_v48  ;;  %v7789_v30 = vadd.f32 %v7788_v11, %v7740_v56  ;;  %8114 = vmatpush.bf16.msra.mxu1 %v12123_v15  ;;  %v12767_v48 = vld [vmem:[%s18718_s1 + $0xd4c] sm:$0xf]  ;;  %v11596_v56 = vld [vmem:[%s18718_s1 + $0xd58] sm:$0xf0] }
 0x83a   : > { %v11599_v15 = vor.u32 %v12767_v48, %v11596_v56  ;;  %v19207_v48 = vld [vmem:[#allocation13_spill] sm:$0xff] }
 0x83b   : > { %v7838_v26 = vadd.f32 %v7837_v4, %v7789_v30  ;;  %v7791_v25 = vpop.f32.mrf.mxu2  ;;  %v7840_v47 = vpop.f32.mrf.mxu3  ;;  %v12735_v4 = vld [vmem:[%s18718_s1 + $0xc4c] sm:$0xf] }
 0x83c   : > { %v7693_v13 = vpop.f32.mrf.mxu0  ;;  %v7742_v0 = vpop.f32.mrf.mxu1  ;;  %v11471_v7 = vor.u32 %v12735_v4, %v11468_v54  ;;  %8213 = vmatpush.bf16.msra.mxu3 %v11599_v15  ;;  %v12106_v4 = vld [vmem:[%s18718_s1 + $0x1148] sm:$0xf]  ;;  %v19208_v15 = vld [vmem:[#allocation57_spill] sm:$0xff] }
 0x83d   : > { %v8474_v21 = vadd.f32 %v7838_v26, %v19203_v2  ;;  %v7694_v43 = vadd.f32 %v7693_v13, %v17793_v46  ;;  %v11978_v46 = vld [vmem:[%s18718_s1 + $0x1048] sm:$0xf] }
 0x83e   : > { %8164 = vmatpush.bf16.msra.mxu2 %v11471_v7  ;;  %v19206_v13 = vld [vmem:[#allocation12_spill] sm:$0xff] }
 0x83f   : > { %v8572_v11 = vadd.f32 %v8571_v8, %v8474_v21  ;;  %v8646_v52 = vmul.f32 %v8474_v21, %v8474_v21  ;;  %v7743_v14 = vadd.f32 %v7742_v0, %v7694_v43  ;;  %7888 = vmatmul.bf16.gmra.mxu0 %v19204_v9  ;;  %7937 = vmatmul.bf16.gmra.mxu1 %v19205_v20  ;;  %v12865_v8 = vld [vmem:[%s18718_s1 + $0x1054] sm:$0xf0] }
 0x840   : > { %v11979_v18 = vor.u32 %v12865_v8, %v11978_v46 }
 0x841   : > { %v8708_v59 = vadd.f32 %v8707_v12, %v8646_v52  ;;  %v7792_v36 = vadd.f32 %v7791_v25, %v7743_v14 }
 0x842   : > { %8066 = vmatpush.bf16.msra.mxu0 %v11979_v18 }
 0x843   : > { %v7841_v12 = vadd.f32 %v7840_v47, %v7792_v36  ;;  %v7793_v30 = vpop.f32.mrf.mxu2  ;;  %v7842_v19 = vpop.f32.mrf.mxu3 }
 0x844   : > { %v7695_v26 = vpop.f32.mrf.mxu0  ;;  %v7744_v25 = vpop.f32.mrf.mxu1 }
 0x845   : > { %v8478_v0 = vadd.f32 %v7841_v12, %v19206_v13  ;;  %v7696_v2 = vadd.f32 %v7695_v26, %v17801_v51  ;;  %v12897_v51 = vld [vmem:[%s18718_s1 + $0x1154] sm:$0xf0] }
 0x846   : > { %v12107_v54 = vor.u32 %v12897_v51, %v12106_v4  ;;  %v19209_v26 = vld [vmem:[#allocation58_spill] sm:$0xff] }
 0x847   : > { %v8523_v21 = vpack.c.bf16 %v8478_v0, %v17799_v38  ;;  %v8573_v43 = vadd.f32 %v8572_v11, %v8478_v0  ;;  %v8650_v52 = vmul.f32 %v8478_v0, %v8478_v0  ;;  %v7745_v14 = vadd.f32 %v7744_v25, %v7696_v2  ;;  %v11452_v0 = vld [vmem:[%s18718_s1 + $0xc38] sm:$0xf0] }
 0x848   : > { %7991 = vmatmul.bf16.gmra.mxu2 %v17209_v3  ;;  %8040 = vmatmul.bf16.gmra.mxu3 %v17211_v42 }
 0x849   : > { %8539 = vst [vmem:[%s13011_s22 + $0x30] sm:$0xff] %v8523_v21  ;;  %v8709_v47 = vadd.f32 %v8708_v59, %v8650_v52  ;;  %v7794_v36 = vadd.f32 %v7793_v30, %v7745_v14  ;;  %8115 = vmatpush.bf16.msra.mxu1 %v12107_v54  ;;  %v12861_v21 = vld [vmem:[%s18718_s1 + $0x1034] sm:$0xf0]  ;;  %v11580_v52 = vld [vmem:[%s18718_s1 + $0xd38] sm:$0xf0] }
 0x84b   : > { %v7843_v38 = vadd.f32 %v7842_v19, %v7794_v36  ;;  %v7796_v11 = vpop.f32.mrf.mxu2  ;;  %v7845_v46 = vpop.f32.mrf.mxu3  ;;  %v12731_v19 = vld [vmem:[%s18718_s1 + $0xc2c] sm:$0xf] }
 0x84c   : > { %v7698_v7 = vpop.f32.mrf.mxu0  ;;  %v7747_v8 = vpop.f32.mrf.mxu1  ;;  %v11455_v2 = vor.u32 %v12731_v19, %v11452_v0 }
 0x84d   : > { %v8482_v56 = vadd.f32 %v7843_v38, %v19207_v48  ;;  %v7699_v59 = vadd.f32 %v7698_v7, %v17834_v34  ;;  %v11962_v34 = vld [vmem:[%s18718_s1 + $0x1028] sm:$0xf] }
 0x84e   : > { %v11963_v4 = vor.u32 %v12861_v21, %v11962_v34  ;;  %8165 = vmatpush.bf16.msra.mxu2 %v11455_v2  ;;  %v19211_v21 = vld [vmem:[#allocation15_spill] sm:$0xff] }
 0x84f   : > { %v8574_v12 = vadd.f32 %v8573_v43, %v8482_v56  ;;  %v8654_v30 = vmul.f32 %v8482_v56, %v8482_v56  ;;  %v7748_v18 = vadd.f32 %v7747_v8, %v7699_v59  ;;  %7893 = vmatmul.bf16.gmra.mxu0 %v19208_v15  ;;  %7942 = vmatmul.bf16.gmra.mxu1 %v19209_v26  ;;  %v12763_v43 = vld [vmem:[%s18718_s1 + $0xd2c] sm:$0xf] }
 0x850   : > { %v11583_v51 = vor.u32 %v12763_v43, %v11580_v52  ;;  %8067 = vmatpush.bf16.msra.mxu0 %v11963_v4  ;;  %v19212_v4 = vld [vmem:[#allocation65_spill] sm:$0xff] }
 0x851   : > { %v8710_v25 = vadd.f32 %v8709_v47, %v8654_v30  ;;  %v7797_v13 = vadd.f32 %v7796_v11, %v7748_v18  ;;  %v19210_v11 = vld [vmem:[#allocation14_spill] sm:$0xff] }
 0x852   : > { %8214 = vmatpush.bf16.msra.mxu3 %v11583_v51  ;;  %v19213_v51 = vld [vmem:[#allocation66_spill] sm:$0xff] }
 0x853   : > { %v7846_v14 = vadd.f32 %v7845_v46, %v7797_v13  ;;  %v7798_v47 = vpop.f32.mrf.mxu2  ;;  %v7847_v36 = vpop.f32.mrf.mxu3  ;;  %v12090_v13 = vld [vmem:[%s18718_s1 + $0x1128] sm:$0xf] }
 0x854   : > { %v7700_v54 = vpop.f32.mrf.mxu0  ;;  %v7749_v38 = vpop.f32.mrf.mxu1 }
 0x855   : > { %v8486_v7 = vadd.f32 %v7846_v14, %v19210_v11  ;;  %v7701_v8 = vadd.f32 %v7700_v54, %v17842_v57  ;;  %v12893_v57 = vld [vmem:[%s18718_s1 + $0x1134] sm:$0xf0]  ;;  %v11436_v11 = vld [vmem:[%s18718_s1 + $0xc18] sm:$0xf0] }
 0x856   : > { %v12091_v19 = vor.u32 %v12893_v57, %v12090_v13 }
 0x857   : > { %v8525_v48 = vpack.c.bf16 %v8486_v7, %v17840_v24  ;;  %v8575_v56 = vadd.f32 %v8574_v12, %v8486_v7  ;;  %v8658_v59 = vmul.f32 %v8486_v7, %v8486_v7  ;;  %v7750_v30 = vadd.f32 %v7749_v38, %v7701_v8  ;;  %v12857_v8 = vld [vmem:[%s18718_s1 + $0x1014] sm:$0xf0] }
 0x858   : > { %7996 = vmatmul.bf16.gmra.mxu2 %v17251_v58  ;;  %8045 = vmatmul.bf16.gmra.mxu3 %v17253_v32 }
 0x859   : > { %8541 = vst [vmem:[%s13011_s22 + $0x40] sm:$0xff] %v8525_v48  ;;  %v8711_v46 = vadd.f32 %v8710_v25, %v8658_v59  ;;  %v7799_v18 = vadd.f32 %v7798_v47, %v7750_v30  ;;  %8116 = vmatpush.bf16.msra.mxu1 %v12091_v19  ;;  %v12759_v48 = vld [vmem:[%s18718_s1 + $0xd0c] sm:$0xf] }
 0x85b   : > { %v7848_v24 = vadd.f32 %v7847_v36, %v7799_v18  ;;  %v7801_v12 = vpop.f32.mrf.mxu2  ;;  %v7850_v0 = vpop.f32.mrf.mxu3  ;;  %v12727_v36 = vld [vmem:[%s18718_s1 + $0xc0c] sm:$0xf] }
 0x85c   : > { %v7703_v34 = vpop.f32.mrf.mxu0  ;;  %v7752_v2 = vpop.f32.mrf.mxu1  ;;  %v11439_v7 = vor.u32 %v12727_v36, %v11436_v11 }
 0x85d   : > { %v8490_v43 = vadd.f32 %v7848_v24, %v19211_v21  ;;  %v7704_v25 = vadd.f32 %v7703_v34, %v17875_v49  ;;  %v11946_v49 = vld [vmem:[%s18718_s1 + $0x1008] sm:$0xf] }
 0x85e   : > { %v11947_v18 = vor.u32 %v12857_v8, %v11946_v49  ;;  %8166 = vmatpush.bf16.msra.mxu2 %v11439_v7  ;;  %v19214_v24 = vld [vmem:[#allocation16_spill] sm:$0xff]  ;;  %v19215_v7 = vld [vmem:[#allocation17_spill] sm:$0xff] }
 0x85f   : > { %v8576_v52 = vadd.f32 %v8575_v56, %v8490_v43  ;;  %v8662_v14 = vmul.f32 %v8490_v43, %v8490_v43  ;;  %v7753_v47 = vadd.f32 %v7752_v2, %v7704_v25  ;;  %7898 = vmatmul.bf16.gmra.mxu0 %v19212_v4  ;;  %7947 = vmatmul.bf16.gmra.mxu1 %v19213_v51  ;;  %v11564_v56 = vld [vmem:[%s18718_s1 + $0xd18] sm:$0xf0] }
 0x860   : > { %v11567_v13 = vor.u32 %v12759_v48, %v11564_v56  ;;  %8068 = vmatpush.bf16.msra.mxu0 %v11947_v18  ;;  %v19217_v18 = vld [vmem:[#allocation74_spill] sm:$0xff] }
 0x861   : > { %v8712_v54 = vadd.f32 %v8711_v46, %v8662_v14  ;;  %v7802_v38 = vadd.f32 %v7801_v12, %v7753_v47  ;;  %v12074_v47 = vld [vmem:[%s18718_s1 + $0x1108] sm:$0xf] }
 0x862   : > { %8215 = vmatpush.bf16.msra.mxu3 %v11567_v13 }
 0x863   : > { %v7851_v59 = vadd.f32 %v7850_v0, %v7802_v38  ;;  %v7803_v30 = vpop.f32.mrf.mxu2  ;;  %v7852_v46 = vpop.f32.mrf.mxu3 }
 0x864   : > { %v7705_v57 = vpop.f32.mrf.mxu0  ;;  %v7754_v19 = vpop.f32.mrf.mxu1 }
 0x865   : > { %v8494_v12 = vadd.f32 %v7851_v59, %v19214_v24  ;;  %v7706_v34 = vadd.f32 %v7705_v57, %v17883_v1  ;;  %v12889_v1 = vld [vmem:[%s18718_s1 + $0x1114] sm:$0xf0] }
 0x866   : > { %v12075_v38 = vor.u32 %v12889_v1, %v12074_v47  ;;  %v11804_v47 = vld [vmem:[%s18718_s1 + $0xef8] sm:$0xf0] }
 0x867   : > { %v8527_v2 = vpack.c.bf16 %v8494_v12, %v17881_v53  ;;  %v8577_v21 = vadd.f32 %v8576_v52, %v8494_v12  ;;  %v8666_v43 = vmul.f32 %v8494_v12, %v8494_v12  ;;  %v7755_v25 = vadd.f32 %v7754_v19, %v7706_v34  ;;  %v12188_v1 = vld [vmem:[%s18718_s1 + $0x11f8] sm:$0xf0] }
 0x868   : > { %8001 = vmatmul.bf16.gmra.mxu2 %v17293_v39  ;;  %8050 = vmatmul.bf16.gmra.mxu3 %v17295_v37 }
 0x869   : > { %8543 = vst [vmem:[%s13011_s22 + $0x50] sm:$0xff] %v8527_v2  ;;  %v8713_v0 = vadd.f32 %v8712_v54, %v8666_v43  ;;  %v7804_v14 = vadd.f32 %v7803_v30, %v7755_v25  ;;  %8117 = vmatpush.bf16.msra.mxu1 %v12075_v38  ;;  %v19216_v30 = vld [vmem:[#allocation73_spill] sm:$0xff]  ;;  %v19218_v2 = vld [vmem:[#allocation78_spill] sm:$0xff] }
 0x86b   : > { %v7853_v53 = vadd.f32 %v7852_v46, %v7804_v14  ;;  %v7806_v52 = vpop.f32.mrf.mxu2  ;;  %v7855_v36 = vpop.f32.mrf.mxu3 }
 0x86c   : > { %v7708_v11 = vpop.f32.mrf.mxu0  ;;  %v7757_v49 = vpop.f32.mrf.mxu1 }
 0x86d   : > { %v8498_v8 = vadd.f32 %v7853_v53, %v19215_v7  ;;  %v7709_v54 = vadd.f32 %v7708_v11, %v17916_v29  ;;  %v12883_v29 = vld [vmem:[%s18718_s1 + $0x10ec] sm:$0xf] }
 0x86e   : > { %v12851_v11 = vld [vmem:[%s18718_s1 + $0xfec] sm:$0xf] }
 0x86f   : > { %v8578_v48 = vadd.f32 %v8577_v21, %v8498_v8  ;;  %v8670_v56 = vmul.f32 %v8498_v8, %v8498_v8  ;;  %v7758_v59 = vadd.f32 %v7757_v49, %v7709_v54  ;;  %7903 = vmatmul.bf16.gmra.mxu0 %v19216_v30  ;;  %7952 = vmatmul.bf16.gmra.mxu1 %v19217_v18  ;;  %v12060_v21 = vld [vmem:[%s18718_s1 + $0x10f8] sm:$0xf0] }
 0x870   : > { %v12063_v14 = vor.u32 %v12883_v29, %v12060_v21  ;;  %v11932_v49 = vld [vmem:[%s18718_s1 + $0xff8] sm:$0xf0] }
 0x871   : > { %v8714_v13 = vadd.f32 %v8713_v0, %v8670_v56  ;;  %v7807_v57 = vadd.f32 %v7806_v52, %v7758_v59  ;;  %v12819_v0 = vld [vmem:[%s18718_s1 + $0xeec] sm:$0xf]  ;;  %v11935_v54 = vor.u32 %v12851_v11, %v11932_v49  ;;  %v11916_v49 = vld [vmem:[%s18718_s1 + $0xfd8] sm:$0xf0] }
 0x872   : > { %v11807_v7 = vor.u32 %v12819_v0, %v11804_v47  ;;  %8355 = vmatpush.bf16.msrb.mxu2 %v12063_v14  ;;  %v19220_v0 = vld [vmem:[#allocation84_spill] sm:$0xff]  ;;  %v11788_v47 = vld [vmem:[%s18718_s1 + $0xed8] sm:$0xf0] }
 0x873   : > { %v7856_v19 = vadd.f32 %v7855_v36, %v7807_v57  ;;  %v7808_v46 = vpop.f32.mrf.mxu2  ;;  %v7857_v24 = vpop.f32.mrf.mxu3  ;;  %8306 = vmatpush.bf16.msrb.mxu1 %v11935_v54  ;;  %v12815_v14 = vld [vmem:[%s18718_s1 + $0xecc] sm:$0xf] }
 0x874   : > { %v7710_v12 = vpop.f32.mrf.mxu0  ;;  %v7759_v34 = vpop.f32.mrf.mxu1  ;;  %8257 = vmatpush.bf16.msrb.mxu0 %v11807_v7  ;;  %v12847_v11 = vld [vmem:[%s18718_s1 + $0xfcc] sm:$0xf] }
 0x875   : > { %v8502_v43 = vadd.f32 %v7856_v19, %v19218_v2  ;;  %v7711_v25 = vadd.f32 %v7710_v12, %v17942_v55  ;;  %v12915_v55 = vld [vmem:[%s18718_s1 + $0x11ec] sm:$0xf]  ;;  %v11919_v7 = vor.u32 %v12847_v11, %v11916_v49  ;;  %v12028_v11 = vld [vmem:[%s18718_s1 + $0x10b8] sm:$0xf0] }
 0x876   : > { %v12191_v8 = vor.u32 %v12915_v55, %v12188_v1  ;;  %v12911_v55 = vld [vmem:[%s18718_s1 + $0x11cc] sm:$0xf]  ;;  %v12172_v1 = vld [vmem:[%s18718_s1 + $0x11d8] sm:$0xf0] }
 0x877   : > { %v8529_v38 = vpack.c.bf16 %v8502_v43, %v17922_v63  ;;  %v8579_v53 = vadd.f32 %v8578_v48, %v8502_v43  ;;  %v8674_v52 = vmul.f32 %v8502_v43, %v8502_v43  ;;  %v7760_v36 = vadd.f32 %v7759_v34, %v7711_v25  ;;  %v19219_v34 = vld [vmem:[#allocation79_spill] sm:$0xff]  ;;  %8307 = vmatpush.bf16.msrb.mxu1 %v11919_v7  ;;  %v12811_v49 = vld [vmem:[%s18718_s1 + $0xeac] sm:$0xf] }
 0x878   : > { %8006 = vmatmul.bf16.gmra.mxu2 %v17335_v5  ;;  %8055 = vmatmul.bf16.gmra.mxu3 %v19188_v22 }
 0x879   : > { %8545 = vst [vmem:[%s13011_s22 + $0x60] sm:$0xff] %v8529_v38  ;;  %v8715_v63 = vadd.f32 %v8714_v13, %v8674_v52  ;;  %v7809_v48 = vadd.f32 %v7808_v46, %v7760_v36  ;;  %8404 = vmatpush.bf16.msrb.mxu3 %v12191_v8  ;;  %v19221_v13 = vld [vmem:[#allocation85_spill] sm:$0xff]  ;;  %v12879_v46 = vld [vmem:[%s18718_s1 + $0x10cc] sm:$0xf]  ;;  %v11791_v52 = vor.u32 %v12815_v14, %v11788_v47 }
 0x87a   : > { %v12175_v36 = vor.u32 %v12911_v55, %v12172_v1  ;;  %v19223_v55 = vld [vmem:[#allocation51_spill] sm:$0xff] }
 0x87b   : > { %v7858_v56 = vadd.f32 %v7857_v24, %v7809_v48  ;;  %v7811_v59 = vpop.f32.mrf.mxu2  ;;  %v7860_v57 = vpop.f32.mrf.mxu3  ;;  %v12044_v24 = vld [vmem:[%s18718_s1 + $0x10d8] sm:$0xf0]  ;;  %8258 = vmatpush.bf16.msrb.mxu0 %v11791_v52 }
 0x87c   : > { %v7713_v19 = vpop.f32.mrf.mxu0  ;;  %v7762_v12 = vpop.f32.mrf.mxu1 }
 0x87d   : > { %v8506_v2 = vadd.f32 %v7858_v56, %v19219_v34  ;;  %v7714_v43 = vadd.f32 %v7713_v19, %v17957_v10  ;;  %v12047_v10 = vor.u32 %v12879_v46, %v12044_v24  ;;  %8405 = vmatpush.bf16.msrb.mxu3 %v12175_v36  ;;  %v12875_v36 = vld [vmem:[%s18718_s1 + $0x10ac] sm:$0xf] }
 0x87e   : > { %v12031_v7 = vor.u32 %v12875_v36, %v12028_v11  ;;  %v12871_v36 = vld [vmem:[%s18718_s1 + $0x108c] sm:$0xf] }
 0x87f   : > { %v8580_v25 = vadd.f32 %v8579_v53, %v8506_v2  ;;  %v8678_v29 = vmul.f32 %v8506_v2, %v8506_v2  ;;  %v7763_v21 = vadd.f32 %v7762_v12, %v7714_v43  ;;  %7908 = vmatmul.bf16.gmra.mxu0 %v19220_v0  ;;  %7957 = vmatmul.bf16.gmra.mxu1 %v19221_v13 }
 0x880   : > { %8356 = vmatpush.bf16.msrb.mxu2 %v12047_v10 }
 0x881   : > { %v8716_v38 = vadd.f32 %v8715_v63, %v8678_v29  ;;  %v7812_v53 = vadd.f32 %v7811_v59, %v7763_v21  ;;  %v19222_v59 = vld [vmem:[#allocation18_spill] sm:$0xff] }
 0x883   : > { %v7861_v8 = vadd.f32 %v7860_v57, %v7812_v53  ;;  %v7813_v54 = vpop.f32.mrf.mxu2  ;;  %v7862_v48 = vpop.f32.mrf.mxu3  ;;  %v19225_v53 = vld [vmem:[#allocation89_spill] sm:$0xff] }
 0x884   : > { %v7715_v63 = vpop.f32.mrf.mxu0  ;;  %v7764_v56 = vpop.f32.mrf.mxu1  ;;  %8357 = vmatpush.bf16.msrb.mxu2 %v12031_v7  ;;  %v12903_v7 = vld [vmem:[%s18718_s1 + $0x118c] sm:$0xf] }
 0x885   : > { %v8510_v19 = vadd.f32 %v7861_v8, %v19222_v59  ;;  %v7716_v12 = vadd.f32 %v7715_v63, %v17983_v60  ;;  %v11772_v8 = vld [vmem:[%s18718_s1 + $0xeb8] sm:$0xf0] }
 0x887   : > { %v8531_v34 = vpack.c.bf16 %v8510_v19, %v17963_v45  ;;  %v8581_v2 = vadd.f32 %v8580_v25, %v8510_v19  ;;  %v8682_v43 = vmul.f32 %v8510_v19, %v8510_v19  ;;  %v7765_v29 = vadd.f32 %v7764_v56, %v7716_v12  ;;  %v8550_v45 = vld [vmem:[%s18720_s3 + $0x8] sm:$0xff] }
 0x888   : > { %8167 = vmatmul.bf16.vlgmr.msra.gmra.mxu2 %v19191_v62  ;;  %8216 = vmatmul.bf16.vlgmr.msra.gmra.mxu3 %v19192_v28  ;;  %v8622_v62 = vld [vmem:[%s18720_s3 + $0x28] sm:$0xff]  ;;  %v11775_v19 = vor.u32 %v12811_v49, %v11772_v8  ;;  %v11756_v49 = vld [vmem:[%s18718_s1 + $0xe98] sm:$0xf0] }
 0x889   : > { %8547 = vst [vmem:[%s13011_s22 + $0x70] sm:$0xff] %v8531_v34  ;;  %v8717_v57 = vadd.f32 %v8716_v38, %v8682_v43  ;;  %v7814_v21 = vadd.f32 %v7813_v54, %v7765_v29  ;;  %v19224_v38 = vld [vmem:[#allocation88_spill] sm:$0xff]  ;;  %v11900_v34 = vld [vmem:[%s18718_s1 + $0xfb8] sm:$0xf0] }
 0x88a   : > { %v12907_v54 = vld [vmem:[%s18718_s1 + $0x11ac] sm:$0xf]  ;;  %8259 = vmatpush.bf16.msrb.mxu0 %v11775_v19  ;;  %v12140_v8 = vld [vmem:[%s18718_s1 + $0x1198] sm:$0xf0] }
 0x88b   : > { %v7863_v46 = vadd.f32 %v7862_v48, %v7814_v21  ;;  %v7972_v24 = vpop.f32.mrf.mxu2  ;;  %v8021_v14 = vpop.f32.mrf.mxu3  ;;  %v12156_v48 = vld [vmem:[%s18718_s1 + $0x11b8] sm:$0xf0]  ;;  %v12843_v12 = vld [vmem:[%s18718_s1 + $0xfac] sm:$0xf] }
 0x88c   : > { %v7874_v10 = vpop.f32.mrf.mxu0  ;;  %v7923_v47 = vpop.f32.mrf.mxu1  ;;  %v11903_v43 = vor.u32 %v12843_v12, %v11900_v34  ;;  %v11884_v19 = vld [vmem:[%s18718_s1 + $0xf98] sm:$0xf0] }
 0x88d   : > { %v8514_v1 = vadd.f32 %v7863_v46, %v19223_v55  ;;  %v7924_v60 = vadd.f32 %v7923_v47, %v7874_v10 }
 0x88e   : > { %8308 = vmatpush.bf16.msrb.mxu1 %v11903_v43 }
 0x88f   : > { %v8582_v28 = vadd.f32 %v8581_v2, %v8514_v1  ;;  %v8686_v25 = vmul.f32 %v8514_v1, %v8514_v1  ;;  %8069 = vmatmul.bf16.vlgmr.msra.gmra.mxu0 %v19224_v38  ;;  %8118 = vmatmul.bf16.vlgmr.msra.gmra.mxu1 %v19225_v53  ;;  %v7973_v52 = vadd.f32 %v7972_v24, %v7924_v60 }
 0x890   : > { %v12159_v2 = vor.u32 %v12907_v54, %v12156_v48 }
 0x891   : > { %v8614_v63 = vadd.f32 %v8582_v28, %v8550_v45  ;;  %v8718_v56 = vadd.f32 %v8717_v57, %v8686_v25  ;;  %v18308_v59 = vadd.f32 %v8021_v14, %v7973_v52  ;;  %v19226_v28 = vld [vmem:[#allocation90_spill] sm:$0xff]  ;;  %v19227_v25 = vld [vmem:[#allocation91_spill] sm:$0xff] }
 0x892   : > { %8406 = vmatpush.bf16.msrb.mxu3 %v12159_v2 }
 0x893   : > { %8618 = vst [vmem:[%s18720_s3 + $0x8] sm:$0xff] %v8614_v63  ;;  %v8750_v29 = vadd.f32 %v8718_v56, %v8622_v62  ;;  %v7974_v57 = vpop.f32.mrf.mxu2  ;;  %v8023_v21 = vpop.f32.mrf.mxu3  ;;  %v12143_v63 = vor.u32 %v12903_v7, %v12140_v8  ;;  %v12839_v56 = vld [vmem:[%s18718_s1 + $0xf8c] sm:$0xf] }
 0x894   : > { %v7876_v46 = vpop.f32.mrf.mxu0  ;;  %v7925_v24 = vpop.f32.mrf.mxu1  ;;  %v11887_v12 = vor.u32 %v12839_v56, %v11884_v19 }
 0x895   : > { %8754 = vst [vmem:[%s18720_s3 + $0x28] sm:$0xff] %v8750_v29  ;;  %v7926_v14 = vadd.f32 %v7925_v24, %v7876_v46 }
 0x896   : > { %8407 = vmatpush.bf16.msrb.mxu3 %v12143_v63  ;;  %8309 = vmatpush.bf16.msrb.mxu1 %v11887_v12  ;;  %v11868_v63 = vld [vmem:[%s18718_s1 + $0xf78] sm:$0xf0] }
 0x897   : > { %v7975_v10 = vadd.f32 %v7974_v57, %v7926_v14 }
 0x898   : > { %8172 = vmatmul.bf16.gmra.mxu2 %v19195_v61  ;;  %8221 = vmatmul.bf16.gmra.mxu3 %v19196_v27  ;;  %v12012_v61 = vld [vmem:[%s18718_s1 + $0x1098] sm:$0xf0]  ;;  %v12807_v27 = vld [vmem:[%s18718_s1 + $0xe8c] sm:$0xf] }
 0x899   : > { %v18324_v47 = vadd.f32 %v8023_v21, %v7975_v10  ;;  %v12015_v11 = vor.u32 %v12871_v36, %v12012_v61  ;;  %v11759_v48 = vor.u32 %v12807_v27, %v11756_v49  ;;  %v11740_v61 = vld [vmem:[%s18718_s1 + $0xe78] sm:$0xf0]  ;;  %v12899_v27 = vld [vmem:[%s18718_s1 + $0x116c] sm:$0xf] }
 0x89b   : > { %v7977_v55 = vpop.f32.mrf.mxu2  ;;  %v8026_v1 = vpop.f32.mrf.mxu3  ;;  %8358 = vmatpush.bf16.msrb.mxu2 %v12015_v11  ;;  %8260 = vmatpush.bf16.msrb.mxu0 %v11759_v48  ;;  %v12124_v11 = vld [vmem:[%s18718_s1 + $0x1178] sm:$0xf0]  ;;  %v12835_v48 = vld [vmem:[%s18718_s1 + $0xf6c] sm:$0xf] }
 0x89c   : > { %v7879_v60 = vpop.f32.mrf.mxu0  ;;  %v7928_v45 = vpop.f32.mrf.mxu1  ;;  %v12127_v8 = vor.u32 %v12899_v27, %v12124_v11  ;;  %v11871_v56 = vor.u32 %v12835_v48, %v11868_v63  ;;  %v11852_v48 = vld [vmem:[%s18718_s1 + $0xf58] sm:$0xf0] }
 0x89d   : > { %v7929_v62 = vadd.f32 %v7928_v45, %v7879_v60  ;;  %v19228_v60 = vld [vmem:[#allocation92_spill] sm:$0xff]  ;;  %v19229_v45 = vld [vmem:[#allocation93_spill] sm:$0xff] }
 0x89e   : > { %8408 = vmatpush.bf16.msrb.mxu3 %v12127_v8  ;;  %8310 = vmatpush.bf16.msrb.mxu1 %v11871_v56  ;;  %v12831_v8 = vld [vmem:[%s18718_s1 + $0xf4c] sm:$0xf] }
 0x89f   : > { %8074 = vmatmul.bf16.gmra.mxu0 %v19226_v28  ;;  %8123 = vmatmul.bf16.gmra.mxu1 %v19227_v25  ;;  %v7978_v52 = vadd.f32 %v7977_v55, %v7929_v62  ;;  %v11855_v63 = vor.u32 %v12831_v8, %v11852_v48  ;;  %v12827_v8 = vld [vmem:[%s18718_s1 + $0xf2c] sm:$0xf]  ;;  %v11836_v48 = vld [vmem:[%s18718_s1 + $0xf38] sm:$0xf0] }
 0x8a1   : > { %v18346_v54 = vadd.f32 %v8026_v1, %v7978_v52  ;;  %v12867_v52 = vld [vmem:[%s18718_s1 + $0x106c] sm:$0xf] }
 0x8a2   : > { %8311 = vmatpush.bf16.msrb.mxu1 %v11855_v63  ;;  %v11839_v63 = vor.u32 %v12827_v8, %v11836_v48  ;;  %v12823_v48 = vld [vmem:[%s18718_s1 + $0xf0c] sm:$0xf] }
 0x8a3   : > { %v7979_v34 = vpop.f32.mrf.mxu2  ;;  %v8028_v2 = vpop.f32.mrf.mxu3 }
 0x8a4   : > { %v7881_v43 = vpop.f32.mrf.mxu0  ;;  %v7930_v29 = vpop.f32.mrf.mxu1 }
 0x8a5   : > { %v7931_v57 = vadd.f32 %v7930_v29, %v7881_v43 }
 0x8a6   : > { %8312 = vmatpush.bf16.msrb.mxu1 %v11839_v63  ;;  %v11820_v63 = vld [vmem:[%s18718_s1 + $0xf18] sm:$0xf0] }
 0x8a7   : > { %v7980_v21 = vadd.f32 %v7979_v34, %v7931_v57 }
 0x8a8   : > { %8177 = vmatmul.bf16.gmra.mxu2 %v19200_v40  ;;  %8226 = vmatmul.bf16.gmra.mxu3 %v19201_v35  ;;  %v11996_v40 = vld [vmem:[%s18718_s1 + $0x1078] sm:$0xf0]  ;;  %v12803_v35 = vld [vmem:[%s18718_s1 + $0xe6c] sm:$0xf] }
 0x8a9   : > { %v18356_v46 = vadd.f32 %v8028_v2, %v7980_v21  ;;  %v11999_v36 = vor.u32 %v12867_v52, %v11996_v40  ;;  %v11743_v7 = vor.u32 %v12803_v35, %v11740_v61  ;;  %v12863_v52 = vld [vmem:[%s18718_s1 + $0x104c] sm:$0xf]  ;;  %v11724_v35 = vld [vmem:[%s18718_s1 + $0xe58] sm:$0xf0] }
 0x8aa   : > { %v12108_v61 = vld [vmem:[%s18718_s1 + $0x1158] sm:$0xf0] }
 0x8ab   : > { %v7982_v24 = vpop.f32.mrf.mxu2  ;;  %v8031_v14 = vpop.f32.mrf.mxu3  ;;  %8359 = vmatpush.bf16.msrb.mxu2 %v11999_v36  ;;  %8261 = vmatpush.bf16.msrb.mxu0 %v11743_v7  ;;  %v12895_v36 = vld [vmem:[%s18718_s1 + $0x114c] sm:$0xf] }
 0x8ac   : > { %v7884_v10 = vpop.f32.mrf.mxu0  ;;  %v7933_v55 = vpop.f32.mrf.mxu1  ;;  %v12111_v7 = vor.u32 %v12895_v36, %v12108_v61  ;;  %v12092_v36 = vld [vmem:[%s18718_s1 + $0x1138] sm:$0xf0] }
 0x8ad   : > { %v7934_v1 = vadd.f32 %v7933_v55, %v7884_v10 }
 0x8ae   : > { %8409 = vmatpush.bf16.msrb.mxu3 %v12111_v7 }
 0x8af   : > { %8079 = vmatmul.bf16.gmra.mxu0 %v19228_v60  ;;  %8128 = vmatmul.bf16.gmra.mxu1 %v19229_v45  ;;  %v7983_v62 = vadd.f32 %v7982_v24, %v7934_v1  ;;  %v19230_v1 = vld [vmem:[#allocation94_spill] sm:$0xff] }
 0x8b1   : > { %v18378_v49 = vadd.f32 %v8031_v14, %v7983_v62 }
 0x8b3   : > { %v7984_v19 = vpop.f32.mrf.mxu2  ;;  %v8033_v12 = vpop.f32.mrf.mxu3 }
 0x8b4   : > { %v7886_v34 = vpop.f32.mrf.mxu0  ;;  %v7935_v2 = vpop.f32.mrf.mxu1 }
 0x8b5   : > { %v7936_v43 = vadd.f32 %v7935_v2, %v7886_v34 }
 0x8b7   : > { %v7985_v29 = vadd.f32 %v7984_v19, %v7936_v43 }
 0x8b8   : > { %8182 = vmatmul.bf16.gmra.mxu2 %v19204_v9  ;;  %8231 = vmatmul.bf16.gmra.mxu3 %v19205_v20  ;;  %v11980_v9 = vld [vmem:[%s18718_s1 + $0x1058] sm:$0xf0]  ;;  %v12799_v20 = vld [vmem:[%s18718_s1 + $0xe4c] sm:$0xf] }
 0x8b9   : > { %v18388_v57 = vadd.f32 %v8033_v12, %v7985_v29  ;;  %v11983_v40 = vor.u32 %v12863_v52, %v11980_v9  ;;  %v11727_v11 = vor.u32 %v12799_v20, %v11724_v35  ;;  %v12859_v9 = vld [vmem:[%s18718_s1 + $0x102c] sm:$0xf] }
 0x8ba   : > { %v12891_v35 = vld [vmem:[%s18718_s1 + $0x112c] sm:$0xf] }
 0x8bb   : > { %v7987_v21 = vpop.f32.mrf.mxu2  ;;  %v8036_v24 = vpop.f32.mrf.mxu3  ;;  %8360 = vmatpush.bf16.msrb.mxu2 %v11983_v40  ;;  %8262 = vmatpush.bf16.msrb.mxu0 %v11727_v11  ;;  %v11708_v40 = vld [vmem:[%s18718_s1 + $0xe38] sm:$0xf0]  ;;  %v12095_v7 = vor.u32 %v12891_v35, %v12092_v36  ;;  %v12887_v35 = vld [vmem:[%s18718_s1 + $0x110c] sm:$0xf] }
 0x8bc   : > { %v7889_v14 = vpop.f32.mrf.mxu0  ;;  %v7938_v10 = vpop.f32.mrf.mxu1  ;;  %v12076_v36 = vld [vmem:[%s18718_s1 + $0x1118] sm:$0xf0] }
 0x8bd   : > { %v7939_v55 = vadd.f32 %v7938_v10, %v7889_v14  ;;  %8410 = vmatpush.bf16.msrb.mxu3 %v12095_v7  ;;  %v12079_v8 = vor.u32 %v12887_v35, %v12076_v36 }
 0x8bf   : > { %8084 = vmatmul.bf16.gmra.mxu0 %v19230_v1  ;;  %8133 = vmatmul.bf16.gmra.mxu1 %v17492_v16  ;;  %v7988_v62 = vadd.f32 %v7987_v21, %v7939_v55 }
 0x8c1   : > { %v18410_v27 = vadd.f32 %v8036_v24, %v7988_v62  ;;  %v19231_v62 = vld [vmem:[#allocation95_spill] sm:$0xff]  ;;  %8411 = vmatpush.bf16.msrb.mxu3 %v12079_v8 }
 0x8c3   : > { %v7989_v56 = vpop.f32.mrf.mxu2  ;;  %v8038_v19 = vpop.f32.mrf.mxu3 }
 0x8c4   : > { %v7891_v12 = vpop.f32.mrf.mxu0  ;;  %v7940_v34 = vpop.f32.mrf.mxu1 }
 0x8c5   : > { %v7941_v2 = vadd.f32 %v7940_v34, %v7891_v12 }
 0x8c7   : > { %v7990_v43 = vadd.f32 %v7989_v56, %v7941_v2 }
 0x8c8   : > { %8187 = vmatmul.bf16.gmra.mxu2 %v19208_v15  ;;  %8236 = vmatmul.bf16.gmra.mxu3 %v19209_v26  ;;  %v11964_v15 = vld [vmem:[%s18718_s1 + $0x1038] sm:$0xf0]  ;;  %v12795_v26 = vld [vmem:[%s18718_s1 + $0xe2c] sm:$0xf] }
 0x8c9   : > { %v18420_v29 = vadd.f32 %v8038_v19, %v7990_v43  ;;  %v11967_v20 = vor.u32 %v12859_v9, %v11964_v15  ;;  %v11711_v11 = vor.u32 %v12795_v26, %v11708_v40  ;;  %v19232_v9 = vld [vmem:[#allocation96_spill] sm:$0xff]  ;;  %v11692_v40 = vld [vmem:[%s18718_s1 + $0xe18] sm:$0xf0] }
 0x8ca   : > { %v12855_v26 = vld [vmem:[%s18718_s1 + $0x100c] sm:$0xf] }
 0x8cb   : > { %v7992_v21 = vpop.f32.mrf.mxu2  ;;  %v8041_v24 = vpop.f32.mrf.mxu3  ;;  %8361 = vmatpush.bf16.msrb.mxu2 %v11967_v20  ;;  %8263 = vmatpush.bf16.msrb.mxu0 %v11711_v11 }
 0x8cc   : > { %v7894_v14 = vpop.f32.mrf.mxu0  ;;  %v7943_v10 = vpop.f32.mrf.mxu1 }
 0x8cd   : > { %v7944_v55 = vadd.f32 %v7943_v10, %v7894_v14 }
 0x8cf   : > { %8089 = vmatmul.bf16.gmra.mxu0 %v19231_v62  ;;  %8138 = vmatmul.bf16.gmra.mxu1 %v17528_v44  ;;  %v7993_v52 = vadd.f32 %v7992_v21, %v7944_v55 }
 0x8d1   : > { %v18442_v61 = vadd.f32 %v8041_v24, %v7993_v52 }
 0x8d3   : > { %v7994_v56 = vpop.f32.mrf.mxu2  ;;  %v8043_v19 = vpop.f32.mrf.mxu3 }
 0x8d4   : > { %v7896_v12 = vpop.f32.mrf.mxu0  ;;  %v7945_v34 = vpop.f32.mrf.mxu1 }
 0x8d5   : > { %v7946_v2 = vadd.f32 %v7945_v34, %v7896_v12 }
 0x8d7   : > { %v7995_v43 = vadd.f32 %v7994_v56, %v7946_v2  ;;  %v11823_v56 = vor.u32 %v12823_v48, %v11820_v63 }
 0x8d8   : > { %8192 = vmatmul.bf16.gmra.mxu2 %v19212_v4  ;;  %8241 = vmatmul.bf16.gmra.mxu3 %v19213_v51  ;;  %v11948_v4 = vld [vmem:[%s18718_s1 + $0x1018] sm:$0xf0]  ;;  %v12791_v51 = vld [vmem:[%s18718_s1 + $0xe0c] sm:$0xf] }
 0x8d9   : > { %v18452_v21 = vadd.f32 %v8043_v19, %v7995_v43  ;;  %v11951_v20 = vor.u32 %v12855_v26, %v11948_v4  ;;  %v11695_v7 = vor.u32 %v12791_v51, %v11692_v40  ;;  %8313 = vmatpush.bf16.msrb.mxu1 %v11823_v56  ;;  %v19233_v4 = vld [vmem:[#allocation97_spill] sm:$0xff] }
 0x8db   : > { %v7997_v24 = vpop.f32.mrf.mxu2  ;;  %v8046_v14 = vpop.f32.mrf.mxu3  ;;  %8362 = vmatpush.bf16.msrb.mxu2 %v11951_v20  ;;  %8264 = vmatpush.bf16.msrb.mxu0 %v11695_v7 }
 0x8dc   : > { %v7899_v10 = vpop.f32.mrf.mxu0  ;;  %v7948_v55 = vpop.f32.mrf.mxu1 }
 0x8dd   : > { %v7949_v52 = vadd.f32 %v7948_v55, %v7899_v10 }
 0x8df   : > { %8094 = vmatmul.bf16.gmra.mxu0 %v19232_v9  ;;  %8143 = vmatmul.bf16.gmra.mxu1 %v17564_v41  ;;  %v7998_v15 = vadd.f32 %v7997_v24, %v7949_v52 }
 0x8e1   : > { %v18474_v11 = vadd.f32 %v8046_v14, %v7998_v15 }
 0x8e3   : > { %v7999_v19 = vpop.f32.mrf.mxu2  ;;  %v8048_v12 = vpop.f32.mrf.mxu3 }
 0x8e4   : > { %v7901_v34 = vpop.f32.mrf.mxu0  ;;  %v7950_v2 = vpop.f32.mrf.mxu1 }
 0x8e5   : > { %v7951_v43 = vadd.f32 %v7950_v2, %v7901_v34  ;;  %v19234_v34 = vld [vmem:[#allocation98_spill] sm:$0xff] }
 0x8e7   : > { %v8000_v24 = vadd.f32 %v7999_v19, %v7951_v43 }
 0x8e8   : > { %8197 = vmatmul.bf16.gmra.mxu2 %v19216_v30  ;;  %8246 = vmatmul.bf16.gmra.mxu3 %v19217_v18 }
 0x8e9   : > { %v18484_v14 = vadd.f32 %v8048_v12, %v8000_v24 }
 0x8eb   : > { %v8002_v10 = vpop.f32.mrf.mxu2  ;;  %v8051_v55 = vpop.f32.mrf.mxu3 }
 0x8ec   : > { %v7904_v52 = vpop.f32.mrf.mxu0  ;;  %v7953_v15 = vpop.f32.mrf.mxu1 }
 0x8ed   : > { %v7954_v26 = vadd.f32 %v7953_v15, %v7904_v52 }
 0x8ef   : > { %8099 = vmatmul.bf16.gmra.mxu0 %v19233_v4  ;;  %8148 = vmatmul.bf16.gmra.mxu1 %v17600_v23  ;;  %v8003_v51 = vadd.f32 %v8002_v10, %v7954_v26 }
 0x8f1   : > { %v18488_v20 = vadd.f32 %v8051_v55, %v8003_v51 }
 0x8f3   : > { %v8004_v40 = vpop.f32.mrf.mxu2  ;;  %v8053_v35 = vpop.f32.mrf.mxu3 }
 0x8f4   : > { %v7906_v36 = vpop.f32.mrf.mxu0  ;;  %v7955_v30 = vpop.f32.mrf.mxu1 }
 0x8f5   : > { %v7956_v7 = vadd.f32 %v7955_v30, %v7906_v36 }
 0x8f7   : > { %v8005_v18 = vadd.f32 %v8004_v40, %v7956_v7 }
 0x8f8   : > { %8202 = vmatmul.bf16.gmra.mxu2 %v19220_v0  ;;  %8251 = vmatmul.bf16.gmra.mxu3 %v19221_v13 }
 0x8f9   : > { %v18492_v8 = vadd.f32 %v8053_v35, %v8005_v18  ;;  %v19235_v18 = vld [vmem:[#allocation19_spill] sm:$0xff] }
 0x8fb   : > { %v8007_v48 = vpop.f32.mrf.mxu2  ;;  %v8056_v63 = vpop.f32.mrf.mxu3 }
 0x8fc   : > { %v7909_v56 = vpop.f32.mrf.mxu0  ;;  %v7958_v19 = vpop.f32.mrf.mxu1 }
 0x8fd   : > { %v7959_v12 = vadd.f32 %v7958_v19, %v7909_v56 }
 0x8ff   : > { %8104 = vmatmul.bf16.gmra.mxu0 %v17634_v33  ;;  %8153 = vmatmul.bf16.gmra.mxu1 %v19234_v34  ;;  %v8008_v2 = vadd.f32 %v8007_v48, %v7959_v12  ;;  %v19236_v48 = vld [vmem:[#allocation20_spill] sm:$0xff] }
 0x901   : > { %v18496_v43 = vadd.f32 %v8056_v63, %v8008_v2  ;;  %v19237_v63 = vld [vmem:[#allocation52_spill] sm:$0xff] }
 0x903   : > { %v8009_v24 = vpop.f32.mrf.mxu2  ;;  %v8058_v10 = vpop.f32.mrf.mxu3 }
 0x904   : > { %v7911_v55 = vpop.f32.mrf.mxu0  ;;  %v7960_v0 = vpop.f32.mrf.mxu1 }
 0x905   : > { %v7961_v52 = vadd.f32 %v7960_v0, %v7911_v55 }
 0x907   : > { %v8010_v13 = vadd.f32 %v8009_v24, %v7961_v52 }
 0x908   : > { %8363 = vmatmul.bf16.vlgmr.msrb.gmra.mxu2 %v19224_v38  ;;  %8412 = vmatmul.bf16.vlgmr.msrb.gmra.mxu3 %v19225_v53 }
 0x909   : > { %v18500_v15 = vadd.f32 %v8058_v10, %v8010_v13 }
 0x90b   : > { %v8168_v26 = vpop.f32.mrf.mxu2  ;;  %v8217_v51 = vpop.f32.mrf.mxu3 }
 0x90c   : > { %v8070_v40 = vpop.f32.mrf.mxu0  ;;  %v8119_v35 = vpop.f32.mrf.mxu1  ;;  %v18502_v36 = vadd.f32 %v8217_v51, %v8168_v26 }
 0x90d   : > { %v8071_v30 = vadd.f32 %v8070_v40, %v18308_v59  ;;  %v19238_v59 = vld [vmem:[#allocation55_spill] sm:$0xff] }
 0x90f   : > { %v8120_v7 = vadd.f32 %v8119_v35, %v8071_v30  ;;  %8265 = vmatmul.bf16.vlgmr.msrb.gmra.mxu0 %v19235_v18  ;;  %8314 = vmatmul.bf16.vlgmr.msrb.gmra.mxu1 %v19236_v48  ;;  %v19239_v18 = vld [vmem:[#allocation40_spill] sm:$0xff] }
 0x910   : > { %v19241_v48 = vld [vmem:[#allocation56_spill] sm:$0xff] }
 0x911   : > { %v18508_v56 = vadd.f32 %v8120_v7, %v19237_v63 }
 0x913   : > { %v8170_v38 = vpop.f32.mrf.mxu2  ;;  %v8219_v53 = vpop.f32.mrf.mxu3  ;;  %v8627_v0 = vmul.f32 %v18508_v56, %v18508_v56 }
 0x914   : > { %v8072_v19 = vpop.f32.mrf.mxu0  ;;  %v8121_v12 = vpop.f32.mrf.mxu1  ;;  %v18510_v2 = vadd.f32 %v8219_v53, %v8170_v38 }
 0x915   : > { %v8073_v24 = vadd.f32 %v8072_v19, %v18324_v47 }
 0x917   : > { %v8122_v10 = vadd.f32 %v8121_v12, %v8073_v24 }
 0x918   : > { %8368 = vmatmul.bf16.gmra.mxu2 %v19226_v28  ;;  %8417 = vmatmul.bf16.gmra.mxu3 %v19227_v25  ;;  %v19240_v25 = vld [vmem:[#allocation41_spill] sm:$0xff] }
 0x919   : > { %v8459_v55 = vadd.f32 %v8122_v10, %v19238_v59 }
 0x91b   : > { %v8583_v52 = vadd.f32 %v8459_v55, %v18508_v56  ;;  %v8631_v13 = vmul.f32 %v8459_v55, %v8459_v55  ;;  %v8173_v26 = vpop.f32.mrf.mxu2  ;;  %v8222_v51 = vpop.f32.mrf.mxu3 }
 0x91c   : > { %v8075_v40 = vpop.f32.mrf.mxu0  ;;  %v8124_v35 = vpop.f32.mrf.mxu1  ;;  %v18519_v30 = vadd.f32 %v8222_v51, %v8173_v26 }
 0x91d   : > { %v8719_v47 = vadd.f32 %v8631_v13, %v8627_v0  ;;  %v8076_v7 = vadd.f32 %v8075_v40, %v18346_v54  ;;  %v19242_v13 = vld [vmem:[#allocation59_spill] sm:$0xff] }
 0x91f   : > { %v8125_v28 = vadd.f32 %v8124_v35, %v8076_v7  ;;  %8270 = vmatmul.bf16.gmra.mxu0 %v19239_v18  ;;  %8319 = vmatmul.bf16.gmra.mxu1 %v19240_v25 }
 0x921   : > { %v18525_v63 = vadd.f32 %v8125_v28, %v19241_v48 }
 0x923   : > { %v8584_v38 = vadd.f32 %v8583_v52, %v18525_v63  ;;  %v8635_v53 = vmul.f32 %v18525_v63, %v18525_v63  ;;  %v8175_v19 = vpop.f32.mrf.mxu2  ;;  %v8224_v12 = vpop.f32.mrf.mxu3 }
 0x924   : > { %v8077_v24 = vpop.f32.mrf.mxu0  ;;  %v8126_v10 = vpop.f32.mrf.mxu1  ;;  %v18530_v59 = vadd.f32 %v8224_v12, %v8175_v19 }
 0x925   : > { %v8720_v54 = vadd.f32 %v8719_v47, %v8635_v53  ;;  %v8078_v55 = vadd.f32 %v8077_v24, %v18356_v46  ;;  %v19243_v46 = vld [vmem:[#allocation60_spill] sm:$0xff] }
 0x927   : > { %v8127_v0 = vadd.f32 %v8126_v10, %v8078_v55 }
 0x928   : > { %8373 = vmatmul.bf16.gmra.mxu2 %v19228_v60  ;;  %8422 = vmatmul.bf16.gmra.mxu3 %v19229_v45 }
 0x929   : > { %v8467_v26 = vadd.f32 %v8127_v0, %v19242_v13 }
 0x92b   : > { %v8585_v52 = vadd.f32 %v8584_v38, %v8467_v26  ;;  %v8639_v51 = vmul.f32 %v8467_v26, %v8467_v26  ;;  %v8178_v40 = vpop.f32.mrf.mxu2  ;;  %v8227_v35 = vpop.f32.mrf.mxu3 }
 0x92c   : > { %v8080_v7 = vpop.f32.mrf.mxu0  ;;  %v8129_v28 = vpop.f32.mrf.mxu1  ;;  %v18536_v18 = vadd.f32 %v8227_v35, %v8178_v40 }
 0x92d   : > { %v8721_v25 = vadd.f32 %v8720_v54, %v8639_v51  ;;  %v8081_v47 = vadd.f32 %v8080_v7, %v18378_v49 }
 0x92f   : > { %v8130_v48 = vadd.f32 %v8129_v28, %v8081_v47  ;;  %8275 = vmatmul.bf16.gmra.mxu0 %v17125_v50  ;;  %8324 = vmatmul.bf16.gmra.mxu1 %v17127_v31  ;;  %v19244_v31 = vld [vmem:[#allocation63_spill] sm:$0xff] }
 0x931   : > { %v18542_v60 = vadd.f32 %v8130_v48, %v19243_v46 }
 0x933   : > { %v8180_v45 = vpop.f32.mrf.mxu2  ;;  %v8229_v38 = vpop.f32.mrf.mxu3  ;;  %v8643_v10 = vmul.f32 %v18542_v60, %v18542_v60  ;;  %v8586_v50 = vadd.f32 %v8585_v52, %v18542_v60 }
 0x934   : > { %v8082_v53 = vpop.f32.mrf.mxu0  ;;  %v8131_v19 = vpop.f32.mrf.mxu1  ;;  %v18544_v12 = vadd.f32 %v8229_v38, %v8180_v45 }
 0x935   : > { %v8083_v24 = vadd.f32 %v8082_v53, %v18388_v57  ;;  %v8722_v55 = vadd.f32 %v8721_v25, %v8643_v10 }
 0x937   : > { %v8132_v49 = vadd.f32 %v8131_v19, %v8083_v24 }
 0x938   : > { %8378 = vmatmul.bf16.gmra.mxu2 %v19230_v1  ;;  %8427 = vmatmul.bf16.gmra.mxu3 %v17492_v16  ;;  %v19245_v16 = vld [vmem:[#allocation64_spill] sm:$0xff] }
 0x939   : > { %v8475_v54 = vadd.f32 %v8132_v49, %v19244_v31 }
 0x93b   : > { %v8587_v0 = vadd.f32 %v8586_v50, %v8475_v54  ;;  %v8647_v13 = vmul.f32 %v8475_v54, %v8475_v54  ;;  %v8183_v26 = vpop.f32.mrf.mxu2  ;;  %v8232_v51 = vpop.f32.mrf.mxu3 }
 0x93c   : > { %v8085_v40 = vpop.f32.mrf.mxu0  ;;  %v8134_v35 = vpop.f32.mrf.mxu1  ;;  %v18553_v57 = vadd.f32 %v8232_v51, %v8183_v26 }
 0x93d   : > { %v8723_v7 = vadd.f32 %v8722_v55, %v8647_v13  ;;  %v8086_v28 = vadd.f32 %v8085_v40, %v18410_v27 }
 0x93f   : > { %v8135_v47 = vadd.f32 %v8134_v35, %v8086_v28  ;;  %8280 = vmatmul.bf16.gmra.mxu0 %v17167_v6  ;;  %8329 = vmatmul.bf16.gmra.mxu1 %v17169_v17  ;;  %v19246_v17 = vld [vmem:[#allocation67_spill] sm:$0xff] }
 0x941   : > { %v18559_v1 = vadd.f32 %v8135_v47, %v19245_v16 }
 0x943   : > { %v8185_v52 = vpop.f32.mrf.mxu2  ;;  %v8234_v25 = vpop.f32.mrf.mxu3  ;;  %v8651_v53 = vmul.f32 %v18559_v1, %v18559_v1  ;;  %v8588_v6 = vadd.f32 %v8587_v0, %v18559_v1 }
 0x944   : > { %v8087_v48 = vpop.f32.mrf.mxu0  ;;  %v8136_v46 = vpop.f32.mrf.mxu1  ;;  %v18561_v45 = vadd.f32 %v8234_v25, %v8185_v52 }
 0x945   : > { %v8088_v38 = vadd.f32 %v8087_v48, %v18420_v29  ;;  %v8724_v24 = vadd.f32 %v8723_v7, %v8651_v53 }
 0x947   : > { %v8137_v27 = vadd.f32 %v8136_v46, %v8088_v38 }
 0x948   : > { %8383 = vmatmul.bf16.gmra.mxu2 %v19231_v62  ;;  %8432 = vmatmul.bf16.gmra.mxu3 %v17528_v44  ;;  %v19247_v44 = vld [vmem:[#allocation68_spill] sm:$0xff] }
 0x949   : > { %v8483_v19 = vadd.f32 %v8137_v27, %v19246_v17 }
 0x94b   : > { %v8589_v10 = vadd.f32 %v8588_v6, %v8483_v19  ;;  %v8655_v49 = vmul.f32 %v8483_v19, %v8483_v19  ;;  %v8188_v50 = vpop.f32.mrf.mxu2  ;;  %v8237_v31 = vpop.f32.mrf.mxu3 }
 0x94c   : > { %v8090_v54 = vpop.f32.mrf.mxu0  ;;  %v8139_v55 = vpop.f32.mrf.mxu1  ;;  %v18570_v29 = vadd.f32 %v8237_v31, %v8188_v50 }
 0x94d   : > { %v8725_v13 = vadd.f32 %v8724_v24, %v8655_v49  ;;  %v8091_v26 = vadd.f32 %v8090_v54, %v18442_v61 }
 0x94f   : > { %v8140_v51 = vadd.f32 %v8139_v55, %v8091_v26  ;;  %8285 = vmatmul.bf16.gmra.mxu0 %v17209_v3  ;;  %8334 = vmatmul.bf16.gmra.mxu1 %v17211_v42  ;;  %v19248_v3 = vld [vmem:[#allocation71_spill] sm:$0xff] }
 0x951   : > { %v18576_v62 = vadd.f32 %v8140_v51, %v19247_v44 }
 0x953   : > { %v8190_v0 = vpop.f32.mrf.mxu2  ;;  %v8239_v40 = vpop.f32.mrf.mxu3  ;;  %v8659_v16 = vmul.f32 %v18576_v62, %v18576_v62  ;;  %v8590_v52 = vadd.f32 %v8589_v10, %v18576_v62 }
 0x954   : > { %v8092_v35 = vpop.f32.mrf.mxu0  ;;  %v8141_v7 = vpop.f32.mrf.mxu1  ;;  %v18578_v28 = vadd.f32 %v8239_v40, %v8190_v0 }
 0x955   : > { %v8093_v47 = vadd.f32 %v8092_v35, %v18452_v21  ;;  %v8726_v46 = vadd.f32 %v8725_v13, %v8659_v16 }
 0x957   : > { %v8142_v61 = vadd.f32 %v8141_v7, %v8093_v47 }
 0x958   : > { %8388 = vmatmul.bf16.gmra.mxu2 %v19232_v9  ;;  %8437 = vmatmul.bf16.gmra.mxu3 %v17564_v41  ;;  %v19249_v41 = vld [vmem:[#allocation72_spill] sm:$0xff] }
 0x959   : > { %v8491_v42 = vadd.f32 %v8142_v61, %v19248_v3 }
 0x95b   : > { %v8591_v25 = vadd.f32 %v8590_v52, %v8491_v42  ;;  %v8663_v48 = vmul.f32 %v8491_v42, %v8491_v42  ;;  %v8193_v38 = vpop.f32.mrf.mxu2  ;;  %v8242_v53 = vpop.f32.mrf.mxu3 }
 0x95c   : > { %v8095_v27 = vpop.f32.mrf.mxu0  ;;  %v8144_v6 = vpop.f32.mrf.mxu1  ;;  %v18587_v21 = vadd.f32 %v8242_v53, %v8193_v38 }
 0x95d   : > { %v8727_v17 = vadd.f32 %v8726_v46, %v8663_v48  ;;  %v8096_v19 = vadd.f32 %v8095_v27, %v18474_v11 }
 0x95f   : > { %v8145_v24 = vadd.f32 %v8144_v6, %v8096_v19  ;;  %8290 = vmatmul.bf16.gmra.mxu0 %v17251_v58  ;;  %8339 = vmatmul.bf16.gmra.mxu1 %v17253_v32  ;;  %v19250_v58 = vld [vmem:[#allocation75_spill] sm:$0xff] }
 0x961   : > { %v18593_v9 = vadd.f32 %v8145_v24, %v19249_v41 }
 0x963   : > { %v8195_v10 = vpop.f32.mrf.mxu2  ;;  %v8244_v49 = vpop.f32.mrf.mxu3  ;;  %v8667_v13 = vmul.f32 %v18593_v9, %v18593_v9  ;;  %v8592_v26 = vadd.f32 %v8591_v25, %v18593_v9 }
 0x964   : > { %v8097_v50 = vpop.f32.mrf.mxu0  ;;  %v8146_v31 = vpop.f32.mrf.mxu1  ;;  %v18595_v54 = vadd.f32 %v8244_v49, %v8195_v10 }
 0x965   : > { %v8098_v55 = vadd.f32 %v8097_v50, %v18484_v14  ;;  %v8728_v0 = vadd.f32 %v8727_v17, %v8667_v13 }
 0x967   : > { %v8147_v11 = vadd.f32 %v8146_v31, %v8098_v55 }
 0x968   : > { %8393 = vmatmul.bf16.gmra.mxu2 %v19233_v4  ;;  %8442 = vmatmul.bf16.gmra.mxu3 %v17600_v23  ;;  %v19251_v23 = vld [vmem:[#allocation76_spill] sm:$0xff] }
 0x969   : > { %v8499_v32 = vadd.f32 %v8147_v11, %v19250_v58 }
 0x96b   : > { %v8593_v51 = vadd.f32 %v8592_v26, %v8499_v32  ;;  %v8671_v44 = vmul.f32 %v8499_v32, %v8499_v32  ;;  %v8198_v40 = vpop.f32.mrf.mxu2  ;;  %v8247_v35 = vpop.f32.mrf.mxu3 }
 0x96c   : > { %v8100_v7 = vpop.f32.mrf.mxu0  ;;  %v8149_v47 = vpop.f32.mrf.mxu1  ;;  %v18604_v14 = vadd.f32 %v8247_v35, %v8198_v40 }
 0x96d   : > { %v8729_v16 = vadd.f32 %v8728_v0, %v8671_v44  ;;  %v8101_v61 = vadd.f32 %v8100_v7, %v18488_v20  ;;  %v19254_v0 = vld [vmem:[#allocation3_spill] sm:$0xff] }
 0x96f   : > { %v8150_v3 = vadd.f32 %v8149_v47, %v8101_v61  ;;  %8295 = vmatmul.bf16.gmra.mxu0 %v17293_v39  ;;  %8344 = vmatmul.bf16.gmra.mxu1 %v17295_v37  ;;  %v19252_v39 = vld [vmem:[#allocation81_spill] sm:$0xff] }
 0x971   : > { %v18610_v4 = vadd.f32 %v8150_v3, %v19251_v23 }
 0x973   : > { %v8200_v42 = vpop.f32.mrf.mxu2  ;;  %v8249_v52 = vpop.f32.mrf.mxu3  ;;  %v8675_v53 = vmul.f32 %v18610_v4, %v18610_v4  ;;  %v8594_v27 = vadd.f32 %v8593_v51, %v18610_v4 }
 0x974   : > { %v8102_v25 = vpop.f32.mrf.mxu0  ;;  %v8151_v48 = vpop.f32.mrf.mxu1  ;;  %v18612_v46 = vadd.f32 %v8249_v52, %v8200_v42 }
 0x975   : > { %v8103_v38 = vadd.f32 %v8102_v25, %v18492_v8  ;;  %v8730_v19 = vadd.f32 %v8729_v16, %v8675_v53 }
 0x977   : > { %v8152_v20 = vadd.f32 %v8151_v48, %v8103_v38 }
 0x978   : > { %8398 = vmatmul.bf16.gmra.mxu2 %v17634_v33  ;;  %8447 = vmatmul.bf16.gmra.mxu3 %v19234_v34  ;;  %v19253_v33 = vld [vmem:[#allocation82_spill] sm:$0xff] }
 0x979   : > { %v8507_v37 = vadd.f32 %v8152_v20, %v19252_v39 }
 0x97b   : > { %v8595_v6 = vadd.f32 %v8594_v27, %v8507_v37  ;;  %v8679_v17 = vmul.f32 %v8507_v37, %v8507_v37  ;;  %v8203_v24 = vpop.f32.mrf.mxu2  ;;  %v8252_v41 = vpop.f32.mrf.mxu3 }
 0x97c   : > { %v8105_v10 = vpop.f32.mrf.mxu0  ;;  %v8154_v49 = vpop.f32.mrf.mxu1  ;;  %v18621_v8 = vadd.f32 %v8252_v41, %v8203_v24 }
 0x97d   : > { %v8731_v50 = vadd.f32 %v8730_v19, %v8679_v17  ;;  %v8106_v31 = vadd.f32 %v8105_v10, %v18496_v43  ;;  %v19255_v17 = vld [vmem:[#allocation39_spill] sm:$0xff] }
 0x97f   : > { %v8155_v55 = vadd.f32 %v8154_v49, %v8106_v31  ;;  %8300 = vmatmul.bf16.gmra.mxu0 %v17335_v5  ;;  %8349 = vmatmul.bf16.gmra.mxu1 %v19188_v22  ;;  %v8551_v22 = vld [vmem:[%s18720_s3 + $0x10] sm:$0xff] }
 0x981   : > { %v18627_v34 = vadd.f32 %v8155_v55, %v19253_v33 }
 0x983   : > { %v8205_v13 = vpop.f32.mrf.mxu2  ;;  %v8254_v11 = vpop.f32.mrf.mxu3  ;;  %v8683_v44 = vmul.f32 %v18627_v34, %v18627_v34  ;;  %v8596_v5 = vadd.f32 %v8595_v6, %v18627_v34 }
 0x984   : > { %v8107_v58 = vpop.f32.mrf.mxu0  ;;  %v8156_v32 = vpop.f32.mrf.mxu1  ;;  %v18629_v26 = vadd.f32 %v8254_v11, %v8205_v13  ;;  %v19256_v13 = vld [vmem:[#allocation42_spill] sm:$0xff] }
 0x985   : > { %v8108_v51 = vadd.f32 %v8107_v58, %v18500_v15  ;;  %v8732_v47 = vadd.f32 %v8731_v50, %v8683_v44  ;;  %v8623_v15 = vld [vmem:[%s18720_s3 + $0x30] sm:$0xff] }
 0x987   : > { %v8157_v43 = vadd.f32 %v8156_v32, %v8108_v51 }
 0x989   : > { %v8515_v40 = vadd.f32 %v8157_v43, %v19254_v0 }
 0x98b   : > { %v8597_v35 = vadd.f32 %v8596_v5, %v8515_v40  ;;  %v8687_v7 = vmul.f32 %v8515_v40, %v8515_v40  ;;  %v8364_v16 = vpop.f32.mrf.mxu2  ;;  %v8413_v61 = vpop.f32.mrf.mxu3 }
 0x98c   : > { %v8266_v3 = vpop.f32.mrf.mxu0  ;;  %v8315_v23 = vpop.f32.mrf.mxu1 }
 0x98d   : > { %v8615_v42 = vadd.f32 %v8597_v35, %v8551_v22  ;;  %v8733_v52 = vadd.f32 %v8732_v47, %v8687_v7  ;;  %v8267_v25 = vadd.f32 %v8266_v3, %v18502_v36  ;;  %v19257_v7 = vld [vmem:[#allocation45_spill] sm:$0xff] }
 0x98f   : > { %8619 = vst [vmem:[%s18720_s3 + $0x10] sm:$0xff] %v8615_v42  ;;  %v8751_v48 = vadd.f32 %v8733_v52, %v8623_v15  ;;  %v8316_v38 = vadd.f32 %v8315_v23, %v8267_v25 }
 0x991   : > { %8755 = vst [vmem:[%s18720_s3 + $0x30] sm:$0xff] %v8751_v48  ;;  %v8365_v53 = vadd.f32 %v8364_v16, %v8316_v38 }
 0x993   : > { %v8414_v20 = vadd.f32 %v8413_v61, %v8365_v53  ;;  %v8366_v39 = vpop.f32.mrf.mxu2  ;;  %v8415_v37 = vpop.f32.mrf.mxu3 }
 0x994   : > { %v8268_v27 = vpop.f32.mrf.mxu0  ;;  %v8317_v6 = vpop.f32.mrf.mxu1 }
 0x995   : > { %v8456_v19 = vadd.f32 %v8414_v20, %v19255_v17  ;;  %v8269_v36 = vadd.f32 %v8268_v27, %v18510_v2  ;;  %v19258_v20 = vld [vmem:[#allocation46_spill] sm:$0xff] }
 0x997   : > { %v8518_v24 = vpack.c.bf16 %v8456_v19, %v18508_v56  ;;  %v8318_v41 = vadd.f32 %v8317_v6, %v8269_v36  ;;  %v8628_v32 = vmul.f32 %v8456_v19, %v8456_v19 }
 0x999   : > { %8534 = vst [vmem:[%s13011_s22 + $0x8] sm:$0xff] %v8518_v24  ;;  %v8367_v10 = vadd.f32 %v8366_v39, %v8318_v41 }
 0x99b   : > { %v8416_v49 = vadd.f32 %v8415_v37, %v8367_v10  ;;  %v8369_v50 = vpop.f32.mrf.mxu2  ;;  %v8418_v31 = vpop.f32.mrf.mxu3 }
 0x99c   : > { %v8271_v55 = vpop.f32.mrf.mxu0  ;;  %v8320_v33 = vpop.f32.mrf.mxu1 }
 0x99d   : > { %v8460_v11 = vadd.f32 %v8416_v49, %v19256_v13  ;;  %v8272_v58 = vadd.f32 %v8271_v55, %v18519_v30  ;;  %v19259_v49 = vld [vmem:[#allocation21_spill] sm:$0xff] }
 0x99f   : > { %v8598_v51 = vadd.f32 %v8460_v11, %v8456_v19  ;;  %v8632_v44 = vmul.f32 %v8460_v11, %v8460_v11  ;;  %v8321_v43 = vadd.f32 %v8320_v33, %v8272_v58 }
 0x9a1   : > { %v8734_v2 = vadd.f32 %v8632_v44, %v8628_v32  ;;  %v8370_v0 = vadd.f32 %v8369_v50, %v8321_v43 }
 0x9a3   : > { %v8419_v56 = vadd.f32 %v8418_v31, %v8370_v0  ;;  %v8371_v40 = vpop.f32.mrf.mxu2  ;;  %v8420_v5 = vpop.f32.mrf.mxu3  ;;  %v19260_v0 = vld [vmem:[#allocation22_spill] sm:$0xff] }
 0x9a4   : > { %v8273_v22 = vpop.f32.mrf.mxu0  ;;  %v8322_v35 = vpop.f32.mrf.mxu1 }
 0x9a5   : > { %v8464_v47 = vadd.f32 %v8419_v56, %v19257_v7  ;;  %v8274_v16 = vadd.f32 %v8273_v22, %v18530_v59 }
 0x9a7   : > { %v8520_v61 = vpack.c.bf16 %v8464_v47, %v18525_v63  ;;  %v8636_v15 = vmul.f32 %v8464_v47, %v8464_v47  ;;  %v8323_v30 = vadd.f32 %v8322_v35, %v8274_v16  ;;  %v8599_v3 = vadd.f32 %v8598_v51, %v8464_v47 }
 0x9a9   : > { %8536 = vst [vmem:[%s13011_s22 + $0x18] sm:$0xff] %v8520_v61  ;;  %v8372_v23 = vadd.f32 %v8371_v40, %v8323_v30  ;;  %v8735_v42 = vadd.f32 %v8734_v2, %v8636_v15  ;;  %v19261_v30 = vld [vmem:[#allocation49_spill] sm:$0xff] }
 0x9ab   : > { %v8421_v52 = vadd.f32 %v8420_v5, %v8372_v23  ;;  %v8374_v25 = vpop.f32.mrf.mxu2  ;;  %v8423_v48 = vpop.f32.mrf.mxu3 }
 0x9ac   : > { %v8276_v38 = vpop.f32.mrf.mxu0  ;;  %v8325_v53 = vpop.f32.mrf.mxu1 }
 0x9ad   : > { %v8468_v39 = vadd.f32 %v8421_v52, %v19258_v20  ;;  %v8277_v37 = vadd.f32 %v8276_v38, %v18536_v18 }
 0x9af   : > { %v8600_v27 = vadd.f32 %v8599_v3, %v8468_v39  ;;  %v8640_v59 = vmul.f32 %v8468_v39, %v8468_v39  ;;  %v8326_v6 = vadd.f32 %v8325_v53, %v8277_v37 }
 0x9b1   : > { %v8736_v63 = vadd.f32 %v8735_v42, %v8640_v59  ;;  %v8375_v17 = vadd.f32 %v8374_v25, %v8326_v6  ;;  %v19262_v59 = vld [vmem:[#allocation54_spill] sm:$0xff] }
 0x9b3   : > { %v8424_v19 = vadd.f32 %v8423_v48, %v8375_v17  ;;  %v8376_v36 = vpop.f32.mrf.mxu2  ;;  %v8425_v24 = vpop.f32.mrf.mxu3 }
 0x9b4   : > { %v8278_v41 = vpop.f32.mrf.mxu0  ;;  %v8327_v10 = vpop.f32.mrf.mxu1 }
 0x9b5   : > { %v8472_v50 = vadd.f32 %v8424_v19, %v19259_v49  ;;  %v8279_v31 = vadd.f32 %v8278_v41, %v18544_v12 }
 0x9b7   : > { %v8522_v55 = vpack.c.bf16 %v8472_v50, %v18542_v60  ;;  %v8644_v33 = vmul.f32 %v8472_v50, %v8472_v50  ;;  %v8328_v13 = vadd.f32 %v8327_v10, %v8279_v31  ;;  %v8601_v18 = vadd.f32 %v8600_v27, %v8472_v50  ;;  %v19263_v31 = vld [vmem:[#allocation61_spill] sm:$0xff] }
 0x9b9   : > { %8538 = vst [vmem:[%s13011_s22 + $0x28] sm:$0xff] %v8522_v55  ;;  %v8377_v11 = vadd.f32 %v8376_v36, %v8328_v13  ;;  %v8737_v58 = vadd.f32 %v8736_v63, %v8644_v33 }
 0x9bb   : > { %v8426_v32 = vadd.f32 %v8425_v24, %v8377_v11  ;;  %v8379_v51 = vpop.f32.mrf.mxu2  ;;  %v8428_v44 = vpop.f32.mrf.mxu3 }
 0x9bc   : > { %v8281_v43 = vpop.f32.mrf.mxu0  ;;  %v8330_v2 = vpop.f32.mrf.mxu1 }
 0x9bd   : > { %v8476_v56 = vadd.f32 %v8426_v32, %v19260_v0  ;;  %v8282_v40 = vadd.f32 %v8281_v43, %v18553_v57 }
 0x9bf   : > { %v8602_v5 = vadd.f32 %v8601_v18, %v8476_v56  ;;  %v8648_v12 = vmul.f32 %v8476_v56, %v8476_v56  ;;  %v8331_v22 = vadd.f32 %v8330_v2, %v8282_v40  ;;  %v19264_v56 = vld [vmem:[#allocation62_spill] sm:$0xff] }
 0x9c1   : > { %v8738_v60 = vadd.f32 %v8737_v58, %v8648_v12  ;;  %v8380_v35 = vadd.f32 %v8379_v51, %v8331_v22 }
 0x9c3   : > { %v8429_v7 = vadd.f32 %v8428_v44, %v8380_v35  ;;  %v8381_v47 = vpop.f32.mrf.mxu2  ;;  %v8430_v16 = vpop.f32.mrf.mxu3 }
 0x9c4   : > { %v8283_v61 = vpop.f32.mrf.mxu0  ;;  %v8332_v15 = vpop.f32.mrf.mxu1 }
 0x9c5   : > { %v8480_v3 = vadd.f32 %v8429_v7, %v19261_v30  ;;  %v8284_v23 = vadd.f32 %v8283_v61, %v18561_v45 }
 0x9c7   : > { %v8524_v42 = vpack.c.bf16 %v8480_v3, %v18559_v1  ;;  %v8652_v52 = vmul.f32 %v8480_v3, %v8480_v3  ;;  %v8333_v25 = vadd.f32 %v8332_v15, %v8284_v23  ;;  %v8603_v57 = vadd.f32 %v8602_v5, %v8480_v3  ;;  %v19265_v15 = vld [vmem:[#allocation69_spill] sm:$0xff] }
 0x9c9   : > { %8540 = vst [vmem:[%s13011_s22 + $0x38] sm:$0xff] %v8524_v42  ;;  %v8382_v48 = vadd.f32 %v8381_v47, %v8333_v25  ;;  %v8739_v38 = vadd.f32 %v8738_v60, %v8652_v52 }
 0x9cb   : > { %v8431_v53 = vadd.f32 %v8430_v16, %v8382_v48  ;;  %v8384_v20 = vpop.f32.mrf.mxu2  ;;  %v8433_v39 = vpop.f32.mrf.mxu3 }
 0x9cc   : > { %v8286_v37 = vpop.f32.mrf.mxu0  ;;  %v8335_v27 = vpop.f32.mrf.mxu1 }
 0x9cd   : > { %v8484_v6 = vadd.f32 %v8431_v53, %v19262_v59  ;;  %v8287_v63 = vadd.f32 %v8286_v37, %v18570_v29  ;;  %v19266_v37 = vld [vmem:[#allocation70_spill] sm:$0xff] }
 0x9cf   : > { %v8604_v17 = vadd.f32 %v8603_v57, %v8484_v6  ;;  %v8656_v45 = vmul.f32 %v8484_v6, %v8484_v6  ;;  %v8336_v19 = vadd.f32 %v8335_v27, %v8287_v63 }
 0x9d1   : > { %v8740_v1 = vadd.f32 %v8739_v38, %v8656_v45  ;;  %v8385_v36 = vadd.f32 %v8384_v20, %v8336_v19 }
 0x9d3   : > { %v8434_v24 = vadd.f32 %v8433_v39, %v8385_v36  ;;  %v8386_v41 = vpop.f32.mrf.mxu2  ;;  %v8435_v10 = vpop.f32.mrf.mxu3 }
 0x9d4   : > { %v8288_v49 = vpop.f32.mrf.mxu0  ;;  %v8337_v50 = vpop.f32.mrf.mxu1 }
 0x9d5   : > { %v8488_v55 = vadd.f32 %v8434_v24, %v19263_v31  ;;  %v8289_v33 = vadd.f32 %v8288_v49, %v18578_v28  ;;  %v19267_v24 = vld [vmem:[#allocation77_spill] sm:$0xff] }
 0x9d7   : > { %v8526_v13 = vpack.c.bf16 %v8488_v55, %v18576_v62  ;;  %v8660_v18 = vmul.f32 %v8488_v55, %v8488_v55  ;;  %v8338_v11 = vadd.f32 %v8337_v50, %v8289_v33  ;;  %v8605_v29 = vadd.f32 %v8604_v17, %v8488_v55 }
 0x9d9   : > { %8542 = vst [vmem:[%s13011_s22 + $0x48] sm:$0xff] %v8526_v13  ;;  %v8387_v58 = vadd.f32 %v8386_v41, %v8338_v11  ;;  %v8741_v32 = vadd.f32 %v8740_v1, %v8660_v18 }
 0x9db   : > { %v8436_v51 = vadd.f32 %v8435_v10, %v8387_v58  ;;  %v8389_v44 = vpop.f32.mrf.mxu2  ;;  %v8438_v43 = vpop.f32.mrf.mxu3 }
 0x9dc   : > { %v8291_v2 = vpop.f32.mrf.mxu0  ;;  %v8340_v0 = vpop.f32.mrf.mxu1 }
 0x9dd   : > { %v8492_v40 = vadd.f32 %v8436_v51, %v19264_v56  ;;  %v8292_v5 = vadd.f32 %v8291_v2, %v18587_v21 }
 0x9df   : > { %v8606_v12 = vadd.f32 %v8605_v29, %v8492_v40  ;;  %v8664_v28 = vmul.f32 %v8492_v40, %v8492_v40  ;;  %v8341_v22 = vadd.f32 %v8340_v0, %v8292_v5 }
 0x9e1   : > { %v8742_v62 = vadd.f32 %v8741_v32, %v8664_v28  ;;  %v8390_v60 = vadd.f32 %v8389_v44, %v8341_v22  ;;  %v19268_v32 = vld [vmem:[#allocation83_spill] sm:$0xff] }
 0x9e3   : > { %v8439_v35 = vadd.f32 %v8438_v43, %v8390_v60  ;;  %v8391_v7 = vpop.f32.mrf.mxu2  ;;  %v8440_v47 = vpop.f32.mrf.mxu3 }
 0x9e4   : > { %v8293_v16 = vpop.f32.mrf.mxu0  ;;  %v8342_v61 = vpop.f32.mrf.mxu1 }
 0x9e5   : > { %v8496_v30 = vadd.f32 %v8439_v35, %v19265_v15  ;;  %v8294_v3 = vadd.f32 %v8293_v16, %v18595_v54 }
 0x9e7   : > { %v8528_v23 = vpack.c.bf16 %v8496_v30, %v18593_v9  ;;  %v8668_v42 = vmul.f32 %v8496_v30, %v8496_v30  ;;  %v8343_v52 = vadd.f32 %v8342_v61, %v8294_v3  ;;  %v8607_v21 = vadd.f32 %v8606_v12, %v8496_v30  ;;  %v19269_v12 = vld [vmem:[#allocation86_spill] sm:$0xff]  ;;  %v19270_v3 = vld [vmem:[#allocation87_spill] sm:$0xff] }
 0x9e9   : > { %8544 = vst [vmem:[%s13011_s22 + $0x58] sm:$0xff] %v8528_v23  ;;  %v8392_v25 = vadd.f32 %v8391_v7, %v8343_v52  ;;  %v8743_v57 = vadd.f32 %v8742_v62, %v8668_v42  ;;  %v8552_v42 = vld [vmem:[%s18720_s3 + $0x18] sm:$0xff] }
 0x9eb   : > { %v8441_v48 = vadd.f32 %v8440_v47, %v8392_v25  ;;  %v8394_v38 = vpop.f32.mrf.mxu2  ;;  %v8443_v53 = vpop.f32.mrf.mxu3 }
 0x9ec   : > { %v8296_v20 = vpop.f32.mrf.mxu0  ;;  %v8345_v39 = vpop.f32.mrf.mxu1 }
 0x9ed   : > { %v8500_v27 = vadd.f32 %v8441_v48, %v19266_v37  ;;  %v8297_v59 = vadd.f32 %v8296_v20, %v18604_v14 }
 0x9ef   : > { %v8608_v6 = vadd.f32 %v8607_v21, %v8500_v27  ;;  %v8672_v54 = vmul.f32 %v8500_v27, %v8500_v27  ;;  %v8346_v63 = vadd.f32 %v8345_v39, %v8297_v59 }
 0x9f1   : > { %v8744_v9 = vadd.f32 %v8743_v57, %v8672_v54  ;;  %v8395_v17 = vadd.f32 %v8394_v38, %v8346_v63 }
 0x9f3   : > { %v8444_v45 = vadd.f32 %v8443_v53, %v8395_v17  ;;  %v8396_v19 = vpop.f32.mrf.mxu2  ;;  %v8445_v49 = vpop.f32.mrf.mxu3 }
 0x9f4   : > { %v8298_v1 = vpop.f32.mrf.mxu0  ;;  %v8347_v36 = vpop.f32.mrf.mxu1 }
 0x9f5   : > { %v8504_v41 = vadd.f32 %v8444_v45, %v19267_v24  ;;  %v8299_v10 = vadd.f32 %v8298_v1, %v18612_v46 }
 0x9f7   : > { %v8530_v50 = vpack.c.bf16 %v8504_v41, %v18610_v4  ;;  %v8676_v31 = vmul.f32 %v8504_v41, %v8504_v41  ;;  %v8348_v55 = vadd.f32 %v8347_v36, %v8299_v10  ;;  %v8609_v14 = vadd.f32 %v8608_v6, %v8504_v41 }
 0x9f9   : > { %8546 = vst [vmem:[%s13011_s22 + $0x68] sm:$0xff] %v8530_v50  ;;  %v8397_v33 = vadd.f32 %v8396_v19, %v8348_v55  ;;  %v8745_v13 = vadd.f32 %v8744_v9, %v8676_v31 }
 0x9fb   : > { %v8446_v18 = vadd.f32 %v8445_v49, %v8397_v33  ;;  %v8399_v11 = vpop.f32.mrf.mxu2  ;;  %v8448_v0 = vpop.f32.mrf.mxu3 }
 0x9fc   : > { %v8301_v29 = vpop.f32.mrf.mxu0  ;;  %v8350_v58 = vpop.f32.mrf.mxu1 }
 0x9fd   : > { %v8508_v51 = vadd.f32 %v8446_v18, %v19268_v32  ;;  %v8302_v44 = vadd.f32 %v8301_v29, %v18621_v8 }
 0x9ff   : > { %v8610_v43 = vadd.f32 %v8609_v14, %v8508_v51  ;;  %v8680_v46 = vmul.f32 %v8508_v51, %v8508_v51  ;;  %v8351_v2 = vadd.f32 %v8350_v58, %v8302_v44 }
 0xa01   : > { %v8746_v4 = vadd.f32 %v8745_v13, %v8680_v46  ;;  %v8400_v56 = vadd.f32 %v8399_v11, %v8351_v2 }
 0xa03   : > { %v8449_v40 = vadd.f32 %v8448_v0, %v8400_v56  ;;  %v8401_v60 = vpop.f32.mrf.mxu2  ;;  %v8450_v15 = vpop.f32.mrf.mxu3 }
 0xa04   : > { %v8303_v5 = vpop.f32.mrf.mxu0  ;;  %v8352_v62 = vpop.f32.mrf.mxu1 }
 0xa05   : > { %v8512_v28 = vadd.f32 %v8449_v40, %v19269_v12  ;;  %v8304_v22 = vadd.f32 %v8303_v5, %v18629_v26 }
 0xa07   : > { %v8532_v35 = vpack.c.bf16 %v8512_v28, %v18627_v34  ;;  %v8684_v7 = vmul.f32 %v8512_v28, %v8512_v28  ;;  %v8353_v47 = vadd.f32 %v8352_v62, %v8304_v22  ;;  %v8611_v8 = vadd.f32 %v8610_v43, %v8512_v28  ;;  %v8624_v34 = vld [vmem:[%s18720_s3 + $0x38] sm:$0xff] }
 0xa09   : > { %8548 = vst [vmem:[%s13011_s22 + $0x78] sm:$0xff] %v8532_v35  ;;  %v8402_v16 = vadd.f32 %v8401_v60, %v8353_v47  ;;  %v8747_v61 = vadd.f32 %v8746_v4, %v8684_v7 }
 0xa0b   : > { %v8451_v30 = vadd.f32 %v8450_v15, %v8402_v16 }
 0xa0d   : > { %v8516_v23 = vadd.f32 %v8451_v30, %v19270_v3 }
 0xa0f   : > { %v8612_v52 = vadd.f32 %v8611_v8, %v8516_v23  ;;  %v8688_v26 = vmul.f32 %v8516_v23, %v8516_v23 }
 0xa11   : > { %v8616_v21 = vadd.f32 %v8612_v52, %v8552_v42  ;;  %v8748_v25 = vadd.f32 %v8747_v61, %v8688_v26 }
 0xa13   : > { %8620 = vst [vmem:[%s18720_s3 + $0x18] sm:$0xff] %v8616_v21  ;;  %v8752_v57 = vadd.f32 %v8748_v25, %v8624_v34 }
 0xa15   : > { %8756 = vst [vmem:[%s18720_s3 + $0x38] sm:$0xff] %v8752_v57 }
 0xa16 PF: > { %s14_s14 = sadd.s32 1, %s12966_s14   ;;  %s19271_s12 = smov %s12962_s13 }
 0xa17   : > { %p11_p7 = scmp.ge.s32.totalorder %s14_s14, 4   ;;  %s19272_s13 = smov %s19274_s15 }
 0xa19   :  { %13 = sbr.rel (!%p11_p7) target bundleno = 2 (0x2), region = 82 }

</bundles_post_ra>
